<compile_context>
chip_gen: v6e
topology: v6e:2x2x1
jax: 0.10.0
libtpu: 0.0.40
codegen_flags: <defaults>
</compile_context>

<pallas_src>
import jax
import jax.numpy as jnp
from jax.experimental import pallas as pl
from jax.experimental.pallas import tpu as pltpu

EPS = 1e-5


def _conv_relu_bn(src_ref, w_ref, b_ref, g_ref, be_ref, *, n, hout, wout,
                  dil, kh, kw):
    """Conv2d(+bias) -> ReLU -> BatchNorm2d (batch stats) on a zero-padded
    NHWC VMEM ref.  Returns a (n*hout*wout, cout) f32 value (stays in VMEM)."""
    cin = w_ref.shape[1]
    cout = w_ref.shape[2]
    m = n * hout * wout

    # conv = accumulation of kh*kw shifted-slice matmuls (in-kernel im2col).
    acc = jnp.zeros((m, cout), jnp.float32)
    for t in range(kh * kw):
        i, j = divmod(t, kw)
        tap = src_ref[:, i * dil:i * dil + hout, j * dil:j * dil + wout, :]
        acc = acc + jnp.dot(tap.reshape(m, cin), w_ref[t],
                            preferred_element_type=jnp.float32)

    y = jnp.maximum(acc + b_ref[...], 0.0)                     # bias + ReLU

    # BatchNorm (training mode, biased variance over all N*H*W rows).
    mean = jnp.mean(y, axis=0, keepdims=True)                  # (1, cout)
    var = jnp.mean(jnp.square(y - mean), axis=0, keepdims=True)
    s = g_ref[...] * jax.lax.rsqrt(var + EPS)                  # (1, cout)
    t_ = be_ref[...] - mean * s
    return y * s + t_                                          # fused scale+shift


def _taps(w):
    # PyTorch Conv2d weight (Cout, Cin, KH, KW) -> per-tap (KH*KW, Cin, Cout),
    # tap index t = i*KW + j matching the in-kernel shifted-slice order.
    cout, cin, kh, kw = w.shape
    return jnp.transpose(w, (2, 3, 1, 0)).reshape(kh * kw, cin, cout)


def conv_block_forward(x_nchw, params, kernel_size, padding, dilation):
    w1, b1, g1, be1, w2, b2, g2, be2 = params
    kh = kw = kernel_size
    N, Cin, H, W = x_nchw.shape
    Cmid = w1.shape[0]
    Cout = w2.shape[0]
    Ho1 = H + 2 * padding - dilation * (kh - 1)
    Wo1 = W + 2 * padding - dilation * (kw - 1)
    Ho2 = Ho1 + 2 * padding - dilation * (kh - 1)
    Wo2 = Wo1 + 2 * padding - dilation * (kw - 1)
    M2 = N * Ho2 * Wo2

    def kernel(x_ref, w1_ref, b1_ref, g1_ref, be1_ref,
               w2_ref, b2_ref, g2_ref, be2_ref,
               o_ref, xpad_ref, y1pad_ref):
        # ---- layer 1: stage input into zero-padded NHWC scratch (1x HBM read)
        xpad_ref[...] = jnp.zeros(xpad_ref.shape, xpad_ref.dtype)
        xpad_ref[:, padding:padding + H, padding:padding + W, :] = x_ref[...]
        y1 = _conv_relu_bn(xpad_ref, w1_ref, b1_ref, g1_ref, be1_ref,
                           n=N, hout=Ho1, wout=Wo1, dil=dilation, kh=kh, kw=kw)

        # ---- layer 2: layer-1 activation never leaves VMEM ------------------
        y1pad_ref[...] = jnp.zeros(y1pad_ref.shape, y1pad_ref.dtype)
        y1pad_ref[:, padding:padding + Ho1, padding:padding + Wo1, :] = (
            y1.reshape(N, Ho1, Wo1, Cmid))
        y2 = _conv_relu_bn(y1pad_ref, w2_ref, b2_ref, g2_ref, be2_ref,
                           n=N, hout=Ho2, wout=Wo2, dil=dilation, kh=kh, kw=kw)

        # ---- lane-dense store: (Cout, M2) with M2 = N*Ho2*Wo2 on the lane axis
        o_ref[...] = jnp.transpose(y2, (1, 0))

    def full_spec(shape):
        nd = len(shape)
        return pl.BlockSpec(shape, lambda i, nd=nd: (0,) * nd)

    x_nhwc = jnp.transpose(x_nchw, (0, 2, 3, 1))               # NCHW -> NHWC
    args = (x_nhwc,
            _taps(w1), b1.reshape(1, -1), g1.reshape(1, -1), be1.reshape(1, -1),
            _taps(w2), b2.reshape(1, -1), g2.reshape(1, -1), be2.reshape(1, -1))

    out = pl.pallas_call(
        kernel,
        out_shape=jax.ShapeDtypeStruct((Cout, M2), jnp.float32),
        grid=(1,),
        in_specs=[full_spec(a.shape) for a in args],
        out_specs=full_spec((Cout, M2)),
        scratch_shapes=[
            pltpu.VMEM((N, H + 2 * padding, W + 2 * padding, Cin), jnp.float32),
            pltpu.VMEM((N, Ho1 + 2 * padding, Wo1 + 2 * padding, Cmid),
                       jnp.float32),
        ],
        compiler_params=pltpu.CompilerParams(
            dimension_semantics=("arbitrary",)),
    )(*args)

    # channel-major (Cout, N*Ho2*Wo2) -> NCHW (tiny boundary transpose)
    return jnp.transpose(out.reshape(Cout, N, Ho2, Wo2), (1, 0, 2, 3))


def reference_forward(x, params, kernel_size, padding, dilation):
    """Pure-JAX reference (lax conv) for correctness checking."""
    w1, b1, g1, be1, w2, b2, g2, be2 = params

    def conv(x, w):
        return jax.lax.conv_general_dilated(
            x, w, window_strides=(1, 1),
            padding=[(padding, padding), (padding, padding)],
            rhs_dilation=(dilation, dilation),
            dimension_numbers=("NCHW", "OIHW", "NCHW"))

    def bn(y, g, be):
        mean = jnp.mean(y, axis=(0, 2, 3), keepdims=True)
        var = jnp.mean(jnp.square(y - mean), axis=(0, 2, 3), keepdims=True)
        return ((y - mean) * jax.lax.rsqrt(var + EPS)
                * g.reshape(1, -1, 1, 1) + be.reshape(1, -1, 1, 1))

    y = jnp.maximum(conv(x, w1) + b1.reshape(1, -1, 1, 1), 0.0)
    y = bn(y, g1, be1)
    y = jnp.maximum(conv(y, w2) + b2.reshape(1, -1, 1, 1), 0.0)
    y = bn(y, g2, be2)
    return y


if __name__ == "__main__":
    # Module config: ConvBlock(in_channels=4, out_channels=8, kernel_size=3,
    #                          padding=1, dilation=1)
    N, CIN, COUT, H, W = 2, 4, 8, 16, 16
    K, PAD, DIL = 3, 1, 1

    key = jax.random.PRNGKey(0)
    k_x, k_w1, k_b1, k_w2, k_b2 = jax.random.split(key, 5)

    x = jax.random.normal(k_x, (N, CIN, H, W), dtype=jnp.float32)

    # deterministic synthetic parameters (BatchNorm init: gamma=1, beta=0)
    w1 = 0.1 * jax.random.normal(k_w1, (COUT, CIN, K, K), dtype=jnp.float32)
    b1 = 0.1 * jax.random.normal(k_b1, (COUT,), dtype=jnp.float32)
    g1 = jnp.ones((COUT,), jnp.float32)
    be1 = jnp.zeros((COUT,), jnp.float32)
    w2 = 0.1 * jax.random.normal(k_w2, (COUT, COUT, K, K), dtype=jnp.float32)
    b2 = 0.1 * jax.random.normal(k_b2, (COUT,), dtype=jnp.float32)
    g2 = jnp.ones((COUT,), jnp.float32)
    be2 = jnp.zeros((COUT,), jnp.float32)

    params = (w1, b1, g1, be1, w2, b2, g2, be2)

    out = conv_block_forward(x, params, K, PAD, DIL)
    out = jax.block_until_ready(out)

    ref = jax.block_until_ready(reference_forward(x, params, K, PAD, DIL))
    assert out.shape == (N, COUT, H, W), out.shape
    assert jnp.allclose(out, ref, atol=1e-3, rtol=1e-3), float(
        jnp.max(jnp.abs(out - ref)))

    print("KERNEL_OK")
</pallas_src>

<mosaic_0001>
module attributes {stable_mosaic.version = 11 : i64} {
  func.func @kernel(%arg0: i32, %arg1: memref<2x16x16x4xf32, #tpu.memory_space<vmem>>, %arg2: memref<9x4x8xf32, #tpu.memory_space<vmem>>, %arg3: memref<1x8xf32, #tpu.memory_space<vmem>>, %arg4: memref<1x8xf32, #tpu.memory_space<vmem>>, %arg5: memref<1x8xf32, #tpu.memory_space<vmem>>, %arg6: memref<9x8x8xf32, #tpu.memory_space<vmem>>, %arg7: memref<1x8xf32, #tpu.memory_space<vmem>>, %arg8: memref<1x8xf32, #tpu.memory_space<vmem>>, %arg9: memref<1x8xf32, #tpu.memory_space<vmem>>, %arg10: memref<8x512xf32, #tpu.memory_space<vmem>>, %arg11: memref<2x18x18x4xf32, #tpu.memory_space<vmem>>, %arg12: memref<2x18x18x8xf32, #tpu.memory_space<vmem>>) attributes {dimension_semantics = [#tpu.dimension_semantics<arbitrary>], iteration_bounds = array<i64: 1>, scalar_prefetch = 0 : i64, scratch_operands = 2 : i64, tpu.core_type = #tpu.core_type<tc>, window_params = [{pipeline_mode = #tpu.pipeline_mode<synchronous>, transform_indices = @transform_0, window_bounds = array<i64: 2, 16, 16, 4>}, {pipeline_mode = #tpu.pipeline_mode<synchronous>, transform_indices = @transform_1, window_bounds = array<i64: 9, 4, 8>}, {pipeline_mode = #tpu.pipeline_mode<synchronous>, transform_indices = @transform_2, window_bounds = array<i64: 1, 8>}, {pipeline_mode = #tpu.pipeline_mode<synchronous>, transform_indices = @transform_3, window_bounds = array<i64: 1, 8>}, {pipeline_mode = #tpu.pipeline_mode<synchronous>, transform_indices = @transform_4, window_bounds = array<i64: 1, 8>}, {pipeline_mode = #tpu.pipeline_mode<synchronous>, transform_indices = @transform_5, window_bounds = array<i64: 9, 8, 8>}, {pipeline_mode = #tpu.pipeline_mode<synchronous>, transform_indices = @transform_6, window_bounds = array<i64: 1, 8>}, {pipeline_mode = #tpu.pipeline_mode<synchronous>, transform_indices = @transform_7, window_bounds = array<i64: 1, 8>}, {pipeline_mode = #tpu.pipeline_mode<synchronous>, transform_indices = @transform_8, window_bounds = array<i64: 1, 8>}, {pipeline_mode = #tpu.pipeline_mode<synchronous>, transform_indices = @transform_9, window_bounds = array<i64: 8, 512>}]} {
    %cst = arith.constant 0.000000e+00 : f32
    %0 = vector.broadcast %cst : f32 to vector<2x18x18x4xf32>
    %c0 = arith.constant 0 : index
    %c0_0 = arith.constant 0 : index
    %c0_1 = arith.constant 0 : index
    %c0_2 = arith.constant 0 : index
    %1 = vector.load %arg11[%c0, %c0_0, %c0_1, %c0_2] : memref<2x18x18x4xf32, #tpu.memory_space<vmem>>, vector<2x18x18x4xf32>
    tpu.vector_store %arg11[%c0, %c0_0, %c0_1, %c0_2], %0 {strides = array<i32>} : memref<2x18x18x4xf32, #tpu.memory_space<vmem>>, vector<2x18x18x4xf32>,
    %c0_3 = arith.constant 0 : index
    %c0_4 = arith.constant 0 : index
    %c0_5 = arith.constant 0 : index
    %c0_6 = arith.constant 0 : index
    %2 = vector.load %arg1[%c0_3, %c0_4, %c0_5, %c0_6] : memref<2x16x16x4xf32, #tpu.memory_space<vmem>>, vector<2x16x16x4xf32>
    %c0_7 = arith.constant 0 : index
    %c1 = arith.constant 1 : index
    %c1_8 = arith.constant 1 : index
    %c0_9 = arith.constant 0 : index
    %3 = vector.load %arg11[%c0_7, %c1, %c1_8, %c0_9] : memref<2x18x18x4xf32, #tpu.memory_space<vmem>>, vector<2x16x16x4xf32>
    tpu.vector_store %arg11[%c0_7, %c1, %c1_8, %c0_9], %2 {strides = array<i32>} : memref<2x18x18x4xf32, #tpu.memory_space<vmem>>, vector<2x16x16x4xf32>,
    %cst_10 = arith.constant 0.000000e+00 : f32
    %4 = vector.broadcast %cst_10 : f32 to vector<512x8xf32>
    %c0_11 = arith.constant 0 : index
    %c0_12 = arith.constant 0 : index
    %c0_13 = arith.constant 0 : index
    %c0_14 = arith.constant 0 : index
    %5 = vector.load %arg11[%c0_11, %c0_12, %c0_13, %c0_14] : memref<2x18x18x4xf32, #tpu.memory_space<vmem>>, vector<2x16x16x4xf32>
    %6 = vector.shape_cast %5 : vector<2x16x16x4xf32> to vector<512x4xf32>
    %c0_15 = arith.constant 0 : index
    %c0_16 = arith.constant 0 : index
    %c0_17 = arith.constant 0 : index
    %7 = vector.load %arg2[%c0_15, %c0_16, %c0_17] : memref<9x4x8xf32, #tpu.memory_space<vmem>>, vector<1x4x8xf32>
    %8 = vector.shape_cast %7 : vector<1x4x8xf32> to vector<4x8xf32>
    %cst_18 = arith.constant dense<0.000000e+00> : vector<512x8xf32>
    %9 = tpu.matmul %6, %8, %cst_18 {dimension_numbers = #tpu.dot_dimension_numbers<[1], [0], [0], [1], [0, 0, 1, 1], [], []>} : vector<512x4xf32>, vector<4x8xf32>, vector<512x8xf32> -> vector<512x8xf32>
    %10 = arith.addf %4, %9 : vector<512x8xf32>
    %c0_19 = arith.constant 0 : index
    %c0_20 = arith.constant 0 : index
    %c1_21 = arith.constant 1 : index
    %c0_22 = arith.constant 0 : index
    %11 = vector.load %arg11[%c0_19, %c0_20, %c1_21, %c0_22] : memref<2x18x18x4xf32, #tpu.memory_space<vmem>>, vector<2x16x16x4xf32>
    %12 = vector.shape_cast %11 : vector<2x16x16x4xf32> to vector<512x4xf32>
    %c1_23 = arith.constant 1 : index
    %c0_24 = arith.constant 0 : index
    %c0_25 = arith.constant 0 : index
    %13 = vector.load %arg2[%c1_23, %c0_24, %c0_25] : memref<9x4x8xf32, #tpu.memory_space<vmem>>, vector<1x4x8xf32>
    %14 = vector.shape_cast %13 : vector<1x4x8xf32> to vector<4x8xf32>
    %cst_26 = arith.constant dense<0.000000e+00> : vector<512x8xf32>
    %15 = tpu.matmul %12, %14, %cst_26 {dimension_numbers = #tpu.dot_dimension_numbers<[1], [0], [0], [1], [0, 0, 1, 1], [], []>} : vector<512x4xf32>, vector<4x8xf32>, vector<512x8xf32> -> vector<512x8xf32>
    %16 = arith.addf %10, %15 : vector<512x8xf32>
    %c0_27 = arith.constant 0 : index
    %c0_28 = arith.constant 0 : index
    %c2 = arith.constant 2 : index
    %c0_29 = arith.constant 0 : index
    %17 = vector.load %arg11[%c0_27, %c0_28, %c2, %c0_29] : memref<2x18x18x4xf32, #tpu.memory_space<vmem>>, vector<2x16x16x4xf32>
    %18 = vector.shape_cast %17 : vector<2x16x16x4xf32> to vector<512x4xf32>
    %c2_30 = arith.constant 2 : index
    %c0_31 = arith.constant 0 : index
    %c0_32 = arith.constant 0 : index
    %19 = vector.load %arg2[%c2_30, %c0_31, %c0_32] : memref<9x4x8xf32, #tpu.memory_space<vmem>>, vector<1x4x8xf32>
    %20 = vector.shape_cast %19 : vector<1x4x8xf32> to vector<4x8xf32>
    %cst_33 = arith.constant dense<0.000000e+00> : vector<512x8xf32>
    %21 = tpu.matmul %18, %20, %cst_33 {dimension_numbers = #tpu.dot_dimension_numbers<[1], [0], [0], [1], [0, 0, 1, 1], [], []>} : vector<512x4xf32>, vector<4x8xf32>, vector<512x8xf32> -> vector<512x8xf32>
    %22 = arith.addf %16, %21 : vector<512x8xf32>
    %c0_34 = arith.constant 0 : index
    %c1_35 = arith.constant 1 : index
    %c0_36 = arith.constant 0 : index
    %c0_37 = arith.constant 0 : index
    %23 = vector.load %arg11[%c0_34, %c1_35, %c0_36, %c0_37] : memref<2x18x18x4xf32, #tpu.memory_space<vmem>>, vector<2x16x16x4xf32>
    %24 = vector.shape_cast %23 : vector<2x16x16x4xf32> to vector<512x4xf32>
    %c3 = arith.constant 3 : index
    %c0_38 = arith.constant 0 : index
    %c0_39 = arith.constant 0 : index
    %25 = vector.load %arg2[%c3, %c0_38, %c0_39] : memref<9x4x8xf32, #tpu.memory_space<vmem>>, vector<1x4x8xf32>
    %26 = vector.shape_cast %25 : vector<1x4x8xf32> to vector<4x8xf32>
    %cst_40 = arith.constant dense<0.000000e+00> : vector<512x8xf32>
    %27 = tpu.matmul %24, %26, %cst_40 {dimension_numbers = #tpu.dot_dimension_numbers<[1], [0], [0], [1], [0, 0, 1, 1], [], []>} : vector<512x4xf32>, vector<4x8xf32>, vector<512x8xf32> -> vector<512x8xf32>
    %28 = arith.addf %22, %27 : vector<512x8xf32>
    %c0_41 = arith.constant 0 : index
    %c1_42 = arith.constant 1 : index
    %c1_43 = arith.constant 1 : index
    %c0_44 = arith.constant 0 : index
    %29 = vector.load %arg11[%c0_41, %c1_42, %c1_43, %c0_44] : memref<2x18x18x4xf32, #tpu.memory_space<vmem>>, vector<2x16x16x4xf32>
    %30 = vector.shape_cast %29 : vector<2x16x16x4xf32> to vector<512x4xf32>
    %c4 = arith.constant 4 : index
    %c0_45 = arith.constant 0 : index
    %c0_46 = arith.constant 0 : index
    %31 = vector.load %arg2[%c4, %c0_45, %c0_46] : memref<9x4x8xf32, #tpu.memory_space<vmem>>, vector<1x4x8xf32>
    %32 = vector.shape_cast %31 : vector<1x4x8xf32> to vector<4x8xf32>
    %cst_47 = arith.constant dense<0.000000e+00> : vector<512x8xf32>
    %33 = tpu.matmul %30, %32, %cst_47 {dimension_numbers = #tpu.dot_dimension_numbers<[1], [0], [0], [1], [0, 0, 1, 1], [], []>} : vector<512x4xf32>, vector<4x8xf32>, vector<512x8xf32> -> vector<512x8xf32>
    %34 = arith.addf %28, %33 : vector<512x8xf32>
    %c0_48 = arith.constant 0 : index
    %c1_49 = arith.constant 1 : index
    %c2_50 = arith.constant 2 : index
    %c0_51 = arith.constant 0 : index
    %35 = vector.load %arg11[%c0_48, %c1_49, %c2_50, %c0_51] : memref<2x18x18x4xf32, #tpu.memory_space<vmem>>, vector<2x16x16x4xf32>
    %36 = vector.shape_cast %35 : vector<2x16x16x4xf32> to vector<512x4xf32>
    %c5 = arith.constant 5 : index
    %c0_52 = arith.constant 0 : index
    %c0_53 = arith.constant 0 : index
    %37 = vector.load %arg2[%c5, %c0_52, %c0_53] : memref<9x4x8xf32, #tpu.memory_space<vmem>>, vector<1x4x8xf32>
    %38 = vector.shape_cast %37 : vector<1x4x8xf32> to vector<4x8xf32>
    %cst_54 = arith.constant dense<0.000000e+00> : vector<512x8xf32>
    %39 = tpu.matmul %36, %38, %cst_54 {dimension_numbers = #tpu.dot_dimension_numbers<[1], [0], [0], [1], [0, 0, 1, 1], [], []>} : vector<512x4xf32>, vector<4x8xf32>, vector<512x8xf32> -> vector<512x8xf32>
    %40 = arith.addf %34, %39 : vector<512x8xf32>
    %c0_55 = arith.constant 0 : index
    %c2_56 = arith.constant 2 : index
    %c0_57 = arith.constant 0 : index
    %c0_58 = arith.constant 0 : index
    %41 = vector.load %arg11[%c0_55, %c2_56, %c0_57, %c0_58] : memref<2x18x18x4xf32, #tpu.memory_space<vmem>>, vector<2x16x16x4xf32>
    %42 = vector.shape_cast %41 : vector<2x16x16x4xf32> to vector<512x4xf32>
    %c6 = arith.constant 6 : index
    %c0_59 = arith.constant 0 : index
    %c0_60 = arith.constant 0 : index
    %43 = vector.load %arg2[%c6, %c0_59, %c0_60] : memref<9x4x8xf32, #tpu.memory_space<vmem>>, vector<1x4x8xf32>
    %44 = vector.shape_cast %43 : vector<1x4x8xf32> to vector<4x8xf32>
    %cst_61 = arith.constant dense<0.000000e+00> : vector<512x8xf32>
    %45 = tpu.matmul %42, %44, %cst_61 {dimension_numbers = #tpu.dot_dimension_numbers<[1], [0], [0], [1], [0, 0, 1, 1], [], []>} : vector<512x4xf32>, vector<4x8xf32>, vector<512x8xf32> -> vector<512x8xf32>
    %46 = arith.addf %40, %45 : vector<512x8xf32>
    %c0_62 = arith.constant 0 : index
    %c2_63 = arith.constant 2 : index
    %c1_64 = arith.constant 1 : index
    %c0_65 = arith.constant 0 : index
    %47 = vector.load %arg11[%c0_62, %c2_63, %c1_64, %c0_65] : memref<2x18x18x4xf32, #tpu.memory_space<vmem>>, vector<2x16x16x4xf32>
    %48 = vector.shape_cast %47 : vector<2x16x16x4xf32> to vector<512x4xf32>
    %c7 = arith.constant 7 : index
    %c0_66 = arith.constant 0 : index
    %c0_67 = arith.constant 0 : index
    %49 = vector.load %arg2[%c7, %c0_66, %c0_67] : memref<9x4x8xf32, #tpu.memory_space<vmem>>, vector<1x4x8xf32>
    %50 = vector.shape_cast %49 : vector<1x4x8xf32> to vector<4x8xf32>
    %cst_68 = arith.constant dense<0.000000e+00> : vector<512x8xf32>
    %51 = tpu.matmul %48, %50, %cst_68 {dimension_numbers = #tpu.dot_dimension_numbers<[1], [0], [0], [1], [0, 0, 1, 1], [], []>} : vector<512x4xf32>, vector<4x8xf32>, vector<512x8xf32> -> vector<512x8xf32>
    %52 = arith.addf %46, %51 : vector<512x8xf32>
    %c0_69 = arith.constant 0 : index
    %c2_70 = arith.constant 2 : index
    %c2_71 = arith.constant 2 : index
    %c0_72 = arith.constant 0 : index
    %53 = vector.load %arg11[%c0_69, %c2_70, %c2_71, %c0_72] : memref<2x18x18x4xf32, #tpu.memory_space<vmem>>, vector<2x16x16x4xf32>
    %54 = vector.shape_cast %53 : vector<2x16x16x4xf32> to vector<512x4xf32>
    %c8 = arith.constant 8 : index
    %c0_73 = arith.constant 0 : index
    %c0_74 = arith.constant 0 : index
    %55 = vector.load %arg2[%c8, %c0_73, %c0_74] : memref<9x4x8xf32, #tpu.memory_space<vmem>>, vector<1x4x8xf32>
    %56 = vector.shape_cast %55 : vector<1x4x8xf32> to vector<4x8xf32>
    %cst_75 = arith.constant dense<0.000000e+00> : vector<512x8xf32>
    %57 = tpu.matmul %54, %56, %cst_75 {dimension_numbers = #tpu.dot_dimension_numbers<[1], [0], [0], [1], [0, 0, 1, 1], [], []>} : vector<512x4xf32>, vector<4x8xf32>, vector<512x8xf32> -> vector<512x8xf32>
    %58 = arith.addf %52, %57 : vector<512x8xf32>
    %c0_76 = arith.constant 0 : index
    %c0_77 = arith.constant 0 : index
    %59 = vector.load %arg3[%c0_76, %c0_77] : memref<1x8xf32, #tpu.memory_space<vmem>>, vector<1x8xf32>
    %60 = vector.broadcast %59 : vector<1x8xf32> to vector<512x8xf32>
    %61 = arith.addf %58, %60 : vector<512x8xf32>
    %cst_78 = arith.constant 0.000000e+00 : f32
    %62 = vector.broadcast %cst_78 : f32 to vector<512x8xf32>
    %63 = arith.maximumf %61, %62 : vector<512x8xf32>
    %cst_79 = arith.constant dense<0.000000e+00> : vector<8xf32>
    %64 = vector.multi_reduction <add>, %63, %cst_79 [0] : vector<512x8xf32> to vector<8xf32>
    %65 = vector.shape_cast %64 : vector<8xf32> to vector<1x8xf32>
    %cst_80 = arith.constant 5.120000e+02 : f32
    %66 = vector.broadcast %cst_80 : f32 to vector<1x8xf32>
    %67 = arith.divf %65, %66 : vector<1x8xf32>
    %68 = vector.broadcast %67 : vector<1x8xf32> to vector<512x8xf32>
    %69 = arith.subf %63, %68 : vector<512x8xf32>
    %70 = arith.mulf %69, %69 : vector<512x8xf32>
    %cst_81 = arith.constant dense<0.000000e+00> : vector<8xf32>
    %71 = vector.multi_reduction <add>, %70, %cst_81 [0] : vector<512x8xf32> to vector<8xf32>
    %72 = vector.shape_cast %71 : vector<8xf32> to vector<1x8xf32>
    %cst_82 = arith.constant 5.120000e+02 : f32
    %73 = vector.broadcast %cst_82 : f32 to vector<1x8xf32>
    %74 = arith.divf %72, %73 : vector<1x8xf32>
    %c0_83 = arith.constant 0 : index
    %c0_84 = arith.constant 0 : index
    %75 = vector.load %arg4[%c0_83, %c0_84] : memref<1x8xf32, #tpu.memory_space<vmem>>, vector<1x8xf32>
    %cst_85 = arith.constant 9.99999974E-6 : f32
    %76 = vector.broadcast %cst_85 : f32 to vector<1x8xf32>
    %77 = arith.addf %74, %76 : vector<1x8xf32>
    %78 = math.rsqrt %77 : vector<1x8xf32>
    %79 = arith.mulf %75, %78 : vector<1x8xf32>
    %c0_86 = arith.constant 0 : index
    %c0_87 = arith.constant 0 : index
    %80 = vector.load %arg5[%c0_86, %c0_87] : memref<1x8xf32, #tpu.memory_space<vmem>>, vector<1x8xf32>
    %81 = arith.mulf %67, %79 : vector<1x8xf32>
    %82 = arith.subf %80, %81 : vector<1x8xf32>
    %83 = vector.broadcast %79 : vector<1x8xf32> to vector<512x8xf32>
    %84 = arith.mulf %63, %83 : vector<512x8xf32>
    %85 = vector.broadcast %82 : vector<1x8xf32> to vector<512x8xf32>
    %86 = arith.addf %84, %85 : vector<512x8xf32>
    %cst_88 = arith.constant 0.000000e+00 : f32
    %87 = vector.broadcast %cst_88 : f32 to vector<2x18x18x8xf32>
    %c0_89 = arith.constant 0 : index
    %c0_90 = arith.constant 0 : index
    %c0_91 = arith.constant 0 : index
    %c0_92 = arith.constant 0 : index
    %88 = vector.load %arg12[%c0_89, %c0_90, %c0_91, %c0_92] : memref<2x18x18x8xf32, #tpu.memory_space<vmem>>, vector<2x18x18x8xf32>
    tpu.vector_store %arg12[%c0_89, %c0_90, %c0_91, %c0_92], %87 {strides = array<i32>} : memref<2x18x18x8xf32, #tpu.memory_space<vmem>>, vector<2x18x18x8xf32>,
    %89 = vector.shape_cast %86 : vector<512x8xf32> to vector<2x16x16x8xf32>
    %c0_93 = arith.constant 0 : index
    %c1_94 = arith.constant 1 : index
    %c1_95 = arith.constant 1 : index
    %c0_96 = arith.constant 0 : index
    %90 = vector.load %arg12[%c0_93, %c1_94, %c1_95, %c0_96] : memref<2x18x18x8xf32, #tpu.memory_space<vmem>>, vector<2x16x16x8xf32>
    tpu.vector_store %arg12[%c0_93, %c1_94, %c1_95, %c0_96], %89 {strides = array<i32>} : memref<2x18x18x8xf32, #tpu.memory_space<vmem>>, vector<2x16x16x8xf32>,
    %cst_97 = arith.constant 0.000000e+00 : f32
    %91 = vector.broadcast %cst_97 : f32 to vector<512x8xf32>
    %c0_98 = arith.constant 0 : index
    %c0_99 = arith.constant 0 : index
    %c0_100 = arith.constant 0 : index
    %c0_101 = arith.constant 0 : index
    %92 = vector.load %arg12[%c0_98, %c0_99, %c0_100, %c0_101] : memref<2x18x18x8xf32, #tpu.memory_space<vmem>>, vector<2x16x16x8xf32>
    %93 = vector.shape_cast %92 : vector<2x16x16x8xf32> to vector<512x8xf32>
    %c0_102 = arith.constant 0 : index
    %c0_103 = arith.constant 0 : index
    %c0_104 = arith.constant 0 : index
    %94 = vector.load %arg6[%c0_102, %c0_103, %c0_104] : memref<9x8x8xf32, #tpu.memory_space<vmem>>, vector<1x8x8xf32>
    %95 = vector.shape_cast %94 : vector<1x8x8xf32> to vector<8x8xf32>
    %cst_105 = arith.constant dense<0.000000e+00> : vector<512x8xf32>
    %96 = tpu.matmul %93, %95, %cst_105 {dimension_numbers = #tpu.dot_dimension_numbers<[1], [0], [0], [1], [0, 0, 1, 1], [], []>} : vector<512x8xf32>, vector<8x8xf32>, vector<512x8xf32> -> vector<512x8xf32>
    %97 = arith.addf %91, %96 : vector<512x8xf32>
    %c0_106 = arith.constant 0 : index
    %c0_107 = arith.constant 0 : index
    %c1_108 = arith.constant 1 : index
    %c0_109 = arith.constant 0 : index
    %98 = vector.load %arg12[%c0_106, %c0_107, %c1_108, %c0_109] : memref<2x18x18x8xf32, #tpu.memory_space<vmem>>, vector<2x16x16x8xf32>
    %99 = vector.shape_cast %98 : vector<2x16x16x8xf32> to vector<512x8xf32>
    %c1_110 = arith.constant 1 : index
    %c0_111 = arith.constant 0 : index
    %c0_112 = arith.constant 0 : index
    %100 = vector.load %arg6[%c1_110, %c0_111, %c0_112] : memref<9x8x8xf32, #tpu.memory_space<vmem>>, vector<1x8x8xf32>
    %101 = vector.shape_cast %100 : vector<1x8x8xf32> to vector<8x8xf32>
    %cst_113 = arith.constant dense<0.000000e+00> : vector<512x8xf32>
    %102 = tpu.matmul %99, %101, %cst_113 {dimension_numbers = #tpu.dot_dimension_numbers<[1], [0], [0], [1], [0, 0, 1, 1], [], []>} : vector<512x8xf32>, vector<8x8xf32>, vector<512x8xf32> -> vector<512x8xf32>
    %103 = arith.addf %97, %102 : vector<512x8xf32>
    %c0_114 = arith.constant 0 : index
    %c0_115 = arith.constant 0 : index
    %c2_116 = arith.constant 2 : index
    %c0_117 = arith.constant 0 : index
    %104 = vector.load %arg12[%c0_114, %c0_115, %c2_116, %c0_117] : memref<2x18x18x8xf32, #tpu.memory_space<vmem>>, vector<2x16x16x8xf32>
    %105 = vector.shape_cast %104 : vector<2x16x16x8xf32> to vector<512x8xf32>
    %c2_118 = arith.constant 2 : index
    %c0_119 = arith.constant 0 : index
    %c0_120 = arith.constant 0 : index
    %106 = vector.load %arg6[%c2_118, %c0_119, %c0_120] : memref<9x8x8xf32, #tpu.memory_space<vmem>>, vector<1x8x8xf32>
    %107 = vector.shape_cast %106 : vector<1x8x8xf32> to vector<8x8xf32>
    %cst_121 = arith.constant dense<0.000000e+00> : vector<512x8xf32>
    %108 = tpu.matmul %105, %107, %cst_121 {dimension_numbers = #tpu.dot_dimension_numbers<[1], [0], [0], [1], [0, 0, 1, 1], [], []>} : vector<512x8xf32>, vector<8x8xf32>, vector<512x8xf32> -> vector<512x8xf32>
    %109 = arith.addf %103, %108 : vector<512x8xf32>
    %c0_122 = arith.constant 0 : index
    %c1_123 = arith.constant 1 : index
    %c0_124 = arith.constant 0 : index
    %c0_125 = arith.constant 0 : index
    %110 = vector.load %arg12[%c0_122, %c1_123, %c0_124, %c0_125] : memref<2x18x18x8xf32, #tpu.memory_space<vmem>>, vector<2x16x16x8xf32>
    %111 = vector.shape_cast %110 : vector<2x16x16x8xf32> to vector<512x8xf32>
    %c3_126 = arith.constant 3 : index
    %c0_127 = arith.constant 0 : index
    %c0_128 = arith.constant 0 : index
    %112 = vector.load %arg6[%c3_126, %c0_127, %c0_128] : memref<9x8x8xf32, #tpu.memory_space<vmem>>, vector<1x8x8xf32>
    %113 = vector.shape_cast %112 : vector<1x8x8xf32> to vector<8x8xf32>
    %cst_129 = arith.constant dense<0.000000e+00> : vector<512x8xf32>
    %114 = tpu.matmul %111, %113, %cst_129 {dimension_numbers = #tpu.dot_dimension_numbers<[1], [0], [0], [1], [0, 0, 1, 1], [], []>} : vector<512x8xf32>, vector<8x8xf32>, vector<512x8xf32> -> vector<512x8xf32>
    %115 = arith.addf %109, %114 : vector<512x8xf32>
    %c0_130 = arith.constant 0 : index
    %c1_131 = arith.constant 1 : index
    %c1_132 = arith.constant 1 : index
    %c0_133 = arith.constant 0 : index
    %116 = vector.load %arg12[%c0_130, %c1_131, %c1_132, %c0_133] : memref<2x18x18x8xf32, #tpu.memory_space<vmem>>, vector<2x16x16x8xf32>
    %117 = vector.shape_cast %116 : vector<2x16x16x8xf32> to vector<512x8xf32>
    %c4_134 = arith.constant 4 : index
    %c0_135 = arith.constant 0 : index
    %c0_136 = arith.constant 0 : index
    %118 = vector.load %arg6[%c4_134, %c0_135, %c0_136] : memref<9x8x8xf32, #tpu.memory_space<vmem>>, vector<1x8x8xf32>
    %119 = vector.shape_cast %118 : vector<1x8x8xf32> to vector<8x8xf32>
    %cst_137 = arith.constant dense<0.000000e+00> : vector<512x8xf32>
    %120 = tpu.matmul %117, %119, %cst_137 {dimension_numbers = #tpu.dot_dimension_numbers<[1], [0], [0], [1], [0, 0, 1, 1], [], []>} : vector<512x8xf32>, vector<8x8xf32>, vector<512x8xf32> -> vector<512x8xf32>
    %121 = arith.addf %115, %120 : vector<512x8xf32>
    %c0_138 = arith.constant 0 : index
    %c1_139 = arith.constant 1 : index
    %c2_140 = arith.constant 2 : index
    %c0_141 = arith.constant 0 : index
    %122 = vector.load %arg12[%c0_138, %c1_139, %c2_140, %c0_141] : memref<2x18x18x8xf32, #tpu.memory_space<vmem>>, vector<2x16x16x8xf32>
    %123 = vector.shape_cast %122 : vector<2x16x16x8xf32> to vector<512x8xf32>
    %c5_142 = arith.constant 5 : index
    %c0_143 = arith.constant 0 : index
    %c0_144 = arith.constant 0 : index
    %124 = vector.load %arg6[%c5_142, %c0_143, %c0_144] : memref<9x8x8xf32, #tpu.memory_space<vmem>>, vector<1x8x8xf32>
    %125 = vector.shape_cast %124 : vector<1x8x8xf32> to vector<8x8xf32>
    %cst_145 = arith.constant dense<0.000000e+00> : vector<512x8xf32>
    %126 = tpu.matmul %123, %125, %cst_145 {dimension_numbers = #tpu.dot_dimension_numbers<[1], [0], [0], [1], [0, 0, 1, 1], [], []>} : vector<512x8xf32>, vector<8x8xf32>, vector<512x8xf32> -> vector<512x8xf32>
    %127 = arith.addf %121, %126 : vector<512x8xf32>
    %c0_146 = arith.constant 0 : index
    %c2_147 = arith.constant 2 : index
    %c0_148 = arith.constant 0 : index
    %c0_149 = arith.constant 0 : index
    %128 = vector.load %arg12[%c0_146, %c2_147, %c0_148, %c0_149] : memref<2x18x18x8xf32, #tpu.memory_space<vmem>>, vector<2x16x16x8xf32>
    %129 = vector.shape_cast %128 : vector<2x16x16x8xf32> to vector<512x8xf32>
    %c6_150 = arith.constant 6 : index
    %c0_151 = arith.constant 0 : index
    %c0_152 = arith.constant 0 : index
    %130 = vector.load %arg6[%c6_150, %c0_151, %c0_152] : memref<9x8x8xf32, #tpu.memory_space<vmem>>, vector<1x8x8xf32>
    %131 = vector.shape_cast %130 : vector<1x8x8xf32> to vector<8x8xf32>
    %cst_153 = arith.constant dense<0.000000e+00> : vector<512x8xf32>
    %132 = tpu.matmul %129, %131, %cst_153 {dimension_numbers = #tpu.dot_dimension_numbers<[1], [0], [0], [1], [0, 0, 1, 1], [], []>} : vector<512x8xf32>, vector<8x8xf32>, vector<512x8xf32> -> vector<512x8xf32>
    %133 = arith.addf %127, %132 : vector<512x8xf32>
    %c0_154 = arith.constant 0 : index
    %c2_155 = arith.constant 2 : index
    %c1_156 = arith.constant 1 : index
    %c0_157 = arith.constant 0 : index
    %134 = vector.load %arg12[%c0_154, %c2_155, %c1_156, %c0_157] : memref<2x18x18x8xf32, #tpu.memory_space<vmem>>, vector<2x16x16x8xf32>
    %135 = vector.shape_cast %134 : vector<2x16x16x8xf32> to vector<512x8xf32>
    %c7_158 = arith.constant 7 : index
    %c0_159 = arith.constant 0 : index
    %c0_160 = arith.constant 0 : index
    %136 = vector.load %arg6[%c7_158, %c0_159, %c0_160] : memref<9x8x8xf32, #tpu.memory_space<vmem>>, vector<1x8x8xf32>
    %137 = vector.shape_cast %136 : vector<1x8x8xf32> to vector<8x8xf32>
    %cst_161 = arith.constant dense<0.000000e+00> : vector<512x8xf32>
    %138 = tpu.matmul %135, %137, %cst_161 {dimension_numbers = #tpu.dot_dimension_numbers<[1], [0], [0], [1], [0, 0, 1, 1], [], []>} : vector<512x8xf32>, vector<8x8xf32>, vector<512x8xf32> -> vector<512x8xf32>
    %139 = arith.addf %133, %138 : vector<512x8xf32>
    %c0_162 = arith.constant 0 : index
    %c2_163 = arith.constant 2 : index
    %c2_164 = arith.constant 2 : index
    %c0_165 = arith.constant 0 : index
    %140 = vector.load %arg12[%c0_162, %c2_163, %c2_164, %c0_165] : memref<2x18x18x8xf32, #tpu.memory_space<vmem>>, vector<2x16x16x8xf32>
    %141 = vector.shape_cast %140 : vector<2x16x16x8xf32> to vector<512x8xf32>
    %c8_166 = arith.constant 8 : index
    %c0_167 = arith.constant 0 : index
    %c0_168 = arith.constant 0 : index
    %142 = vector.load %arg6[%c8_166, %c0_167, %c0_168] : memref<9x8x8xf32, #tpu.memory_space<vmem>>, vector<1x8x8xf32>
    %143 = vector.shape_cast %142 : vector<1x8x8xf32> to vector<8x8xf32>
    %cst_169 = arith.constant dense<0.000000e+00> : vector<512x8xf32>
    %144 = tpu.matmul %141, %143, %cst_169 {dimension_numbers = #tpu.dot_dimension_numbers<[1], [0], [0], [1], [0, 0, 1, 1], [], []>} : vector<512x8xf32>, vector<8x8xf32>, vector<512x8xf32> -> vector<512x8xf32>
    %145 = arith.addf %139, %144 : vector<512x8xf32>
    %c0_170 = arith.constant 0 : index
    %c0_171 = arith.constant 0 : index
    %146 = vector.load %arg7[%c0_170, %c0_171] : memref<1x8xf32, #tpu.memory_space<vmem>>, vector<1x8xf32>
    %147 = vector.broadcast %146 : vector<1x8xf32> to vector<512x8xf32>
    %148 = arith.addf %145, %147 : vector<512x8xf32>
    %cst_172 = arith.constant 0.000000e+00 : f32
    %149 = vector.broadcast %cst_172 : f32 to vector<512x8xf32>
    %150 = arith.maximumf %148, %149 : vector<512x8xf32>
    %cst_173 = arith.constant dense<0.000000e+00> : vector<8xf32>
    %151 = vector.multi_reduction <add>, %150, %cst_173 [0] : vector<512x8xf32> to vector<8xf32>
    %152 = vector.shape_cast %151 : vector<8xf32> to vector<1x8xf32>
    %cst_174 = arith.constant 5.120000e+02 : f32
    %153 = vector.broadcast %cst_174 : f32 to vector<1x8xf32>
    %154 = arith.divf %152, %153 : vector<1x8xf32>
    %155 = vector.broadcast %154 : vector<1x8xf32> to vector<512x8xf32>
    %156 = arith.subf %150, %155 : vector<512x8xf32>
    %157 = arith.mulf %156, %156 : vector<512x8xf32>
    %cst_175 = arith.constant dense<0.000000e+00> : vector<8xf32>
    %158 = vector.multi_reduction <add>, %157, %cst_175 [0] : vector<512x8xf32> to vector<8xf32>
    %159 = vector.shape_cast %158 : vector<8xf32> to vector<1x8xf32>
    %cst_176 = arith.constant 5.120000e+02 : f32
    %160 = vector.broadcast %cst_176 : f32 to vector<1x8xf32>
    %161 = arith.divf %159, %160 : vector<1x8xf32>
    %c0_177 = arith.constant 0 : index
    %c0_178 = arith.constant 0 : index
    %162 = vector.load %arg8[%c0_177, %c0_178] : memref<1x8xf32, #tpu.memory_space<vmem>>, vector<1x8xf32>
    %cst_179 = arith.constant 9.99999974E-6 : f32
    %163 = vector.broadcast %cst_179 : f32 to vector<1x8xf32>
    %164 = arith.addf %161, %163 : vector<1x8xf32>
    %165 = math.rsqrt %164 : vector<1x8xf32>
    %166 = arith.mulf %162, %165 : vector<1x8xf32>
    %c0_180 = arith.constant 0 : index
    %c0_181 = arith.constant 0 : index
    %167 = vector.load %arg9[%c0_180, %c0_181] : memref<1x8xf32, #tpu.memory_space<vmem>>, vector<1x8xf32>
    %168 = arith.mulf %154, %166 : vector<1x8xf32>
    %169 = arith.subf %167, %168 : vector<1x8xf32>
    %170 = vector.broadcast %166 : vector<1x8xf32> to vector<512x8xf32>
    %171 = arith.mulf %150, %170 : vector<512x8xf32>
    %172 = vector.broadcast %169 : vector<1x8xf32> to vector<512x8xf32>
    %173 = arith.addf %171, %172 : vector<512x8xf32>
    %174 = tpu.transpose %173, [1, 0] : vector<512x8xf32> -> vector<8x512xf32>
    %c0_182 = arith.constant 0 : index
    %c0_183 = arith.constant 0 : index
    %175 = vector.load %arg10[%c0_182, %c0_183] : memref<8x512xf32, #tpu.memory_space<vmem>>, vector<8x512xf32>
    tpu.vector_store %arg10[%c0_182, %c0_183], %174 {strides = array<i32>} : memref<8x512xf32, #tpu.memory_space<vmem>>, vector<8x512xf32>,
    return
  }
  func.func @transform_0(%arg0: i32) -> (i32, i32, i32, i32) {
    %c0_i32 = arith.constant 0 : i32
    %c0_i32_0 = arith.constant 0 : i32
    %c0_i32_1 = arith.constant 0 : i32
    %c0_i32_2 = arith.constant 0 : i32
    %c0_i32_3 = arith.constant 0 : i32
    return %c0_i32, %c0_i32_0, %c0_i32_1, %c0_i32_2 : i32, i32, i32, i32
  }
  func.func @transform_1(%arg0: i32) -> (i32, i32, i32) {
    %c0_i32 = arith.constant 0 : i32
    %c0_i32_0 = arith.constant 0 : i32
    %c0_i32_1 = arith.constant 0 : i32
    %c0_i32_2 = arith.constant 0 : i32
    return %c0_i32, %c0_i32_0, %c0_i32_1 : i32, i32, i32
  }
  func.func @transform_2(%arg0: i32) -> (i32, i32) {
    %c0_i32 = arith.constant 0 : i32
    %c0_i32_0 = arith.constant 0 : i32
    %c0_i32_1 = arith.constant 0 : i32
    return %c0_i32, %c0_i32_0 : i32, i32
  }
  func.func @transform_3(%arg0: i32) -> (i32, i32) {
    %c0_i32 = arith.constant 0 : i32
    %c0_i32_0 = arith.constant 0 : i32
    %c0_i32_1 = arith.constant 0 : i32
    return %c0_i32, %c0_i32_0 : i32, i32
  }
  func.func @transform_4(%arg0: i32) -> (i32, i32) {
    %c0_i32 = arith.constant 0 : i32
    %c0_i32_0 = arith.constant 0 : i32
    %c0_i32_1 = arith.constant 0 : i32
    return %c0_i32, %c0_i32_0 : i32, i32
  }
  func.func @transform_5(%arg0: i32) -> (i32, i32, i32) {
    %c0_i32 = arith.constant 0 : i32
    %c0_i32_0 = arith.constant 0 : i32
    %c0_i32_1 = arith.constant 0 : i32
    %c0_i32_2 = arith.constant 0 : i32
    return %c0_i32, %c0_i32_0, %c0_i32_1 : i32, i32, i32
  }
  func.func @transform_6(%arg0: i32) -> (i32, i32) {
    %c0_i32 = arith.constant 0 : i32
    %c0_i32_0 = arith.constant 0 : i32
    %c0_i32_1 = arith.constant 0 : i32
    return %c0_i32, %c0_i32_0 : i32, i32
  }
  func.func @transform_7(%arg0: i32) -> (i32, i32) {
    %c0_i32 = arith.constant 0 : i32
    %c0_i32_0 = arith.constant 0 : i32
    %c0_i32_1 = arith.constant 0 : i32
    return %c0_i32, %c0_i32_0 : i32, i32
  }
  func.func @transform_8(%arg0: i32) -> (i32, i32) {
    %c0_i32 = arith.constant 0 : i32
    %c0_i32_0 = arith.constant 0 : i32
    %c0_i32_1 = arith.constant 0 : i32
    return %c0_i32, %c0_i32_0 : i32, i32
  }
  func.func @transform_9(%arg0: i32) -> (i32, i32) {
    %c0_i32 = arith.constant 0 : i32
    %c0_i32_0 = arith.constant 0 : i32
    %c0_i32_1 = arith.constant 0 : i32
    return %c0_i32, %c0_i32_0 : i32, i32
  }
}

</mosaic_0001>

<bundles_post_ra>
// kernel: tpu_custom_call.1
= control target key start
LH: loop header
LB: loop body
LE: loop exit
PB: predicated region body
PF: predicated region fallthrough
CT: control target
= control target key end

     0   :  { %vm595_vm0 = vcmask 1043456   ;;  %vm33_vm1 = vcmask 31744   ;;  %vm36_vm2 = vcmask 25600   ;;  %v25810_v5 = vmov 0.0   ;;  %s25800_s0 = inlined_call_operand.vmem [shape: f32[2,16,16,4], index: 0, kind: input, shape index: {}]   ;;  %s25801_s1 = inlined_call_operand.vmem [shape: f32[9,4,8], index: 1, kind: input, shape index: {}]   ;;  %s25802_s2 = inlined_call_operand.vmem [shape: f32[1,8], index: 2, kind: input, shape index: {}]   ;;  %s25803_s3 = inlined_call_operand.vmem [shape: f32[1,8], index: 3, kind: input, shape index: {}]   ;;  %s25804_s4 = inlined_call_operand.vmem [shape: f32[1,8], index: 4, kind: input, shape index: {}]   ;;  %s25805_s5 = inlined_call_operand.vmem [shape: f32[9,8,8], index: 5, kind: input, shape index: {}]   ;;  %s25806_s6 = inlined_call_operand.vmem [shape: f32[1,8], index: 6, kind: input, shape index: {}]   ;;  %s25807_s7 = inlined_call_operand.vmem [shape: f32[1,8], index: 7, kind: input, shape index: {}]   ;;  %s25808_s8 = inlined_call_operand.vmem [shape: f32[1,8], index: 8, kind: input, shape index: {}]   ;;  %s25809_s9 = inlined_call_operand.hbm [shape: f32[8,512], index: 9, kind: output, shape index: {}]  }
   0x1   :  { %v14448_v0 = vld [vmem:[%s25801_s1 + $0x4] sm:$0xf]  ;;  %v18648_v1 = vld [vmem:[%s25801_s1] sm:$0xf]  ;;  %v18656_v2 = vld [vmem:[%s25801_s1 + $0x8] sm:$0xf] }
   0x2   :  { %16797 = vmatprep.subr.msk.mxu0 %vm595_vm0, %v14448_v0  ;;  %16895 = vmatprep.subr.msk.mxu1 %vm595_vm0, %v18648_v1  ;;  %v18661_v3 = vld [vmem:[%s25800_s0] sm:$0xff]  ;;  %v18666_v4 = vld [vmem:[%s25800_s0 + $0x8] sm:$0xff]  ;;  %34 = vst.msk [vmem:[#allocation2] sm:$0xff] %vm33_vm1, %v25810_v5  ;;  %35 = vst.msk [vmem:[#allocation2 + $0x8] sm:$0xff] %vm33_vm1, %v25810_v5 }
   0x3   :  { %16798 = vmatpush3.msk.msra.mxu0 %vm595_vm0, %v14448_v0  ;;  %38 = vst.msk [vmem:[#allocation2 + $0x18] sm:$0xff] %vm33_vm1, %v25810_v5  ;;  %39 = vst.msk [vmem:[#allocation2 + $0x20] sm:$0xff] %vm33_vm1, %v25810_v5  ;;  %16896 = vmatpush3.msk.msra.mxu1 %vm595_vm0, %v18648_v1  ;;  %v145_v6 = vld [vmem:[%s25800_s0 + $0x10] sm:$0xff]  ;;  %v146_v7 = vld [vmem:[%s25800_s0 + $0x18] sm:$0xff] }
   0x4   :  { %41 = vst.msk [vmem:[#allocation2 + $0x30] sm:$0xff] %vm33_vm1, %v25810_v5  ;;  %42 = vst.msk [vmem:[#allocation2 + $0x38] sm:$0xff] %vm33_vm1, %v25810_v5  ;;  %v147_v8 = vld [vmem:[%s25800_s0 + $0x20] sm:$0xff]  ;;  %16993 = vmatprep.subr.msk.mxu0 %vm595_vm0, %v18656_v2  ;;  %v148_v9 = vld [vmem:[%s25800_s0 + $0x28] sm:$0xff] }
   0x5   :  { %44 = vst.msk [vmem:[#allocation2 + $0x48] sm:$0xff] %vm33_vm1, %v25810_v5  ;;  %45 = vst.msk [vmem:[#allocation2 + $0x50] sm:$0xff] %vm33_vm1, %v25810_v5  ;;  %v149_v10 = vld [vmem:[%s25800_s0 + $0x30] sm:$0xff]  ;;  %v150_v11 = vld [vmem:[%s25800_s0 + $0x38] sm:$0xff] }
   0x6   :  { %47 = vst.msk [vmem:[#allocation2 + $0x60] sm:$0xff] %vm33_vm1, %v25810_v5  ;;  %48 = vst.msk [vmem:[#allocation2 + $0x68] sm:$0xff] %vm33_vm1, %v25810_v5  ;;  %v151_v12 = vld [vmem:[%s25800_s0 + $0x40] sm:$0xff]  ;;  %v152_v13 = vld [vmem:[%s25800_s0 + $0x48] sm:$0xff] }
   0x7   :  { %50 = vst.msk [vmem:[#allocation2 + $0x78] sm:$0xff] %vm33_vm1, %v25810_v5  ;;  %51 = vst.msk [vmem:[#allocation2 + $0x80] sm:$0xff] %vm33_vm1, %v25810_v5  ;;  %v153_v14 = vld [vmem:[%s25800_s0 + $0x50] sm:$0xff]  ;;  %v154_v15 = vld [vmem:[%s25800_s0 + $0x58] sm:$0xff] }
   0x8   :  { %53 = vst.msk [vmem:[#allocation2 + $0x90] sm:$0xff] %vm33_vm1, %v25810_v5  ;;  %54 = vst.msk [vmem:[#allocation2 + $0x98] sm:$0xff] %vm33_vm1, %v25810_v5  ;;  %v155_v16 = vld [vmem:[%s25800_s0 + $0x60] sm:$0xff]  ;;  %v156_v17 = vld [vmem:[%s25800_s0 + $0x68] sm:$0xff] }
   0x9   :  { %56 = vst.msk [vmem:[#allocation2 + $0xa8] sm:$0xff] %vm33_vm1, %v25810_v5  ;;  %57 = vst.msk [vmem:[#allocation2 + $0xb0] sm:$0xff] %vm33_vm1, %v25810_v5  ;;  %v157_v18 = vld [vmem:[%s25800_s0 + $0x70] sm:$0xff]  ;;  %v158_v19 = vld [vmem:[%s25800_s0 + $0x78] sm:$0xff] }
   0xa   :  { %59 = vst.msk [vmem:[#allocation2 + $0xc0] sm:$0xff] %vm33_vm1, %v25810_v5  ;;  %60 = vst.msk [vmem:[#allocation2 + $0xc8] sm:$0xff] %vm33_vm1, %v25810_v5  ;;  %v159_v20 = vld [vmem:[%s25800_s0 + $0x80] sm:$0xff]  ;;  %v160_v21 = vld [vmem:[%s25800_s0 + $0x88] sm:$0xff] }
   0xb   :  { %62 = vst.msk [vmem:[#allocation2 + $0xd8] sm:$0xff] %vm33_vm1, %v25810_v5  ;;  %63 = vst.msk [vmem:[#allocation2 + $0xe0] sm:$0xff] %vm33_vm1, %v25810_v5  ;;  %v161_v22 = vld [vmem:[%s25800_s0 + $0x90] sm:$0xff]  ;;  %v162_v23 = vld [vmem:[%s25800_s0 + $0x98] sm:$0xff] }
   0xc   :  { %65 = vst.msk [vmem:[#allocation2 + $0xf0] sm:$0xff] %vm33_vm1, %v25810_v5  ;;  %66 = vst.msk [vmem:[#allocation2 + $0xf8] sm:$0xff] %vm33_vm1, %v25810_v5  ;;  %v163_v24 = vld [vmem:[%s25800_s0 + $0xa0] sm:$0xff]  ;;  %v164_v25 = vld [vmem:[%s25800_s0 + $0xa8] sm:$0xff] }
   0xd   :  { %68 = vst.msk [vmem:[#allocation2 + $0x108] sm:$0xff] %vm33_vm1, %v25810_v5  ;;  %69 = vst.msk [vmem:[#allocation2 + $0x110] sm:$0xff] %vm33_vm1, %v25810_v5  ;;  %v165_v26 = vld [vmem:[%s25800_s0 + $0xb0] sm:$0xff]  ;;  %v337_v27 = vld [vmem:[#allocation2 + $0x1] sm:$0xff] }
   0xe   :  { %71 = vst.msk [vmem:[#allocation2 + $0x120] sm:$0xff] %vm33_vm1, %v25810_v5  ;;  %72 = vst.msk [vmem:[#allocation2 + $0x128] sm:$0xff] %vm33_vm1, %v25810_v5  ;;  %v272_v28 = vld [vmem:[#allocation2] sm:$0xff]  ;;  %16799 = vmatprep.mubr.msk.f32.mxu0 %vm33_vm1, %v337_v27  ;;  %v273_v30 = vld [vmem:[#allocation2 + $0x8] sm:$0xff] }
   0xf   :  { %74 = vst.msk [vmem:[#allocation2 + $0x138] sm:$0xff] %vm33_vm1, %v25810_v5  ;;  %75 = vst.msk [vmem:[#allocation2 + $0x140] sm:$0xff] %vm33_vm1, %v25810_v5  ;;  %16897 = vmatprep.mubr.msk.f32.mxu1 %vm33_vm1, %v272_v28  ;;  %v166_v49 = vld [vmem:[%s25800_s0 + $0xb8] sm:$0xff]  ;;  %v167_v50 = vld [vmem:[%s25800_s0 + $0xc0] sm:$0xff] }
  0x10   :  { %77 = vst.msk [vmem:[#allocation2 + $0x150] sm:$0xff] %vm33_vm1, %v25810_v5  ;;  %78 = vst.msk [vmem:[#allocation2 + $0x158] sm:$0xff] %vm33_vm1, %v25810_v5  ;;  %16898 = vmatmul.mubr.msk.f32.vlgmr.msra.gmra.mxu1 %vm33_vm1, %v273_v30  ;;  %v168_v51 = vld [vmem:[%s25800_s0 + $0xc8] sm:$0xff]  ;;  %v169_v52 = vld [vmem:[%s25800_s0 + $0xd0] sm:$0xff] }
  0x11   :  { %80 = vst.msk [vmem:[#allocation2 + $0x168] sm:$0xff] %vm33_vm1, %v25810_v5  ;;  %81 = vst.msk [vmem:[#allocation2 + $0x170] sm:$0xff] %vm33_vm1, %v25810_v5  ;;  %v170_v53 = vld [vmem:[%s25800_s0 + $0xd8] sm:$0xff]  ;;  %v171_v54 = vld [vmem:[%s25800_s0 + $0xe0] sm:$0xff] }
  0x12   :  { %83 = vst.msk [vmem:[#allocation2 + $0x180] sm:$0xff] %vm33_vm1, %v25810_v5  ;;  %84 = vst.msk [vmem:[#allocation2 + $0x188] sm:$0xff] %vm33_vm1, %v25810_v5  ;;  %v172_v55 = vld [vmem:[%s25800_s0 + $0xe8] sm:$0xff]  ;;  %v175_v60 = vld [vmem:[%s25800_s0 + $0x100] sm:$0xff] }
  0x13   :  { %86 = vst.msk [vmem:[#allocation2 + $0x198] sm:$0xff] %vm33_vm1, %v25810_v5  ;;  %87 = vst.msk [vmem:[#allocation2 + $0x1a0] sm:$0xff] %vm33_vm1, %v25810_v5  ;;  %v176_v61 = vld [vmem:[%s25800_s0 + $0x108] sm:$0xff]  ;;  %v177_v0 = vld [vmem:[%s25800_s0 + $0x110] sm:$0xff] }
  0x14   :  { %89 = vst.msk [vmem:[#allocation2 + $0x1b0] sm:$0xff] %vm33_vm1, %v25810_v5  ;;  %90 = vst.msk [vmem:[#allocation2 + $0x1b8] sm:$0xff] %vm33_vm1, %v25810_v5  ;;  %v178_v1 = vld [vmem:[%s25800_s0 + $0x118] sm:$0xff]  ;;  %v187_v27 = vld [vmem:[%s25800_s0 + $0x160] sm:$0xff] }
  0x15   :  { %92 = vst.msk [vmem:[#allocation2 + $0x1c8] sm:$0xff] %vm33_vm1, %v25810_v5  ;;  %93 = vst.msk [vmem:[#allocation2 + $0x1d0] sm:$0xff] %vm33_vm1, %v25810_v5  ;;  %v188_v28 = vld [vmem:[%s25800_s0 + $0x168] sm:$0xff] }
  0x16   :  { %95 = vst.msk [vmem:[#allocation2 + $0x1e0] sm:$0xff] %vm33_vm1, %v25810_v5  ;;  %96 = vst.msk [vmem:[#allocation2 + $0x1e8] sm:$0xff] %vm33_vm1, %v25810_v5 }
  0x17   :  { %98 = vst.msk [vmem:[#allocation2 + $0x1f8] sm:$0xff] %vm33_vm1, %v25810_v5  ;;  %99 = vst.msk [vmem:[#allocation2 + $0x200] sm:$0xff] %vm33_vm1, %v25810_v5 }
  0x18   :  { %101 = vst.msk [vmem:[#allocation2 + $0x210] sm:$0xff] %vm33_vm1, %v25810_v5  ;;  %102 = vst.msk [vmem:[#allocation2 + $0x218] sm:$0xff] %vm33_vm1, %v25810_v5 }
  0x19   :  { %104 = vst.msk [vmem:[#allocation2 + $0x228] sm:$0xff] %vm33_vm1, %v25810_v5  ;;  %105 = vst.msk [vmem:[#allocation2 + $0x230] sm:$0xff] %vm33_vm1, %v25810_v5 }
  0x1a   :  { %107 = vst.msk [vmem:[#allocation2 + $0x240] sm:$0xff] %vm33_vm1, %v25810_v5  ;;  %108 = vst.msk [vmem:[#allocation2 + $0x248] sm:$0xff] %vm33_vm1, %v25810_v5 }
  0x1b   :  { %110 = vst.msk [vmem:[#allocation2 + $0x258] sm:$0xff] %vm33_vm1, %v25810_v5  ;;  %111 = vst.msk [vmem:[#allocation2 + $0x260] sm:$0xff] %vm33_vm1, %v25810_v5 }
  0x1c   :  { %113 = vst.msk [vmem:[#allocation2 + $0x270] sm:$0xff] %vm33_vm1, %v25810_v5  ;;  %114 = vst.msk [vmem:[#allocation2 + $0x278] sm:$0xff] %vm33_vm1, %v25810_v5 }
  0x1d   :  { %116 = vst.msk [vmem:[#allocation2 + $0x288] sm:$0xff] %vm33_vm1, %v25810_v5  ;;  %117 = vst.msk [vmem:[#allocation2 + $0x290] sm:$0xff] %vm33_vm1, %v25810_v5 }
  0x1e   :  { %119 = vst.msk [vmem:[#allocation2 + $0x2a0] sm:$0xff] %vm33_vm1, %v25810_v5  ;;  %120 = vst.msk [vmem:[#allocation2 + $0x2a8] sm:$0xff] %vm33_vm1, %v25810_v5 }
  0x1f   :  { %122 = vst.msk [vmem:[#allocation2 + $0x2b8] sm:$0xff] %vm33_vm1, %v25810_v5  ;;  %123 = vst.msk [vmem:[#allocation2 + $0x2c0] sm:$0xff] %vm33_vm1, %v25810_v5 }
  0x20   :  { %125 = vst.msk [vmem:[#allocation2 + $0x2d0] sm:$0xff] %vm33_vm1, %v25810_v5  ;;  %126 = vst.msk [vmem:[#allocation2 + $0x2d8] sm:$0xff] %vm33_vm1, %v25810_v5 }
  0x21   :  { %128 = vst.msk [vmem:[#allocation2 + $0x2e8] sm:$0xff] %vm33_vm1, %v25810_v5  ;;  %129 = vst.msk [vmem:[#allocation2 + $0x2f0] sm:$0xff] %vm33_vm1, %v25810_v5 }
  0x22   :  { %131 = vst.msk [vmem:[#allocation2 + $0x300] sm:$0xff] %vm33_vm1, %v25810_v5  ;;  %132 = vst.msk [vmem:[#allocation2 + $0x308] sm:$0xff] %vm33_vm1, %v25810_v5 }
  0x23   :  { %134 = vst.msk [vmem:[#allocation2 + $0x318] sm:$0xff] %vm33_vm1, %v25810_v5  ;;  %135 = vst.msk [vmem:[#allocation2 + $0x320] sm:$0xff] %vm33_vm1, %v25810_v5 }
  0x24   :  { %137 = vst.msk [vmem:[#allocation2 + $0x330] sm:$0xff] %vm33_vm1, %v25810_v5  ;;  %138 = vst.msk [vmem:[#allocation2 + $0x338] sm:$0xff] %vm33_vm1, %v25810_v5 }
  0x25   :  { %140 = vst.msk [vmem:[#allocation2 + $0x348] sm:$0xff] %vm33_vm1, %v25810_v5  ;;  %141 = vst.msk [vmem:[#allocation2 + $0x350] sm:$0xff] %vm33_vm1, %v25810_v5 }
  0x26   :  { %37 = vst.msk [vmem:[#allocation2 + $0x10] sm:$0x3] %vm36_vm2, %v25810_v5  ;;  %40 = vst.msk [vmem:[#allocation2 + $0x28] sm:$0x3] %vm36_vm2, %v25810_v5 }
  0x27   :  { %43 = vst.msk [vmem:[#allocation2 + $0x40] sm:$0x3] %vm36_vm2, %v25810_v5  ;;  %46 = vst.msk [vmem:[#allocation2 + $0x58] sm:$0x3] %vm36_vm2, %v25810_v5 }
  0x28   :  { %49 = vst.msk [vmem:[#allocation2 + $0x70] sm:$0x3] %vm36_vm2, %v25810_v5  ;;  %52 = vst.msk [vmem:[#allocation2 + $0x88] sm:$0x3] %vm36_vm2, %v25810_v5 }
  0x29   :  { %55 = vst.msk [vmem:[#allocation2 + $0xa0] sm:$0x3] %vm36_vm2, %v25810_v5  ;;  %58 = vst.msk [vmem:[#allocation2 + $0xb8] sm:$0x3] %vm36_vm2, %v25810_v5 }
  0x2a   :  { %61 = vst.msk [vmem:[#allocation2 + $0xd0] sm:$0x3] %vm36_vm2, %v25810_v5  ;;  %64 = vst.msk [vmem:[#allocation2 + $0xe8] sm:$0x3] %vm36_vm2, %v25810_v5 }
  0x2b   :  { %67 = vst.msk [vmem:[#allocation2 + $0x100] sm:$0x3] %vm36_vm2, %v25810_v5  ;;  %70 = vst.msk [vmem:[#allocation2 + $0x118] sm:$0x3] %vm36_vm2, %v25810_v5 }
  0x2c   :  { %73 = vst.msk [vmem:[#allocation2 + $0x130] sm:$0x3] %vm36_vm2, %v25810_v5  ;;  %76 = vst.msk [vmem:[#allocation2 + $0x148] sm:$0x3] %vm36_vm2, %v25810_v5 }
  0x2d   :  { %79 = vst.msk [vmem:[#allocation2 + $0x160] sm:$0x3] %vm36_vm2, %v25810_v5  ;;  %82 = vst.msk [vmem:[#allocation2 + $0x178] sm:$0x3] %vm36_vm2, %v25810_v5  ;;  %v338_v29 = vld [vmem:[#allocation2 + $0x9] sm:$0xff] }
  0x2e   :  { %85 = vst.msk [vmem:[#allocation2 + $0x190] sm:$0x3] %vm36_vm2, %v25810_v5  ;;  %88 = vst.msk [vmem:[#allocation2 + $0x1a8] sm:$0x3] %vm36_vm2, %v25810_v5  ;;  %16800 = vmatmul.mubr.msk.f32.vlgmr.msra.gmra.mxu0 %vm33_vm1, %v338_v29  ;;  %v189_v29 = vld [vmem:[%s25800_s0 + $0x170] sm:$0xff] }
  0x2f   :  { %91 = vst.msk [vmem:[#allocation2 + $0x1c0] sm:$0x3] %vm36_vm2, %v25810_v5  ;;  %94 = vst.msk [vmem:[#allocation2 + $0x1d8] sm:$0x3] %vm36_vm2, %v25810_v5  ;;  %16994 = vmatpush3.msk.msra.mxu0 %vm595_vm0, %v18656_v2  ;;  %v179_v2 = vld [vmem:[%s25800_s0 + $0x120] sm:$0xff] }
  0x30   :  { %97 = vst.msk [vmem:[#allocation2 + $0x1f0] sm:$0x3] %vm36_vm2, %v25810_v5  ;;  %100 = vst.msk [vmem:[#allocation2 + $0x208] sm:$0x3] %vm36_vm2, %v25810_v5 }
  0x31   :  { %103 = vst.msk [vmem:[#allocation2 + $0x220] sm:$0x3] %vm36_vm2, %v25810_v5  ;;  %106 = vst.msk [vmem:[#allocation2 + $0x238] sm:$0x3] %vm36_vm2, %v25810_v5 }
  0x32   :  { %109 = vst.msk [vmem:[#allocation2 + $0x250] sm:$0x3] %vm36_vm2, %v25810_v5  ;;  %112 = vst.msk [vmem:[#allocation2 + $0x268] sm:$0x3] %vm36_vm2, %v25810_v5 }
  0x33   :  { %115 = vst.msk [vmem:[#allocation2 + $0x280] sm:$0x3] %vm36_vm2, %v25810_v5  ;;  %118 = vst.msk [vmem:[#allocation2 + $0x298] sm:$0x3] %vm36_vm2, %v25810_v5 }
  0x34   :  { %121 = vst.msk [vmem:[#allocation2 + $0x2b0] sm:$0x3] %vm36_vm2, %v25810_v5  ;;  %124 = vst.msk [vmem:[#allocation2 + $0x2c8] sm:$0x3] %vm36_vm2, %v25810_v5 }
  0x35   :  { %127 = vst.msk [vmem:[#allocation2 + $0x2e0] sm:$0x3] %vm36_vm2, %v25810_v5  ;;  %130 = vst.msk [vmem:[#allocation2 + $0x2f8] sm:$0x3] %vm36_vm2, %v25810_v5 }
  0x36   :  { %133 = vst.msk [vmem:[#allocation2 + $0x310] sm:$0x3] %vm36_vm2, %v25810_v5  ;;  %136 = vst.msk [vmem:[#allocation2 + $0x328] sm:$0x3] %vm36_vm2, %v25810_v5 }
  0x37   :  { %139 = vst.msk [vmem:[#allocation2 + $0x340] sm:$0x3] %vm36_vm2, %v25810_v5  ;;  %142 = vst.msk [vmem:[#allocation2 + $0x358] sm:$0x3] %vm36_vm2, %v25810_v5 }
  0x38   :  { %208 = vst.msk [vmem:[#allocation2 + $0x19] sm:$0xff] %vm33_vm1, %v18661_v3  ;;  %209 = vst.msk [vmem:[#allocation2 + $0x21] sm:$0xff] %vm33_vm1, %v18666_v4  ;;  %v180_v3 = vld [vmem:[%s25800_s0 + $0x128] sm:$0xff]  ;;  %v181_v4 = vld [vmem:[%s25800_s0 + $0x130] sm:$0xff] }
  0x39   :  { %210 = vst.msk [vmem:[#allocation2 + $0x31] sm:$0xff] %vm33_vm1, %v145_v6  ;;  %211 = vst.msk [vmem:[#allocation2 + $0x39] sm:$0xff] %vm33_vm1, %v146_v7  ;;  %v182_v6 = vld [vmem:[%s25800_s0 + $0x138] sm:$0xff]  ;;  %v183_v7 = vld [vmem:[%s25800_s0 + $0x140] sm:$0xff] }
  0x3a   :  { %212 = vst.msk [vmem:[#allocation2 + $0x49] sm:$0xff] %vm33_vm1, %v147_v8  ;;  %213 = vst.msk [vmem:[#allocation2 + $0x51] sm:$0xff] %vm33_vm1, %v148_v9  ;;  %v184_v8 = vld [vmem:[%s25800_s0 + $0x148] sm:$0xff]  ;;  %v185_v9 = vld [vmem:[%s25800_s0 + $0x150] sm:$0xff] }
  0x3b   :  { %214 = vst.msk [vmem:[#allocation2 + $0x61] sm:$0xff] %vm33_vm1, %v149_v10  ;;  %215 = vst.msk [vmem:[#allocation2 + $0x69] sm:$0xff] %vm33_vm1, %v150_v11 }
  0x3c   :  { %216 = vst.msk [vmem:[#allocation2 + $0x79] sm:$0xff] %vm33_vm1, %v151_v12  ;;  %217 = vst.msk [vmem:[#allocation2 + $0x81] sm:$0xff] %vm33_vm1, %v152_v13  ;;  %v186_v12 = vld [vmem:[%s25800_s0 + $0x158] sm:$0xff] }
  0x3d   :  { %218 = vst.msk [vmem:[#allocation2 + $0x91] sm:$0xff] %vm33_vm1, %v153_v14  ;;  %219 = vst.msk [vmem:[#allocation2 + $0x99] sm:$0xff] %vm33_vm1, %v154_v15 }
  0x3e   :  { %220 = vst.msk [vmem:[#allocation2 + $0xa9] sm:$0xff] %vm33_vm1, %v155_v16  ;;  %221 = vst.msk [vmem:[#allocation2 + $0xb1] sm:$0xff] %vm33_vm1, %v156_v17 }
  0x3f   :  { %222 = vst.msk [vmem:[#allocation2 + $0xc1] sm:$0xff] %vm33_vm1, %v157_v18  ;;  %223 = vst.msk [vmem:[#allocation2 + $0xc9] sm:$0xff] %vm33_vm1, %v158_v19  ;;  %v339_v31 = vld [vmem:[#allocation2 + $0x19] sm:$0xff]  ;;  %v340_v33 = vld [vmem:[#allocation2 + $0x21] sm:$0xff] }
  0x40   :  { %224 = vst.msk [vmem:[#allocation2 + $0xd9] sm:$0xff] %vm33_vm1, %v159_v20  ;;  %225 = vst.msk [vmem:[#allocation2 + $0xe1] sm:$0xff] %vm33_vm1, %v160_v21  ;;  %v18979_v32 = vld [vmem:[#allocation2 + $0x18] sm:$0xff]  ;;  %16802 = vmatprep.mubr.msk.f32.mxu0 %vm33_vm1, %v339_v31  ;;  %v18986_v34 = vld [vmem:[#allocation2 + $0x20] sm:$0xff] }
  0x41   :  { %226 = vst.msk [vmem:[#allocation2 + $0xf1] sm:$0xff] %vm33_vm1, %v161_v22  ;;  %227 = vst.msk [vmem:[#allocation2 + $0xf9] sm:$0xff] %vm33_vm1, %v162_v23  ;;  %16900 = vmatprep.mubr.msk.f32.mxu1 %vm33_vm1, %v18979_v32  ;;  %v341_v35 = vld [vmem:[#allocation2 + $0x31] sm:$0xff]  ;;  %16803 = vmatmul.mubr.msk.f32.gmra.mxu0 %vm33_vm1, %v340_v33  ;;  %v342_v37 = vld [vmem:[#allocation2 + $0x39] sm:$0xff] }
  0x42   :  { %228 = vst.msk [vmem:[#allocation2 + $0x109] sm:$0xff] %vm33_vm1, %v163_v24  ;;  %229 = vst.msk [vmem:[#allocation2 + $0x111] sm:$0xff] %vm33_vm1, %v164_v25  ;;  %v18990_v36 = vld [vmem:[#allocation2 + $0x30] sm:$0xff]  ;;  %16901 = vmatmul.mubr.msk.f32.gmra.mxu1 %vm33_vm1, %v18986_v34  ;;  %16805 = vmatprep.mubr.msk.f32.mxu0 %vm33_vm1, %v341_v35  ;;  %v18998_v38 = vld [vmem:[#allocation2 + $0x38] sm:$0xff] }
  0x43   :  { %230 = vst.msk [vmem:[#allocation2 + $0x121] sm:$0xff] %vm33_vm1, %v165_v26  ;;  %16903 = vmatprep.mubr.msk.f32.mxu1 %vm33_vm1, %v18990_v36  ;;  %v343_v39 = vld [vmem:[#allocation2 + $0x49] sm:$0xff]  ;;  %v344_v41 = vld [vmem:[#allocation2 + $0x51] sm:$0xff]  ;;  %v345_v43 = vld [vmem:[#allocation2 + $0x61] sm:$0xff] }
  0x44   :  { %v19000_v40 = vld [vmem:[#allocation2 + $0x48] sm:$0xff]  ;;  %v19008_v42 = vld [vmem:[#allocation2 + $0x50] sm:$0xff]  ;;  %v19010_v44 = vld [vmem:[#allocation2 + $0x60] sm:$0xff]  ;;  %231 = vst.msk [vmem:[#allocation2 + $0x129] sm:$0xff] %vm33_vm1, %v166_v49 }
  0x45   :  { %16806 = vmatmul.mubr.msk.f32.gmra.mxu0 %vm33_vm1, %v342_v37  ;;  %v346_v45 = vld [vmem:[#allocation2 + $0x69] sm:$0xff]  ;;  %v347_v47 = vld [vmem:[#allocation2 + $0x79] sm:$0xff]  ;;  %232 = vst.msk [vmem:[#allocation2 + $0x139] sm:$0xff] %vm33_vm1, %v167_v50  ;;  %233 = vst.msk [vmem:[#allocation2 + $0x141] sm:$0xff] %vm33_vm1, %v168_v51 }
  0x46   :  { %16904 = vmatmul.mubr.msk.f32.gmra.mxu1 %vm33_vm1, %v18998_v38  ;;  %16808 = vmatprep.mubr.msk.f32.mxu0 %vm33_vm1, %v343_v39  ;;  %v19018_v46 = vld [vmem:[#allocation2 + $0x68] sm:$0xff]  ;;  %v19020_v48 = vld [vmem:[#allocation2 + $0x78] sm:$0xff]  ;;  %234 = vst.msk [vmem:[#allocation2 + $0x151] sm:$0xff] %vm33_vm1, %v169_v52  ;;  %v19053_v57 = vld [vmem:[#allocation2 + $0x80] sm:$0xff] }
  0x47   :  { %16906 = vmatprep.mubr.msk.f32.mxu1 %vm33_vm1, %v19000_v40  ;;  %v348_v56 = vld [vmem:[#allocation2 + $0x81] sm:$0xff]  ;;  %v349_v58 = vld [vmem:[#allocation2 + $0x91] sm:$0xff]  ;;  %235 = vst.msk [vmem:[#allocation2 + $0x159] sm:$0xff] %vm33_vm1, %v170_v53  ;;  %236 = vst.msk [vmem:[#allocation2 + $0x169] sm:$0xff] %vm33_vm1, %v171_v54 }
  0x48   :  { %237 = vst.msk [vmem:[#allocation2 + $0x171] sm:$0xff] %vm33_vm1, %v172_v55  ;;  %v19058_v59 = vld [vmem:[#allocation2 + $0x90] sm:$0xff]  ;;  %v350_v62 = vld [vmem:[#allocation2 + $0x99] sm:$0xff]  ;;  %240 = vst.msk [vmem:[#allocation2 + $0x1c9] sm:$0xff] %vm33_vm1, %v175_v60 }
  0x49   :  { %16809 = vmatmul.mubr.msk.f32.gmra.mxu0 %vm33_vm1, %v344_v41  ;;  %v19066_v63 = vld [vmem:[#allocation2 + $0x98] sm:$0xff]  ;;  %241 = vst.msk [vmem:[#allocation2 + $0x1d1] sm:$0xff] %vm33_vm1, %v176_v61  ;;  %242 = vst.msk [vmem:[#allocation2 + $0x1e1] sm:$0xff] %vm33_vm1, %v177_v0  ;;  %v351_v10 = vld [vmem:[#allocation2 + $0xa9] sm:$0xff] }
  0x4a   :  { %16907 = vmatmul.mubr.msk.f32.gmra.mxu1 %vm33_vm1, %v19008_v42  ;;  %16811 = vmatprep.mubr.msk.f32.mxu0 %vm33_vm1, %v345_v43  ;;  %243 = vst.msk [vmem:[#allocation2 + $0x1e9] sm:$0xff] %vm33_vm1, %v178_v1  ;;  %244 = vst.msk [vmem:[#allocation2 + $0x1f9] sm:$0xff] %vm33_vm1, %v179_v2  ;;  %v19109_v11 = vld [vmem:[#allocation2 + $0xa8] sm:$0xff]  ;;  %v352_v13 = vld [vmem:[#allocation2 + $0xb1] sm:$0xff] }
  0x4b   :  { %16909 = vmatprep.mubr.msk.f32.mxu1 %vm33_vm1, %v19010_v44  ;;  %245 = vst.msk [vmem:[#allocation2 + $0x201] sm:$0xff] %vm33_vm1, %v180_v3  ;;  %246 = vst.msk [vmem:[#allocation2 + $0x211] sm:$0xff] %vm33_vm1, %v181_v4  ;;  %v19124_v14 = vld [vmem:[#allocation2 + $0xb0] sm:$0xff]  ;;  %v353_v15 = vld [vmem:[#allocation2 + $0xc1] sm:$0xff] }
  0x4c   :  { %247 = vst.msk [vmem:[#allocation2 + $0x219] sm:$0xff] %vm33_vm1, %v182_v6  ;;  %248 = vst.msk [vmem:[#allocation2 + $0x229] sm:$0xff] %vm33_vm1, %v183_v7  ;;  %v19126_v16 = vld [vmem:[#allocation2 + $0xc0] sm:$0xff]  ;;  %v354_v17 = vld [vmem:[#allocation2 + $0xc9] sm:$0xff] }
  0x4d   :  { %16812 = vmatmul.mubr.msk.f32.gmra.mxu0 %vm33_vm1, %v346_v45  ;;  %249 = vst.msk [vmem:[#allocation2 + $0x231] sm:$0xff] %vm33_vm1, %v184_v8  ;;  %250 = vst.msk [vmem:[#allocation2 + $0x241] sm:$0xff] %vm33_vm1, %v185_v9  ;;  %v19134_v18 = vld [vmem:[#allocation2 + $0xc8] sm:$0xff]  ;;  %v355_v19 = vld [vmem:[#allocation2 + $0xd9] sm:$0xff] }
  0x4e   :  { %16910 = vmatmul.mubr.msk.f32.gmra.mxu1 %vm33_vm1, %v19018_v46  ;;  %16814 = vmatprep.mubr.msk.f32.mxu0 %vm33_vm1, %v347_v47  ;;  %251 = vst.msk [vmem:[#allocation2 + $0x249] sm:$0xff] %vm33_vm1, %v186_v12  ;;  %v19136_v20 = vld [vmem:[#allocation2 + $0xd8] sm:$0xff]  ;;  %v356_v21 = vld [vmem:[#allocation2 + $0xe1] sm:$0xff]  ;;  %v19146_v24 = vld [vmem:[#allocation2 + $0xf0] sm:$0xff] }
  0x4f   :  { %16912 = vmatprep.mubr.msk.f32.mxu1 %vm33_vm1, %v19020_v48  ;;  %v19144_v22 = vld [vmem:[#allocation2 + $0xe0] sm:$0xff]  ;;  %v357_v23 = vld [vmem:[#allocation2 + $0xf1] sm:$0xff]  ;;  %v359_v30 = vld [vmem:[#allocation2 + $0x109] sm:$0xff]  ;;  %252 = vst.msk [vmem:[#allocation2 + $0x259] sm:$0xff] %vm33_vm1, %v187_v27 }
  0x50   :  { %v358_v25 = vld [vmem:[#allocation2 + $0xf9] sm:$0xff]  ;;  %v19162_v31 = vld [vmem:[#allocation2 + $0x108] sm:$0xff]  ;;  %253 = vst.msk [vmem:[#allocation2 + $0x261] sm:$0xff] %vm33_vm1, %v188_v28  ;;  %254 = vst.msk [vmem:[#allocation2 + $0x271] sm:$0xff] %vm33_vm1, %v189_v29 }
  0x51   :  { %16815 = vmatmul.mubr.msk.f32.gmra.mxu0 %vm33_vm1, %v348_v56  ;;  %v19148_v26 = vld [vmem:[#allocation2 + $0xf8] sm:$0xff]  ;;  %v191_v35 = vld [vmem:[%s25800_s0 + $0x180] sm:$0xff]  ;;  %v192_v37 = vld [vmem:[%s25800_s0 + $0x188] sm:$0xff] }
  0x52   :  { %16913 = vmatmul.mubr.msk.f32.gmra.mxu1 %vm33_vm1, %v19053_v57  ;;  %16817 = vmatprep.mubr.msk.f32.mxu0 %vm33_vm1, %v349_v58  ;;  %v190_v33 = vld [vmem:[%s25800_s0 + $0x178] sm:$0xff]  ;;  %256 = vst.msk [vmem:[#allocation2 + $0x289] sm:$0xff] %vm33_vm1, %v191_v35  ;;  %257 = vst.msk [vmem:[#allocation2 + $0x291] sm:$0xff] %vm33_vm1, %v192_v37  ;;  %v193_v39 = vld [vmem:[%s25800_s0 + $0x190] sm:$0xff] }
  0x53   :  { %16915 = vmatprep.mubr.msk.f32.mxu1 %vm33_vm1, %v19058_v59  ;;  %255 = vst.msk [vmem:[#allocation2 + $0x279] sm:$0xff] %vm33_vm1, %v190_v33  ;;  %v194_v41 = vld [vmem:[%s25800_s0 + $0x198] sm:$0xff]  ;;  %v195_v43 = vld [vmem:[%s25800_s0 + $0x1a0] sm:$0xff]  ;;  %258 = vst.msk [vmem:[#allocation2 + $0x2a1] sm:$0xff] %vm33_vm1, %v193_v39 }
  0x54   :  { %259 = vst.msk [vmem:[#allocation2 + $0x2a9] sm:$0xff] %vm33_vm1, %v194_v41  ;;  %260 = vst.msk [vmem:[#allocation2 + $0x2b9] sm:$0xff] %vm33_vm1, %v195_v43  ;;  %v196_v45 = vld [vmem:[%s25800_s0 + $0x1a8] sm:$0xff]  ;;  %v197_v47 = vld [vmem:[%s25800_s0 + $0x1b0] sm:$0xff] }
  0x55   :  { %16818 = vmatmul.mubr.msk.f32.gmra.mxu0 %vm33_vm1, %v350_v62  ;;  %v198_v49 = vld [vmem:[%s25800_s0 + $0x1b8] sm:$0xff]  ;;  %261 = vst.msk [vmem:[#allocation2 + $0x2c1] sm:$0xff] %vm33_vm1, %v196_v45  ;;  %262 = vst.msk [vmem:[#allocation2 + $0x2d1] sm:$0xff] %vm33_vm1, %v197_v47  ;;  %v199_v51 = vld [vmem:[%s25800_s0 + $0x1c0] sm:$0xff] }
  0x56   :  { %16916 = vmatmul.mubr.msk.f32.gmra.mxu1 %vm33_vm1, %v19066_v63  ;;  %16820 = vmatprep.mubr.msk.f32.mxu0 %vm33_vm1, %v351_v10  ;;  %v360_v50 = vld [vmem:[#allocation2 + $0x111] sm:$0xff]  ;;  %263 = vst.msk [vmem:[#allocation2 + $0x2d9] sm:$0xff] %vm33_vm1, %v198_v49  ;;  %v200_v52 = vld [vmem:[%s25800_s0 + $0x1c8] sm:$0xff]  ;;  %264 = vst.msk [vmem:[#allocation2 + $0x2e9] sm:$0xff] %vm33_vm1, %v199_v51 }
  0x57   :  { %16918 = vmatprep.mubr.msk.f32.mxu1 %vm33_vm1, %v19109_v11  ;;  %v201_v53 = vld [vmem:[%s25800_s0 + $0x1d0] sm:$0xff]  ;;  %265 = vst.msk [vmem:[#allocation2 + $0x2f1] sm:$0xff] %vm33_vm1, %v200_v52  ;;  %v202_v54 = vld [vmem:[%s25800_s0 + $0x1d8] sm:$0xff]  ;;  %v203_v55 = vld [vmem:[%s25800_s0 + $0x1e0] sm:$0xff] }
  0x58   :  { %266 = vst.msk [vmem:[#allocation2 + $0x301] sm:$0xff] %vm33_vm1, %v201_v53  ;;  %v204_v56 = vld [vmem:[%s25800_s0 + $0x1e8] sm:$0xff]  ;;  %v19233_v58 = vld [vmem:[#allocation2 + $0x110] sm:$0xff]  ;;  %267 = vst.msk [vmem:[#allocation2 + $0x309] sm:$0xff] %vm33_vm1, %v202_v54 }
  0x59   :  { %16821 = vmatmul.mubr.msk.f32.gmra.mxu0 %vm33_vm1, %v352_v13  ;;  %268 = vst.msk [vmem:[#allocation2 + $0x319] sm:$0xff] %vm33_vm1, %v203_v55  ;;  %269 = vst.msk [vmem:[#allocation2 + $0x321] sm:$0xff] %vm33_vm1, %v204_v56  ;;  %v14645_v60 = vld [vmem:[%s25801_s1 + $0xc] sm:$0xf]  ;;  %v19244_v61 = vld [vmem:[%s25801_s1 + $0x10] sm:$0xf] }
  0x5a   :  { %16919 = vmatmul.mubr.msk.f32.gmra.mxu1 %vm33_vm1, %v19124_v14  ;;  %16823 = vmatprep.mubr.msk.f32.mxu0 %vm33_vm1, %v353_v15  ;;  %v361_v62 = vld [vmem:[#allocation2 + $0x121] sm:$0xff]  ;;  %v362_v1 = vld [vmem:[#allocation2 + $0x129] sm:$0xff]  ;;  %v363_v3 = vld [vmem:[#allocation2 + $0x139] sm:$0xff] }
  0x5b   :  { %16921 = vmatprep.mubr.msk.f32.mxu1 %vm33_vm1, %v19126_v16  ;;  %v19246_v0 = vld [vmem:[#allocation2 + $0x120] sm:$0xff]  ;;  %17091 = vmatprep.subr.msk.mxu1 %vm595_vm0, %v14645_v60  ;;  %v19258_v2 = vld [vmem:[#allocation2 + $0x128] sm:$0xff]  ;;  %v19260_v4 = vld [vmem:[#allocation2 + $0x138] sm:$0xff] }
  0x5c   :  { %17189 = vmatprep.subr.msk.mxu0 %vm595_vm0, %v19244_v61  ;;  %17092 = vmatpush3.msk.msra.mxu1 %vm595_vm0, %v14645_v60  ;;  %v364_v6 = vld [vmem:[#allocation2 + $0x141] sm:$0xff]  ;;  %v365_v8 = vld [vmem:[#allocation2 + $0x151] sm:$0xff]  ;;  %v366_v10 = vld [vmem:[#allocation2 + $0x159] sm:$0xff] }
  0x5d   :  { %16824 = vmatmul.mubr.msk.f32.gmra.mxu0 %vm33_vm1, %v354_v17  ;;  %v19268_v7 = vld [vmem:[#allocation2 + $0x140] sm:$0xff]  ;;  %v19270_v9 = vld [vmem:[#allocation2 + $0x150] sm:$0xff]  ;;  %v19278_v12 = vld [vmem:[#allocation2 + $0x158] sm:$0xff] }
  0x5e   :  { %16922 = vmatmul.mubr.msk.f32.gmra.mxu1 %vm33_vm1, %v19134_v18  ;;  %16826 = vmatprep.mubr.msk.f32.mxu0 %vm33_vm1, %v355_v19  ;;  %v367_v13 = vld [vmem:[#allocation2 + $0x169] sm:$0xff]  ;;  %v368_v17 = vld [vmem:[#allocation2 + $0x171] sm:$0xff] }
  0x5f   :  { %16924 = vmatprep.mubr.msk.f32.mxu1 %vm33_vm1, %v19136_v20  ;;  %v19280_v15 = vld [vmem:[#allocation2 + $0x168] sm:$0xff]  ;;  %v19288_v19 = vld [vmem:[#allocation2 + $0x170] sm:$0xff]  ;;  %v305_v27 = vld [vmem:[#allocation2 + $0x1b8] sm:$0xff] }
  0x60   :  { %v371_v28 = vld [vmem:[#allocation2 + $0x1c9] sm:$0xff]  ;;  %v174_v33 = vld [vmem:[%s25800_s0 + $0xf8] sm:$0xff] }
  0x61   :  { %16827 = vmatmul.mubr.msk.f32.gmra.mxu0 %vm33_vm1, %v356_v21  ;;  %v369_v21 = vld [vmem:[#allocation2 + $0x1b1] sm:$0xff]  ;;  %v19295_v29 = vld [vmem:[#allocation2 + $0x1c8] sm:$0xff]  ;;  %239 = vst.msk [vmem:[#allocation2 + $0x189] sm:$0xff] %vm33_vm1, %v174_v33 }
  0x62   :  { %16925 = vmatmul.mubr.msk.f32.gmra.mxu1 %vm33_vm1, %v19144_v22  ;;  %16829 = vmatprep.mubr.msk.f32.mxu0 %vm33_vm1, %v357_v23  ;;  %v304_v23 = vld [vmem:[#allocation2 + $0x1b0] sm:$0xff] }
  0x63   :  { %16927 = vmatprep.mubr.msk.f32.mxu1 %vm33_vm1, %v19146_v24  ;;  %v372_v35 = vld [vmem:[#allocation2 + $0x1d1] sm:$0xff] }
  0x64   :  { %v19308_v37 = vld [vmem:[#allocation2 + $0x1d0] sm:$0xff] }
  0x65   :  { %16830 = vmatmul.mubr.msk.f32.gmra.mxu0 %vm33_vm1, %v358_v25  ;;  %v370_v25 = vld [vmem:[#allocation2 + $0x1b9] sm:$0xff] }
  0x66   :  { %16928 = vmatmul.mubr.msk.f32.gmra.mxu1 %vm33_vm1, %v19148_v26  ;;  %16832 = vmatprep.mubr.msk.f32.mxu0 %vm33_vm1, %v359_v30  ;;  %v173_v30 = vld [vmem:[%s25800_s0 + $0xf0] sm:$0xff] }
  0x67   :  { %16930 = vmatprep.mubr.msk.f32.mxu1 %vm33_vm1, %v19162_v31  ;;  %238 = vst.msk [vmem:[#allocation2 + $0x181] sm:$0xff] %vm33_vm1, %v173_v30 }
  0x69   :  { %16833 = vmatmul.mubr.msk.f32.gmra.mxu0 %vm33_vm1, %v360_v50 }
  0x6a   :  { %16931 = vmatmul.mubr.msk.f32.gmra.mxu1 %vm33_vm1, %v19233_v58  ;;  %16835 = vmatprep.mubr.msk.f32.mxu0 %vm33_vm1, %v361_v62 }
  0x6b   :  { %16933 = vmatprep.mubr.msk.f32.mxu1 %vm33_vm1, %v19246_v0 }
  0x6d   :  { %16836 = vmatmul.mubr.msk.f32.gmra.mxu0 %vm33_vm1, %v362_v1 }
  0x6e   :  { %16934 = vmatmul.mubr.msk.f32.gmra.mxu1 %vm33_vm1, %v19258_v2  ;;  %16838 = vmatprep.mubr.msk.f32.mxu0 %vm33_vm1, %v363_v3 }
  0x6f   :  { %16936 = vmatprep.mubr.msk.f32.mxu1 %vm33_vm1, %v19260_v4 }
  0x71   :  { %16839 = vmatmul.mubr.msk.f32.gmra.mxu0 %vm33_vm1, %v364_v6 }
  0x72   :  { %16937 = vmatmul.mubr.msk.f32.gmra.mxu1 %vm33_vm1, %v19268_v7  ;;  %16841 = vmatprep.mubr.msk.f32.mxu0 %vm33_vm1, %v365_v8 }
  0x73   :  { %16939 = vmatprep.mubr.msk.f32.mxu1 %vm33_vm1, %v19270_v9 }
  0x75   :  { %16842 = vmatmul.mubr.msk.f32.gmra.mxu0 %vm33_vm1, %v366_v10 }
  0x76   :  { %16940 = vmatmul.mubr.msk.f32.gmra.mxu1 %vm33_vm1, %v19278_v12  ;;  %16844 = vmatprep.mubr.msk.f32.mxu0 %vm33_vm1, %v367_v13 }
  0x77   :  { %16942 = vmatprep.mubr.msk.f32.mxu1 %vm33_vm1, %v19280_v15 }
  0x79   :  { %16845 = vmatmul.mubr.msk.f32.gmra.mxu0 %vm33_vm1, %v368_v17 }
  0x7a   :  { %16943 = vmatmul.mubr.msk.f32.gmra.mxu1 %vm33_vm1, %v19288_v19  ;;  %16847 = vmatprep.mubr.msk.f32.mxu0 %vm33_vm1, %v369_v21 }
  0x7b   :  { %16945 = vmatprep.mubr.msk.f32.mxu1 %vm33_vm1, %v304_v23 }
  0x7d   :  { %16848 = vmatmul.mubr.msk.f32.gmra.mxu0 %vm33_vm1, %v370_v25 }
  0x7e   :  { %16946 = vmatmul.mubr.msk.f32.gmra.mxu1 %vm33_vm1, %v305_v27  ;;  %16850 = vmatprep.mubr.msk.f32.mxu0 %vm33_vm1, %v371_v28 }
  0x7f   :  { %16948 = vmatprep.mubr.msk.f32.mxu1 %vm33_vm1, %v19295_v29 }
  0x80   :  { %14 = vsyncpa [#allocation5], 0  ;;  %v373_v39 = vld [vmem:[#allocation2 + $0x1e1] sm:$0xff]  ;;  %v374_v43 = vld [vmem:[#allocation2 + $0x1e9] sm:$0xff]  ;;  %vm6670_vm3 = vcmask 64512   ;;  %vm7217_vm4 = vcmask 58368  }
  0x81   :  { %v19312_v41 = vld [vmem:[#allocation2 + $0x1e0] sm:$0xff]  ;;  %16851 = vmatmul.mubr.msk.f32.gmra.mxu0 %vm33_vm1, %v372_v35  ;;  %v19320_v45 = vld [vmem:[#allocation2 + $0x1e8] sm:$0xff]  ;;  %v19322_v49 = vld [vmem:[#allocation2 + $0x1f8] sm:$0xff] }
  0x82   :  { %16949 = vmatmul.mubr.msk.f32.gmra.mxu1 %vm33_vm1, %v19308_v37  ;;  %16853 = vmatprep.mubr.msk.f32.mxu0 %vm33_vm1, %v373_v39  ;;  %v375_v47 = vld [vmem:[#allocation2 + $0x1f9] sm:$0xff]  ;;  %v376_v50 = vld [vmem:[#allocation2 + $0x201] sm:$0xff]  ;;  %v377_v52 = vld [vmem:[#allocation2 + $0x211] sm:$0xff] }
  0x83   :  { %16951 = vmatprep.mubr.msk.f32.mxu1 %vm33_vm1, %v19312_v41  ;;  %v19330_v51 = vld [vmem:[#allocation2 + $0x200] sm:$0xff]  ;;  %v19332_v53 = vld [vmem:[#allocation2 + $0x210] sm:$0xff]  ;;  %v19340_v55 = vld [vmem:[#allocation2 + $0x218] sm:$0xff] }
  0x84   :  { %v378_v54 = vld [vmem:[#allocation2 + $0x219] sm:$0xff]  ;;  %v379_v56 = vld [vmem:[#allocation2 + $0x229] sm:$0xff]  ;;  %v380_v62 = vld [vmem:[#allocation2 + $0x231] sm:$0xff] }
  0x85   :  { %16854 = vmatmul.mubr.msk.f32.gmra.mxu0 %vm33_vm1, %v374_v43  ;;  %v19342_v60 = vld [vmem:[#allocation2 + $0x228] sm:$0xff]  ;;  %v19350_v1 = vld [vmem:[#allocation2 + $0x230] sm:$0xff]  ;;  %v19352_v6 = vld [vmem:[#allocation2 + $0x240] sm:$0xff] }
  0x86   :  { %16952 = vmatmul.mubr.msk.f32.gmra.mxu1 %vm33_vm1, %v19320_v45  ;;  %16856 = vmatprep.mubr.msk.f32.mxu0 %vm33_vm1, %v375_v47  ;;  %v381_v3 = vld [vmem:[#allocation2 + $0x241] sm:$0xff]  ;;  %v382_v8 = vld [vmem:[#allocation2 + $0x249] sm:$0xff]  ;;  %v383_v13 = vld [vmem:[#allocation2 + $0x259] sm:$0xff] }
  0x87   :  { %16954 = vmatprep.mubr.msk.f32.mxu1 %vm33_vm1, %v19322_v49  ;;  %v19360_v10 = vld [vmem:[#allocation2 + $0x248] sm:$0xff]  ;;  %v19362_v17 = vld [vmem:[#allocation2 + $0x258] sm:$0xff]  ;;  %v19370_v23 = vld [vmem:[#allocation2 + $0x260] sm:$0xff] }
  0x88   :  { %v384_v21 = vld [vmem:[#allocation2 + $0x261] sm:$0xff]  ;;  %v385_v25 = vld [vmem:[#allocation2 + $0x271] sm:$0xff]  ;;  %v386_v28 = vld [vmem:[#allocation2 + $0x279] sm:$0xff] }
  0x89   :  { %16857 = vmatmul.mubr.msk.f32.gmra.mxu0 %vm33_vm1, %v376_v50  ;;  %v19372_v27 = vld [vmem:[#allocation2 + $0x270] sm:$0xff]  ;;  %v19380_v30 = vld [vmem:[#allocation2 + $0x278] sm:$0xff]  ;;  %v19382_v35 = vld [vmem:[#allocation2 + $0x288] sm:$0xff] }
  0x8a   :  { %16955 = vmatmul.mubr.msk.f32.gmra.mxu1 %vm33_vm1, %v19330_v51  ;;  %16859 = vmatprep.mubr.msk.f32.mxu0 %vm33_vm1, %v377_v52  ;;  %v387_v33 = vld [vmem:[#allocation2 + $0x289] sm:$0xff]  ;;  %v388_v39 = vld [vmem:[#allocation2 + $0x291] sm:$0xff]  ;;  %v389_v47 = vld [vmem:[#allocation2 + $0x2a1] sm:$0xff] }
  0x8b   :  { %16957 = vmatprep.mubr.msk.f32.mxu1 %vm33_vm1, %v19332_v53  ;;  %v19390_v43 = vld [vmem:[#allocation2 + $0x290] sm:$0xff]  ;;  %v19392_v50 = vld [vmem:[#allocation2 + $0x2a0] sm:$0xff] }
  0x8c   :  { %v390_v52 = vld [vmem:[#allocation2 + $0x2a9] sm:$0xff]  ;;  %v399_v5 = vld [vmem:[#allocation2 + $0x319] sm:$0xff] }
  0x8d   :  { %16860 = vmatmul.mubr.msk.f32.gmra.mxu0 %vm33_vm1, %v378_v54  ;;  %v19400_v54 = vld [vmem:[#allocation2 + $0x2a8] sm:$0xff] }
  0x8e   :  { %16958 = vmatmul.mubr.msk.f32.gmra.mxu1 %vm33_vm1, %v19340_v55  ;;  %16862 = vmatprep.mubr.msk.f32.mxu0 %vm33_vm1, %v379_v56  ;;  %v391_v56 = vld [vmem:[#allocation2 + $0x2b9] sm:$0xff] }
  0x8f   :  { %16960 = vmatprep.mubr.msk.f32.mxu1 %vm33_vm1, %v19342_v60 }
  0x91   :  { %16863 = vmatmul.mubr.msk.f32.gmra.mxu0 %vm33_vm1, %v380_v62  ;;  %v19402_v62 = vld [vmem:[#allocation2 + $0x2b8] sm:$0xff] }
  0x92   :  { %16961 = vmatmul.mubr.msk.f32.gmra.mxu1 %vm33_vm1, %v19350_v1  ;;  %16865 = vmatprep.mubr.msk.f32.mxu0 %vm33_vm1, %v381_v3  ;;  %v392_v3 = vld [vmem:[#allocation2 + $0x2c1] sm:$0xff] }
  0x93   :  { %16963 = vmatprep.mubr.msk.f32.mxu1 %vm33_vm1, %v19352_v6 }
  0x95   :  { %16866 = vmatmul.mubr.msk.f32.gmra.mxu0 %vm33_vm1, %v382_v8  ;;  %v19410_v8 = vld [vmem:[#allocation2 + $0x2c0] sm:$0xff] }
  0x96   :  { %16964 = vmatmul.mubr.msk.f32.gmra.mxu1 %vm33_vm1, %v19360_v10  ;;  %16868 = vmatprep.mubr.msk.f32.mxu0 %vm33_vm1, %v383_v13  ;;  %v393_v13 = vld [vmem:[#allocation2 + $0x2d1] sm:$0xff] }
  0x97   :  { %16966 = vmatprep.mubr.msk.f32.mxu1 %vm33_vm1, %v19362_v17 }
  0x99   :  { %16869 = vmatmul.mubr.msk.f32.gmra.mxu0 %vm33_vm1, %v384_v21  ;;  %v19412_v21 = vld [vmem:[#allocation2 + $0x2d0] sm:$0xff] }
  0x9a   :  { %16967 = vmatmul.mubr.msk.f32.gmra.mxu1 %vm33_vm1, %v19370_v23  ;;  %16871 = vmatprep.mubr.msk.f32.mxu0 %vm33_vm1, %v385_v25  ;;  %v394_v25 = vld [vmem:[#allocation2 + $0x2d9] sm:$0xff] }
  0x9b   :  { %16969 = vmatprep.mubr.msk.f32.mxu1 %vm33_vm1, %v19372_v27 }
  0x9d   :  { %16872 = vmatmul.mubr.msk.f32.gmra.mxu0 %vm33_vm1, %v386_v28  ;;  %v19420_v28 = vld [vmem:[#allocation2 + $0x2d8] sm:$0xff] }
  0x9e   :  { %16970 = vmatmul.mubr.msk.f32.gmra.mxu1 %vm33_vm1, %v19380_v30  ;;  %16874 = vmatprep.mubr.msk.f32.mxu0 %vm33_vm1, %v387_v33  ;;  %v395_v33 = vld [vmem:[#allocation2 + $0x2e9] sm:$0xff] }
  0x9f   :  { %16972 = vmatprep.mubr.msk.f32.mxu1 %vm33_vm1, %v19382_v35 }
  0xa1   :  { %16875 = vmatmul.mubr.msk.f32.gmra.mxu0 %vm33_vm1, %v388_v39  ;;  %v19422_v39 = vld [vmem:[#allocation2 + $0x2e8] sm:$0xff] }
  0xa2   :  { %16973 = vmatmul.mubr.msk.f32.gmra.mxu1 %vm33_vm1, %v19390_v43  ;;  %16877 = vmatprep.mubr.msk.f32.mxu0 %vm33_vm1, %v389_v47  ;;  %v396_v47 = vld [vmem:[#allocation2 + $0x2f1] sm:$0xff] }
  0xa3   :  { %16975 = vmatprep.mubr.msk.f32.mxu1 %vm33_vm1, %v19392_v50 }
  0xa5   :  { %16878 = vmatmul.mubr.msk.f32.gmra.mxu0 %vm33_vm1, %v390_v52  ;;  %v19430_v52 = vld [vmem:[#allocation2 + $0x2f0] sm:$0xff] }
  0xa6   :  { %16976 = vmatmul.mubr.msk.f32.gmra.mxu1 %vm33_vm1, %v19400_v54  ;;  %16880 = vmatprep.mubr.msk.f32.mxu0 %vm33_vm1, %v391_v56  ;;  %26016 = vst [vmem:[#allocation7_spill] sm:$0xff] %v19430_v52  ;;  %v397_v56 = vld [vmem:[#allocation2 + $0x301] sm:$0xff] }
  0xa7   :  { %16978 = vmatprep.mubr.msk.f32.mxu1 %vm33_vm1, %v19402_v62 }
  0xa9   :  { %16881 = vmatmul.mubr.msk.f32.gmra.mxu0 %vm33_vm1, %v392_v3  ;;  %v19432_v3 = vld [vmem:[#allocation2 + $0x300] sm:$0xff] }
  0xaa   :  { %16979 = vmatmul.mubr.msk.f32.gmra.mxu1 %vm33_vm1, %v19410_v8  ;;  %16883 = vmatprep.mubr.msk.f32.mxu0 %vm33_vm1, %v393_v13  ;;  %26017 = vst [vmem:[#allocation8_spill] sm:$0xff] %v19432_v3  ;;  %v205_v13 = vld [vmem:[%s25800_s0 + $0x1f0] sm:$0xff] }
  0xab   :  { %16981 = vmatprep.mubr.msk.f32.mxu1 %vm33_vm1, %v19412_v21  ;;  %270 = vst.msk [vmem:[#allocation2 + $0x331] sm:$0xff] %vm33_vm1, %v205_v13  ;;  %v19458_v13 = vld [vmem:[#allocation2 + $0x320] sm:$0xff] }
  0xad   :  { %16884 = vmatmul.mubr.msk.f32.gmra.mxu0 %vm33_vm1, %v394_v25  ;;  %v398_v25 = vld [vmem:[#allocation2 + $0x309] sm:$0xff] }
  0xae   :  { %16982 = vmatmul.mubr.msk.f32.gmra.mxu1 %vm33_vm1, %v19420_v28  ;;  %16886 = vmatprep.mubr.msk.f32.mxu0 %vm33_vm1, %v395_v33  ;;  %v19443_v33 = vld [vmem:[#allocation2 + $0x308] sm:$0xff] }
  0xaf   :  { %16984 = vmatprep.mubr.msk.f32.mxu1 %vm33_vm1, %v19422_v39 }
  0xb1   :  { %16887 = vmatmul.mubr.msk.f32.gmra.mxu0 %vm33_vm1, %v396_v47  ;;  %v206_v47 = vld [vmem:[%s25800_s0 + $0x1f8] sm:$0xff] }
  0xb2   :  { %16985 = vmatmul.mubr.msk.f32.gmra.mxu1 %vm33_vm1, %v19430_v52  ;;  %16889 = vmatprep.mubr.msk.f32.mxu0 %vm33_vm1, %v397_v56  ;;  %v19449_v52 = vld [vmem:[#allocation2 + $0x318] sm:$0xff]  ;;  %271 = vst.msk [vmem:[#allocation2 + $0x339] sm:$0xff] %vm33_vm1, %v206_v47  ;;  %v400_v56 = vld [vmem:[#allocation2 + $0x321] sm:$0xff] }
  0xb3   :  { %16987 = vmatprep.mubr.msk.f32.mxu1 %vm33_vm1, %v19432_v3  ;;  %v1564_v3 = vld [vmem:[#allocation2 + $0x2] sm:$0xff]  ;;  %v19469_v47 = vld [vmem:[#allocation2 + $0x1a] sm:$0xff] }
  0xb5   :  { %16890 = vmatmul.mubr.msk.f32.gmra.mxu0 %vm33_vm1, %v398_v25  ;;  %v1565_v25 = vld [vmem:[#allocation2 + $0xa] sm:$0xff] }
  0xb6   :  { %16988 = vmatmul.mubr.msk.f32.gmra.mxu1 %vm33_vm1, %v19443_v33  ;;  %16892 = vmatprep.mubr.msk.f32.mxu0 %vm33_vm1, %v399_v5  ;;  %v14777_v5 = vld [vmem:[%s25801_s1 + $0x14] sm:$0xf] }
  0xb7   :  { %16990 = vmatprep.mubr.msk.f32.mxu1 %vm33_vm1, %v19449_v52  ;;  %17287 = vmatprep.subr.msk.mxu1 %vm595_vm0, %v14777_v5 }
  0xb9   :  { %16893 = vmatmul.mubr.msk.f32.gmra.mxu0 %vm33_vm1, %v400_v56  ;;  %v19488_v56 = vld [vmem:[#allocation2 + $0x32] sm:$0xff] }
  0xba   :  { %16991 = vmatmul.mubr.msk.f32.gmra.mxu1 %vm33_vm1, %v19458_v13  ;;  %16995 = vmatprep.mubr.msk.f32.mxu0 %vm33_vm1, %v1564_v3  ;;  %v19478_v3 = vld [vmem:[%s25801_s1 + $0x18] sm:$0xf] }
  0xbb   :  { %17093 = vmatprep.mubr.msk.f32.mxu1 %vm33_vm1, %v18979_v32  ;;  %v19484_v32 = vld [vmem:[#allocation2 + $0x22] sm:$0xff] }
  0xbd   :  { %16996 = vmatmul.mubr.msk.f32.vlgmr.msra.gmra.mxu0 %vm33_vm1, %v1565_v25  ;;  %v2304_v25 = vld [vmem:[#allocation2 + $0x180] sm:$0xff] }
  0xbe   :  { %17094 = vmatmul.mubr.msk.f32.vlgmr.msra.gmra.mxu1 %vm33_vm1, %v18986_v34  ;;  %17190 = vmatpush3.msk.msra.mxu0 %vm595_vm0, %v19244_v61  ;;  %v19499_v34 = vld [vmem:[#allocation2 + $0x3a] sm:$0xff]  ;;  %v19515_v61 = vld [vmem:[#allocation2 + $0x62] sm:$0xff] }
  0xbf   :  { %16998 = vmatprep.mubr.msk.f32.mxu0 %vm33_vm1, %v19469_v47  ;;  %17096 = vmatprep.mubr.msk.f32.mxu1 %vm33_vm1, %v18990_v36  ;;  %v19503_v36 = vld [vmem:[#allocation2 + $0x4a] sm:$0xff] }
  0xc0   :  { %17288 = vmatpush3.msk.msra.mxu1 %vm595_vm0, %v14777_v5  ;;  %17385 = vmatprep.subr.msk.mxu0 %vm595_vm0, %v19478_v3  ;;  %v1596_v5 = vld [vmem:[#allocation2 + $0x1b2] sm:$0xff] }
  0xc1   :  { %16999 = vmatmul.mubr.msk.f32.gmra.mxu0 %vm33_vm1, %v19484_v32 }
  0xc2   :  { %17097 = vmatmul.mubr.msk.f32.gmra.mxu1 %vm33_vm1, %v18998_v38  ;;  %17001 = vmatprep.mubr.msk.f32.mxu0 %vm33_vm1, %v19488_v56  ;;  %v19511_v38 = vld [vmem:[#allocation2 + $0x52] sm:$0xff] }
  0xc3   :  { %17099 = vmatprep.mubr.msk.f32.mxu1 %vm33_vm1, %v19000_v40  ;;  %v19523_v40 = vld [vmem:[#allocation2 + $0x6a] sm:$0xff] }
  0xc5   :  { %17002 = vmatmul.mubr.msk.f32.gmra.mxu0 %vm33_vm1, %v19499_v34 }
  0xc6   :  { %17100 = vmatmul.mubr.msk.f32.gmra.mxu1 %vm33_vm1, %v19008_v42  ;;  %17004 = vmatprep.mubr.msk.f32.mxu0 %vm33_vm1, %v19503_v36  ;;  %v19527_v42 = vld [vmem:[#allocation2 + $0x7a] sm:$0xff] }
  0xc7   :  { %17102 = vmatprep.mubr.msk.f32.mxu1 %vm33_vm1, %v19010_v44  ;;  %v19535_v44 = vld [vmem:[#allocation2 + $0x82] sm:$0xff] }
  0xc9   :  { %17005 = vmatmul.mubr.msk.f32.gmra.mxu0 %vm33_vm1, %v19511_v38 }
  0xca   :  { %17103 = vmatmul.mubr.msk.f32.gmra.mxu1 %vm33_vm1, %v19018_v46  ;;  %17007 = vmatprep.mubr.msk.f32.mxu0 %vm33_vm1, %v19515_v61  ;;  %v19539_v46 = vld [vmem:[#allocation2 + $0x92] sm:$0xff] }
  0xcb   :  { %17105 = vmatprep.mubr.msk.f32.mxu1 %vm33_vm1, %v19020_v48  ;;  %v19547_v48 = vld [vmem:[#allocation2 + $0x9a] sm:$0xff] }
  0xcd   :  { %17008 = vmatmul.mubr.msk.f32.gmra.mxu0 %vm33_vm1, %v19523_v40 }
  0xce   :  { %17106 = vmatmul.mubr.msk.f32.gmra.mxu1 %vm33_vm1, %v19053_v57  ;;  %17010 = vmatprep.mubr.msk.f32.mxu0 %vm33_vm1, %v19527_v42  ;;  %v19551_v57 = vld [vmem:[#allocation2 + $0xaa] sm:$0xff] }
  0xcf   :  { %17108 = vmatprep.mubr.msk.f32.mxu1 %vm33_vm1, %v19058_v59  ;;  %v19559_v59 = vld [vmem:[#allocation2 + $0xb2] sm:$0xff] }
  0xd1   :  { %17011 = vmatmul.mubr.msk.f32.gmra.mxu0 %vm33_vm1, %v19535_v44 }
  0xd2   :  { %17109 = vmatmul.mubr.msk.f32.gmra.mxu1 %vm33_vm1, %v19066_v63  ;;  %17013 = vmatprep.mubr.msk.f32.mxu0 %vm33_vm1, %v19539_v46  ;;  %v19563_v63 = vld [vmem:[#allocation2 + $0xc2] sm:$0xff] }
  0xd3   :  { %17111 = vmatprep.mubr.msk.f32.mxu1 %vm33_vm1, %v19109_v11  ;;  %v19571_v11 = vld [vmem:[#allocation2 + $0xca] sm:$0xff] }
  0xd5   :  { %17014 = vmatmul.mubr.msk.f32.gmra.mxu0 %vm33_vm1, %v19547_v48 }
  0xd6   :  { %17112 = vmatmul.mubr.msk.f32.gmra.mxu1 %vm33_vm1, %v19124_v14  ;;  %17016 = vmatprep.mubr.msk.f32.mxu0 %vm33_vm1, %v19551_v57  ;;  %v19575_v14 = vld [vmem:[#allocation2 + $0xda] sm:$0xff] }
  0xd7   :  { %17114 = vmatprep.mubr.msk.f32.mxu1 %vm33_vm1, %v19126_v16  ;;  %v19583_v16 = vld [vmem:[#allocation2 + $0xe2] sm:$0xff] }
  0xd9   :  { %17017 = vmatmul.mubr.msk.f32.gmra.mxu0 %vm33_vm1, %v19559_v59 }
  0xda   :  { %17115 = vmatmul.mubr.msk.f32.gmra.mxu1 %vm33_vm1, %v19134_v18  ;;  %17019 = vmatprep.mubr.msk.f32.mxu0 %vm33_vm1, %v19563_v63  ;;  %v19587_v18 = vld [vmem:[#allocation2 + $0xf2] sm:$0xff] }
  0xdb   :  { %17117 = vmatprep.mubr.msk.f32.mxu1 %vm33_vm1, %v19136_v20  ;;  %v19595_v20 = vld [vmem:[#allocation2 + $0xfa] sm:$0xff] }
  0xdd   :  { %17020 = vmatmul.mubr.msk.f32.gmra.mxu0 %vm33_vm1, %v19571_v11 }
  0xde   :  { %17118 = vmatmul.mubr.msk.f32.gmra.mxu1 %vm33_vm1, %v19144_v22  ;;  %17022 = vmatprep.mubr.msk.f32.mxu0 %vm33_vm1, %v19575_v14  ;;  %v19599_v22 = vld [vmem:[#allocation2 + $0x10a] sm:$0xff] }
  0xdf   :  { %17120 = vmatprep.mubr.msk.f32.mxu1 %vm33_vm1, %v19146_v24  ;;  %v19607_v24 = vld [vmem:[#allocation2 + $0x112] sm:$0xff] }
  0xe1   :  { %17023 = vmatmul.mubr.msk.f32.gmra.mxu0 %vm33_vm1, %v19583_v16 }
  0xe2   :  { %17121 = vmatmul.mubr.msk.f32.gmra.mxu1 %vm33_vm1, %v19148_v26  ;;  %17025 = vmatprep.mubr.msk.f32.mxu0 %vm33_vm1, %v19587_v18  ;;  %v19611_v26 = vld [vmem:[#allocation2 + $0x122] sm:$0xff] }
  0xe3   :  { %17123 = vmatprep.mubr.msk.f32.mxu1 %vm33_vm1, %v19162_v31  ;;  %v19619_v31 = vld [vmem:[#allocation2 + $0x12a] sm:$0xff] }
  0xe5   :  { %17026 = vmatmul.mubr.msk.f32.gmra.mxu0 %vm33_vm1, %v19595_v20 }
  0xe6   :  { %17124 = vmatmul.mubr.msk.f32.gmra.mxu1 %vm33_vm1, %v19233_v58  ;;  %17028 = vmatprep.mubr.msk.f32.mxu0 %vm33_vm1, %v19599_v22  ;;  %v19623_v58 = vld [vmem:[#allocation2 + $0x13a] sm:$0xff] }
  0xe7   :  { %17126 = vmatprep.mubr.msk.f32.mxu1 %vm33_vm1, %v19246_v0  ;;  %v19631_v0 = vld [vmem:[#allocation2 + $0x142] sm:$0xff] }
  0xe8   :  { %26018 = vst [vmem:[#allocation9_spill] sm:$0xff] %v19631_v0 }
  0xe9   :  { %17029 = vmatmul.mubr.msk.f32.gmra.mxu0 %vm33_vm1, %v19607_v24 }
  0xea   :  { %17127 = vmatmul.mubr.msk.f32.gmra.mxu1 %vm33_vm1, %v19258_v2  ;;  %17031 = vmatprep.mubr.msk.f32.mxu0 %vm33_vm1, %v19611_v26  ;;  %v19635_v2 = vld [vmem:[#allocation2 + $0x152] sm:$0xff] }
  0xeb   :  { %17129 = vmatprep.mubr.msk.f32.mxu1 %vm33_vm1, %v19260_v4  ;;  %26019 = vst [vmem:[#allocation10_spill] sm:$0xff] %v19635_v2  ;;  %v19643_v4 = vld [vmem:[#allocation2 + $0x15a] sm:$0xff] }
  0xec   :  { %26020 = vst [vmem:[#allocation11_spill] sm:$0xff] %v19643_v4 }
  0xed   :  { %17032 = vmatmul.mubr.msk.f32.gmra.mxu0 %vm33_vm1, %v19619_v31 }
  0xee   :  { %17130 = vmatmul.mubr.msk.f32.gmra.mxu1 %vm33_vm1, %v19268_v7  ;;  %17034 = vmatprep.mubr.msk.f32.mxu0 %vm33_vm1, %v19623_v58  ;;  %v19647_v7 = vld [vmem:[#allocation2 + $0x16a] sm:$0xff] }
  0xef   :  { %17132 = vmatprep.mubr.msk.f32.mxu1 %vm33_vm1, %v19270_v9  ;;  %26021 = vst [vmem:[#allocation12_spill] sm:$0xff] %v19647_v7  ;;  %v19655_v9 = vld [vmem:[#allocation2 + $0x172] sm:$0xff] }
  0xf0   :  { %26022 = vst [vmem:[#allocation13_spill] sm:$0xff] %v19655_v9 }
  0xf1   :  { %17035 = vmatmul.mubr.msk.f32.gmra.mxu0 %vm33_vm1, %v19631_v0 }
  0xf2   :  { %17133 = vmatmul.mubr.msk.f32.gmra.mxu1 %vm33_vm1, %v19278_v12  ;;  %17037 = vmatprep.mubr.msk.f32.mxu0 %vm33_vm1, %v19635_v2  ;;  %v2305_v12 = vld [vmem:[#allocation2 + $0x188] sm:$0xff] }
  0xf3   :  { %17135 = vmatprep.mubr.msk.f32.mxu1 %vm33_vm1, %v19280_v15  ;;  %v1597_v15 = vld [vmem:[#allocation2 + $0x1ba] sm:$0xff] }
  0xf5   :  { %17038 = vmatmul.mubr.msk.f32.gmra.mxu0 %vm33_vm1, %v19643_v4  ;;  %v16899_v4 = vpop.f32.mrf.mxu1 }
  0xf6   :  { %17136 = vmatmul.mubr.msk.f32.gmra.mxu1 %vm33_vm1, %v19288_v19  ;;  %17040 = vmatprep.mubr.msk.f32.mxu0 %vm33_vm1, %v19647_v7  ;;  %v19664_v19 = vld [vmem:[#allocation2 + $0x1ca] sm:$0xff]  ;;  %v16801_v7 = vpop.f32.mrf.mxu0 }
  0xf7   :  { %17138 = vmatprep.mubr.msk.f32.mxu1 %vm33_vm1, %v2304_v25  ;;  %v19669_v25 = vadd.f32 %v16899_v4, %v16801_v7 }
  0xf9   :  { %17041 = vmatmul.mubr.msk.f32.gmra.mxu0 %vm33_vm1, %v19655_v9  ;;  %26023 = vst [vmem:[#allocation14_spill] sm:$0xff] %v19669_v25  ;;  %v19677_v9 = vld [vmem:[#allocation2 + $0x1e2] sm:$0xff] }
  0xfa   :  { %17139 = vmatmul.mubr.msk.f32.gmra.mxu1 %vm33_vm1, %v2305_v12  ;;  %17043 = vmatprep.mubr.msk.f32.mxu0 %vm33_vm1, %v1596_v5  ;;  %v19673_v12 = vld [vmem:[#allocation2 + $0x1d2] sm:$0xff]  ;;  %v1245_v5 = vpop.f32.mrf.mxu1 }
  0xfb   :  { %17141 = vmatprep.mubr.msk.f32.mxu1 %vm33_vm1, %v19295_v29  ;;  %v665_v29 = vpop.f32.mrf.mxu0 }
  0xfc   :  { %v19679_v2 = vadd.f32 %v1245_v5, %v665_v29  ;;  %v19693_v29 = vld [vmem:[#allocation2 + $0x1fa] sm:$0xff] }
  0xfd   :  { %17044 = vmatmul.mubr.msk.f32.gmra.mxu0 %vm33_vm1, %v1597_v15 }
  0xfe   :  { %17142 = vmatmul.mubr.msk.f32.gmra.mxu1 %vm33_vm1, %v19308_v37  ;;  %17046 = vmatprep.mubr.msk.f32.mxu0 %vm33_vm1, %v19664_v19  ;;  %26024 = vst [vmem:[#allocation15_spill] sm:$0xff] %v19679_v2 }
  0xff   :  { %17144 = vmatprep.mubr.msk.f32.mxu1 %vm33_vm1, %v19312_v41  ;;  %v19689_v41 = vld [vmem:[#allocation2 + $0x1ea] sm:$0xff] }
 0x101   :  { %v16804_v15 = vpop.f32.mrf.mxu0  ;;  %17047 = vmatmul.mubr.msk.f32.gmra.mxu0 %vm33_vm1, %v19673_v12 }
 0x102   :  { %v16902_v0 = vpop.f32.mrf.mxu1  ;;  %17145 = vmatmul.mubr.msk.f32.gmra.mxu1 %vm33_vm1, %v19320_v45  ;;  %17049 = vmatprep.mubr.msk.f32.mxu0 %vm33_vm1, %v19677_v9 }
 0x103   :  { %v19685_v37 = vadd.f32 %v16902_v0, %v16804_v15  ;;  %17147 = vmatprep.mubr.msk.f32.mxu1 %vm33_vm1, %v19322_v49  ;;  %v675_v4 = vpop.f32.mrf.mxu0  ;;  %v19705_v49 = vld [vmem:[#allocation2 + $0x202] sm:$0xff] }
 0x104   :  { %v1255_v7 = vpop.f32.mrf.mxu1 }
 0x105   :  { %26025 = vst [vmem:[#allocation16_spill] sm:$0xff] %v19685_v37  ;;  %v19695_v5 = vadd.f32 %v1255_v7, %v675_v4  ;;  %v16807_v2 = vpop.f32.mrf.mxu0  ;;  %17050 = vmatmul.mubr.msk.f32.gmra.mxu0 %vm33_vm1, %v19689_v41  ;;  %v19709_v4 = vld [vmem:[#allocation2 + $0x212] sm:$0xff] }
 0x106   :  { %v16905_v25 = vpop.f32.mrf.mxu1  ;;  %17148 = vmatmul.mubr.msk.f32.gmra.mxu1 %vm33_vm1, %v19330_v51  ;;  %17052 = vmatprep.mubr.msk.f32.mxu0 %vm33_vm1, %v19693_v29 }
 0x107   :  { %26026 = vst [vmem:[#allocation17_spill] sm:$0xff] %v19695_v5  ;;  %v19701_v45 = vadd.f32 %v16905_v25, %v16807_v2  ;;  %17150 = vmatprep.mubr.msk.f32.mxu1 %vm33_vm1, %v19332_v53  ;;  %v685_v0 = vpop.f32.mrf.mxu0  ;;  %v19721_v53 = vld [vmem:[#allocation2 + $0x21a] sm:$0xff] }
 0x108   :  { %v1265_v15 = vpop.f32.mrf.mxu1 }
 0x109   :  { %26027 = vst [vmem:[#allocation18_spill] sm:$0xff] %v19701_v45  ;;  %v19711_v7 = vadd.f32 %v1265_v15, %v685_v0  ;;  %v16810_v5 = vpop.f32.mrf.mxu0  ;;  %17053 = vmatmul.mubr.msk.f32.gmra.mxu0 %vm33_vm1, %v19705_v49  ;;  %v19725_v0 = vld [vmem:[#allocation2 + $0x22a] sm:$0xff] }
 0x10a   :  { %v16908_v37 = vpop.f32.mrf.mxu1  ;;  %17151 = vmatmul.mubr.msk.f32.gmra.mxu1 %vm33_vm1, %v19340_v55  ;;  %17055 = vmatprep.mubr.msk.f32.mxu0 %vm33_vm1, %v19709_v4 }
 0x10b   :  { %26028 = vst [vmem:[#allocation19_spill] sm:$0xff] %v19711_v7  ;;  %v19717_v51 = vadd.f32 %v16908_v37, %v16810_v5  ;;  %17153 = vmatprep.mubr.msk.f32.mxu1 %vm33_vm1, %v19342_v60  ;;  %v695_v2 = vpop.f32.mrf.mxu0  ;;  %v19737_v60 = vld [vmem:[#allocation2 + $0x232] sm:$0xff] }
 0x10c   :  { %v1275_v25 = vpop.f32.mrf.mxu1 }
 0x10d   :  { %26029 = vst [vmem:[#allocation20_spill] sm:$0xff] %v19717_v51  ;;  %v19727_v15 = vadd.f32 %v1275_v25, %v695_v2  ;;  %v16813_v7 = vpop.f32.mrf.mxu0  ;;  %17056 = vmatmul.mubr.msk.f32.gmra.mxu0 %vm33_vm1, %v19721_v53  ;;  %v19741_v2 = vld [vmem:[#allocation2 + $0x242] sm:$0xff] }
 0x10e   :  { %v16911_v45 = vpop.f32.mrf.mxu1  ;;  %17154 = vmatmul.mubr.msk.f32.gmra.mxu1 %vm33_vm1, %v19350_v1  ;;  %17058 = vmatprep.mubr.msk.f32.mxu0 %vm33_vm1, %v19725_v0 }
 0x10f   :  { %26030 = vst [vmem:[#allocation21_spill] sm:$0xff] %v19727_v15  ;;  %v19733_v55 = vadd.f32 %v16911_v45, %v16813_v7  ;;  %17156 = vmatprep.mubr.msk.f32.mxu1 %vm33_vm1, %v19352_v6  ;;  %v705_v37 = vpop.f32.mrf.mxu0  ;;  %v19753_v6 = vld [vmem:[#allocation2 + $0x24a] sm:$0xff] }
 0x110   :  { %v1285_v5 = vpop.f32.mrf.mxu1 }
 0x111   :  { %26031 = vst [vmem:[#allocation22_spill] sm:$0xff] %v19733_v55  ;;  %v19743_v25 = vadd.f32 %v1285_v5, %v705_v37  ;;  %v16816_v15 = vpop.f32.mrf.mxu0  ;;  %17059 = vmatmul.mubr.msk.f32.gmra.mxu0 %vm33_vm1, %v19737_v60  ;;  %v19757_v37 = vld [vmem:[#allocation2 + $0x25a] sm:$0xff] }
 0x112   :  { %v16914_v51 = vpop.f32.mrf.mxu1  ;;  %17157 = vmatmul.mubr.msk.f32.gmra.mxu1 %vm33_vm1, %v19360_v10  ;;  %17061 = vmatprep.mubr.msk.f32.mxu0 %vm33_vm1, %v19741_v2 }
 0x113   :  { %26032 = vst [vmem:[#allocation23_spill] sm:$0xff] %v19743_v25  ;;  %v19749_v1 = vadd.f32 %v16914_v51, %v16816_v15  ;;  %17159 = vmatprep.mubr.msk.f32.mxu1 %vm33_vm1, %v19362_v17  ;;  %v715_v45 = vpop.f32.mrf.mxu0  ;;  %v19769_v17 = vld [vmem:[#allocation2 + $0x262] sm:$0xff] }
 0x114   :  { %v1295_v7 = vpop.f32.mrf.mxu1 }
 0x115   :  { %26033 = vst [vmem:[#allocation24_spill] sm:$0xff] %v19749_v1  ;;  %v19759_v5 = vadd.f32 %v1295_v7, %v715_v45  ;;  %v16819_v25 = vpop.f32.mrf.mxu0  ;;  %17062 = vmatmul.mubr.msk.f32.gmra.mxu0 %vm33_vm1, %v19753_v6  ;;  %v19773_v45 = vld [vmem:[#allocation2 + $0x272] sm:$0xff] }
 0x116   :  { %v16917_v55 = vpop.f32.mrf.mxu1  ;;  %17160 = vmatmul.mubr.msk.f32.gmra.mxu1 %vm33_vm1, %v19370_v23  ;;  %17064 = vmatprep.mubr.msk.f32.mxu0 %vm33_vm1, %v19757_v37 }
 0x117   :  { %26034 = vst [vmem:[#allocation25_spill] sm:$0xff] %v19759_v5  ;;  %v19765_v10 = vadd.f32 %v16917_v55, %v16819_v25  ;;  %17162 = vmatprep.mubr.msk.f32.mxu1 %vm33_vm1, %v19372_v27  ;;  %v725_v51 = vpop.f32.mrf.mxu0  ;;  %v19785_v27 = vld [vmem:[#allocation2 + $0x27a] sm:$0xff] }
 0x118   :  { %v1305_v15 = vpop.f32.mrf.mxu1 }
 0x119   :  { %26035 = vst [vmem:[#allocation26_spill] sm:$0xff] %v19765_v10  ;;  %v19775_v7 = vadd.f32 %v1305_v15, %v725_v51  ;;  %v16822_v5 = vpop.f32.mrf.mxu0  ;;  %17065 = vmatmul.mubr.msk.f32.gmra.mxu0 %vm33_vm1, %v19769_v17  ;;  %v19789_v51 = vld [vmem:[#allocation2 + $0x28a] sm:$0xff] }
 0x11a   :  { %v16920_v1 = vpop.f32.mrf.mxu1  ;;  %17163 = vmatmul.mubr.msk.f32.gmra.mxu1 %vm33_vm1, %v19380_v30  ;;  %17067 = vmatprep.mubr.msk.f32.mxu0 %vm33_vm1, %v19773_v45 }
 0x11b   :  { %26036 = vst [vmem:[#allocation27_spill] sm:$0xff] %v19775_v7  ;;  %v19781_v23 = vadd.f32 %v16920_v1, %v16822_v5  ;;  %17165 = vmatprep.mubr.msk.f32.mxu1 %vm33_vm1, %v19382_v35  ;;  %v735_v55 = vpop.f32.mrf.mxu0  ;;  %v19801_v35 = vld [vmem:[#allocation2 + $0x292] sm:$0xff] }
 0x11c   :  { %v1315_v25 = vpop.f32.mrf.mxu1 }
 0x11d   :  { %26037 = vst [vmem:[#allocation28_spill] sm:$0xff] %v19781_v23  ;;  %v19791_v15 = vadd.f32 %v1315_v25, %v735_v55  ;;  %v16825_v7 = vpop.f32.mrf.mxu0  ;;  %17068 = vmatmul.mubr.msk.f32.gmra.mxu0 %vm33_vm1, %v19785_v27  ;;  %v19805_v55 = vld [vmem:[#allocation2 + $0x2a2] sm:$0xff] }
 0x11e   :  { %v16923_v10 = vpop.f32.mrf.mxu1  ;;  %17166 = vmatmul.mubr.msk.f32.gmra.mxu1 %vm33_vm1, %v19390_v43  ;;  %17070 = vmatprep.mubr.msk.f32.mxu0 %vm33_vm1, %v19789_v51 }
 0x11f   :  { %26038 = vst [vmem:[#allocation29_spill] sm:$0xff] %v19791_v15  ;;  %v19797_v30 = vadd.f32 %v16923_v10, %v16825_v7  ;;  %17168 = vmatprep.mubr.msk.f32.mxu1 %vm33_vm1, %v19392_v50  ;;  %v745_v1 = vpop.f32.mrf.mxu0  ;;  %v19817_v50 = vld [vmem:[#allocation2 + $0x2aa] sm:$0xff] }
 0x120   :  { %v1325_v5 = vpop.f32.mrf.mxu1 }
 0x121   :  { %26039 = vst [vmem:[#allocation30_spill] sm:$0xff] %v19797_v30  ;;  %v19807_v25 = vadd.f32 %v1325_v5, %v745_v1  ;;  %v16828_v15 = vpop.f32.mrf.mxu0  ;;  %17071 = vmatmul.mubr.msk.f32.gmra.mxu0 %vm33_vm1, %v19801_v35  ;;  %v19821_v1 = vld [vmem:[#allocation2 + $0x2ba] sm:$0xff] }
 0x122   :  { %v16926_v23 = vpop.f32.mrf.mxu1  ;;  %17169 = vmatmul.mubr.msk.f32.gmra.mxu1 %vm33_vm1, %v19400_v54  ;;  %17073 = vmatprep.mubr.msk.f32.mxu0 %vm33_vm1, %v19805_v55 }
 0x123   :  { %26040 = vst [vmem:[#allocation31_spill] sm:$0xff] %v19807_v25  ;;  %v19813_v43 = vadd.f32 %v16926_v23, %v16828_v15  ;;  %17171 = vmatprep.mubr.msk.f32.mxu1 %vm33_vm1, %v19402_v62  ;;  %v755_v10 = vpop.f32.mrf.mxu0  ;;  %v19833_v62 = vld [vmem:[#allocation2 + $0x2c2] sm:$0xff] }
 0x124   :  { %v1335_v7 = vpop.f32.mrf.mxu1 }
 0x125   :  { %26041 = vst [vmem:[#allocation32_spill] sm:$0xff] %v19813_v43  ;;  %v19823_v5 = vadd.f32 %v1335_v7, %v755_v10  ;;  %v16831_v25 = vpop.f32.mrf.mxu0  ;;  %17074 = vmatmul.mubr.msk.f32.gmra.mxu0 %vm33_vm1, %v19817_v50  ;;  %v19837_v10 = vld [vmem:[#allocation2 + $0x2d2] sm:$0xff] }
 0x126   :  { %v16929_v30 = vpop.f32.mrf.mxu1  ;;  %17172 = vmatmul.mubr.msk.f32.gmra.mxu1 %vm33_vm1, %v19410_v8  ;;  %17076 = vmatprep.mubr.msk.f32.mxu0 %vm33_vm1, %v19821_v1  ;;  %26044 = vst [vmem:[#allocation35_spill] sm:$0xff] %v19837_v10 }
 0x127   :  { %26042 = vst [vmem:[#allocation33_spill] sm:$0xff] %v19823_v5  ;;  %v19829_v54 = vadd.f32 %v16929_v30, %v16831_v25  ;;  %17174 = vmatprep.mubr.msk.f32.mxu1 %vm33_vm1, %v19412_v21  ;;  %v765_v23 = vpop.f32.mrf.mxu0  ;;  %v19849_v21 = vld [vmem:[#allocation2 + $0x2da] sm:$0xff] }
 0x128   :  { %v1345_v15 = vpop.f32.mrf.mxu1  ;;  %26047 = vst [vmem:[#allocation38_spill] sm:$0xff] %v19849_v21 }
 0x129   :  { %26043 = vst [vmem:[#allocation34_spill] sm:$0xff] %v19829_v54  ;;  %v19839_v7 = vadd.f32 %v1345_v15, %v765_v23  ;;  %v16834_v5 = vpop.f32.mrf.mxu0  ;;  %17077 = vmatmul.mubr.msk.f32.gmra.mxu0 %vm33_vm1, %v19833_v62  ;;  %v19853_v23 = vld [vmem:[#allocation2 + $0x2ea] sm:$0xff] }
 0x12a   :  { %v16932_v43 = vpop.f32.mrf.mxu1  ;;  %17175 = vmatmul.mubr.msk.f32.gmra.mxu1 %vm33_vm1, %v19420_v28  ;;  %17079 = vmatprep.mubr.msk.f32.mxu0 %vm33_vm1, %v19837_v10  ;;  %v26049_v28 = vld [vmem:[#allocation7_spill] sm:$0xff] }
 0x12b   :  { %26045 = vst [vmem:[#allocation36_spill] sm:$0xff] %v19839_v7  ;;  %v19845_v8 = vadd.f32 %v16932_v43, %v16834_v5  ;;  %17177 = vmatprep.mubr.msk.f32.mxu1 %vm33_vm1, %v19422_v39  ;;  %v775_v30 = vpop.f32.mrf.mxu0  ;;  %v19865_v39 = vld [vmem:[#allocation2 + $0x2f2] sm:$0xff]  ;;  %v26052_v5 = vld [vmem:[#allocation8_spill] sm:$0xff] }
 0x12c   :  { %v1355_v25 = vpop.f32.mrf.mxu1  ;;  %26051 = vst [vmem:[#allocation40_spill] sm:$0xff] %v19865_v39 }
 0x12d   :  { %26046 = vst [vmem:[#allocation37_spill] sm:$0xff] %v19845_v8  ;;  %v19855_v15 = vadd.f32 %v1355_v25, %v775_v30  ;;  %v16837_v7 = vpop.f32.mrf.mxu0  ;;  %17080 = vmatmul.mubr.msk.f32.gmra.mxu0 %vm33_vm1, %v19849_v21 }
 0x12e   :  { %v16935_v54 = vpop.f32.mrf.mxu1  ;;  %17178 = vmatmul.mubr.msk.f32.gmra.mxu1 %vm33_vm1, %v26049_v28  ;;  %17082 = vmatprep.mubr.msk.f32.mxu0 %vm33_vm1, %v19853_v23 }
 0x12f   :  { %26048 = vst [vmem:[#allocation39_spill] sm:$0xff] %v19855_v15  ;;  %v19861_v43 = vadd.f32 %v16935_v54, %v16837_v7  ;;  %17180 = vmatprep.mubr.msk.f32.mxu1 %vm33_vm1, %v26052_v5  ;;  %v785_v30 = vpop.f32.mrf.mxu0  ;;  %v19869_v15 = vld [vmem:[#allocation2 + $0x302] sm:$0xff]  ;;  %v19881_v7 = vld [vmem:[#allocation2 + $0x30a] sm:$0xff] }
 0x130   :  { %v1365_v25 = vpop.f32.mrf.mxu1  ;;  %26055 = vst [vmem:[#allocation42_spill] sm:$0xff] %v19881_v7 }
 0x131   :  { %26050 = vst [vmem:[#allocation7_spill] sm:$0xff] %v19861_v43  ;;  %v19871_v8 = vadd.f32 %v1365_v25, %v785_v30  ;;  %v16840_v21 = vpop.f32.mrf.mxu0  ;;  %17083 = vmatmul.mubr.msk.f32.gmra.mxu0 %vm33_vm1, %v19865_v39  ;;  %v19885_v30 = vld [vmem:[#allocation2 + $0x31a] sm:$0xff]  ;;  %v2336_v25 = vld [vmem:[#allocation2 + $0x330] sm:$0xff] }
 0x132   :  { %v16938_v10 = vpop.f32.mrf.mxu1  ;;  %17181 = vmatmul.mubr.msk.f32.gmra.mxu1 %vm33_vm1, %v19443_v33  ;;  %17085 = vmatprep.mubr.msk.f32.mxu0 %vm33_vm1, %v19869_v15 }
 0x133   :  { %26053 = vst [vmem:[#allocation8_spill] sm:$0xff] %v19871_v8  ;;  %v19877_v54 = vadd.f32 %v16938_v10, %v16840_v21  ;;  %17183 = vmatprep.mubr.msk.f32.mxu1 %vm33_vm1, %v19449_v52  ;;  %v795_v28 = vpop.f32.mrf.mxu0  ;;  %v19897_v52 = vld [vmem:[#allocation2 + $0x322] sm:$0xff]  ;;  %v2337_v10 = vld [vmem:[#allocation2 + $0x338] sm:$0xff] }
 0x134   :  { %v1375_v5 = vpop.f32.mrf.mxu1 }
 0x135   :  { %26054 = vst [vmem:[#allocation41_spill] sm:$0xff] %v19877_v54  ;;  %v19887_v8 = vadd.f32 %v1375_v5, %v795_v28  ;;  %v16843_v43 = vpop.f32.mrf.mxu0  ;;  %17086 = vmatmul.mubr.msk.f32.gmra.mxu0 %vm33_vm1, %v19881_v7  ;;  %v2984_v5 = vld [vmem:[#allocation2 + $0x19] sm:$0xff] }
 0x136   :  { %v16941_v39 = vpop.f32.mrf.mxu1  ;;  %17184 = vmatmul.mubr.msk.f32.gmra.mxu1 %vm33_vm1, %v19458_v13  ;;  %17088 = vmatprep.mubr.msk.f32.mxu0 %vm33_vm1, %v19885_v30 }
 0x137   :  { %26056 = vst [vmem:[#allocation43_spill] sm:$0xff] %v19887_v8  ;;  %v19893_v33 = vadd.f32 %v16941_v39, %v16843_v43  ;;  %17186 = vmatprep.mubr.msk.f32.mxu1 %vm33_vm1, %v2336_v25  ;;  %v805_v21 = vpop.f32.mrf.mxu0  ;;  %v2985_v43 = vld [vmem:[#allocation2 + $0x21] sm:$0xff]  ;;  %v14909_v39 = vld [vmem:[%s25801_s1 + $0x1c] sm:$0xf] }
 0x138   :  { %v1385_v28 = vpop.f32.mrf.mxu1  ;;  %17483 = vmatprep.subr.msk.mxu1 %vm595_vm0, %v14909_v39 }
 0x139   :  { %v19900_v8 = vadd.f32 %v1385_v28, %v805_v21  ;;  %v16846_v54 = vpop.f32.mrf.mxu0  ;;  %17089 = vmatmul.mubr.msk.f32.gmra.mxu0 %vm33_vm1, %v19897_v52  ;;  %v19913_v28 = vld [vmem:[#allocation2 + $0x31] sm:$0xff] }
 0x13a   :  { %v16944_v7 = vpop.f32.mrf.mxu1  ;;  %17187 = vmatmul.mubr.msk.f32.gmra.mxu1 %vm33_vm1, %v2337_v10  ;;  %17191 = vmatprep.mubr.msk.f32.mxu0 %vm33_vm1, %v2984_v5  ;;  %v19932_v5 = vld [vmem:[#allocation2 + $0x39] sm:$0xff] }
 0x13b   :  { %26057 = vst [vmem:[#allocation44_spill] sm:$0xff] %v19900_v8  ;;  %v19905_v13 = vadd.f32 %v16944_v7, %v16846_v54  ;;  %17289 = vmatprep.mubr.msk.f32.mxu1 %vm33_vm1, %v19469_v47  ;;  %v815_v25 = vpop.f32.mrf.mxu0  ;;  %v19924_v47 = vld [vmem:[%s25801_s1 + $0x20] sm:$0xf] }
 0x13c   :  { %v1395_v21 = vpop.f32.mrf.mxu1  ;;  %26058 = vst [vmem:[#allocation45_spill] sm:$0xff] %v19924_v47 }
 0x13d   :  { %v19916_v8 = vadd.f32 %v1395_v21, %v815_v25  ;;  %v16849_v54 = vpop.f32.mrf.mxu0  ;;  %17192 = vmatmul.mubr.msk.f32.vlgmr.msra.gmra.mxu0 %vm33_vm1, %v2985_v43 }
 0x13e   :  { %v16947_v7 = vpop.f32.mrf.mxu1  ;;  %17290 = vmatmul.mubr.msk.f32.vlgmr.msra.gmra.mxu1 %vm33_vm1, %v19484_v32  ;;  %17386 = vmatpush3.msk.msra.mxu0 %vm595_vm0, %v19478_v3  ;;  %v19936_v32 = vld [vmem:[#allocation2 + $0x49] sm:$0xff] }
 0x13f   :  { %v19926_v10 = vadd.f32 %v16947_v7, %v16849_v54  ;;  %17194 = vmatprep.mubr.msk.f32.mxu0 %vm33_vm1, %v19913_v28  ;;  %v825_v25 = vpop.f32.mrf.mxu0  ;;  %17292 = vmatprep.mubr.msk.f32.mxu1 %vm33_vm1, %v19488_v56  ;;  %v19951_v56 = vld [vmem:[#allocation2 + $0x51] sm:$0xff] }
 0x140   :  { %v1405_v43 = vpop.f32.mrf.mxu1  ;;  %17484 = vmatpush3.msk.msra.mxu1 %vm595_vm0, %v14909_v39  ;;  %17581 = vmatprep.subr.msk.mxu0 %vm595_vm0, %v19924_v47 }
 0x141   :  { %26059 = vst [vmem:[#allocation46_spill] sm:$0xff] %v19926_v10  ;;  %v19939_v21 = vadd.f32 %v1405_v43, %v825_v25  ;;  %v16852_v3 = vpop.f32.mrf.mxu0  ;;  %17195 = vmatmul.mubr.msk.f32.gmra.mxu0 %vm33_vm1, %v19932_v5  ;;  %v19955_v43 = vld [vmem:[#allocation2 + $0x61] sm:$0xff] }
 0x142   :  { %v16950_v54 = vpop.f32.mrf.mxu1  ;;  %17293 = vmatmul.mubr.msk.f32.gmra.mxu1 %vm33_vm1, %v19499_v34  ;;  %17197 = vmatprep.mubr.msk.f32.mxu0 %vm33_vm1, %v19936_v32 }
 0x143   :  { %26060 = vst [vmem:[#allocation47_spill] sm:$0xff] %v19939_v21  ;;  %v19947_v7 = vadd.f32 %v16950_v54, %v16852_v3  ;;  %17295 = vmatprep.mubr.msk.f32.mxu1 %vm33_vm1, %v19503_v36  ;;  %v835_v39 = vpop.f32.mrf.mxu0  ;;  %v19967_v36 = vld [vmem:[#allocation2 + $0x69] sm:$0xff] }
 0x144   :  { %v1415_v25 = vpop.f32.mrf.mxu1 }
 0x145   :  { %26061 = vst [vmem:[#allocation48_spill] sm:$0xff] %v19947_v7  ;;  %v19957_v21 = vadd.f32 %v1415_v25, %v835_v39  ;;  %v16855_v47 = vpop.f32.mrf.mxu0  ;;  %17198 = vmatmul.mubr.msk.f32.gmra.mxu0 %vm33_vm1, %v19951_v56  ;;  %v19971_v39 = vld [vmem:[#allocation2 + $0x79] sm:$0xff] }
 0x146   :  { %v16953_v10 = vpop.f32.mrf.mxu1  ;;  %17296 = vmatmul.mubr.msk.f32.gmra.mxu1 %vm33_vm1, %v19511_v38  ;;  %17200 = vmatprep.mubr.msk.f32.mxu0 %vm33_vm1, %v19955_v43 }
 0x147   :  { %26062 = vst [vmem:[#allocation49_spill] sm:$0xff] %v19957_v21  ;;  %v19963_v34 = vadd.f32 %v16953_v10, %v16855_v47  ;;  %17298 = vmatprep.mubr.msk.f32.mxu1 %vm33_vm1, %v19515_v61  ;;  %v845_v3 = vpop.f32.mrf.mxu0  ;;  %v19983_v61 = vld [vmem:[#allocation2 + $0x81] sm:$0xff] }
 0x148   :  { %v1425_v54 = vpop.f32.mrf.mxu1 }
 0x149   :  { %26063 = vst [vmem:[#allocation50_spill] sm:$0xff] %v19963_v34  ;;  %v19973_v25 = vadd.f32 %v1425_v54, %v845_v3  ;;  %v16858_v21 = vpop.f32.mrf.mxu0  ;;  %17201 = vmatmul.mubr.msk.f32.gmra.mxu0 %vm33_vm1, %v19967_v36  ;;  %v19987_v3 = vld [vmem:[#allocation2 + $0x91] sm:$0xff] }
 0x14a   :  { %v16956_v7 = vpop.f32.mrf.mxu1  ;;  %17299 = vmatmul.mubr.msk.f32.gmra.mxu1 %vm33_vm1, %v19523_v40  ;;  %17203 = vmatprep.mubr.msk.f32.mxu0 %vm33_vm1, %v19971_v39 }
 0x14b   :  { %26064 = vst [vmem:[#allocation51_spill] sm:$0xff] %v19973_v25  ;;  %v19979_v38 = vadd.f32 %v16956_v7, %v16858_v21  ;;  %17301 = vmatprep.mubr.msk.f32.mxu1 %vm33_vm1, %v19527_v42  ;;  %v855_v47 = vpop.f32.mrf.mxu0  ;;  %v19999_v42 = vld [vmem:[#allocation2 + $0x99] sm:$0xff] }
 0x14c   :  { %v1435_v10 = vpop.f32.mrf.mxu1 }
 0x14d   :  { %26065 = vst [vmem:[#allocation52_spill] sm:$0xff] %v19979_v38  ;;  %v19989_v54 = vadd.f32 %v1435_v10, %v855_v47  ;;  %v16861_v25 = vpop.f32.mrf.mxu0  ;;  %17204 = vmatmul.mubr.msk.f32.gmra.mxu0 %vm33_vm1, %v19983_v61  ;;  %v20003_v47 = vld [vmem:[#allocation2 + $0xa9] sm:$0xff] }
 0x14e   :  { %v16959_v34 = vpop.f32.mrf.mxu1  ;;  %17302 = vmatmul.mubr.msk.f32.gmra.mxu1 %vm33_vm1, %v19535_v44  ;;  %17206 = vmatprep.mubr.msk.f32.mxu0 %vm33_vm1, %v19987_v3 }
 0x14f   :  { %26066 = vst [vmem:[#allocation53_spill] sm:$0xff] %v19989_v54  ;;  %v19995_v40 = vadd.f32 %v16959_v34, %v16861_v25  ;;  %17304 = vmatprep.mubr.msk.f32.mxu1 %vm33_vm1, %v19539_v46  ;;  %v865_v21 = vpop.f32.mrf.mxu0  ;;  %v20015_v46 = vld [vmem:[#allocation2 + $0xb1] sm:$0xff] }
 0x150   :  { %v1445_v7 = vpop.f32.mrf.mxu1 }
 0x151   :  { %26067 = vst [vmem:[#allocation54_spill] sm:$0xff] %v19995_v40  ;;  %v20005_v10 = vadd.f32 %v1445_v7, %v865_v21  ;;  %v16864_v54 = vpop.f32.mrf.mxu0  ;;  %17207 = vmatmul.mubr.msk.f32.gmra.mxu0 %vm33_vm1, %v19999_v42  ;;  %v20019_v21 = vld [vmem:[#allocation2 + $0xc1] sm:$0xff] }
 0x152   :  { %v16962_v38 = vpop.f32.mrf.mxu1  ;;  %17305 = vmatmul.mubr.msk.f32.gmra.mxu1 %vm33_vm1, %v19547_v48  ;;  %17209 = vmatprep.mubr.msk.f32.mxu0 %vm33_vm1, %v20003_v47 }
 0x153   :  { %26068 = vst [vmem:[#allocation55_spill] sm:$0xff] %v20005_v10  ;;  %v20011_v44 = vadd.f32 %v16962_v38, %v16864_v54  ;;  %17307 = vmatprep.mubr.msk.f32.mxu1 %vm33_vm1, %v19551_v57  ;;  %v875_v34 = vpop.f32.mrf.mxu0  ;;  %v20031_v57 = vld [vmem:[#allocation2 + $0xc9] sm:$0xff] }
 0x154   :  { %v1455_v25 = vpop.f32.mrf.mxu1 }
 0x155   :  { %26069 = vst [vmem:[#allocation56_spill] sm:$0xff] %v20011_v44  ;;  %v20021_v7 = vadd.f32 %v1455_v25, %v875_v34  ;;  %v16867_v10 = vpop.f32.mrf.mxu0  ;;  %17210 = vmatmul.mubr.msk.f32.gmra.mxu0 %vm33_vm1, %v20015_v46  ;;  %v20035_v34 = vld [vmem:[#allocation2 + $0xd9] sm:$0xff] }
 0x156   :  { %v16965_v40 = vpop.f32.mrf.mxu1  ;;  %17308 = vmatmul.mubr.msk.f32.gmra.mxu1 %vm33_vm1, %v19559_v59  ;;  %17212 = vmatprep.mubr.msk.f32.mxu0 %vm33_vm1, %v20019_v21 }
 0x157   :  { %26070 = vst [vmem:[#allocation57_spill] sm:$0xff] %v20021_v7  ;;  %v20027_v48 = vadd.f32 %v16965_v40, %v16867_v10  ;;  %17310 = vmatprep.mubr.msk.f32.mxu1 %vm33_vm1, %v19563_v63  ;;  %v885_v38 = vpop.f32.mrf.mxu0  ;;  %v20047_v63 = vld [vmem:[#allocation2 + $0xe1] sm:$0xff] }
 0x158   :  { %v1465_v54 = vpop.f32.mrf.mxu1 }
 0x159   :  { %26071 = vst [vmem:[#allocation58_spill] sm:$0xff] %v20027_v48  ;;  %v20037_v25 = vadd.f32 %v1465_v54, %v885_v38  ;;  %v16870_v7 = vpop.f32.mrf.mxu0  ;;  %17213 = vmatmul.mubr.msk.f32.gmra.mxu0 %vm33_vm1, %v20031_v57  ;;  %v20051_v38 = vld [vmem:[#allocation2 + $0xf1] sm:$0xff] }
 0x15a   :  { %v16968_v44 = vpop.f32.mrf.mxu1  ;;  %17311 = vmatmul.mubr.msk.f32.gmra.mxu1 %vm33_vm1, %v19571_v11  ;;  %17215 = vmatprep.mubr.msk.f32.mxu0 %vm33_vm1, %v20035_v34 }
 0x15b   :  { %26072 = vst [vmem:[#allocation59_spill] sm:$0xff] %v20037_v25  ;;  %v20043_v59 = vadd.f32 %v16968_v44, %v16870_v7  ;;  %17313 = vmatprep.mubr.msk.f32.mxu1 %vm33_vm1, %v19575_v14  ;;  %v895_v40 = vpop.f32.mrf.mxu0  ;;  %v20063_v14 = vld [vmem:[#allocation2 + $0xf9] sm:$0xff] }
 0x15c   :  { %v1475_v10 = vpop.f32.mrf.mxu1 }
 0x15d   :  { %26073 = vst [vmem:[#allocation60_spill] sm:$0xff] %v20043_v59  ;;  %v20053_v54 = vadd.f32 %v1475_v10, %v895_v40  ;;  %v16873_v25 = vpop.f32.mrf.mxu0  ;;  %17216 = vmatmul.mubr.msk.f32.gmra.mxu0 %vm33_vm1, %v20047_v63  ;;  %v20067_v40 = vld [vmem:[#allocation2 + $0x109] sm:$0xff] }
 0x15e   :  { %v16971_v48 = vpop.f32.mrf.mxu1  ;;  %17314 = vmatmul.mubr.msk.f32.gmra.mxu1 %vm33_vm1, %v19583_v16  ;;  %17218 = vmatprep.mubr.msk.f32.mxu0 %vm33_vm1, %v20051_v38 }
 0x15f   :  { %26074 = vst [vmem:[#allocation61_spill] sm:$0xff] %v20053_v54  ;;  %v20059_v11 = vadd.f32 %v16971_v48, %v16873_v25  ;;  %17316 = vmatprep.mubr.msk.f32.mxu1 %vm33_vm1, %v19587_v18  ;;  %v905_v44 = vpop.f32.mrf.mxu0  ;;  %v20079_v18 = vld [vmem:[#allocation2 + $0x111] sm:$0xff] }
 0x160   :  { %v1485_v7 = vpop.f32.mrf.mxu1 }
 0x161   :  { %26075 = vst [vmem:[#allocation62_spill] sm:$0xff] %v20059_v11  ;;  %v20069_v10 = vadd.f32 %v1485_v7, %v905_v44  ;;  %v16876_v54 = vpop.f32.mrf.mxu0  ;;  %17219 = vmatmul.mubr.msk.f32.gmra.mxu0 %vm33_vm1, %v20063_v14  ;;  %v20083_v44 = vld [vmem:[#allocation2 + $0x121] sm:$0xff] }
 0x162   :  { %v16974_v59 = vpop.f32.mrf.mxu1  ;;  %17317 = vmatmul.mubr.msk.f32.gmra.mxu1 %vm33_vm1, %v19595_v20  ;;  %17221 = vmatprep.mubr.msk.f32.mxu0 %vm33_vm1, %v20067_v40 }
 0x163   :  { %26076 = vst [vmem:[#allocation63_spill] sm:$0xff] %v20069_v10  ;;  %v20075_v16 = vadd.f32 %v16974_v59, %v16876_v54  ;;  %17319 = vmatprep.mubr.msk.f32.mxu1 %vm33_vm1, %v19599_v22  ;;  %v915_v48 = vpop.f32.mrf.mxu0  ;;  %v20095_v22 = vld [vmem:[#allocation2 + $0x129] sm:$0xff] }
 0x164   :  { %v1495_v25 = vpop.f32.mrf.mxu1  ;;  %26080 = vst [vmem:[#allocation67_spill] sm:$0xff] %v20095_v22 }
 0x165   :  { %26077 = vst [vmem:[#allocation64_spill] sm:$0xff] %v20075_v16  ;;  %v20085_v7 = vadd.f32 %v1495_v25, %v915_v48  ;;  %v16879_v10 = vpop.f32.mrf.mxu0  ;;  %17222 = vmatmul.mubr.msk.f32.gmra.mxu0 %vm33_vm1, %v20079_v18  ;;  %v20099_v48 = vld [vmem:[#allocation2 + $0x139] sm:$0xff] }
 0x166   :  { %v16977_v11 = vpop.f32.mrf.mxu1  ;;  %17320 = vmatmul.mubr.msk.f32.gmra.mxu1 %vm33_vm1, %v19607_v24  ;;  %17224 = vmatprep.mubr.msk.f32.mxu0 %vm33_vm1, %v20083_v44  ;;  %26081 = vst [vmem:[#allocation68_spill] sm:$0xff] %v20099_v48 }
 0x167   :  { %26078 = vst [vmem:[#allocation65_spill] sm:$0xff] %v20085_v7  ;;  %v20091_v20 = vadd.f32 %v16977_v11, %v16879_v10  ;;  %17322 = vmatprep.mubr.msk.f32.mxu1 %vm33_vm1, %v19611_v26  ;;  %v925_v59 = vpop.f32.mrf.mxu0  ;;  %v20111_v26 = vld [vmem:[#allocation2 + $0x141] sm:$0xff] }
 0x168   :  { %v1505_v54 = vpop.f32.mrf.mxu1  ;;  %26084 = vst [vmem:[#allocation71_spill] sm:$0xff] %v20111_v26 }
 0x169   :  { %26079 = vst [vmem:[#allocation66_spill] sm:$0xff] %v20091_v20  ;;  %v20101_v25 = vadd.f32 %v1505_v54, %v925_v59  ;;  %v16882_v7 = vpop.f32.mrf.mxu0  ;;  %17225 = vmatmul.mubr.msk.f32.gmra.mxu0 %vm33_vm1, %v20095_v22  ;;  %v20115_v59 = vld [vmem:[#allocation2 + $0x151] sm:$0xff] }
 0x16a   :  { %v16980_v16 = vpop.f32.mrf.mxu1  ;;  %17323 = vmatmul.mubr.msk.f32.gmra.mxu1 %vm33_vm1, %v19619_v31  ;;  %17227 = vmatprep.mubr.msk.f32.mxu0 %vm33_vm1, %v20099_v48  ;;  %26085 = vst [vmem:[#allocation72_spill] sm:$0xff] %v20115_v59  ;;  %v26087_v31 = vld [vmem:[#allocation9_spill] sm:$0xff] }
 0x16b   :  { %26082 = vst [vmem:[#allocation69_spill] sm:$0xff] %v20101_v25  ;;  %v20107_v24 = vadd.f32 %v16980_v16, %v16882_v7  ;;  %17325 = vmatprep.mubr.msk.f32.mxu1 %vm33_vm1, %v19623_v58  ;;  %v935_v11 = vpop.f32.mrf.mxu0  ;;  %v20127_v58 = vld [vmem:[#allocation2 + $0x159] sm:$0xff] }
 0x16c   :  { %v1515_v10 = vpop.f32.mrf.mxu1  ;;  %26089 = vst [vmem:[#allocation74_spill] sm:$0xff] %v20127_v58  ;;  %v26090_v7 = vld [vmem:[#allocation10_spill] sm:$0xff] }
 0x16d   :  { %26083 = vst [vmem:[#allocation70_spill] sm:$0xff] %v20107_v24  ;;  %v20117_v54 = vadd.f32 %v1515_v10, %v935_v11  ;;  %v16885_v25 = vpop.f32.mrf.mxu0  ;;  %17228 = vmatmul.mubr.msk.f32.gmra.mxu0 %vm33_vm1, %v20111_v26 }
 0x16e   :  { %v16983_v20 = vpop.f32.mrf.mxu1  ;;  %17326 = vmatmul.mubr.msk.f32.gmra.mxu1 %vm33_vm1, %v26087_v31  ;;  %17230 = vmatprep.mubr.msk.f32.mxu0 %vm33_vm1, %v20115_v59  ;;  %v20143_v31 = vld [vmem:[#allocation2 + $0x171] sm:$0xff] }
 0x16f   :  { %26086 = vst [vmem:[#allocation73_spill] sm:$0xff] %v20117_v54  ;;  %v20123_v16 = vadd.f32 %v16983_v20, %v16885_v25  ;;  %17328 = vmatprep.mubr.msk.f32.mxu1 %vm33_vm1, %v26090_v7  ;;  %v945_v11 = vpop.f32.mrf.mxu0  ;;  %v20131_v54 = vld [vmem:[#allocation2 + $0x169] sm:$0xff]  ;;  %v26093_v20 = vld [vmem:[#allocation11_spill] sm:$0xff]  ;;  %26095 = vst [vmem:[#allocation76_spill] sm:$0xff] %v20143_v31 }
 0x170   :  { %v1525_v10 = vpop.f32.mrf.mxu1  ;;  %26091 = vst [vmem:[#allocation10_spill] sm:$0xff] %v20131_v54  ;;  %v26096_v7 = vld [vmem:[#allocation12_spill] sm:$0xff] }
 0x171   :  { %26088 = vst [vmem:[#allocation9_spill] sm:$0xff] %v20123_v16  ;;  %v20133_v24 = vadd.f32 %v1525_v10, %v945_v11  ;;  %v16888_v26 = vpop.f32.mrf.mxu0  ;;  %17231 = vmatmul.mubr.msk.f32.gmra.mxu0 %vm33_vm1, %v20127_v58  ;;  %v3724_v16 = vld [vmem:[#allocation2 + $0x182] sm:$0xff] }
 0x172   :  { %v16986_v48 = vpop.f32.mrf.mxu1  ;;  %17329 = vmatmul.mubr.msk.f32.gmra.mxu1 %vm33_vm1, %v26093_v20  ;;  %17233 = vmatprep.mubr.msk.f32.mxu0 %vm33_vm1, %v20131_v54  ;;  %v20159_v20 = vld [vmem:[#allocation2 + $0x189] sm:$0xff] }
 0x173   :  { %26092 = vst [vmem:[#allocation75_spill] sm:$0xff] %v20133_v24  ;;  %v20139_v25 = vadd.f32 %v16986_v48, %v16888_v26  ;;  %17331 = vmatprep.mubr.msk.f32.mxu1 %vm33_vm1, %v26096_v7  ;;  %v955_v11 = vpop.f32.mrf.mxu0  ;;  %v20147_v24 = vld [vmem:[#allocation2 + $0x181] sm:$0xff]  ;;  %v26098_v48 = vld [vmem:[#allocation13_spill] sm:$0xff] }
 0x174   :  { %v1535_v10 = vpop.f32.mrf.mxu1  ;;  %v3725_v7 = vld [vmem:[#allocation2 + $0x18a] sm:$0xff] }
 0x175   :  { %26094 = vst [vmem:[#allocation11_spill] sm:$0xff] %v20139_v25  ;;  %v20149_v59 = vadd.f32 %v1535_v10, %v955_v11  ;;  %v16891_v58 = vpop.f32.mrf.mxu0  ;;  %17234 = vmatmul.mubr.msk.f32.gmra.mxu0 %vm33_vm1, %v20143_v31 }
 0x176   :  { %v16989_v22 = vpop.f32.mrf.mxu1  ;;  %17332 = vmatmul.mubr.msk.f32.gmra.mxu1 %vm33_vm1, %v26098_v48  ;;  %17236 = vmatprep.mubr.msk.f32.mxu0 %vm33_vm1, %v20147_v24 }
 0x177   :  { %26097 = vst [vmem:[#allocation12_spill] sm:$0xff] %v20149_v59  ;;  %v20155_v26 = vadd.f32 %v16989_v22, %v16891_v58  ;;  %17334 = vmatprep.mubr.msk.f32.mxu1 %vm33_vm1, %v3724_v16  ;;  %v965_v11 = vpop.f32.mrf.mxu0  ;;  %v3016_v59 = vld [vmem:[#allocation2 + $0x1c9] sm:$0xff]  ;;  %v3017_v58 = vld [vmem:[#allocation2 + $0x1d1] sm:$0xff] }
 0x178   :  { %v1545_v10 = vpop.f32.mrf.mxu1 }
 0x179   :  { %26099 = vst [vmem:[#allocation13_spill] sm:$0xff] %v20155_v26  ;;  %v20162_v25 = vadd.f32 %v1545_v10, %v965_v11  ;;  %v16894_v54 = vpop.f32.mrf.mxu0  ;;  %17237 = vmatmul.mubr.msk.f32.gmra.mxu0 %vm33_vm1, %v20159_v20  ;;  %v20172_v26 = vld [vmem:[#allocation2 + $0x1e1] sm:$0xff] }
 0x17a   :  { %v16992_v31 = vpop.f32.mrf.mxu1  ;;  %17335 = vmatmul.mubr.msk.f32.gmra.mxu1 %vm33_vm1, %v3725_v7  ;;  %17239 = vmatprep.mubr.msk.f32.mxu0 %vm33_vm1, %v3016_v59  ;;  %26102 = vst [vmem:[#allocation79_spill] sm:$0xff] %v20172_v26  ;;  %v20182_v59 = vld [vmem:[#allocation2 + $0x1e9] sm:$0xff] }
 0x17b   :  { %26100 = vst [vmem:[#allocation77_spill] sm:$0xff] %v20162_v25  ;;  %v20167_v22 = vadd.f32 %v16992_v31, %v16894_v54  ;;  %17337 = vmatprep.mubr.msk.f32.mxu1 %vm33_vm1, %v19664_v19  ;;  %v975_v16 = vpop.f32.mrf.mxu0  ;;  %v26104_v54 = vld [vmem:[#allocation14_spill] sm:$0xff] }
 0x17c   :  { %v1555_v48 = vpop.f32.mrf.mxu1  ;;  %26105 = vst [vmem:[#allocation14_spill] sm:$0xff] %v20182_v59 }
 0x17d   :  { %26101 = vst [vmem:[#allocation78_spill] sm:$0xff] %v20167_v22  ;;  %v20174_v11 = vadd.f32 %v1555_v48, %v975_v16  ;;  %v16997_v10 = vpop.f32.mrf.mxu0  ;;  %17240 = vmatmul.mubr.msk.f32.gmra.mxu0 %vm33_vm1, %v3017_v58  ;;  %v20186_v16 = vld [vmem:[#allocation2 + $0x1f9] sm:$0xff] }
 0x17e   :  { %v17095_v25 = vpop.f32.mrf.mxu1  ;;  %17338 = vmatmul.mubr.msk.f32.gmra.mxu1 %vm33_vm1, %v19673_v12  ;;  %v2211_v31 = vadd.f32 %v16997_v10, %v26104_v54  ;;  %17242 = vmatprep.mubr.msk.f32.mxu0 %vm33_vm1, %v20172_v26  ;;  %v26106_v48 = vld [vmem:[#allocation15_spill] sm:$0xff]  ;;  %v26108_v10 = vld [vmem:[#allocation16_spill] sm:$0xff] }
 0x17f   :  { %26103 = vst [vmem:[#allocation80_spill] sm:$0xff] %v20174_v11  ;;  %17340 = vmatprep.mubr.msk.f32.mxu1 %vm33_vm1, %v19677_v9  ;;  %v1891_v19 = vpop.f32.mrf.mxu0  ;;  %v20200_v9 = vld [vmem:[#allocation2 + $0x201] sm:$0xff] }
 0x180   :  { %v2601_v7 = vpop.f32.mrf.mxu1  ;;  %v2210_v58 = vadd.f32 %v1891_v19, %v26106_v48  ;;  %v20189_v11 = vadd.f32 %v17095_v25, %v2211_v31  ;;  %26109 = vst [vmem:[#allocation16_spill] sm:$0xff] %v20200_v9  ;;  %v20204_v19 = vld [vmem:[#allocation2 + $0x211] sm:$0xff] }
 0x181   :  { %v17000_v22 = vpop.f32.mrf.mxu0  ;;  %17243 = vmatmul.mubr.msk.f32.gmra.mxu0 %vm33_vm1, %v20182_v59  ;;  %v26110_v48 = vld [vmem:[#allocation17_spill] sm:$0xff] }
 0x182   :  { %26107 = vst [vmem:[#allocation15_spill] sm:$0xff] %v20189_v11  ;;  %v17098_v12 = vpop.f32.mrf.mxu1  ;;  %17341 = vmatmul.mubr.msk.f32.gmra.mxu1 %vm33_vm1, %v19689_v41  ;;  %v2213_v54 = vadd.f32 %v17000_v22, %v26108_v10  ;;  %v20196_v26 = vadd.f32 %v2601_v7, %v2210_v58  ;;  %17245 = vmatprep.mubr.msk.f32.mxu0 %vm33_vm1, %v20186_v16  ;;  %v26112_v7 = vld [vmem:[#allocation18_spill] sm:$0xff] }
 0x183   :  { %17343 = vmatprep.mubr.msk.f32.mxu1 %vm33_vm1, %v19693_v29  ;;  %v1901_v25 = vpop.f32.mrf.mxu0  ;;  %v20218_v29 = vld [vmem:[#allocation2 + $0x219] sm:$0xff] }
 0x184   :  { %v2611_v31 = vpop.f32.mrf.mxu1  ;;  %v2212_v11 = vadd.f32 %v1901_v25, %v26110_v48  ;;  %v20207_v59 = vadd.f32 %v17098_v12, %v2213_v54  ;;  %26113 = vst [vmem:[#allocation18_spill] sm:$0xff] %v20218_v29  ;;  %v20222_v25 = vld [vmem:[#allocation2 + $0x229] sm:$0xff]  ;;  %v26114_v48 = vld [vmem:[#allocation19_spill] sm:$0xff] }
 0x185   :  { %v17003_v41 = vpop.f32.mrf.mxu0  ;;  %17246 = vmatmul.mubr.msk.f32.gmra.mxu0 %vm33_vm1, %v20200_v9 }
 0x186   :  { %26111 = vst [vmem:[#allocation17_spill] sm:$0xff] %v20207_v59  ;;  %v17101_v22 = vpop.f32.mrf.mxu1  ;;  %17344 = vmatmul.mubr.msk.f32.gmra.mxu1 %vm33_vm1, %v19705_v49  ;;  %v2215_v58 = vadd.f32 %v17003_v41, %v26112_v7  ;;  %v20214_v10 = vadd.f32 %v2611_v31, %v2212_v11  ;;  %17248 = vmatprep.mubr.msk.f32.mxu0 %vm33_vm1, %v20204_v19  ;;  %v26116_v31 = vld [vmem:[#allocation20_spill] sm:$0xff] }
 0x187   :  { %17346 = vmatprep.mubr.msk.f32.mxu1 %vm33_vm1, %v19709_v4  ;;  %v1911_v12 = vpop.f32.mrf.mxu0  ;;  %v20236_v4 = vld [vmem:[#allocation2 + $0x231] sm:$0xff] }
 0x188   :  { %v2621_v54 = vpop.f32.mrf.mxu1  ;;  %v2214_v59 = vadd.f32 %v1911_v12, %v26114_v48  ;;  %v20225_v9 = vadd.f32 %v17101_v22, %v2215_v58  ;;  %26117 = vst [vmem:[#allocation20_spill] sm:$0xff] %v20236_v4  ;;  %v20240_v12 = vld [vmem:[#allocation2 + $0x241] sm:$0xff]  ;;  %v26118_v48 = vld [vmem:[#allocation21_spill] sm:$0xff] }
 0x189   :  { %v17006_v49 = vpop.f32.mrf.mxu0  ;;  %17249 = vmatmul.mubr.msk.f32.gmra.mxu0 %vm33_vm1, %v20218_v29 }
 0x18a   :  { %26115 = vst [vmem:[#allocation19_spill] sm:$0xff] %v20225_v9  ;;  %v17104_v11 = vpop.f32.mrf.mxu1  ;;  %17347 = vmatmul.mubr.msk.f32.gmra.mxu1 %vm33_vm1, %v19721_v53  ;;  %v2217_v41 = vadd.f32 %v17006_v49, %v26116_v31  ;;  %v20232_v7 = vadd.f32 %v2621_v54, %v2214_v59  ;;  %17251 = vmatprep.mubr.msk.f32.mxu0 %vm33_vm1, %v20222_v25  ;;  %v26120_v54 = vld [vmem:[#allocation22_spill] sm:$0xff] }
 0x18b   :  { %17349 = vmatprep.mubr.msk.f32.mxu1 %vm33_vm1, %v19725_v0  ;;  %v1921_v22 = vpop.f32.mrf.mxu0  ;;  %v20254_v0 = vld [vmem:[#allocation2 + $0x249] sm:$0xff] }
 0x18c   :  { %v2631_v58 = vpop.f32.mrf.mxu1  ;;  %v2216_v9 = vadd.f32 %v1921_v22, %v26118_v48  ;;  %v20243_v29 = vadd.f32 %v17104_v11, %v2217_v41  ;;  %26121 = vst [vmem:[#allocation22_spill] sm:$0xff] %v20254_v0  ;;  %v20258_v22 = vld [vmem:[#allocation2 + $0x259] sm:$0xff] }
 0x18d   :  { %v17009_v53 = vpop.f32.mrf.mxu0  ;;  %17252 = vmatmul.mubr.msk.f32.gmra.mxu0 %vm33_vm1, %v20236_v4  ;;  %v26122_v48 = vld [vmem:[#allocation23_spill] sm:$0xff] }
 0x18e   :  { %26119 = vst [vmem:[#allocation21_spill] sm:$0xff] %v20243_v29  ;;  %v17107_v59 = vpop.f32.mrf.mxu1  ;;  %17350 = vmatmul.mubr.msk.f32.gmra.mxu1 %vm33_vm1, %v19737_v60  ;;  %v2219_v49 = vadd.f32 %v17009_v53, %v26120_v54  ;;  %v20250_v31 = vadd.f32 %v2631_v58, %v2216_v9  ;;  %17254 = vmatprep.mubr.msk.f32.mxu0 %vm33_vm1, %v20240_v12  ;;  %v26124_v58 = vld [vmem:[#allocation24_spill] sm:$0xff] }
 0x18f   :  { %17352 = vmatprep.mubr.msk.f32.mxu1 %vm33_vm1, %v19741_v2  ;;  %v1931_v11 = vpop.f32.mrf.mxu0  ;;  %v20272_v2 = vld [vmem:[#allocation2 + $0x261] sm:$0xff] }
 0x190   :  { %v2641_v41 = vpop.f32.mrf.mxu1  ;;  %v2218_v29 = vadd.f32 %v1931_v11, %v26122_v48  ;;  %v20261_v4 = vadd.f32 %v17107_v59, %v2219_v49  ;;  %26125 = vst [vmem:[#allocation24_spill] sm:$0xff] %v20272_v2  ;;  %v20276_v11 = vld [vmem:[#allocation2 + $0x271] sm:$0xff] }
 0x191   :  { %v17012_v60 = vpop.f32.mrf.mxu0  ;;  %17255 = vmatmul.mubr.msk.f32.gmra.mxu0 %vm33_vm1, %v20254_v0  ;;  %v26126_v48 = vld [vmem:[#allocation25_spill] sm:$0xff] }
 0x192   :  { %26123 = vst [vmem:[#allocation23_spill] sm:$0xff] %v20261_v4  ;;  %v17110_v9 = vpop.f32.mrf.mxu1  ;;  %17353 = vmatmul.mubr.msk.f32.gmra.mxu1 %vm33_vm1, %v19753_v6  ;;  %v2221_v53 = vadd.f32 %v17012_v60, %v26124_v58  ;;  %v20268_v54 = vadd.f32 %v2641_v41, %v2218_v29  ;;  %17257 = vmatprep.mubr.msk.f32.mxu0 %vm33_vm1, %v20258_v22  ;;  %v26128_v41 = vld [vmem:[#allocation26_spill] sm:$0xff] }
 0x193   :  { %17355 = vmatprep.mubr.msk.f32.mxu1 %vm33_vm1, %v19757_v37  ;;  %v1941_v59 = vpop.f32.mrf.mxu0  ;;  %v20290_v37 = vld [vmem:[#allocation2 + $0x279] sm:$0xff] }
 0x194   :  { %v2651_v49 = vpop.f32.mrf.mxu1  ;;  %v2220_v4 = vadd.f32 %v1941_v59, %v26126_v48  ;;  %v20279_v0 = vadd.f32 %v17110_v9, %v2221_v53  ;;  %26129 = vst [vmem:[#allocation26_spill] sm:$0xff] %v20290_v37  ;;  %v20294_v59 = vld [vmem:[#allocation2 + $0x289] sm:$0xff]  ;;  %v26130_v48 = vld [vmem:[#allocation27_spill] sm:$0xff] }
 0x195   :  { %v17015_v6 = vpop.f32.mrf.mxu0  ;;  %17258 = vmatmul.mubr.msk.f32.gmra.mxu0 %vm33_vm1, %v20272_v2 }
 0x196   :  { %26127 = vst [vmem:[#allocation25_spill] sm:$0xff] %v20279_v0  ;;  %v17113_v29 = vpop.f32.mrf.mxu1  ;;  %17356 = vmatmul.mubr.msk.f32.gmra.mxu1 %vm33_vm1, %v19769_v17  ;;  %v2223_v60 = vadd.f32 %v17015_v6, %v26128_v41  ;;  %v20286_v58 = vadd.f32 %v2651_v49, %v2220_v4  ;;  %17260 = vmatprep.mubr.msk.f32.mxu0 %vm33_vm1, %v20276_v11  ;;  %v26132_v49 = vld [vmem:[#allocation28_spill] sm:$0xff] }
 0x197   :  { %17358 = vmatprep.mubr.msk.f32.mxu1 %vm33_vm1, %v19773_v45  ;;  %v1951_v9 = vpop.f32.mrf.mxu0  ;;  %v20308_v45 = vld [vmem:[#allocation2 + $0x291] sm:$0xff] }
 0x198   :  { %v2661_v53 = vpop.f32.mrf.mxu1  ;;  %v2222_v0 = vadd.f32 %v1951_v9, %v26130_v48  ;;  %v20297_v2 = vadd.f32 %v17113_v29, %v2223_v60  ;;  %26133 = vst [vmem:[#allocation28_spill] sm:$0xff] %v20308_v45  ;;  %v20312_v9 = vld [vmem:[#allocation2 + $0x2a1] sm:$0xff]  ;;  %v26134_v48 = vld [vmem:[#allocation29_spill] sm:$0xff] }
 0x199   :  { %v17018_v17 = vpop.f32.mrf.mxu0  ;;  %17261 = vmatmul.mubr.msk.f32.gmra.mxu0 %vm33_vm1, %v20290_v37 }
 0x19a   :  { %26131 = vst [vmem:[#allocation27_spill] sm:$0xff] %v20297_v2  ;;  %v17116_v4 = vpop.f32.mrf.mxu1  ;;  %17359 = vmatmul.mubr.msk.f32.gmra.mxu1 %vm33_vm1, %v19785_v27  ;;  %v2225_v6 = vadd.f32 %v17018_v17, %v26132_v49  ;;  %v20304_v41 = vadd.f32 %v2661_v53, %v2222_v0  ;;  %17263 = vmatprep.mubr.msk.f32.mxu0 %vm33_vm1, %v20294_v59  ;;  %v26136_v53 = vld [vmem:[#allocation30_spill] sm:$0xff] }
 0x19b   :  { %17361 = vmatprep.mubr.msk.f32.mxu1 %vm33_vm1, %v19789_v51  ;;  %v1961_v29 = vpop.f32.mrf.mxu0  ;;  %v20326_v51 = vld [vmem:[#allocation2 + $0x2a9] sm:$0xff] }
 0x19c   :  { %v2671_v60 = vpop.f32.mrf.mxu1  ;;  %v2224_v2 = vadd.f32 %v1961_v29, %v26134_v48  ;;  %v20315_v37 = vadd.f32 %v17116_v4, %v2225_v6  ;;  %26137 = vst [vmem:[#allocation30_spill] sm:$0xff] %v20326_v51  ;;  %v20330_v29 = vld [vmem:[#allocation2 + $0x2b9] sm:$0xff] }
 0x19d   :  { %v17021_v27 = vpop.f32.mrf.mxu0  ;;  %17264 = vmatmul.mubr.msk.f32.gmra.mxu0 %vm33_vm1, %v20308_v45  ;;  %v26138_v48 = vld [vmem:[#allocation31_spill] sm:$0xff] }
 0x19e   :  { %26135 = vst [vmem:[#allocation29_spill] sm:$0xff] %v20315_v37  ;;  %v17119_v0 = vpop.f32.mrf.mxu1  ;;  %17362 = vmatmul.mubr.msk.f32.gmra.mxu1 %vm33_vm1, %v19801_v35  ;;  %v2227_v17 = vadd.f32 %v17021_v27, %v26136_v53  ;;  %v20322_v49 = vadd.f32 %v2671_v60, %v2224_v2  ;;  %17266 = vmatprep.mubr.msk.f32.mxu0 %vm33_vm1, %v20312_v9  ;;  %v26140_v60 = vld [vmem:[#allocation32_spill] sm:$0xff] }
 0x19f   :  { %17364 = vmatprep.mubr.msk.f32.mxu1 %vm33_vm1, %v19805_v55  ;;  %v1971_v4 = vpop.f32.mrf.mxu0  ;;  %v20344_v55 = vld [vmem:[#allocation2 + $0x2c1] sm:$0xff] }
 0x1a0   :  { %v2681_v6 = vpop.f32.mrf.mxu1  ;;  %v2226_v37 = vadd.f32 %v1971_v4, %v26138_v48  ;;  %v20333_v45 = vadd.f32 %v17119_v0, %v2227_v17  ;;  %26142 = vst [vmem:[#allocation81_spill] sm:$0xff] %v20344_v55  ;;  %v20348_v4 = vld [vmem:[#allocation2 + $0x2d1] sm:$0xff] }
 0x1a1   :  { %v17024_v35 = vpop.f32.mrf.mxu0  ;;  %17267 = vmatmul.mubr.msk.f32.gmra.mxu0 %vm33_vm1, %v20326_v51  ;;  %v26143_v48 = vld [vmem:[#allocation33_spill] sm:$0xff] }
 0x1a2   :  { %26139 = vst [vmem:[#allocation31_spill] sm:$0xff] %v20333_v45  ;;  %v17122_v2 = vpop.f32.mrf.mxu1  ;;  %17365 = vmatmul.mubr.msk.f32.gmra.mxu1 %vm33_vm1, %v19817_v50  ;;  %v2229_v27 = vadd.f32 %v17024_v35, %v26140_v60  ;;  %v20340_v53 = vadd.f32 %v2681_v6, %v2226_v37  ;;  %17269 = vmatprep.mubr.msk.f32.mxu0 %vm33_vm1, %v20330_v29  ;;  %v26145_v6 = vld [vmem:[#allocation34_spill] sm:$0xff] }
 0x1a3   :  { %17367 = vmatprep.mubr.msk.f32.mxu1 %vm33_vm1, %v19821_v1  ;;  %v1981_v0 = vpop.f32.mrf.mxu0  ;;  %v20362_v1 = vld [vmem:[#allocation2 + $0x2d9] sm:$0xff] }
 0x1a4   :  { %26141 = vst [vmem:[#allocation32_spill] sm:$0xff] %v20340_v53  ;;  %v2691_v17 = vpop.f32.mrf.mxu1  ;;  %v2228_v45 = vadd.f32 %v1981_v0, %v26143_v48  ;;  %v20351_v51 = vadd.f32 %v17122_v2, %v2229_v27  ;;  %26147 = vst [vmem:[#allocation82_spill] sm:$0xff] %v20362_v1  ;;  %v26148_v0 = vld [vmem:[#allocation35_spill] sm:$0xff]  ;;  %v20366_v48 = vld [vmem:[#allocation2 + $0x2e9] sm:$0xff] }
 0x1a5   :  { %v17027_v50 = vpop.f32.mrf.mxu0  ;;  %17270 = vmatmul.mubr.msk.f32.gmra.mxu0 %vm33_vm1, %v20344_v55 }
 0x1a6   :  { %26144 = vst [vmem:[#allocation33_spill] sm:$0xff] %v20351_v51  ;;  %v17125_v37 = vpop.f32.mrf.mxu1  ;;  %17368 = vmatmul.mubr.msk.f32.gmra.mxu1 %vm33_vm1, %v19833_v62  ;;  %v2231_v35 = vadd.f32 %v17027_v50, %v26145_v6  ;;  %v20358_v60 = vadd.f32 %v2691_v17, %v2228_v45  ;;  %17272 = vmatprep.mubr.msk.f32.mxu0 %vm33_vm1, %v20348_v4  ;;  %v26149_v51 = vld [vmem:[#allocation36_spill] sm:$0xff]  ;;  %v26151_v17 = vld [vmem:[#allocation38_spill] sm:$0xff]  ;;  %v26152_v50 = vld [vmem:[#allocation37_spill] sm:$0xff] }
 0x1a7   :  { %17370 = vmatprep.mubr.msk.f32.mxu1 %vm33_vm1, %v26148_v0  ;;  %v1991_v2 = vpop.f32.mrf.mxu0  ;;  %v20380_v0 = vld [vmem:[#allocation2 + $0x2f1] sm:$0xff] }
 0x1a8   :  { %26146 = vst [vmem:[#allocation34_spill] sm:$0xff] %v20358_v60  ;;  %v2701_v27 = vpop.f32.mrf.mxu1  ;;  %v2230_v55 = vadd.f32 %v1991_v2, %v26149_v51  ;;  %v20369_v53 = vadd.f32 %v17125_v37, %v2231_v35  ;;  %26154 = vst [vmem:[#allocation38_spill] sm:$0xff] %v20380_v0  ;;  %v20384_v35 = vld [vmem:[#allocation2 + $0x301] sm:$0xff] }
 0x1a9   :  { %v17030_v62 = vpop.f32.mrf.mxu0  ;;  %17273 = vmatmul.mubr.msk.f32.gmra.mxu0 %vm33_vm1, %v20362_v1  ;;  %v26155_v2 = vld [vmem:[#allocation39_spill] sm:$0xff] }
 0x1aa   :  { %26150 = vst [vmem:[#allocation35_spill] sm:$0xff] %v20369_v53  ;;  %v17128_v45 = vpop.f32.mrf.mxu1  ;;  %17371 = vmatmul.mubr.msk.f32.gmra.mxu1 %vm33_vm1, %v26151_v17  ;;  %v2233_v6 = vadd.f32 %v17030_v62, %v26152_v50  ;;  %v20376_v60 = vadd.f32 %v2701_v27, %v2230_v55  ;;  %17275 = vmatprep.mubr.msk.f32.mxu0 %vm33_vm1, %v20366_v48  ;;  %v26157_v27 = vld [vmem:[#allocation40_spill] sm:$0xff]  ;;  %v26158_v62 = vld [vmem:[#allocation7_spill] sm:$0xff] }
 0x1ab   :  { %17373 = vmatprep.mubr.msk.f32.mxu1 %vm33_vm1, %v19853_v23  ;;  %v2001_v51 = vpop.f32.mrf.mxu0  ;;  %v20398_v23 = vld [vmem:[#allocation2 + $0x309] sm:$0xff] }
 0x1ac   :  { %26153 = vst [vmem:[#allocation36_spill] sm:$0xff] %v20376_v60  ;;  %v2711_v37 = vpop.f32.mrf.mxu1  ;;  %v2232_v53 = vadd.f32 %v2001_v51, %v26155_v2  ;;  %v20387_v1 = vadd.f32 %v17128_v45, %v2233_v6  ;;  %26160 = vst [vmem:[#allocation40_spill] sm:$0xff] %v20398_v23  ;;  %v20402_v51 = vld [vmem:[#allocation2 + $0x319] sm:$0xff]  ;;  %v26161_v2 = vld [vmem:[#allocation8_spill] sm:$0xff] }
 0x1ad   :  { %v17033_v17 = vpop.f32.mrf.mxu0  ;;  %17276 = vmatmul.mubr.msk.f32.gmra.mxu0 %vm33_vm1, %v20380_v0 }
 0x1ae   :  { %26156 = vst [vmem:[#allocation37_spill] sm:$0xff] %v20387_v1  ;;  %v17131_v55 = vpop.f32.mrf.mxu1  ;;  %17374 = vmatmul.mubr.msk.f32.gmra.mxu1 %vm33_vm1, %v26157_v27  ;;  %v2235_v50 = vadd.f32 %v17033_v17, %v26158_v62  ;;  %v20394_v60 = vadd.f32 %v2711_v37, %v2232_v53  ;;  %17278 = vmatprep.mubr.msk.f32.mxu0 %vm33_vm1, %v20384_v35  ;;  %v26163_v37 = vld [vmem:[#allocation42_spill] sm:$0xff]  ;;  %v26164_v17 = vld [vmem:[#allocation41_spill] sm:$0xff] }
 0x1af   :  { %17376 = vmatprep.mubr.msk.f32.mxu1 %vm33_vm1, %v19869_v15  ;;  %v2011_v45 = vpop.f32.mrf.mxu0  ;;  %v20416_v15 = vld [vmem:[#allocation2 + $0x321] sm:$0xff] }
 0x1b0   :  { %26159 = vst [vmem:[#allocation39_spill] sm:$0xff] %v20394_v60  ;;  %v2721_v6 = vpop.f32.mrf.mxu1  ;;  %v2234_v1 = vadd.f32 %v2011_v45, %v26161_v2  ;;  %v20405_v0 = vadd.f32 %v17131_v55, %v2235_v50  ;;  %26166 = vst [vmem:[#allocation42_spill] sm:$0xff] %v20416_v15  ;;  %v20420_v45 = vld [vmem:[#allocation2 + $0x331] sm:$0xff] }
 0x1b1   :  { %v17036_v27 = vpop.f32.mrf.mxu0  ;;  %17279 = vmatmul.mubr.msk.f32.gmra.mxu0 %vm33_vm1, %v20398_v23  ;;  %v3756_v2 = vld [vmem:[#allocation2 + $0x332] sm:$0xff] }
 0x1b2   :  { %26162 = vst [vmem:[#allocation7_spill] sm:$0xff] %v20405_v0  ;;  %v17134_v53 = vpop.f32.mrf.mxu1  ;;  %17377 = vmatmul.mubr.msk.f32.gmra.mxu1 %vm33_vm1, %v26163_v37  ;;  %v2237_v62 = vadd.f32 %v17036_v27, %v26164_v17  ;;  %v20412_v60 = vadd.f32 %v2721_v6, %v2234_v1  ;;  %17281 = vmatprep.mubr.msk.f32.mxu0 %vm33_vm1, %v20402_v51  ;;  %v26167_v0 = vld [vmem:[#allocation43_spill] sm:$0xff] }
 0x1b3   :  { %17379 = vmatprep.mubr.msk.f32.mxu1 %vm33_vm1, %v19885_v30  ;;  %v2021_v55 = vpop.f32.mrf.mxu0  ;;  %v20434_v17 = vld [vmem:[#allocation2 + $0x339] sm:$0xff] }
 0x1b4   :  { %26165 = vst [vmem:[#allocation8_spill] sm:$0xff] %v20412_v60  ;;  %v2731_v50 = vpop.f32.mrf.mxu1  ;;  %v2236_v23 = vadd.f32 %v2021_v55, %v26167_v0  ;;  %v20423_v37 = vadd.f32 %v17134_v53, %v2237_v62  ;;  %v3757_v0 = vld [vmem:[#allocation2 + $0x33a] sm:$0xff]  ;;  %v4405_v55 = vld [vmem:[#allocation2 + $0x30] sm:$0xff] }
 0x1b5   :  { %v17039_v27 = vpop.f32.mrf.mxu0  ;;  %17282 = vmatmul.mubr.msk.f32.gmra.mxu0 %vm33_vm1, %v20416_v15 }
 0x1b6   :  { %26168 = vst [vmem:[#allocation41_spill] sm:$0xff] %v20423_v37  ;;  %v17137_v1 = vpop.f32.mrf.mxu1  ;;  %17380 = vmatmul.mubr.msk.f32.gmra.mxu1 %vm33_vm1, %v19897_v52  ;;  %v2239_v6 = vadd.f32 %v17039_v27, %v19893_v33  ;;  %v20430_v30 = vadd.f32 %v2731_v50, %v2236_v23  ;;  %17284 = vmatprep.mubr.msk.f32.mxu0 %vm33_vm1, %v20420_v45  ;;  %v26169_v37 = vld [vmem:[#allocation44_spill] sm:$0xff] }
 0x1b7   :  { %17382 = vmatprep.mubr.msk.f32.mxu1 %vm33_vm1, %v3756_v2  ;;  %v2031_v53 = vpop.f32.mrf.mxu0  ;;  %v4406_v2 = vld [vmem:[#allocation2 + $0x38] sm:$0xff] }
 0x1b8   :  { %v2741_v62 = vpop.f32.mrf.mxu1  ;;  %v2238_v15 = vadd.f32 %v2031_v53, %v26169_v37  ;;  %v20438_v60 = vadd.f32 %v17137_v1, %v2239_v6  ;;  %v4407_v1 = vld [vmem:[#allocation2 + $0x48] sm:$0xff] }
 0x1b9   :  { %v17042_v52 = vpop.f32.mrf.mxu0  ;;  %17285 = vmatmul.mubr.msk.f32.gmra.mxu0 %vm33_vm1, %v20434_v17 }
 0x1ba   :  { %26170 = vst [vmem:[#allocation43_spill] sm:$0xff] %v20438_v60  ;;  %v17140_v33 = vpop.f32.mrf.mxu1  ;;  %17383 = vmatmul.mubr.msk.f32.gmra.mxu1 %vm33_vm1, %v3757_v0  ;;  %v2241_v23 = vadd.f32 %v17042_v52, %v19905_v13  ;;  %v20444_v50 = vadd.f32 %v2741_v62, %v2238_v15  ;;  %17387 = vmatprep.mubr.msk.f32.mxu0 %vm33_vm1, %v4405_v55  ;;  %v26171_v13 = vld [vmem:[#allocation46_spill] sm:$0xff]  ;;  %v26172_v55 = vld [vmem:[#allocation45_spill] sm:$0xff] }
 0x1bb   :  { %17485 = vmatprep.mubr.msk.f32.mxu1 %vm33_vm1, %v19913_v28  ;;  %v2041_v37 = vpop.f32.mrf.mxu0  ;;  %v4408_v28 = vld [vmem:[#allocation2 + $0x50] sm:$0xff] }
 0x1bc   :  { %v2751_v27 = vpop.f32.mrf.mxu1  ;;  %v2240_v6 = vadd.f32 %v2041_v37, %v19916_v8  ;;  %v20450_v53 = vadd.f32 %v17140_v33, %v2241_v23  ;;  %v4409_v33 = vld [vmem:[#allocation2 + $0x60] sm:$0xff] }
 0x1bd   :  { %v17045_v60 = vpop.f32.mrf.mxu0  ;;  %17388 = vmatmul.mubr.msk.f32.vlgmr.msra.gmra.mxu0 %vm33_vm1, %v4406_v2  ;;  %v26173_v23 = vld [vmem:[#allocation47_spill] sm:$0xff] }
 0x1be   :  { %v17143_v0 = vpop.f32.mrf.mxu1  ;;  %17486 = vmatmul.mubr.msk.f32.vlgmr.msra.gmra.mxu1 %vm33_vm1, %v19932_v5  ;;  %v2243_v15 = vadd.f32 %v17045_v60, %v26171_v13  ;;  %v20456_v62 = vadd.f32 %v2751_v27, %v2240_v6  ;;  %17582 = vmatpush3.msk.msra.mxu0 %vm595_vm0, %v26172_v55  ;;  %v26174_v27 = vld [vmem:[#allocation48_spill] sm:$0xff]  ;;  %v26175_v55 = vld [vmem:[#allocation49_spill] sm:$0xff] }
 0x1bf   :  { %17390 = vmatprep.mubr.msk.f32.mxu0 %vm33_vm1, %v4407_v1  ;;  %v2051_v8 = vpop.f32.mrf.mxu0  ;;  %17488 = vmatprep.mubr.msk.f32.mxu1 %vm33_vm1, %v19936_v32  ;;  %v4410_v13 = vld [vmem:[#allocation2 + $0x68] sm:$0xff] }
 0x1c0   :  { %v2761_v52 = vpop.f32.mrf.mxu1  ;;  %v2242_v2 = vadd.f32 %v2051_v8, %v26173_v23  ;;  %v20464_v37 = vadd.f32 %v17143_v0, %v2243_v15  ;;  %v4411_v15 = vld [vmem:[#allocation2 + $0x78] sm:$0xff] }
 0x1c1   :  { %v17048_v5 = vpop.f32.mrf.mxu0  ;;  %17391 = vmatmul.mubr.msk.f32.gmra.mxu0 %vm33_vm1, %v4408_v28 }
 0x1c2   :  { %v17146_v60 = vpop.f32.mrf.mxu1  ;;  %17489 = vmatmul.mubr.msk.f32.gmra.mxu1 %vm33_vm1, %v19951_v56  ;;  %v2245_v1 = vadd.f32 %v17048_v5, %v26174_v27  ;;  %v20470_v6 = vadd.f32 %v2761_v52, %v2242_v2  ;;  %17393 = vmatprep.mubr.msk.f32.mxu0 %vm33_vm1, %v4409_v33  ;;  %v26176_v52 = vld [vmem:[#allocation50_spill] sm:$0xff]  ;;  %v4413_v27 = vld [vmem:[#allocation2 + $0x90] sm:$0xff] }
 0x1c3   :  { %17491 = vmatprep.mubr.msk.f32.mxu1 %vm33_vm1, %v19955_v43  ;;  %v2061_v32 = vpop.f32.mrf.mxu0  ;;  %v4412_v43 = vld [vmem:[#allocation2 + $0x80] sm:$0xff] }
 0x1c4   :  { %v2771_v0 = vpop.f32.mrf.mxu1  ;;  %v2244_v8 = vadd.f32 %v2061_v32, %v26175_v55  ;;  %v20476_v28 = vadd.f32 %v17146_v60, %v2245_v1  ;;  %v26177_v1 = vld [vmem:[#allocation51_spill] sm:$0xff] }
 0x1c5   :  { %v17051_v23 = vpop.f32.mrf.mxu0  ;;  %17394 = vmatmul.mubr.msk.f32.gmra.mxu0 %vm33_vm1, %v4410_v13 }
 0x1c6   :  { %v17149_v56 = vpop.f32.mrf.mxu1  ;;  %17492 = vmatmul.mubr.msk.f32.gmra.mxu1 %vm33_vm1, %v19967_v36  ;;  %v2247_v33 = vadd.f32 %v17051_v23, %v26176_v52  ;;  %v20482_v2 = vadd.f32 %v2771_v0, %v2244_v8  ;;  %17396 = vmatprep.mubr.msk.f32.mxu0 %vm33_vm1, %v4411_v15  ;;  %v26178_v0 = vld [vmem:[#allocation52_spill] sm:$0xff] }
 0x1c7   :  { %17494 = vmatprep.mubr.msk.f32.mxu1 %vm33_vm1, %v19971_v39  ;;  %v2071_v5 = vpop.f32.mrf.mxu0  ;;  %v4414_v39 = vld [vmem:[#allocation2 + $0x98] sm:$0xff]  ;;  %v4415_v52 = vld [vmem:[#allocation2 + $0xa8] sm:$0xff] }
 0x1c8   :  { %v2781_v60 = vpop.f32.mrf.mxu1  ;;  %v2246_v32 = vadd.f32 %v2071_v5, %v26177_v1  ;;  %v20488_v13 = vadd.f32 %v17149_v56, %v2247_v33  ;;  %v26179_v33 = vld [vmem:[#allocation53_spill] sm:$0xff] }
 0x1c9   :  { %v17054_v55 = vpop.f32.mrf.mxu0  ;;  %17397 = vmatmul.mubr.msk.f32.gmra.mxu0 %vm33_vm1, %v4412_v43 }
 0x1ca   :  { %v17152_v36 = vpop.f32.mrf.mxu1  ;;  %17495 = vmatmul.mubr.msk.f32.gmra.mxu1 %vm33_vm1, %v19983_v61  ;;  %v2249_v15 = vadd.f32 %v17054_v55, %v26178_v0  ;;  %v20494_v8 = vadd.f32 %v2781_v60, %v2246_v32  ;;  %17399 = vmatprep.mubr.msk.f32.mxu0 %vm33_vm1, %v4413_v27  ;;  %v26180_v60 = vld [vmem:[#allocation54_spill] sm:$0xff]  ;;  %v4417_v0 = vld [vmem:[#allocation2 + $0xc0] sm:$0xff] }
 0x1cb   :  { %17497 = vmatprep.mubr.msk.f32.mxu1 %vm33_vm1, %v19987_v3  ;;  %v2081_v23 = vpop.f32.mrf.mxu0  ;;  %v4416_v3 = vld [vmem:[#allocation2 + $0xb0] sm:$0xff] }
 0x1cc   :  { %v2791_v56 = vpop.f32.mrf.mxu1  ;;  %v2248_v5 = vadd.f32 %v2081_v23, %v26179_v33  ;;  %v20500_v43 = vadd.f32 %v17152_v36, %v2249_v15  ;;  %v26181_v15 = vld [vmem:[#allocation55_spill] sm:$0xff] }
 0x1cd   :  { %v17057_v1 = vpop.f32.mrf.mxu0  ;;  %17400 = vmatmul.mubr.msk.f32.gmra.mxu0 %vm33_vm1, %v4414_v39 }
 0x1ce   :  { %v17155_v61 = vpop.f32.mrf.mxu1  ;;  %17498 = vmatmul.mubr.msk.f32.gmra.mxu1 %vm33_vm1, %v19999_v42  ;;  %v2251_v27 = vadd.f32 %v17057_v1, %v26180_v60  ;;  %v20506_v32 = vadd.f32 %v2791_v56, %v2248_v5  ;;  %17402 = vmatprep.mubr.msk.f32.mxu0 %vm33_vm1, %v4415_v52  ;;  %v26182_v56 = vld [vmem:[#allocation56_spill] sm:$0xff]  ;;  %v4419_v60 = vld [vmem:[#allocation2 + $0xd8] sm:$0xff] }
 0x1cf   :  { %17500 = vmatprep.mubr.msk.f32.mxu1 %vm33_vm1, %v20003_v47  ;;  %v2091_v55 = vpop.f32.mrf.mxu0  ;;  %v4418_v47 = vld [vmem:[#allocation2 + $0xc8] sm:$0xff] }
 0x1d0   :  { %v2801_v36 = vpop.f32.mrf.mxu1  ;;  %v2250_v23 = vadd.f32 %v2091_v55, %v26181_v15  ;;  %v20512_v39 = vadd.f32 %v17155_v61, %v2251_v27  ;;  %v26183_v27 = vld [vmem:[#allocation57_spill] sm:$0xff] }
 0x1d1   :  { %v17060_v33 = vpop.f32.mrf.mxu0  ;;  %17403 = vmatmul.mubr.msk.f32.gmra.mxu0 %vm33_vm1, %v4416_v3 }
 0x1d2   :  { %v17158_v42 = vpop.f32.mrf.mxu1  ;;  %17501 = vmatmul.mubr.msk.f32.gmra.mxu1 %vm33_vm1, %v20015_v46  ;;  %v2253_v52 = vadd.f32 %v17060_v33, %v26182_v56  ;;  %v20518_v5 = vadd.f32 %v2801_v36, %v2250_v23  ;;  %17405 = vmatprep.mubr.msk.f32.mxu0 %vm33_vm1, %v4417_v0  ;;  %v26184_v36 = vld [vmem:[#allocation58_spill] sm:$0xff]  ;;  %v4421_v56 = vld [vmem:[#allocation2 + $0xf0] sm:$0xff] }
 0x1d3   :  { %17503 = vmatprep.mubr.msk.f32.mxu1 %vm33_vm1, %v20019_v21  ;;  %v2101_v1 = vpop.f32.mrf.mxu0  ;;  %v4420_v21 = vld [vmem:[#allocation2 + $0xe0] sm:$0xff] }
 0x1d4   :  { %v2811_v61 = vpop.f32.mrf.mxu1  ;;  %v2252_v55 = vadd.f32 %v2101_v1, %v26183_v27  ;;  %v20524_v3 = vadd.f32 %v17158_v42, %v2253_v52  ;;  %v26185_v52 = vld [vmem:[#allocation59_spill] sm:$0xff] }
 0x1d5   :  { %v17063_v15 = vpop.f32.mrf.mxu0  ;;  %17406 = vmatmul.mubr.msk.f32.gmra.mxu0 %vm33_vm1, %v4418_v47 }
 0x1d6   :  { %v17161_v46 = vpop.f32.mrf.mxu1  ;;  %17504 = vmatmul.mubr.msk.f32.gmra.mxu1 %vm33_vm1, %v20031_v57  ;;  %v2255_v0 = vadd.f32 %v17063_v15, %v26184_v36  ;;  %v20530_v23 = vadd.f32 %v2811_v61, %v2252_v55  ;;  %17408 = vmatprep.mubr.msk.f32.mxu0 %vm33_vm1, %v4419_v60  ;;  %v26186_v61 = vld [vmem:[#allocation60_spill] sm:$0xff] }
 0x1d7   :  { %17506 = vmatprep.mubr.msk.f32.mxu1 %vm33_vm1, %v20035_v34  ;;  %v2111_v33 = vpop.f32.mrf.mxu0  ;;  %v4422_v34 = vld [vmem:[#allocation2 + $0xf8] sm:$0xff]  ;;  %v4423_v36 = vld [vmem:[#allocation2 + $0x108] sm:$0xff] }
 0x1d8   :  { %v2821_v42 = vpop.f32.mrf.mxu1  ;;  %v2254_v1 = vadd.f32 %v2111_v33, %v26185_v52  ;;  %v20536_v47 = vadd.f32 %v17161_v46, %v2255_v0  ;;  %v26187_v0 = vld [vmem:[#allocation61_spill] sm:$0xff] }
 0x1d9   :  { %v17066_v27 = vpop.f32.mrf.mxu0  ;;  %17409 = vmatmul.mubr.msk.f32.gmra.mxu0 %vm33_vm1, %v4420_v21 }
 0x1da   :  { %v17164_v57 = vpop.f32.mrf.mxu1  ;;  %17507 = vmatmul.mubr.msk.f32.gmra.mxu1 %vm33_vm1, %v20047_v63  ;;  %v2257_v60 = vadd.f32 %v17066_v27, %v26186_v61  ;;  %v20542_v55 = vadd.f32 %v2821_v42, %v2254_v1  ;;  %17411 = vmatprep.mubr.msk.f32.mxu0 %vm33_vm1, %v4421_v56  ;;  %v26188_v42 = vld [vmem:[#allocation62_spill] sm:$0xff]  ;;  %v4425_v61 = vld [vmem:[#allocation2 + $0x120] sm:$0xff] }
 0x1db   :  { %17509 = vmatprep.mubr.msk.f32.mxu1 %vm33_vm1, %v20051_v38  ;;  %v2121_v15 = vpop.f32.mrf.mxu0  ;;  %v4424_v38 = vld [vmem:[#allocation2 + $0x110] sm:$0xff] }
 0x1dc   :  { %v2831_v46 = vpop.f32.mrf.mxu1  ;;  %v2256_v33 = vadd.f32 %v2121_v15, %v26187_v0  ;;  %v20548_v21 = vadd.f32 %v17164_v57, %v2257_v60  ;;  %v26189_v60 = vld [vmem:[#allocation63_spill] sm:$0xff] }
 0x1dd   :  { %v17069_v52 = vpop.f32.mrf.mxu0  ;;  %17412 = vmatmul.mubr.msk.f32.gmra.mxu0 %vm33_vm1, %v4422_v34 }
 0x1de   :  { %v17167_v63 = vpop.f32.mrf.mxu1  ;;  %17510 = vmatmul.mubr.msk.f32.gmra.mxu1 %vm33_vm1, %v20063_v14  ;;  %v2259_v56 = vadd.f32 %v17069_v52, %v26188_v42  ;;  %v20554_v1 = vadd.f32 %v2831_v46, %v2256_v33  ;;  %17414 = vmatprep.mubr.msk.f32.mxu0 %vm33_vm1, %v4423_v36  ;;  %v26190_v46 = vld [vmem:[#allocation64_spill] sm:$0xff]  ;;  %v4427_v42 = vld [vmem:[#allocation2 + $0x138] sm:$0xff] }
 0x1df   :  { %17512 = vmatprep.mubr.msk.f32.mxu1 %vm33_vm1, %v20067_v40  ;;  %v2131_v27 = vpop.f32.mrf.mxu0  ;;  %v4426_v40 = vld [vmem:[#allocation2 + $0x128] sm:$0xff] }
 0x1e0   :  { %v2841_v57 = vpop.f32.mrf.mxu1  ;;  %v2258_v15 = vadd.f32 %v2131_v27, %v26189_v60  ;;  %v20560_v34 = vadd.f32 %v17167_v63, %v2259_v56  ;;  %v26192_v56 = vld [vmem:[#allocation65_spill] sm:$0xff] }
 0x1e1   :  { %v17072_v0 = vpop.f32.mrf.mxu0  ;;  %17415 = vmatmul.mubr.msk.f32.gmra.mxu0 %vm33_vm1, %v4424_v38 }
 0x1e2   :  { %v17170_v14 = vpop.f32.mrf.mxu1  ;;  %17513 = vmatmul.mubr.msk.f32.gmra.mxu1 %vm33_vm1, %v20079_v18  ;;  %v2261_v36 = vadd.f32 %v17072_v0, %v26190_v46  ;;  %v20566_v33 = vadd.f32 %v2841_v57, %v2258_v15  ;;  %17417 = vmatprep.mubr.msk.f32.mxu0 %vm33_vm1, %v4425_v61  ;;  %v26194_v0 = vld [vmem:[#allocation67_spill] sm:$0xff]  ;;  %v26195_v57 = vld [vmem:[#allocation66_spill] sm:$0xff]  ;;  %v26197_v46 = vld [vmem:[#allocation68_spill] sm:$0xff] }
 0x1e3   :  { %17515 = vmatprep.mubr.msk.f32.mxu1 %vm33_vm1, %v20083_v44  ;;  %v2141_v52 = vpop.f32.mrf.mxu0  ;;  %v4428_v44 = vld [vmem:[#allocation2 + $0x140] sm:$0xff] }
 0x1e4   :  { %26191 = vst [vmem:[#allocation44_spill] sm:$0xff] %v20566_v33  ;;  %v2851_v63 = vpop.f32.mrf.mxu1  ;;  %v2260_v27 = vadd.f32 %v2141_v52, %v26192_v56  ;;  %v20572_v38 = vadd.f32 %v17170_v14, %v2261_v36  ;;  %v4429_v36 = vld [vmem:[#allocation2 + $0x150] sm:$0xff] }
 0x1e5   :  { %v17075_v60 = vpop.f32.mrf.mxu0  ;;  %17418 = vmatmul.mubr.msk.f32.gmra.mxu0 %vm33_vm1, %v4426_v40  ;;  %v26198_v56 = vld [vmem:[#allocation69_spill] sm:$0xff] }
 0x1e6   :  { %26193 = vst [vmem:[#allocation46_spill] sm:$0xff] %v20572_v38  ;;  %v17173_v18 = vpop.f32.mrf.mxu1  ;;  %17516 = vmatmul.mubr.msk.f32.gmra.mxu1 %vm33_vm1, %v26194_v0  ;;  %v2263_v61 = vadd.f32 %v17075_v60, %v26195_v57  ;;  %v20578_v15 = vadd.f32 %v2851_v63, %v2260_v27  ;;  %17420 = vmatprep.mubr.msk.f32.mxu0 %vm33_vm1, %v4427_v42  ;;  %v26200_v60 = vld [vmem:[#allocation71_spill] sm:$0xff]  ;;  %v26201_v63 = vld [vmem:[#allocation70_spill] sm:$0xff] }
 0x1e7   :  { %17518 = vmatprep.mubr.msk.f32.mxu1 %vm33_vm1, %v26197_v46  ;;  %v2151_v52 = vpop.f32.mrf.mxu0  ;;  %v4430_v57 = vld [vmem:[#allocation2 + $0x158] sm:$0xff]  ;;  %v26203_v46 = vld [vmem:[#allocation72_spill] sm:$0xff] }
 0x1e8   :  { %26196 = vst [vmem:[#allocation45_spill] sm:$0xff] %v20578_v15  ;;  %v2861_v14 = vpop.f32.mrf.mxu1  ;;  %v2262_v38 = vadd.f32 %v2151_v52, %v26198_v56  ;;  %v20584_v40 = vadd.f32 %v17173_v18, %v2263_v61  ;;  %v4431_v61 = vld [vmem:[#allocation2 + $0x168] sm:$0xff]  ;;  %v26204_v56 = vld [vmem:[#allocation73_spill] sm:$0xff] }
 0x1e9   :  { %v17078_v33 = vpop.f32.mrf.mxu0  ;;  %17421 = vmatmul.mubr.msk.f32.gmra.mxu0 %vm33_vm1, %v4428_v44 }
 0x1ea   :  { %26199 = vst [vmem:[#allocation47_spill] sm:$0xff] %v20584_v40  ;;  %v17176_v0 = vpop.f32.mrf.mxu1  ;;  %17519 = vmatmul.mubr.msk.f32.gmra.mxu1 %vm33_vm1, %v26200_v60  ;;  %v2265_v42 = vadd.f32 %v17078_v33, %v26201_v63  ;;  %v20590_v27 = vadd.f32 %v2861_v14, %v2262_v38  ;;  %17423 = vmatprep.mubr.msk.f32.mxu0 %vm33_vm1, %v4429_v36  ;;  %v26206_v33 = vld [vmem:[#allocation74_spill] sm:$0xff]  ;;  %v26207_v38 = vld [vmem:[#allocation9_spill] sm:$0xff] }
 0x1eb   :  { %17521 = vmatprep.mubr.msk.f32.mxu1 %vm33_vm1, %v26203_v46  ;;  %v2161_v52 = vpop.f32.mrf.mxu0  ;;  %v4432_v63 = vld [vmem:[#allocation2 + $0x170] sm:$0xff]  ;;  %v26209_v46 = vld [vmem:[#allocation10_spill] sm:$0xff] }
 0x1ec   :  { %26202 = vst [vmem:[#allocation48_spill] sm:$0xff] %v20590_v27  ;;  %v2871_v18 = vpop.f32.mrf.mxu1  ;;  %v2264_v40 = vadd.f32 %v2161_v52, %v26204_v56  ;;  %v20596_v44 = vadd.f32 %v17176_v0, %v2265_v42  ;;  %v4433_v42 = vld [vmem:[#allocation2 + $0x180] sm:$0xff] }
 0x1ed   :  { %v17081_v15 = vpop.f32.mrf.mxu0  ;;  %17424 = vmatmul.mubr.msk.f32.gmra.mxu0 %vm33_vm1, %v4430_v57  ;;  %v26210_v56 = vld [vmem:[#allocation75_spill] sm:$0xff] }
 0x1ee   :  { %26205 = vst [vmem:[#allocation49_spill] sm:$0xff] %v20596_v44  ;;  %v17179_v60 = vpop.f32.mrf.mxu1  ;;  %17522 = vmatmul.mubr.msk.f32.gmra.mxu1 %vm33_vm1, %v26206_v33  ;;  %v2267_v14 = vadd.f32 %v17081_v15, %v26207_v38  ;;  %v20602_v36 = vadd.f32 %v2871_v18, %v2264_v40  ;;  %17426 = vmatprep.mubr.msk.f32.mxu0 %vm33_vm1, %v4431_v61  ;;  %v26212_v15 = vld [vmem:[#allocation76_spill] sm:$0xff]  ;;  %v26213_v40 = vld [vmem:[#allocation11_spill] sm:$0xff] }
 0x1ef   :  { %17524 = vmatprep.mubr.msk.f32.mxu1 %vm33_vm1, %v26209_v46  ;;  %v2171_v52 = vpop.f32.mrf.mxu0  ;;  %v4434_v38 = vld [vmem:[#allocation2 + $0x188] sm:$0xff] }
 0x1f0   :  { %26208 = vst [vmem:[#allocation50_spill] sm:$0xff] %v20602_v36  ;;  %v2881_v0 = vpop.f32.mrf.mxu1  ;;  %v2266_v44 = vadd.f32 %v2171_v52, %v26210_v56  ;;  %v20608_v57 = vadd.f32 %v17179_v60, %v2267_v14  ;;  %v4435_v14 = vld [vmem:[#allocation2 + $0x198] sm:$0xff]  ;;  %v26214_v56 = vld [vmem:[#allocation12_spill] sm:$0xff] }
 0x1f1   :  { %v17084_v27 = vpop.f32.mrf.mxu0  ;;  %17427 = vmatmul.mubr.msk.f32.gmra.mxu0 %vm33_vm1, %v4432_v63  ;;  %v5145_v52 = vld [vmem:[#allocation2 + $0x199] sm:$0xff] }
 0x1f2   :  { %26211 = vst [vmem:[#allocation51_spill] sm:$0xff] %v20608_v57  ;;  %v17182_v33 = vpop.f32.mrf.mxu1  ;;  %17525 = vmatmul.mubr.msk.f32.gmra.mxu1 %vm33_vm1, %v26212_v15  ;;  %v2269_v18 = vadd.f32 %v17084_v27, %v26213_v40  ;;  %v20614_v61 = vadd.f32 %v2881_v0, %v2266_v44  ;;  %17429 = vmatprep.mubr.msk.f32.mxu0 %vm33_vm1, %v4433_v42  ;;  %v26216_v44 = vld [vmem:[#allocation13_spill] sm:$0xff]  ;;  %v5146_v15 = vld [vmem:[#allocation2 + $0x1a1] sm:$0xff] }
 0x1f3   :  { %17527 = vmatprep.mubr.msk.f32.mxu1 %vm33_vm1, %v20147_v24  ;;  %v2181_v46 = vpop.f32.mrf.mxu0  ;;  %v4436_v24 = vld [vmem:[#allocation2 + $0x1a0] sm:$0xff] }
 0x1f4   :  { %v2891_v60 = vpop.f32.mrf.mxu1  ;;  %v2268_v63 = vadd.f32 %v2181_v46, %v26214_v56  ;;  %v20620_v57 = vadd.f32 %v17182_v33, %v2269_v18  ;;  %v4437_v18 = vld [vmem:[#allocation2 + $0x1e0] sm:$0xff]  ;;  %v26217_v46 = vld [vmem:[#allocation77_spill] sm:$0xff] }
 0x1f5   :  { %v17087_v36 = vpop.f32.mrf.mxu0  ;;  %17430 = vmatmul.mubr.msk.f32.gmra.mxu0 %vm33_vm1, %v4434_v38 }
 0x1f6   :  { %26215 = vst [vmem:[#allocation52_spill] sm:$0xff] %v20620_v57  ;;  %v17185_v27 = vpop.f32.mrf.mxu1  ;;  %17528 = vmatmul.mubr.msk.f32.gmra.mxu1 %vm33_vm1, %v20159_v20  ;;  %v2271_v0 = vadd.f32 %v17087_v36, %v26216_v44  ;;  %v20626_v42 = vadd.f32 %v2891_v60, %v2268_v63  ;;  %17432 = vmatprep.mubr.msk.f32.mxu0 %vm33_vm1, %v4435_v14  ;;  %v26219_v36 = vld [vmem:[#allocation78_spill] sm:$0xff]  ;;  %v26220_v63 = vld [vmem:[#allocation79_spill] sm:$0xff] }
 0x1f7   :  { %17530 = vmatprep.mubr.msk.f32.mxu1 %vm33_vm1, %v5145_v52  ;;  %v2191_v40 = vpop.f32.mrf.mxu0  ;;  %v4438_v52 = vld [vmem:[#allocation2 + $0x1e8] sm:$0xff] }
 0x1f8   :  { %v2901_v33 = vpop.f32.mrf.mxu1  ;;  %v2270_v56 = vadd.f32 %v2191_v40, %v26217_v46  ;;  %v20631_v38 = vadd.f32 %v17185_v27, %v2271_v0  ;;  %v4439_v27 = vld [vmem:[#allocation2 + $0x1f8] sm:$0xff]  ;;  %v26221_v0 = vld [vmem:[#allocation80_spill] sm:$0xff] }
 0x1f9   :  { %v17090_v57 = vpop.f32.mrf.mxu0  ;;  %17433 = vmatmul.mubr.msk.f32.gmra.mxu0 %vm33_vm1, %v4436_v24 }
 0x1fa   :  { %26218 = vst [vmem:[#allocation53_spill] sm:$0xff] %v20631_v38  ;;  %v17188_v20 = vpop.f32.mrf.mxu1  ;;  %17531 = vmatmul.mubr.msk.f32.gmra.mxu1 %vm33_vm1, %v5146_v15  ;;  %v2273_v60 = vadd.f32 %v17090_v57, %v26219_v36  ;;  %v20636_v14 = vadd.f32 %v2901_v33, %v2270_v56  ;;  %17435 = vmatprep.mubr.msk.f32.mxu0 %vm33_vm1, %v4437_v18  ;;  %v26222_v57 = vld [vmem:[#allocation14_spill] sm:$0xff]  ;;  %v26223_v18 = vld [vmem:[#allocation15_spill] sm:$0xff] }
 0x1fb   :  { %17533 = vmatprep.mubr.msk.f32.mxu1 %vm33_vm1, %v26220_v63  ;;  %v2201_v44 = vpop.f32.mrf.mxu0  ;;  %v4440_v36 = vld [vmem:[#allocation2 + $0x200] sm:$0xff] }
 0x1fc   :  { %v2911_v40 = vpop.f32.mrf.mxu1  ;;  %v2272_v46 = vadd.f32 %v2201_v44, %v26221_v0  ;;  %v20642_v38 = vadd.f32 %v17188_v20, %v2273_v60  ;;  %v4441_v60 = vld [vmem:[#allocation2 + $0x210] sm:$0xff] }
 0x1fd   :  { %v17193_v24 = vpop.f32.mrf.mxu0  ;;  %17436 = vmatmul.mubr.msk.f32.gmra.mxu0 %vm33_vm1, %v4438_v52 }
 0x1fe   :  { %v17291_v15 = vpop.f32.mrf.mxu1  ;;  %17534 = vmatmul.mubr.msk.f32.gmra.mxu1 %vm33_vm1, %v26222_v57  ;;  %v20647_v33 = vadd.f32 %v2911_v40, %v2272_v46  ;;  %v3631_v56 = vadd.f32 %v17193_v24, %v26223_v18  ;;  %17438 = vmatprep.mubr.msk.f32.mxu0 %vm33_vm1, %v4439_v27  ;;  %v26224_v46 = vld [vmem:[#allocation16_spill] sm:$0xff]  ;;  %v26225_v24 = vld [vmem:[#allocation17_spill] sm:$0xff] }
 0x1ff   :  { %17536 = vmatprep.mubr.msk.f32.mxu1 %vm33_vm1, %v20186_v16  ;;  %v3311_v63 = vpop.f32.mrf.mxu0  ;;  %v4442_v16 = vld [vmem:[#allocation2 + $0x218] sm:$0xff]  ;;  %v4443_v18 = vld [vmem:[#allocation2 + $0x228] sm:$0xff] }
 0x200   :  { %v4021_v20 = vpop.f32.mrf.mxu1  ;;  %v3630_v44 = vadd.f32 %v3311_v63, %v20196_v26  ;;  %v20654_v52 = vadd.f32 %v17291_v15, %v3631_v56 }
 0x201   :  { %v17196_v0 = vpop.f32.mrf.mxu0  ;;  %17439 = vmatmul.mubr.msk.f32.gmra.mxu0 %vm33_vm1, %v4440_v36 }
 0x202   :  { %v17294_v40 = vpop.f32.mrf.mxu1  ;;  %17537 = vmatmul.mubr.msk.f32.gmra.mxu1 %vm33_vm1, %v26224_v46  ;;  %v3633_v27 = vadd.f32 %v17196_v0, %v26225_v24  ;;  %v20660_v57 = vadd.f32 %v4021_v20, %v3630_v44  ;;  %17441 = vmatprep.mubr.msk.f32.mxu0 %vm33_vm1, %v4441_v60  ;;  %v26226_v0 = vld [vmem:[#allocation18_spill] sm:$0xff]  ;;  %v26227_v20 = vld [vmem:[#allocation19_spill] sm:$0xff] }
 0x203   :  { %17539 = vmatprep.mubr.msk.f32.mxu1 %vm33_vm1, %v20204_v19  ;;  %v3321_v26 = vpop.f32.mrf.mxu0  ;;  %v4444_v19 = vld [vmem:[#allocation2 + $0x230] sm:$0xff]  ;;  %v4445_v24 = vld [vmem:[#allocation2 + $0x240] sm:$0xff] }
 0x204   :  { %v4031_v15 = vpop.f32.mrf.mxu1  ;;  %v3632_v56 = vadd.f32 %v3321_v26, %v20214_v10  ;;  %v20666_v36 = vadd.f32 %v17294_v40, %v3633_v27 }
 0x205   :  { %v17199_v63 = vpop.f32.mrf.mxu0  ;;  %17442 = vmatmul.mubr.msk.f32.gmra.mxu0 %vm33_vm1, %v4442_v16 }
 0x206   :  { %v17297_v46 = vpop.f32.mrf.mxu1  ;;  %17540 = vmatmul.mubr.msk.f32.gmra.mxu1 %vm33_vm1, %v26226_v0  ;;  %v3635_v60 = vadd.f32 %v17199_v63, %v26227_v20  ;;  %v20672_v44 = vadd.f32 %v4031_v15, %v3632_v56  ;;  %17444 = vmatprep.mubr.msk.f32.mxu0 %vm33_vm1, %v4443_v18  ;;  %v26228_v63 = vld [vmem:[#allocation20_spill] sm:$0xff]  ;;  %v26229_v15 = vld [vmem:[#allocation21_spill] sm:$0xff]  ;;  %v4447_v20 = vld [vmem:[#allocation2 + $0x258] sm:$0xff] }
 0x207   :  { %17542 = vmatprep.mubr.msk.f32.mxu1 %vm33_vm1, %v20222_v25  ;;  %v3331_v10 = vpop.f32.mrf.mxu0  ;;  %v4446_v25 = vld [vmem:[#allocation2 + $0x248] sm:$0xff] }
 0x208   :  { %v4041_v40 = vpop.f32.mrf.mxu1  ;;  %v3634_v27 = vadd.f32 %v3331_v10, %v20232_v7  ;;  %v20678_v16 = vadd.f32 %v17297_v46, %v3635_v60 }
 0x209   :  { %v17202_v26 = vpop.f32.mrf.mxu0  ;;  %17445 = vmatmul.mubr.msk.f32.gmra.mxu0 %vm33_vm1, %v4444_v19 }
 0x20a   :  { %v17300_v0 = vpop.f32.mrf.mxu1  ;;  %17543 = vmatmul.mubr.msk.f32.gmra.mxu1 %vm33_vm1, %v26228_v63  ;;  %v3637_v18 = vadd.f32 %v17202_v26, %v26229_v15  ;;  %v20684_v56 = vadd.f32 %v4041_v40, %v3634_v27  ;;  %17447 = vmatprep.mubr.msk.f32.mxu0 %vm33_vm1, %v4445_v24  ;;  %v26230_v26 = vld [vmem:[#allocation22_spill] sm:$0xff]  ;;  %v26231_v40 = vld [vmem:[#allocation23_spill] sm:$0xff]  ;;  %v4449_v15 = vld [vmem:[#allocation2 + $0x270] sm:$0xff] }
 0x20b   :  { %17545 = vmatprep.mubr.msk.f32.mxu1 %vm33_vm1, %v20240_v12  ;;  %v3341_v7 = vpop.f32.mrf.mxu0  ;;  %v4448_v12 = vld [vmem:[#allocation2 + $0x260] sm:$0xff] }
 0x20c   :  { %v4051_v46 = vpop.f32.mrf.mxu1  ;;  %v3636_v60 = vadd.f32 %v3341_v7, %v20250_v31  ;;  %v20690_v19 = vadd.f32 %v17300_v0, %v3637_v18 }
 0x20d   :  { %v17205_v10 = vpop.f32.mrf.mxu0  ;;  %17448 = vmatmul.mubr.msk.f32.gmra.mxu0 %vm33_vm1, %v4446_v25 }
 0x20e   :  { %v17303_v63 = vpop.f32.mrf.mxu1  ;;  %17546 = vmatmul.mubr.msk.f32.gmra.mxu1 %vm33_vm1, %v26230_v26  ;;  %v3639_v24 = vadd.f32 %v17205_v10, %v26231_v40  ;;  %v20696_v27 = vadd.f32 %v4051_v46, %v3636_v60  ;;  %17450 = vmatprep.mubr.msk.f32.mxu0 %vm33_vm1, %v4447_v20  ;;  %v26232_v10 = vld [vmem:[#allocation24_spill] sm:$0xff]  ;;  %v26233_v46 = vld [vmem:[#allocation25_spill] sm:$0xff] }
 0x20f   :  { %17548 = vmatprep.mubr.msk.f32.mxu1 %vm33_vm1, %v20258_v22  ;;  %v3351_v31 = vpop.f32.mrf.mxu0  ;;  %v4450_v22 = vld [vmem:[#allocation2 + $0x278] sm:$0xff]  ;;  %v4451_v40 = vld [vmem:[#allocation2 + $0x288] sm:$0xff] }
 0x210   :  { %v4061_v0 = vpop.f32.mrf.mxu1  ;;  %v3638_v18 = vadd.f32 %v3351_v31, %v20268_v54  ;;  %v20702_v25 = vadd.f32 %v17303_v63, %v3639_v24 }
 0x211   :  { %v17208_v7 = vpop.f32.mrf.mxu0  ;;  %17451 = vmatmul.mubr.msk.f32.gmra.mxu0 %vm33_vm1, %v4448_v12 }
 0x212   :  { %v17306_v26 = vpop.f32.mrf.mxu1  ;;  %17549 = vmatmul.mubr.msk.f32.gmra.mxu1 %vm33_vm1, %v26232_v10  ;;  %v3641_v20 = vadd.f32 %v17208_v7, %v26233_v46  ;;  %v20708_v60 = vadd.f32 %v4061_v0, %v3638_v18  ;;  %17453 = vmatprep.mubr.msk.f32.mxu0 %vm33_vm1, %v4449_v15  ;;  %v26234_v7 = vld [vmem:[#allocation26_spill] sm:$0xff]  ;;  %v26235_v0 = vld [vmem:[#allocation27_spill] sm:$0xff] }
 0x213   :  { %17551 = vmatprep.mubr.msk.f32.mxu1 %vm33_vm1, %v20276_v11  ;;  %v3361_v54 = vpop.f32.mrf.mxu0  ;;  %v4452_v11 = vld [vmem:[#allocation2 + $0x290] sm:$0xff]  ;;  %v4453_v46 = vld [vmem:[#allocation2 + $0x2a0] sm:$0xff] }
 0x214   :  { %v4071_v63 = vpop.f32.mrf.mxu1  ;;  %v3640_v24 = vadd.f32 %v3361_v54, %v20286_v58  ;;  %v20714_v12 = vadd.f32 %v17306_v26, %v3641_v20 }
 0x215   :  { %v17211_v31 = vpop.f32.mrf.mxu0  ;;  %17454 = vmatmul.mubr.msk.f32.gmra.mxu0 %vm33_vm1, %v4450_v22 }
 0x216   :  { %v17309_v10 = vpop.f32.mrf.mxu1  ;;  %17552 = vmatmul.mubr.msk.f32.gmra.mxu1 %vm33_vm1, %v26234_v7  ;;  %v3643_v15 = vadd.f32 %v17211_v31, %v26235_v0  ;;  %v20720_v18 = vadd.f32 %v4071_v63, %v3640_v24  ;;  %17456 = vmatprep.mubr.msk.f32.mxu0 %vm33_vm1, %v4451_v40  ;;  %v26236_v31 = vld [vmem:[#allocation28_spill] sm:$0xff]  ;;  %v26237_v63 = vld [vmem:[#allocation29_spill] sm:$0xff]  ;;  %v4455_v0 = vld [vmem:[#allocation2 + $0x2b8] sm:$0xff] }
 0x217   :  { %17554 = vmatprep.mubr.msk.f32.mxu1 %vm33_vm1, %v20294_v59  ;;  %v3371_v58 = vpop.f32.mrf.mxu0  ;;  %v4454_v59 = vld [vmem:[#allocation2 + $0x2a8] sm:$0xff] }
 0x218   :  { %v4081_v26 = vpop.f32.mrf.mxu1  ;;  %v3642_v20 = vadd.f32 %v3371_v58, %v20304_v41  ;;  %v20726_v22 = vadd.f32 %v17309_v10, %v3643_v15 }
 0x219   :  { %v17214_v54 = vpop.f32.mrf.mxu0  ;;  %17457 = vmatmul.mubr.msk.f32.gmra.mxu0 %vm33_vm1, %v4452_v11 }
 0x21a   :  { %v17312_v7 = vpop.f32.mrf.mxu1  ;;  %17555 = vmatmul.mubr.msk.f32.gmra.mxu1 %vm33_vm1, %v26236_v31  ;;  %v3645_v40 = vadd.f32 %v17214_v54, %v26237_v63  ;;  %v20732_v24 = vadd.f32 %v4081_v26, %v3642_v20  ;;  %17459 = vmatprep.mubr.msk.f32.mxu0 %vm33_vm1, %v4453_v46  ;;  %v26238_v54 = vld [vmem:[#allocation30_spill] sm:$0xff]  ;;  %v26239_v26 = vld [vmem:[#allocation31_spill] sm:$0xff]  ;;  %v4457_v63 = vld [vmem:[#allocation2 + $0x2d0] sm:$0xff] }
 0x21b   :  { %17557 = vmatprep.mubr.msk.f32.mxu1 %vm33_vm1, %v20312_v9  ;;  %v3381_v41 = vpop.f32.mrf.mxu0  ;;  %v4456_v9 = vld [vmem:[#allocation2 + $0x2c0] sm:$0xff] }
 0x21c   :  { %v4091_v10 = vpop.f32.mrf.mxu1  ;;  %v3644_v15 = vadd.f32 %v3381_v41, %v20322_v49  ;;  %v20738_v11 = vadd.f32 %v17312_v7, %v3645_v40  ;;  %v26241_v40 = vld [vmem:[#allocation32_spill] sm:$0xff] }
 0x21d   :  { %v17217_v58 = vpop.f32.mrf.mxu0  ;;  %17460 = vmatmul.mubr.msk.f32.gmra.mxu0 %vm33_vm1, %v4454_v59 }
 0x21e   :  { %v17315_v31 = vpop.f32.mrf.mxu1  ;;  %17558 = vmatmul.mubr.msk.f32.gmra.mxu1 %vm33_vm1, %v26238_v54  ;;  %v3647_v46 = vadd.f32 %v17217_v58, %v26239_v26  ;;  %v20744_v20 = vadd.f32 %v4091_v10, %v3644_v15  ;;  %17462 = vmatprep.mubr.msk.f32.mxu0 %vm33_vm1, %v4455_v0  ;;  %v26242_v15 = vld [vmem:[#allocation81_spill] sm:$0xff] }
 0x21f   :  { %17560 = vmatprep.mubr.msk.f32.mxu1 %vm33_vm1, %v20330_v29  ;;  %v3391_v49 = vpop.f32.mrf.mxu0  ;;  %v26243_v0 = vld [vmem:[#allocation33_spill] sm:$0xff]  ;;  %v4458_v29 = vld [vmem:[#allocation2 + $0x2d8] sm:$0xff] }
 0x220   :  { %v20749_v7 = vpop.f32.mrf.mxu1  ;;  %v20752_v59 = vadd.f32 %v3391_v49, %v26241_v40  ;;  %v20754_v41 = vadd.f32 %v17315_v31, %v3647_v46  ;;  %v4459_v31 = vld [vmem:[#allocation2 + $0x2e8] sm:$0xff]  ;;  %v26245_v46 = vld [vmem:[#allocation34_spill] sm:$0xff] }
 0x221   :  { %26240 = vst [vmem:[#allocation54_spill] sm:$0xff] %v20749_v7  ;;  %v17220_v54 = vpop.f32.mrf.mxu0  ;;  %17463 = vmatmul.mubr.msk.f32.gmra.mxu0 %vm33_vm1, %v4456_v9 }
 0x222   :  { %v17318_v10 = vpop.f32.mrf.mxu1  ;;  %17561 = vmatmul.mubr.msk.f32.gmra.mxu1 %vm33_vm1, %v26242_v15  ;;  %v3649_v58 = vadd.f32 %v17220_v54, %v26243_v0  ;;  %17465 = vmatprep.mubr.msk.f32.mxu0 %vm33_vm1, %v4457_v63  ;;  %v26247_v54 = vld [vmem:[#allocation82_spill] sm:$0xff]  ;;  %v26248_v63 = vld [vmem:[#allocation35_spill] sm:$0xff] }
 0x223   :  { %17563 = vmatprep.mubr.msk.f32.mxu1 %vm33_vm1, %v20348_v4  ;;  %v3401_v26 = vpop.f32.mrf.mxu0  ;;  %v4460_v4 = vld [vmem:[#allocation2 + $0x2f0] sm:$0xff] }
 0x224   :  { %v20763_v49 = vpop.f32.mrf.mxu1  ;;  %v20766_v40 = vadd.f32 %v3401_v26, %v26245_v46  ;;  %v20768_v9 = vadd.f32 %v17318_v10, %v3649_v58  ;;  %v4461_v10 = vld [vmem:[#allocation2 + $0x300] sm:$0xff]  ;;  %v26250_v58 = vld [vmem:[#allocation36_spill] sm:$0xff] }
 0x225   :  { %26244 = vst [vmem:[#allocation55_spill] sm:$0xff] %v20763_v49  ;;  %v17223_v7 = vpop.f32.mrf.mxu0  ;;  %17466 = vmatmul.mubr.msk.f32.gmra.mxu0 %vm33_vm1, %v4458_v29 }
 0x226   :  { %26246 = vst [vmem:[#allocation56_spill] sm:$0xff] %v20766_v40  ;;  %v17321_v15 = vpop.f32.mrf.mxu1  ;;  %17564 = vmatmul.mubr.msk.f32.gmra.mxu1 %vm33_vm1, %v26247_v54  ;;  %v3651_v0 = vadd.f32 %v17223_v7, %v26248_v63  ;;  %17468 = vmatprep.mubr.msk.f32.mxu0 %vm33_vm1, %v4459_v31  ;;  %v26252_v7 = vld [vmem:[#allocation38_spill] sm:$0xff]  ;;  %v26253_v31 = vld [vmem:[#allocation37_spill] sm:$0xff] }
 0x227   :  { %17566 = vmatprep.mubr.msk.f32.mxu1 %vm33_vm1, %v20366_v48  ;;  %v3411_v49 = vpop.f32.mrf.mxu0  ;;  %v4462_v48 = vld [vmem:[#allocation2 + $0x308] sm:$0xff] }
 0x228   :  { %v20777_v26 = vpop.f32.mrf.mxu1  ;;  %v20780_v46 = vadd.f32 %v3411_v49, %v26250_v58  ;;  %v20782_v29 = vadd.f32 %v17321_v15, %v3651_v0  ;;  %v4463_v15 = vld [vmem:[#allocation2 + $0x318] sm:$0xff]  ;;  %v26255_v0 = vld [vmem:[#allocation39_spill] sm:$0xff] }
 0x229   :  { %26249 = vst [vmem:[#allocation57_spill] sm:$0xff] %v20777_v26  ;;  %v17226_v40 = vpop.f32.mrf.mxu0  ;;  %17469 = vmatmul.mubr.msk.f32.gmra.mxu0 %vm33_vm1, %v4460_v4 }
 0x22a   :  { %26251 = vst [vmem:[#allocation58_spill] sm:$0xff] %v20780_v46  ;;  %v17324_v54 = vpop.f32.mrf.mxu1  ;;  %17567 = vmatmul.mubr.msk.f32.gmra.mxu1 %vm33_vm1, %v26252_v7  ;;  %v3653_v63 = vadd.f32 %v17226_v40, %v26253_v31  ;;  %17471 = vmatprep.mubr.msk.f32.mxu0 %vm33_vm1, %v4461_v10  ;;  %v26257_v40 = vld [vmem:[#allocation40_spill] sm:$0xff]  ;;  %v26258_v10 = vld [vmem:[#allocation7_spill] sm:$0xff] }
 0x22b   :  { %17569 = vmatprep.mubr.msk.f32.mxu1 %vm33_vm1, %v20384_v35  ;;  %v3421_v26 = vpop.f32.mrf.mxu0  ;;  %v4464_v35 = vld [vmem:[#allocation2 + $0x320] sm:$0xff] }
 0x22c   :  { %v20791_v49 = vpop.f32.mrf.mxu1  ;;  %v20794_v58 = vadd.f32 %v3421_v26, %v26255_v0  ;;  %v20796_v4 = vadd.f32 %v17324_v54, %v3653_v63  ;;  %v4465_v54 = vld [vmem:[#allocation2 + $0x330] sm:$0xff]  ;;  %v26260_v63 = vld [vmem:[#allocation8_spill] sm:$0xff] }
 0x22d   :  { %26254 = vst [vmem:[#allocation59_spill] sm:$0xff] %v20791_v49  ;;  %v17229_v46 = vpop.f32.mrf.mxu0  ;;  %17472 = vmatmul.mubr.msk.f32.gmra.mxu0 %vm33_vm1, %v4462_v48 }
 0x22e   :  { %26256 = vst [vmem:[#allocation60_spill] sm:$0xff] %v20794_v58  ;;  %v17327_v7 = vpop.f32.mrf.mxu1  ;;  %17570 = vmatmul.mubr.msk.f32.gmra.mxu1 %vm33_vm1, %v26257_v40  ;;  %v3655_v31 = vadd.f32 %v17229_v46, %v26258_v10  ;;  %17474 = vmatprep.mubr.msk.f32.mxu0 %vm33_vm1, %v4463_v15  ;;  %v26262_v46 = vld [vmem:[#allocation42_spill] sm:$0xff]  ;;  %v26263_v15 = vld [vmem:[#allocation41_spill] sm:$0xff] }
 0x22f   :  { %17572 = vmatprep.mubr.msk.f32.mxu1 %vm33_vm1, %v20402_v51  ;;  %v3431_v49 = vpop.f32.mrf.mxu0  ;;  %v4466_v51 = vld [vmem:[#allocation2 + $0x338] sm:$0xff] }
 0x230   :  { %v20805_v26 = vpop.f32.mrf.mxu1  ;;  %v20808_v0 = vadd.f32 %v3431_v49, %v26260_v63  ;;  %v20810_v48 = vadd.f32 %v17327_v7, %v3655_v31  ;;  %v4467_v7 = vld [vmem:[#allocation2 + $0x348] sm:$0xff] }
 0x231   :  { %26259 = vst [vmem:[#allocation61_spill] sm:$0xff] %v20805_v26  ;;  %v17232_v58 = vpop.f32.mrf.mxu0  ;;  %17475 = vmatmul.mubr.msk.f32.gmra.mxu0 %vm33_vm1, %v4464_v35  ;;  %v5177_v31 = vld [vmem:[#allocation2 + $0x349] sm:$0xff] }
 0x232   :  { %26261 = vst [vmem:[#allocation62_spill] sm:$0xff] %v20808_v0  ;;  %v17330_v40 = vpop.f32.mrf.mxu1  ;;  %17573 = vmatmul.mubr.msk.f32.gmra.mxu1 %vm33_vm1, %v26262_v46  ;;  %v3657_v10 = vadd.f32 %v17232_v58, %v26263_v15  ;;  %17477 = vmatprep.mubr.msk.f32.mxu0 %vm33_vm1, %v4465_v54  ;;  %v26266_v54 = vld [vmem:[#allocation43_spill] sm:$0xff]  ;;  %v5178_v15 = vld [vmem:[#allocation2 + $0x351] sm:$0xff] }
 0x233   :  { %17575 = vmatprep.mubr.msk.f32.mxu1 %vm33_vm1, %v20420_v45  ;;  %v3441_v26 = vpop.f32.mrf.mxu0  ;;  %v4468_v45 = vld [vmem:[#allocation2 + $0x350] sm:$0xff] }
 0x234   :  { %v20819_v49 = vpop.f32.mrf.mxu1  ;;  %v20822_v63 = vadd.f32 %v3441_v26, %v20430_v30  ;;  %v20824_v35 = vadd.f32 %v17330_v40, %v3657_v10  ;;  %v5825_v26 = vld [vmem:[#allocation2 + $0x32] sm:$0xff] }
 0x235   :  { %26264 = vst [vmem:[#allocation63_spill] sm:$0xff] %v20819_v49  ;;  %v17235_v0 = vpop.f32.mrf.mxu0  ;;  %17478 = vmatmul.mubr.msk.f32.gmra.mxu0 %vm33_vm1, %v4466_v51 }
 0x236   :  { %26265 = vst [vmem:[#allocation64_spill] sm:$0xff] %v20822_v63  ;;  %v17333_v58 = vpop.f32.mrf.mxu1  ;;  %17576 = vmatmul.mubr.msk.f32.gmra.mxu1 %vm33_vm1, %v20434_v17  ;;  %v3659_v46 = vadd.f32 %v17235_v0, %v26266_v54  ;;  %17480 = vmatprep.mubr.msk.f32.mxu0 %vm33_vm1, %v4467_v7  ;;  %v5826_v7 = vld [vmem:[#allocation2 + $0x3a] sm:$0xff] }
 0x237   :  { %17578 = vmatprep.mubr.msk.f32.mxu1 %vm33_vm1, %v5177_v31  ;;  %v3451_v49 = vpop.f32.mrf.mxu0 }
 0x238   :  { %v20832_v30 = vpop.f32.mrf.mxu1  ;;  %v20835_v40 = vadd.f32 %v3451_v49, %v20444_v50  ;;  %v20837_v10 = vadd.f32 %v17333_v58, %v3659_v46 }
 0x239   :  { %26267 = vst [vmem:[#allocation65_spill] sm:$0xff] %v20832_v30  ;;  %v17238_v51 = vpop.f32.mrf.mxu0  ;;  %17481 = vmatmul.mubr.msk.f32.gmra.mxu0 %vm33_vm1, %v4468_v45  ;;  %v5827_v30 = vld [vmem:[#allocation2 + $0x4a] sm:$0xff] }
 0x23a   :  { %26268 = vst [vmem:[#allocation67_spill] sm:$0xff] %v20835_v40  ;;  %v17336_v17 = vpop.f32.mrf.mxu1  ;;  %17579 = vmatmul.mubr.msk.f32.gmra.mxu1 %vm33_vm1, %v5178_v15  ;;  %v3661_v0 = vadd.f32 %v17238_v51, %v20450_v53  ;;  %17583 = vmatprep.mubr.msk.f32.mxu0 %vm33_vm1, %v5825_v26  ;;  %v5828_v53 = vld [vmem:[#allocation2 + $0x52] sm:$0xff]  ;;  %v5829_v51 = vld [vmem:[#allocation2 + $0x62] sm:$0xff] }
 0x23b   :  { %v3461_v31 = vpop.f32.mrf.mxu0 }
 0x23c   :  { %v20843_v54 = vpop.f32.mrf.mxu1  ;;  %v20846_v50 = vadd.f32 %v3461_v31, %v20456_v62  ;;  %v20848_v49 = vadd.f32 %v17336_v17, %v3661_v0 }
 0x23d   :  { %26269 = vst [vmem:[#allocation66_spill] sm:$0xff] %v20843_v54  ;;  %v17241_v58 = vpop.f32.mrf.mxu0  ;;  %17584 = vmatmul.mubr.msk.f32.vlgmr.msra.gmra.mxu0 %vm33_vm1, %v5826_v7 }
 0x23e   :  { %26270 = vst [vmem:[#allocation68_spill] sm:$0xff] %v20846_v50  ;;  %v17339_v46 = vpop.f32.mrf.mxu1  ;;  %v3663_v45 = vadd.f32 %v17241_v58, %v20464_v37  ;;  %17586 = vmatprep.mubr.msk.f32.mxu0 %vm33_vm1, %v5827_v30  ;;  %v5830_v37 = vld [vmem:[#allocation2 + $0x6a] sm:$0xff]  ;;  %v5831_v58 = vld [vmem:[#allocation2 + $0x7a] sm:$0xff] }
 0x23f   :  { %v3471_v15 = vpop.f32.mrf.mxu0 }
 0x240   :  { %v20853_v26 = vpop.f32.mrf.mxu1  ;;  %v20856_v54 = vadd.f32 %v3471_v15, %v20470_v6  ;;  %v20858_v62 = vadd.f32 %v17339_v46, %v3663_v45 }
 0x241   :  { %26271 = vst [vmem:[#allocation69_spill] sm:$0xff] %v20853_v26  ;;  %v17244_v17 = vpop.f32.mrf.mxu0  ;;  %17587 = vmatmul.mubr.msk.f32.gmra.mxu0 %vm33_vm1, %v5828_v53 }
 0x242   :  { %26272 = vst [vmem:[#allocation71_spill] sm:$0xff] %v20856_v54  ;;  %v17342_v0 = vpop.f32.mrf.mxu1  ;;  %v3665_v7 = vadd.f32 %v17244_v17, %v20476_v28  ;;  %17589 = vmatprep.mubr.msk.f32.mxu0 %vm33_vm1, %v5829_v51  ;;  %v5832_v28 = vld [vmem:[#allocation2 + $0x82] sm:$0xff]  ;;  %v5833_v17 = vld [vmem:[#allocation2 + $0x92] sm:$0xff] }
 0x243   :  { %v3481_v30 = vpop.f32.mrf.mxu0 }
 0x244   :  { %v20863_v31 = vpop.f32.mrf.mxu1  ;;  %v20866_v26 = vadd.f32 %v3481_v30, %v20482_v2  ;;  %v20868_v6 = vadd.f32 %v17342_v0, %v3665_v7 }
 0x245   :  { %26273 = vst [vmem:[#allocation70_spill] sm:$0xff] %v20863_v31  ;;  %v17247_v46 = vpop.f32.mrf.mxu0  ;;  %17590 = vmatmul.mubr.msk.f32.gmra.mxu0 %vm33_vm1, %v5830_v37 }
 0x246   :  { %26274 = vst [vmem:[#allocation72_spill] sm:$0xff] %v20866_v26  ;;  %v17345_v45 = vpop.f32.mrf.mxu1  ;;  %v3667_v53 = vadd.f32 %v17247_v46, %v20488_v13  ;;  %17592 = vmatprep.mubr.msk.f32.mxu0 %vm33_vm1, %v5831_v58  ;;  %v5834_v13 = vld [vmem:[#allocation2 + $0x9a] sm:$0xff]  ;;  %v5835_v46 = vld [vmem:[#allocation2 + $0xaa] sm:$0xff] }
 0x247   :  { %v3491_v15 = vpop.f32.mrf.mxu0 }
 0x248   :  { %v20873_v51 = vpop.f32.mrf.mxu1  ;;  %v20876_v31 = vadd.f32 %v3491_v15, %v20494_v8  ;;  %v20878_v2 = vadd.f32 %v17345_v45, %v3667_v53 }
 0x249   :  { %26275 = vst [vmem:[#allocation73_spill] sm:$0xff] %v20873_v51  ;;  %v17250_v0 = vpop.f32.mrf.mxu0  ;;  %17593 = vmatmul.mubr.msk.f32.gmra.mxu0 %vm33_vm1, %v5832_v28 }
 0x24a   :  { %26276 = vst [vmem:[#allocation74_spill] sm:$0xff] %v20876_v31  ;;  %v17348_v7 = vpop.f32.mrf.mxu1  ;;  %v3669_v37 = vadd.f32 %v17250_v0, %v20500_v43  ;;  %17595 = vmatprep.mubr.msk.f32.mxu0 %vm33_vm1, %v5833_v17  ;;  %v5836_v43 = vld [vmem:[#allocation2 + $0xb2] sm:$0xff]  ;;  %v5837_v0 = vld [vmem:[#allocation2 + $0xc2] sm:$0xff] }
 0x24b   :  { %v3501_v30 = vpop.f32.mrf.mxu0 }
 0x24c   :  { %v20883_v58 = vpop.f32.mrf.mxu1  ;;  %v20886_v51 = vadd.f32 %v3501_v30, %v20506_v32  ;;  %v20888_v8 = vadd.f32 %v17348_v7, %v3669_v37 }
 0x24d   :  { %26277 = vst [vmem:[#allocation9_spill] sm:$0xff] %v20883_v58  ;;  %v17253_v45 = vpop.f32.mrf.mxu0  ;;  %17596 = vmatmul.mubr.msk.f32.gmra.mxu0 %vm33_vm1, %v5834_v13 }
 0x24e   :  { %26278 = vst [vmem:[#allocation10_spill] sm:$0xff] %v20886_v51  ;;  %v17351_v53 = vpop.f32.mrf.mxu1  ;;  %v3671_v28 = vadd.f32 %v17253_v45, %v20512_v39  ;;  %17598 = vmatprep.mubr.msk.f32.mxu0 %vm33_vm1, %v5835_v46  ;;  %v5838_v39 = vld [vmem:[#allocation2 + $0xca] sm:$0xff]  ;;  %v5839_v45 = vld [vmem:[#allocation2 + $0xda] sm:$0xff] }
 0x24f   :  { %v3511_v15 = vpop.f32.mrf.mxu0 }
 0x250   :  { %v20893_v17 = vpop.f32.mrf.mxu1  ;;  %v20896_v58 = vadd.f32 %v3511_v15, %v20518_v5  ;;  %v20898_v32 = vadd.f32 %v17351_v53, %v3671_v28 }
 0x251   :  { %26279 = vst [vmem:[#allocation75_spill] sm:$0xff] %v20893_v17  ;;  %v17256_v7 = vpop.f32.mrf.mxu0  ;;  %17599 = vmatmul.mubr.msk.f32.gmra.mxu0 %vm33_vm1, %v5836_v43 }
 0x252   :  { %26280 = vst [vmem:[#allocation76_spill] sm:$0xff] %v20896_v58  ;;  %v17354_v37 = vpop.f32.mrf.mxu1  ;;  %v3673_v13 = vadd.f32 %v17256_v7, %v20524_v3  ;;  %17601 = vmatprep.mubr.msk.f32.mxu0 %vm33_vm1, %v5837_v0  ;;  %v5840_v3 = vld [vmem:[#allocation2 + $0xe2] sm:$0xff]  ;;  %v5841_v7 = vld [vmem:[#allocation2 + $0xf2] sm:$0xff] }
 0x253   :  { %v3521_v30 = vpop.f32.mrf.mxu0 }
 0x254   :  { %v20903_v46 = vpop.f32.mrf.mxu1  ;;  %v20906_v17 = vadd.f32 %v3521_v30, %v20530_v23  ;;  %v20908_v5 = vadd.f32 %v17354_v37, %v3673_v13 }
 0x255   :  { %26281 = vst [vmem:[#allocation11_spill] sm:$0xff] %v20903_v46  ;;  %v17259_v53 = vpop.f32.mrf.mxu0  ;;  %17602 = vmatmul.mubr.msk.f32.gmra.mxu0 %vm33_vm1, %v5838_v39 }
 0x256   :  { %26282 = vst [vmem:[#allocation12_spill] sm:$0xff] %v20906_v17  ;;  %v17357_v28 = vpop.f32.mrf.mxu1  ;;  %v3675_v43 = vadd.f32 %v17259_v53, %v20536_v47  ;;  %17604 = vmatprep.mubr.msk.f32.mxu0 %vm33_vm1, %v5839_v45  ;;  %v5842_v47 = vld [vmem:[#allocation2 + $0xfa] sm:$0xff]  ;;  %v5843_v53 = vld [vmem:[#allocation2 + $0x10a] sm:$0xff] }
 0x257   :  { %v3531_v15 = vpop.f32.mrf.mxu0 }
 0x258   :  { %v20913_v0 = vpop.f32.mrf.mxu1  ;;  %v20916_v46 = vadd.f32 %v3531_v15, %v20542_v55  ;;  %v20918_v23 = vadd.f32 %v17357_v28, %v3675_v43 }
 0x259   :  { %26283 = vst [vmem:[#allocation13_spill] sm:$0xff] %v20913_v0  ;;  %v17262_v37 = vpop.f32.mrf.mxu0  ;;  %17605 = vmatmul.mubr.msk.f32.gmra.mxu0 %vm33_vm1, %v5840_v3 }
 0x25a   :  { %26284 = vst [vmem:[#allocation77_spill] sm:$0xff] %v20916_v46  ;;  %v17360_v13 = vpop.f32.mrf.mxu1  ;;  %v3677_v39 = vadd.f32 %v17262_v37, %v20548_v21  ;;  %17607 = vmatprep.mubr.msk.f32.mxu0 %vm33_vm1, %v5841_v7  ;;  %v5844_v21 = vld [vmem:[#allocation2 + $0x112] sm:$0xff]  ;;  %v5845_v37 = vld [vmem:[#allocation2 + $0x122] sm:$0xff] }
 0x25b   :  { %v3541_v30 = vpop.f32.mrf.mxu0 }
 0x25c   :  { %v20923_v45 = vpop.f32.mrf.mxu1  ;;  %v20926_v0 = vadd.f32 %v3541_v30, %v20554_v1  ;;  %v20928_v55 = vadd.f32 %v17360_v13, %v3677_v39 }
 0x25d   :  { %26285 = vst [vmem:[#allocation78_spill] sm:$0xff] %v20923_v45  ;;  %v17265_v28 = vpop.f32.mrf.mxu0  ;;  %17608 = vmatmul.mubr.msk.f32.gmra.mxu0 %vm33_vm1, %v5842_v47  ;;  %v26288_v45 = vld [vmem:[#allocation44_spill] sm:$0xff]  ;;  %v26290_v47 = vld [vmem:[#allocation46_spill] sm:$0xff] }
 0x25e   :  { %26286 = vst [vmem:[#allocation79_spill] sm:$0xff] %v20926_v0  ;;  %v17363_v43 = vpop.f32.mrf.mxu1  ;;  %v3679_v3 = vadd.f32 %v17265_v28, %v20560_v34  ;;  %17610 = vmatprep.mubr.msk.f32.mxu0 %vm33_vm1, %v5843_v53  ;;  %v5846_v34 = vld [vmem:[#allocation2 + $0x12a] sm:$0xff]  ;;  %v5847_v0 = vld [vmem:[#allocation2 + $0x13a] sm:$0xff] }
 0x25f   :  { %v3551_v15 = vpop.f32.mrf.mxu0 }
 0x260   :  { %v20933_v7 = vpop.f32.mrf.mxu1  ;;  %v20936_v46 = vadd.f32 %v3551_v15, %v26288_v45  ;;  %v20938_v1 = vadd.f32 %v17363_v43, %v3679_v3 }
 0x261   :  { %26287 = vst [vmem:[#allocation80_spill] sm:$0xff] %v20933_v7  ;;  %v17268_v13 = vpop.f32.mrf.mxu0  ;;  %17611 = vmatmul.mubr.msk.f32.gmra.mxu0 %vm33_vm1, %v5844_v21  ;;  %v26292_v7 = vld [vmem:[#allocation45_spill] sm:$0xff]  ;;  %v26294_v21 = vld [vmem:[#allocation47_spill] sm:$0xff] }
 0x262   :  { %26289 = vst [vmem:[#allocation14_spill] sm:$0xff] %v20936_v46  ;;  %v17366_v39 = vpop.f32.mrf.mxu1  ;;  %v3681_v30 = vadd.f32 %v17268_v13, %v26290_v47  ;;  %17613 = vmatprep.mubr.msk.f32.mxu0 %vm33_vm1, %v5845_v37  ;;  %v5848_v13 = vld [vmem:[#allocation2 + $0x142] sm:$0xff]  ;;  %v5849_v46 = vld [vmem:[#allocation2 + $0x152] sm:$0xff] }
 0x263   :  { %v3561_v53 = vpop.f32.mrf.mxu0 }
 0x264   :  { %v20943_v28 = vpop.f32.mrf.mxu1  ;;  %v20946_v17 = vadd.f32 %v3561_v53, %v26292_v7  ;;  %v20948_v45 = vadd.f32 %v17366_v39, %v3681_v30 }
 0x265   :  { %26291 = vst [vmem:[#allocation15_spill] sm:$0xff] %v20943_v28  ;;  %v17271_v43 = vpop.f32.mrf.mxu0  ;;  %17614 = vmatmul.mubr.msk.f32.gmra.mxu0 %vm33_vm1, %v5846_v34  ;;  %v26296_v28 = vld [vmem:[#allocation48_spill] sm:$0xff]  ;;  %v26298_v34 = vld [vmem:[#allocation49_spill] sm:$0xff] }
 0x266   :  { %26293 = vst [vmem:[#allocation16_spill] sm:$0xff] %v20946_v17  ;;  %v17369_v3 = vpop.f32.mrf.mxu1  ;;  %v3683_v15 = vadd.f32 %v17271_v43, %v26294_v21  ;;  %17616 = vmatprep.mubr.msk.f32.mxu0 %vm33_vm1, %v5847_v0  ;;  %v5850_v43 = vld [vmem:[#allocation2 + $0x15a] sm:$0xff]  ;;  %v5851_v17 = vld [vmem:[#allocation2 + $0x16a] sm:$0xff] }
 0x267   :  { %v3571_v37 = vpop.f32.mrf.mxu0 }
 0x268   :  { %v20953_v47 = vpop.f32.mrf.mxu1  ;;  %v20956_v58 = vadd.f32 %v3571_v37, %v26296_v28  ;;  %v20958_v7 = vadd.f32 %v17369_v3, %v3683_v15 }
 0x269   :  { %26295 = vst [vmem:[#allocation17_spill] sm:$0xff] %v20953_v47  ;;  %v17274_v39 = vpop.f32.mrf.mxu0  ;;  %17617 = vmatmul.mubr.msk.f32.gmra.mxu0 %vm33_vm1, %v5848_v13  ;;  %v26300_v47 = vld [vmem:[#allocation50_spill] sm:$0xff]  ;;  %v26302_v13 = vld [vmem:[#allocation51_spill] sm:$0xff] }
 0x26a   :  { %26297 = vst [vmem:[#allocation18_spill] sm:$0xff] %v20956_v58  ;;  %v17372_v30 = vpop.f32.mrf.mxu1  ;;  %v3685_v53 = vadd.f32 %v17274_v39, %v26298_v34  ;;  %17619 = vmatprep.mubr.msk.f32.mxu0 %vm33_vm1, %v5849_v46  ;;  %v5852_v39 = vld [vmem:[#allocation2 + $0x172] sm:$0xff]  ;;  %v5853_v58 = vld [vmem:[#allocation2 + $0x182] sm:$0xff] }
 0x26b   :  { %v3581_v0 = vpop.f32.mrf.mxu0 }
 0x26c   :  { %v20963_v21 = vpop.f32.mrf.mxu1  ;;  %v20966_v51 = vadd.f32 %v3581_v0, %v26300_v47  ;;  %v20968_v28 = vadd.f32 %v17372_v30, %v3685_v53 }
 0x26d   :  { %26299 = vst [vmem:[#allocation19_spill] sm:$0xff] %v20963_v21  ;;  %v17277_v3 = vpop.f32.mrf.mxu0  ;;  %17620 = vmatmul.mubr.msk.f32.gmra.mxu0 %vm33_vm1, %v5850_v43  ;;  %v26305_v43 = vld [vmem:[#allocation52_spill] sm:$0xff] }
 0x26e   :  { %26301 = vst [vmem:[#allocation20_spill] sm:$0xff] %v20966_v51  ;;  %v17375_v15 = vpop.f32.mrf.mxu1  ;;  %v3687_v37 = vadd.f32 %v17277_v3, %v26302_v13  ;;  %17622 = vmatprep.mubr.msk.f32.mxu0 %vm33_vm1, %v5851_v17  ;;  %v5854_v3 = vld [vmem:[#allocation2 + $0x18a] sm:$0xff]  ;;  %v5855_v51 = vld [vmem:[#allocation2 + $0x19a] sm:$0xff] }
 0x26f   :  { %v3591_v46 = vpop.f32.mrf.mxu0 }
 0x270   :  { %v20973_v34 = vpop.f32.mrf.mxu1  ;;  %v20976_v21 = vadd.f32 %v3591_v46, %v20614_v61  ;;  %v20978_v47 = vadd.f32 %v17375_v15, %v3687_v37 }
 0x271   :  { %26303 = vst [vmem:[#allocation21_spill] sm:$0xff] %v20973_v34  ;;  %v17280_v30 = vpop.f32.mrf.mxu0  ;;  %17623 = vmatmul.mubr.msk.f32.gmra.mxu0 %vm33_vm1, %v5852_v39  ;;  %v26308_v39 = vld [vmem:[#allocation53_spill] sm:$0xff] }
 0x272   :  { %26304 = vst [vmem:[#allocation22_spill] sm:$0xff] %v20976_v21  ;;  %v17378_v53 = vpop.f32.mrf.mxu1  ;;  %v3689_v0 = vadd.f32 %v17280_v30, %v26305_v43  ;;  %17625 = vmatprep.mubr.msk.f32.mxu0 %vm33_vm1, %v5853_v58  ;;  %v5856_v30 = vld [vmem:[#allocation2 + $0x1a2] sm:$0xff] }
 0x273   :  { %v3601_v17 = vpop.f32.mrf.mxu0  ;;  %v5857_v21 = vld [vmem:[#allocation2 + $0x1e2] sm:$0xff] }
 0x274   :  { %v20983_v13 = vpop.f32.mrf.mxu1  ;;  %v20986_v34 = vadd.f32 %v3601_v17, %v20626_v42  ;;  %v20988_v61 = vadd.f32 %v17378_v53, %v3689_v0  ;;  %v5858_v17 = vld [vmem:[#allocation2 + $0x1ea] sm:$0xff] }
 0x275   :  { %26306 = vst [vmem:[#allocation23_spill] sm:$0xff] %v20983_v13  ;;  %v17283_v15 = vpop.f32.mrf.mxu0  ;;  %17626 = vmatmul.mubr.msk.f32.gmra.mxu0 %vm33_vm1, %v5854_v3 }
 0x276   :  { %26307 = vst [vmem:[#allocation24_spill] sm:$0xff] %v20986_v34  ;;  %v17381_v37 = vpop.f32.mrf.mxu1  ;;  %v3691_v46 = vadd.f32 %v17283_v15, %v26308_v39  ;;  %17628 = vmatprep.mubr.msk.f32.mxu0 %vm33_vm1, %v5855_v51  ;;  %v5859_v39 = vld [vmem:[#allocation2 + $0x1fa] sm:$0xff] }
 0x277   :  { %v3611_v58 = vpop.f32.mrf.mxu0 }
 0x278   :  { %v20993_v43 = vpop.f32.mrf.mxu1  ;;  %v20996_v13 = vadd.f32 %v3611_v58, %v20636_v14  ;;  %v20998_v42 = vadd.f32 %v17381_v37, %v3691_v46 }
 0x279   :  { %26309 = vst [vmem:[#allocation25_spill] sm:$0xff] %v20993_v43  ;;  %v17286_v53 = vpop.f32.mrf.mxu0  ;;  %17629 = vmatmul.mubr.msk.f32.gmra.mxu0 %vm33_vm1, %v5856_v30 }
 0x27a   :  { %26310 = vst [vmem:[#allocation26_spill] sm:$0xff] %v20996_v13  ;;  %v17384_v0 = vpop.f32.mrf.mxu1  ;;  %v3693_v3 = vadd.f32 %v17286_v53, %v20642_v38  ;;  %17631 = vmatprep.mubr.msk.f32.mxu0 %vm33_vm1, %v5857_v21  ;;  %v5860_v38 = vld [vmem:[#allocation2 + $0x202] sm:$0xff]  ;;  %v5861_v53 = vld [vmem:[#allocation2 + $0x212] sm:$0xff] }
 0x27b   :  { %v3621_v51 = vpop.f32.mrf.mxu0 }
 0x27c   :  { %v21003_v15 = vpop.f32.mrf.mxu1  ;;  %v21006_v43 = vadd.f32 %v3621_v51, %v20647_v33  ;;  %v21008_v14 = vadd.f32 %v17384_v0, %v3693_v3 }
 0x27d   :  { %26311 = vst [vmem:[#allocation27_spill] sm:$0xff] %v21003_v15  ;;  %v17389_v37 = vpop.f32.mrf.mxu0  ;;  %17632 = vmatmul.mubr.msk.f32.gmra.mxu0 %vm33_vm1, %v5858_v17 }
 0x27e   :  { %26312 = vst [vmem:[#allocation28_spill] sm:$0xff] %v21006_v43  ;;  %v21011_v46 = vpop.f32.mrf.mxu1  ;;  %v21014_v30 = vadd.f32 %v17389_v37, %v20654_v52  ;;  %17634 = vmatprep.mubr.msk.f32.mxu0 %vm33_vm1, %v5859_v39  ;;  %v21027_v52 = vld [vmem:[#allocation2 + $0x21a] sm:$0xff]  ;;  %v21033_v39 = vld [vmem:[#allocation2 + $0x22a] sm:$0xff]  ;;  %v26313_v37 = vmov 0.0  }
 0x27f   :  { %v4732_v21 = vpop.f32.mrf.mxu0  ;;  %7220 = vst.msk [vmem:[#allocation3 + $0x20] sm:$0xff] %vm6670_vm3, %v26313_v37  ;;  %7215 = vst.msk [vmem:[#allocation3] sm:$0xff] %vm6670_vm3, %v26313_v37 }
 0x280   :  { %v21017_v58 = vpop.f32.mrf.mxu1  ;;  %v21020_v33 = vadd.f32 %v4732_v21, %v20660_v57  ;;  %7216 = vst.msk [vmem:[#allocation3 + $0x8] sm:$0xff] %vm6670_vm3, %v26313_v37  ;;  %7219 = vst.msk [vmem:[#allocation3 + $0x18] sm:$0xff] %vm6670_vm3, %v26313_v37 }
 0x281   :  { %v17392_v0 = vpop.f32.mrf.mxu0  ;;  %17635 = vmatmul.mubr.msk.f32.gmra.mxu0 %vm33_vm1, %v5860_v38  ;;  %7222 = vst.msk [vmem:[#allocation3 + $0x30] sm:$0xff] %vm6670_vm3, %v26313_v37  ;;  %7223 = vst.msk [vmem:[#allocation3 + $0x38] sm:$0xff] %vm6670_vm3, %v26313_v37  ;;  %v5864_v38 = vld [vmem:[#allocation2 + $0x232] sm:$0xff] }
 0x282   :  { %v21024_v3 = vadd.f32 %v17392_v0, %v20666_v36  ;;  %17637 = vmatprep.mubr.msk.f32.mxu0 %vm33_vm1, %v5861_v53  ;;  %v21031_v51 = vpop.f32.mrf.mxu1  ;;  %7225 = vst.msk [vmem:[#allocation3 + $0x48] sm:$0xff] %vm6670_vm3, %v26313_v37  ;;  %7226 = vst.msk [vmem:[#allocation3 + $0x50] sm:$0xff] %vm6670_vm3, %v26313_v37  ;;  %v5865_v0 = vld [vmem:[#allocation2 + $0x242] sm:$0xff] }
 0x283   :  { %v21029_v17 = vpop.f32.mrf.mxu0  ;;  %7228 = vst.msk [vmem:[#allocation3 + $0x60] sm:$0xff] %vm6670_vm3, %v26313_v37  ;;  %7229 = vst.msk [vmem:[#allocation3 + $0x68] sm:$0xff] %vm6670_vm3, %v26313_v37 }
 0x284   :  { %7231 = vst.msk [vmem:[#allocation3 + $0x78] sm:$0xff] %vm6670_vm3, %v26313_v37  ;;  %7232 = vst.msk [vmem:[#allocation3 + $0x80] sm:$0xff] %vm6670_vm3, %v26313_v37  ;;  %v21181_v57 = vadd.f32 %v21029_v17, %v20672_v44  ;;  %v21262_v21 = vpop.f32.mrf.mxu1 }
 0x285   :  { %7234 = vst.msk [vmem:[#allocation3 + $0x90] sm:$0xff] %vm6670_vm3, %v26313_v37  ;;  %7235 = vst.msk [vmem:[#allocation3 + $0x98] sm:$0xff] %vm6670_vm3, %v26313_v37  ;;  %v17395_v36 = vpop.f32.mrf.mxu0  ;;  %17638 = vmatmul.mubr.msk.f32.gmra.mxu0 %vm33_vm1, %v21027_v52 }
 0x286   :  { %7237 = vst.msk [vmem:[#allocation3 + $0xa8] sm:$0xff] %vm6670_vm3, %v26313_v37  ;;  %7238 = vst.msk [vmem:[#allocation3 + $0xb0] sm:$0xff] %vm6670_vm3, %v26313_v37  ;;  %v21258_v44 = vadd.f32 %v17395_v36, %v20678_v16  ;;  %17640 = vmatprep.mubr.msk.f32.mxu0 %vm33_vm1, %v21033_v39  ;;  %v5866_v16 = vld [vmem:[#allocation2 + $0x24a] sm:$0xff]  ;;  %v5867_v36 = vld [vmem:[#allocation2 + $0x25a] sm:$0xff] }
 0x287   :  { %7240 = vst.msk [vmem:[#allocation3 + $0xc0] sm:$0xff] %vm6670_vm3, %v26313_v37  ;;  %7241 = vst.msk [vmem:[#allocation3 + $0xc8] sm:$0xff] %vm6670_vm3, %v26313_v37  ;;  %v4752_v53 = vpop.f32.mrf.mxu0 }
 0x288   :  { %7243 = vst.msk [vmem:[#allocation3 + $0xd8] sm:$0xff] %vm6670_vm3, %v26313_v37  ;;  %7244 = vst.msk [vmem:[#allocation3 + $0xe0] sm:$0xff] %vm6670_vm3, %v26313_v37  ;;  %v21265_v52 = vadd.f32 %v4752_v53, %v20684_v56 }
 0x289   :  { %7246 = vst.msk [vmem:[#allocation3 + $0xf0] sm:$0xff] %vm6670_vm3, %v26313_v37  ;;  %7247 = vst.msk [vmem:[#allocation3 + $0xf8] sm:$0xff] %vm6670_vm3, %v26313_v37  ;;  %v17398_v17 = vpop.f32.mrf.mxu0  ;;  %17641 = vmatmul.mubr.msk.f32.gmra.mxu0 %vm33_vm1, %v5864_v38 }
 0x28a   :  { %7249 = vst.msk [vmem:[#allocation3 + $0x108] sm:$0xff] %vm6670_vm3, %v26313_v37  ;;  %7250 = vst.msk [vmem:[#allocation3 + $0x110] sm:$0xff] %vm6670_vm3, %v26313_v37  ;;  %v21269_v15 = vadd.f32 %v17398_v17, %v20690_v19  ;;  %17643 = vmatprep.mubr.msk.f32.mxu0 %vm33_vm1, %v5865_v0  ;;  %v5868_v19 = vld [vmem:[#allocation2 + $0x262] sm:$0xff]  ;;  %v5869_v0 = vld [vmem:[#allocation2 + $0x272] sm:$0xff] }
 0x28b   :  { %7252 = vst.msk [vmem:[#allocation3 + $0x120] sm:$0xff] %vm6670_vm3, %v26313_v37  ;;  %7253 = vst.msk [vmem:[#allocation3 + $0x128] sm:$0xff] %vm6670_vm3, %v26313_v37  ;;  %v4762_v39 = vpop.f32.mrf.mxu0 }
 0x28c   :  { %7255 = vst.msk [vmem:[#allocation3 + $0x138] sm:$0xff] %vm6670_vm3, %v26313_v37  ;;  %7256 = vst.msk [vmem:[#allocation3 + $0x140] sm:$0xff] %vm6670_vm3, %v26313_v37  ;;  %v21275_v43 = vadd.f32 %v4762_v39, %v20696_v27  ;;  %v5871_v39 = vld [vmem:[#allocation2 + $0x28a] sm:$0xff] }
 0x28d   :  { %7258 = vst.msk [vmem:[#allocation3 + $0x150] sm:$0xff] %vm6670_vm3, %v26313_v37  ;;  %7259 = vst.msk [vmem:[#allocation3 + $0x158] sm:$0xff] %vm6670_vm3, %v26313_v37  ;;  %v17401_v13 = vpop.f32.mrf.mxu0  ;;  %17644 = vmatmul.mubr.msk.f32.gmra.mxu0 %vm33_vm1, %v5866_v16 }
 0x28e   :  { %7261 = vst.msk [vmem:[#allocation3 + $0x168] sm:$0xff] %vm6670_vm3, %v26313_v37  ;;  %7262 = vst.msk [vmem:[#allocation3 + $0x170] sm:$0xff] %vm6670_vm3, %v26313_v37  ;;  %v21279_v56 = vadd.f32 %v17401_v13, %v20702_v25  ;;  %17646 = vmatprep.mubr.msk.f32.mxu0 %vm33_vm1, %v5867_v36  ;;  %v5870_v25 = vld [vmem:[#allocation2 + $0x27a] sm:$0xff] }
 0x28f   :  { %7264 = vst.msk [vmem:[#allocation3 + $0x180] sm:$0xff] %vm6670_vm3, %v26313_v37  ;;  %7265 = vst.msk [vmem:[#allocation3 + $0x188] sm:$0xff] %vm6670_vm3, %v26313_v37  ;;  %v4772_v53 = vpop.f32.mrf.mxu0 }
 0x290   :  { %7267 = vst.msk [vmem:[#allocation3 + $0x198] sm:$0xff] %vm6670_vm3, %v26313_v37  ;;  %7268 = vst.msk [vmem:[#allocation3 + $0x1a0] sm:$0xff] %vm6670_vm3, %v26313_v37  ;;  %v21285_v17 = vadd.f32 %v4772_v53, %v20708_v60  ;;  %v5873_v53 = vld [vmem:[#allocation2 + $0x2a2] sm:$0xff] }
 0x291   :  { %7270 = vst.msk [vmem:[#allocation3 + $0x1b0] sm:$0xff] %vm6670_vm3, %v26313_v37  ;;  %7271 = vst.msk [vmem:[#allocation3 + $0x1b8] sm:$0xff] %vm6670_vm3, %v26313_v37  ;;  %v17404_v34 = vpop.f32.mrf.mxu0  ;;  %17647 = vmatmul.mubr.msk.f32.gmra.mxu0 %vm33_vm1, %v5868_v19 }
 0x292   :  { %7273 = vst.msk [vmem:[#allocation3 + $0x1c8] sm:$0xff] %vm6670_vm3, %v26313_v37  ;;  %7274 = vst.msk [vmem:[#allocation3 + $0x1d0] sm:$0xff] %vm6670_vm3, %v26313_v37  ;;  %v21289_v27 = vadd.f32 %v17404_v34, %v20714_v12  ;;  %17649 = vmatprep.mubr.msk.f32.mxu0 %vm33_vm1, %v5869_v0  ;;  %v5872_v12 = vld [vmem:[#allocation2 + $0x292] sm:$0xff] }
 0x293   :  { %7276 = vst.msk [vmem:[#allocation3 + $0x1e0] sm:$0xff] %vm6670_vm3, %v26313_v37  ;;  %7277 = vst.msk [vmem:[#allocation3 + $0x1e8] sm:$0xff] %vm6670_vm3, %v26313_v37  ;;  %v4782_v16 = vpop.f32.mrf.mxu0 }
 0x294   :  { %7279 = vst.msk [vmem:[#allocation3 + $0x1f8] sm:$0xff] %vm6670_vm3, %v26313_v37  ;;  %7280 = vst.msk [vmem:[#allocation3 + $0x200] sm:$0xff] %vm6670_vm3, %v26313_v37  ;;  %v21295_v36 = vadd.f32 %v4782_v16, %v20720_v18  ;;  %v5875_v16 = vld [vmem:[#allocation2 + $0x2ba] sm:$0xff] }
 0x295   :  { %7282 = vst.msk [vmem:[#allocation3 + $0x210] sm:$0xff] %vm6670_vm3, %v26313_v37  ;;  %7283 = vst.msk [vmem:[#allocation3 + $0x218] sm:$0xff] %vm6670_vm3, %v26313_v37  ;;  %v17407_v31 = vpop.f32.mrf.mxu0  ;;  %17650 = vmatmul.mubr.msk.f32.gmra.mxu0 %vm33_vm1, %v5870_v25 }
 0x296   :  { %7285 = vst.msk [vmem:[#allocation3 + $0x228] sm:$0xff] %vm6670_vm3, %v26313_v37  ;;  %7286 = vst.msk [vmem:[#allocation3 + $0x230] sm:$0xff] %vm6670_vm3, %v26313_v37  ;;  %v21299_v60 = vadd.f32 %v17407_v31, %v20726_v22  ;;  %17652 = vmatprep.mubr.msk.f32.mxu0 %vm33_vm1, %v5871_v39  ;;  %v5874_v22 = vld [vmem:[#allocation2 + $0x2aa] sm:$0xff] }
 0x297   :  { %7288 = vst.msk [vmem:[#allocation3 + $0x240] sm:$0xff] %vm6670_vm3, %v26313_v37  ;;  %7289 = vst.msk [vmem:[#allocation3 + $0x248] sm:$0xff] %vm6670_vm3, %v26313_v37  ;;  %v4792_v19 = vpop.f32.mrf.mxu0 }
 0x298   :  { %7291 = vst.msk [vmem:[#allocation3 + $0x258] sm:$0xff] %vm6670_vm3, %v26313_v37  ;;  %7292 = vst.msk [vmem:[#allocation3 + $0x260] sm:$0xff] %vm6670_vm3, %v26313_v37  ;;  %v21305_v0 = vadd.f32 %v4792_v19, %v20732_v24  ;;  %v5877_v19 = vld [vmem:[#allocation2 + $0x2d2] sm:$0xff] }
 0x299   :  { %7294 = vst.msk [vmem:[#allocation3 + $0x270] sm:$0xff] %vm6670_vm3, %v26313_v37  ;;  %7295 = vst.msk [vmem:[#allocation3 + $0x278] sm:$0xff] %vm6670_vm3, %v26313_v37  ;;  %v17410_v26 = vpop.f32.mrf.mxu0  ;;  %17653 = vmatmul.mubr.msk.f32.gmra.mxu0 %vm33_vm1, %v5872_v12 }
 0x29a   :  { %7297 = vst.msk [vmem:[#allocation3 + $0x288] sm:$0xff] %vm6670_vm3, %v26313_v37  ;;  %7298 = vst.msk [vmem:[#allocation3 + $0x290] sm:$0xff] %vm6670_vm3, %v26313_v37  ;;  %v21309_v18 = vadd.f32 %v17410_v26, %v20738_v11  ;;  %17655 = vmatprep.mubr.msk.f32.mxu0 %vm33_vm1, %v5873_v53  ;;  %v5876_v11 = vld [vmem:[#allocation2 + $0x2c2] sm:$0xff] }
 0x29b   :  { %7300 = vst.msk [vmem:[#allocation3 + $0x2a0] sm:$0xff] %vm6670_vm3, %v26313_v37  ;;  %7301 = vst.msk [vmem:[#allocation3 + $0x2a8] sm:$0xff] %vm6670_vm3, %v26313_v37  ;;  %v4802_v25 = vpop.f32.mrf.mxu0 }
 0x29c   :  { %7303 = vst.msk [vmem:[#allocation3 + $0x2b8] sm:$0xff] %vm6670_vm3, %v26313_v37  ;;  %7304 = vst.msk [vmem:[#allocation3 + $0x2c0] sm:$0xff] %vm6670_vm3, %v26313_v37  ;;  %v21315_v39 = vadd.f32 %v4802_v25, %v20744_v20 }
 0x29d   :  { %7306 = vst.msk [vmem:[#allocation3 + $0x2d0] sm:$0xff] %vm6670_vm3, %v26313_v37  ;;  %7307 = vst.msk [vmem:[#allocation3 + $0x2d8] sm:$0xff] %vm6670_vm3, %v26313_v37  ;;  %v17413_v54 = vpop.f32.mrf.mxu0  ;;  %17656 = vmatmul.mubr.msk.f32.gmra.mxu0 %vm33_vm1, %v5874_v22  ;;  %v5878_v22 = vld [vmem:[#allocation2 + $0x2da] sm:$0xff] }
 0x29e   :  { %7309 = vst.msk [vmem:[#allocation3 + $0x2e8] sm:$0xff] %vm6670_vm3, %v26313_v37  ;;  %7310 = vst.msk [vmem:[#allocation3 + $0x2f0] sm:$0xff] %vm6670_vm3, %v26313_v37  ;;  %v21319_v24 = vadd.f32 %v17413_v54, %v20754_v41  ;;  %17658 = vmatprep.mubr.msk.f32.mxu0 %vm33_vm1, %v5875_v16  ;;  %v5879_v54 = vld [vmem:[#allocation2 + $0x2ea] sm:$0xff] }
 0x29f   :  { %7312 = vst.msk [vmem:[#allocation3 + $0x300] sm:$0xff] %vm6670_vm3, %v26313_v37  ;;  %7313 = vst.msk [vmem:[#allocation3 + $0x308] sm:$0xff] %vm6670_vm3, %v26313_v37  ;;  %v21324_v12 = vpop.f32.mrf.mxu0 }
 0x2a0   :  { %7315 = vst.msk [vmem:[#allocation3 + $0x318] sm:$0xff] %vm6670_vm3, %v26313_v37  ;;  %7316 = vst.msk [vmem:[#allocation3 + $0x320] sm:$0xff] %vm6670_vm3, %v26313_v37 }
 0x2a1   :  { %7318 = vst.msk [vmem:[#allocation3 + $0x330] sm:$0xff] %vm6670_vm3, %v26313_v37  ;;  %7319 = vst.msk [vmem:[#allocation3 + $0x338] sm:$0xff] %vm6670_vm3, %v26313_v37  ;;  %v17416_v53 = vpop.f32.mrf.mxu0  ;;  %17659 = vmatmul.mubr.msk.f32.gmra.mxu0 %vm33_vm1, %v5876_v11  ;;  %v5880_v11 = vld [vmem:[#allocation2 + $0x2f2] sm:$0xff] }
 0x2a2   :  { %7321 = vst.msk [vmem:[#allocation3 + $0x348] sm:$0xff] %vm6670_vm3, %v26313_v37  ;;  %7322 = vst.msk [vmem:[#allocation3 + $0x350] sm:$0xff] %vm6670_vm3, %v26313_v37  ;;  %v21328_v20 = vadd.f32 %v17416_v53, %v20768_v9  ;;  %17661 = vmatprep.mubr.msk.f32.mxu0 %vm33_vm1, %v5877_v19  ;;  %v5881_v19 = vld [vmem:[#allocation2 + $0x302] sm:$0xff] }
 0x2a3   :  { %7221 = vst.msk [vmem:[#allocation3 + $0x28] sm:$0x3] %vm7217_vm4, %v26313_v37  ;;  %7218 = vst.msk [vmem:[#allocation3 + $0x10] sm:$0x3] %vm7217_vm4, %v26313_v37  ;;  %v21333_v41 = vpop.f32.mrf.mxu0 }
 0x2a4   :  { %7224 = vst.msk [vmem:[#allocation3 + $0x40] sm:$0x3] %vm7217_vm4, %v26313_v37  ;;  %7227 = vst.msk [vmem:[#allocation3 + $0x58] sm:$0x3] %vm7217_vm4, %v26313_v37 }
 0x2a5   :  { %7230 = vst.msk [vmem:[#allocation3 + $0x70] sm:$0x3] %vm7217_vm4, %v26313_v37  ;;  %7233 = vst.msk [vmem:[#allocation3 + $0x88] sm:$0x3] %vm7217_vm4, %v26313_v37  ;;  %v17419_v16 = vpop.f32.mrf.mxu0  ;;  %17662 = vmatmul.mubr.msk.f32.gmra.mxu0 %vm33_vm1, %v5878_v22  ;;  %v5882_v22 = vld [vmem:[#allocation2 + $0x30a] sm:$0xff] }
 0x2a6   :  { %7236 = vst.msk [vmem:[#allocation3 + $0xa0] sm:$0x3] %vm7217_vm4, %v26313_v37  ;;  %7239 = vst.msk [vmem:[#allocation3 + $0xb8] sm:$0x3] %vm7217_vm4, %v26313_v37  ;;  %v21337_v50 = vadd.f32 %v17419_v16, %v20782_v29  ;;  %17664 = vmatprep.mubr.msk.f32.mxu0 %vm33_vm1, %v5879_v54  ;;  %v5883_v54 = vld [vmem:[#allocation2 + $0x31a] sm:$0xff] }
 0x2a7   :  { %7242 = vst.msk [vmem:[#allocation3 + $0xd0] sm:$0x3] %vm7217_vm4, %v26313_v37  ;;  %7245 = vst.msk [vmem:[#allocation3 + $0xe8] sm:$0x3] %vm7217_vm4, %v26313_v37  ;;  %v21342_v9 = vpop.f32.mrf.mxu0 }
 0x2a8   :  { %7248 = vst.msk [vmem:[#allocation3 + $0x100] sm:$0x3] %vm7217_vm4, %v26313_v37  ;;  %7251 = vst.msk [vmem:[#allocation3 + $0x118] sm:$0x3] %vm7217_vm4, %v26313_v37 }
 0x2a9   :  { %7254 = vst.msk [vmem:[#allocation3 + $0x130] sm:$0x3] %vm7217_vm4, %v26313_v37  ;;  %7257 = vst.msk [vmem:[#allocation3 + $0x148] sm:$0x3] %vm7217_vm4, %v26313_v37  ;;  %v17422_v53 = vpop.f32.mrf.mxu0  ;;  %17665 = vmatmul.mubr.msk.f32.gmra.mxu0 %vm33_vm1, %v5880_v11  ;;  %v5884_v11 = vld [vmem:[#allocation2 + $0x322] sm:$0xff] }
 0x2aa   :  { %7260 = vst.msk [vmem:[#allocation3 + $0x160] sm:$0x3] %vm7217_vm4, %v26313_v37  ;;  %7263 = vst.msk [vmem:[#allocation3 + $0x178] sm:$0x3] %vm7217_vm4, %v26313_v37  ;;  %v21346_v63 = vadd.f32 %v17422_v53, %v20796_v4  ;;  %17667 = vmatprep.mubr.msk.f32.mxu0 %vm33_vm1, %v5881_v19  ;;  %v5885_v19 = vld [vmem:[#allocation2 + $0x332] sm:$0xff] }
 0x2ab   :  { %7266 = vst.msk [vmem:[#allocation3 + $0x190] sm:$0x3] %vm7217_vm4, %v26313_v37  ;;  %7269 = vst.msk [vmem:[#allocation3 + $0x1a8] sm:$0x3] %vm7217_vm4, %v26313_v37  ;;  %v21351_v29 = vpop.f32.mrf.mxu0 }
 0x2ac   :  { %7272 = vst.msk [vmem:[#allocation3 + $0x1c0] sm:$0x3] %vm7217_vm4, %v26313_v37  ;;  %7275 = vst.msk [vmem:[#allocation3 + $0x1d8] sm:$0x3] %vm7217_vm4, %v26313_v37 }
 0x2ad   :  { %7278 = vst.msk [vmem:[#allocation3 + $0x1f0] sm:$0x3] %vm7217_vm4, %v26313_v37  ;;  %7281 = vst.msk [vmem:[#allocation3 + $0x208] sm:$0x3] %vm7217_vm4, %v26313_v37  ;;  %v17425_v16 = vpop.f32.mrf.mxu0  ;;  %17668 = vmatmul.mubr.msk.f32.gmra.mxu0 %vm33_vm1, %v5882_v22  ;;  %v5886_v22 = vld [vmem:[#allocation2 + $0x33a] sm:$0xff] }
 0x2ae   :  { %7284 = vst.msk [vmem:[#allocation3 + $0x220] sm:$0x3] %vm7217_vm4, %v26313_v37  ;;  %7287 = vst.msk [vmem:[#allocation3 + $0x238] sm:$0x3] %vm7217_vm4, %v26313_v37  ;;  %17670 = vmatprep.mubr.msk.f32.mxu0 %vm33_vm1, %v5883_v54  ;;  %v5887_v54 = vld [vmem:[#allocation2 + $0x34a] sm:$0xff] }
 0x2af   :  { %7290 = vst.msk [vmem:[#allocation3 + $0x250] sm:$0x3] %vm7217_vm4, %v26313_v37  ;;  %7293 = vst.msk [vmem:[#allocation3 + $0x268] sm:$0x3] %vm7217_vm4, %v26313_v37  ;;  %v21360_v4 = vpop.f32.mrf.mxu0 }
 0x2b0   :  { %7296 = vst.msk [vmem:[#allocation3 + $0x280] sm:$0x3] %vm7217_vm4, %v26313_v37  ;;  %7299 = vst.msk [vmem:[#allocation3 + $0x298] sm:$0x3] %vm7217_vm4, %v26313_v37 }
 0x2b1   :  { %7302 = vst.msk [vmem:[#allocation3 + $0x2b0] sm:$0x3] %vm7217_vm4, %v26313_v37  ;;  %7305 = vst.msk [vmem:[#allocation3 + $0x2c8] sm:$0x3] %vm7217_vm4, %v26313_v37  ;;  %v17428_v53 = vpop.f32.mrf.mxu0  ;;  %17671 = vmatmul.mubr.msk.f32.gmra.mxu0 %vm33_vm1, %v5884_v11  ;;  %v5888_v11 = vld [vmem:[#allocation2 + $0x352] sm:$0xff] }
 0x2b2   :  { %7308 = vst.msk [vmem:[#allocation3 + $0x2e0] sm:$0x3] %vm7217_vm4, %v26313_v37  ;;  %7311 = vst.msk [vmem:[#allocation3 + $0x2f8] sm:$0x3] %vm7217_vm4, %v26313_v37  ;;  %17673 = vmatprep.mubr.msk.f32.mxu0 %vm33_vm1, %v5885_v19 }
 0x2b3   :  { %7314 = vst.msk [vmem:[#allocation3 + $0x310] sm:$0x3] %vm7217_vm4, %v26313_v37  ;;  %7317 = vst.msk [vmem:[#allocation3 + $0x328] sm:$0x3] %vm7217_vm4, %v26313_v37 }
 0x2b4   :  { %7320 = vst.msk [vmem:[#allocation3 + $0x340] sm:$0x3] %vm7217_vm4, %v26313_v37  ;;  %7323 = vst.msk [vmem:[#allocation3 + $0x358] sm:$0x3] %vm7217_vm4, %v26313_v37  ;;  %v21272_v37 = vpop.f32.mrf.mxu1 }
 0x2b5   :  { %26314 = vst [vmem:[#allocation29_spill] sm:$0xff] %v21328_v20  ;;  %26315 = vst [vmem:[#allocation30_spill] sm:$0xff] %v21337_v50  ;;  %v21355_v50 = vadd.f32 %v17425_v16, %v20810_v48  ;;  %v21369_v48 = vpop.f32.mrf.mxu0  ;;  %17674 = vmatmul.mubr.msk.f32.gmra.mxu0 %vm33_vm1, %v5886_v22 }
 0x2b6   :  { %v21282_v38 = vpop.f32.mrf.mxu1  ;;  %26316 = vst [vmem:[#allocation31_spill] sm:$0xff] %v21342_v9  ;;  %26317 = vst [vmem:[#allocation32_spill] sm:$0xff] %v21346_v63  ;;  %v21364_v63 = vadd.f32 %v17428_v53, %v20824_v35  ;;  %17676 = vmatprep.mubr.msk.f32.mxu0 %vm33_vm1, %v5887_v54 }
 0x2b7   :  { %26318 = vst [vmem:[#allocation81_spill] sm:$0xff] %v21351_v29  ;;  %26319 = vst [vmem:[#allocation33_spill] sm:$0xff] %v21355_v50  ;;  %v17431_v16 = vpop.f32.mrf.mxu0 }
 0x2b8   :  { %v21292_v13 = vpop.f32.mrf.mxu1  ;;  %26320 = vst [vmem:[#allocation34_spill] sm:$0xff] %v21360_v4  ;;  %26321 = vst [vmem:[#allocation82_spill] sm:$0xff] %v21364_v63  ;;  %v21373_v50 = vadd.f32 %v17431_v16, %v20837_v10 }
 0x2b9   :  { %26322 = vst [vmem:[#allocation35_spill] sm:$0xff] %v21369_v48  ;;  %v21378_v35 = vpop.f32.mrf.mxu0  ;;  %17677 = vmatmul.mubr.msk.f32.gmra.mxu0 %vm33_vm1, %v5888_v11 }
 0x2ba   :  { %v21302_v34 = vpop.f32.mrf.mxu1  ;;  %26323 = vst [vmem:[#allocation36_spill] sm:$0xff] %v21373_v50  ;;  %26324 = vst [vmem:[#allocation38_spill] sm:$0xff] %v21378_v35 }
 0x2bb   :  { %v17434_v19 = vpop.f32.mrf.mxu0 }
 0x2bc   :  { %v21312_v31 = vpop.f32.mrf.mxu1  ;;  %v21382_v53 = vadd.f32 %v17434_v19, %v20848_v49 }
 0x2bd   :  { %v21386_v48 = vpop.f32.mrf.mxu0 }
 0x2be   :  { %v21322_v26 = vpop.f32.mrf.mxu1  ;;  %26325 = vst [vmem:[#allocation37_spill] sm:$0xff] %v21382_v53  ;;  %26326 = vst [vmem:[#allocation39_spill] sm:$0xff] %v21386_v48 }
 0x2bf   :  { %v17437_v22 = vpop.f32.mrf.mxu0 }
 0x2c0   :  { %v21331_v25 = vpop.f32.mrf.mxu1  ;;  %v21389_v10 = vadd.f32 %v17437_v22, %v20858_v62 }
 0x2c1   :  { %v21393_v16 = vpop.f32.mrf.mxu0 }
 0x2c2   :  { %v21340_v40 = vpop.f32.mrf.mxu1  ;;  %26327 = vst [vmem:[#allocation40_spill] sm:$0xff] %v21389_v10  ;;  %26328 = vst [vmem:[#allocation7_spill] sm:$0xff] %v21393_v16 }
 0x2c3   :  { %v17440_v50 = vpop.f32.mrf.mxu0 }
 0x2c4   :  { %v21349_v20 = vpop.f32.mrf.mxu1  ;;  %v21396_v35 = vadd.f32 %v17440_v50, %v20868_v6 }
 0x2c5   :  { %v21400_v49 = vpop.f32.mrf.mxu0 }
 0x2c6   :  { %v21358_v9 = vpop.f32.mrf.mxu1  ;;  %26329 = vst [vmem:[#allocation8_spill] sm:$0xff] %v21396_v35  ;;  %26330 = vst [vmem:[#allocation42_spill] sm:$0xff] %v21400_v49 }
 0x2c7   :  { %v17443_v19 = vpop.f32.mrf.mxu0 }
 0x2c8   :  { %v21367_v29 = vpop.f32.mrf.mxu1  ;;  %v21403_v53 = vadd.f32 %v17443_v19, %v20878_v2 }
 0x2c9   :  { %v21407_v62 = vpop.f32.mrf.mxu0 }
 0x2ca   :  { %v21376_v4 = vpop.f32.mrf.mxu1  ;;  %26331 = vst [vmem:[#allocation41_spill] sm:$0xff] %v21403_v53  ;;  %26332 = vst [vmem:[#allocation43_spill] sm:$0xff] %v21407_v62 }
 0x2cb   :  { %v17446_v22 = vpop.f32.mrf.mxu0 }
 0x2cc   :  { %v21384_v63 = vpop.f32.mrf.mxu1  ;;  %v21410_v10 = vadd.f32 %v17446_v22, %v20888_v8 }
 0x2cd   :  { %v21414_v50 = vpop.f32.mrf.mxu0 }
 0x2ce   :  { %v21391_v54 = vpop.f32.mrf.mxu1  ;;  %26333 = vst [vmem:[#allocation44_spill] sm:$0xff] %v21410_v10  ;;  %26334 = vst [vmem:[#allocation46_spill] sm:$0xff] %v21414_v50 }
 0x2cf   :  { %v17449_v6 = vpop.f32.mrf.mxu0 }
 0x2d0   :  { %v21398_v11 = vpop.f32.mrf.mxu1  ;;  %v21417_v35 = vadd.f32 %v17449_v6, %v20898_v32 }
 0x2d1   :  { %v21421_v2 = vpop.f32.mrf.mxu0 }
 0x2d2   :  { %v21405_v48 = vpop.f32.mrf.mxu1  ;;  %26335 = vst [vmem:[#allocation45_spill] sm:$0xff] %v21417_v35  ;;  %26336 = vst [vmem:[#allocation47_spill] sm:$0xff] %v21421_v2 }
 0x2d3   :  { %v17452_v19 = vpop.f32.mrf.mxu0 }
 0x2d4   :  { %v21412_v16 = vpop.f32.mrf.mxu1  ;;  %v21424_v53 = vadd.f32 %v17452_v19, %v20908_v5 }
 0x2d5   :  { %v21428_v8 = vpop.f32.mrf.mxu0 }
 0x2d6   :  { %v21419_v49 = vpop.f32.mrf.mxu1  ;;  %26337 = vst [vmem:[#allocation48_spill] sm:$0xff] %v21424_v53  ;;  %26338 = vst [vmem:[#allocation49_spill] sm:$0xff] %v21428_v8 }
 0x2d7   :  { %v17455_v22 = vpop.f32.mrf.mxu0 }
 0x2d8   :  { %v21426_v62 = vpop.f32.mrf.mxu1  ;;  %v21431_v10 = vadd.f32 %v17455_v22, %v20918_v23 }
 0x2d9   :  { %v21435_v32 = vpop.f32.mrf.mxu0 }
 0x2da   :  { %26339 = vst [vmem:[#allocation50_spill] sm:$0xff] %v21431_v10  ;;  %v21433_v50 = vpop.f32.mrf.mxu1  ;;  %26340 = vst [vmem:[#allocation51_spill] sm:$0xff] %v21435_v32 }
 0x2db   :  { %v17458_v6 = vpop.f32.mrf.mxu0 }
 0x2dc   :  { %v21438_v35 = vadd.f32 %v17458_v6, %v20928_v55  ;;  %v21440_v2 = vpop.f32.mrf.mxu1 }
 0x2dd   :  { %v21442_v5 = vpop.f32.mrf.mxu0 }
 0x2de   :  { %26341 = vst [vmem:[#allocation52_spill] sm:$0xff] %v21438_v35  ;;  %26342 = vst [vmem:[#allocation53_spill] sm:$0xff] %v21442_v5  ;;  %v21447_v8 = vpop.f32.mrf.mxu1 }
 0x2df   :  { %v17461_v19 = vpop.f32.mrf.mxu0 }
 0x2e0   :  { %v21445_v53 = vadd.f32 %v17461_v19, %v20938_v1  ;;  %v21454_v32 = vpop.f32.mrf.mxu1 }
 0x2e1   :  { %v21449_v23 = vpop.f32.mrf.mxu0 }
 0x2e2   :  { %26343 = vst [vmem:[#allocation83_spill] sm:$0xff] %v21445_v53  ;;  %26344 = vst [vmem:[#allocation84_spill] sm:$0xff] %v21449_v23  ;;  %v21461_v5 = vpop.f32.mrf.mxu1 }
 0x2e3   :  { %v17464_v22 = vpop.f32.mrf.mxu0 }
 0x2e4   :  { %v21452_v10 = vadd.f32 %v17464_v22, %v20948_v45  ;;  %v21468_v23 = vpop.f32.mrf.mxu1 }
 0x2e5   :  { %v21456_v55 = vpop.f32.mrf.mxu0 }
 0x2e6   :  { %26345 = vst [vmem:[#allocation85_spill] sm:$0xff] %v21452_v10  ;;  %26346 = vst [vmem:[#allocation86_spill] sm:$0xff] %v21456_v55  ;;  %v21475_v55 = vpop.f32.mrf.mxu1 }
 0x2e7   :  { %v17467_v6 = vpop.f32.mrf.mxu0 }
 0x2e8   :  { %v21459_v35 = vadd.f32 %v17467_v6, %v20958_v7 }
 0x2e9   :  { %v21463_v1 = vpop.f32.mrf.mxu0 }
 0x2ea   :  { %26347 = vst [vmem:[#allocation87_spill] sm:$0xff] %v21459_v35  ;;  %26348 = vst [vmem:[#allocation88_spill] sm:$0xff] %v21463_v1  ;;  %v21482_v1 = vpop.f32.mrf.mxu1 }
 0x2eb   :  { %v17470_v19 = vpop.f32.mrf.mxu0 }
 0x2ec   :  { %v21466_v53 = vadd.f32 %v17470_v19, %v20968_v28 }
 0x2ed   :  { %v21470_v45 = vpop.f32.mrf.mxu0 }
 0x2ee   :  { %26349 = vst [vmem:[#allocation89_spill] sm:$0xff] %v21466_v53  ;;  %26350 = vst [vmem:[#allocation90_spill] sm:$0xff] %v21470_v45  ;;  %v21489_v45 = vpop.f32.mrf.mxu1 }
 0x2ef   :  { %v17473_v22 = vpop.f32.mrf.mxu0  ;;  %26356 = vst [vmem:[#allocation96_spill] sm:$0xff] %v21489_v45 }
 0x2f0   :  { %v21473_v10 = vadd.f32 %v17473_v22, %v20978_v47 }
 0x2f1   :  { %v21477_v7 = vpop.f32.mrf.mxu0 }
 0x2f2   :  { %26351 = vst [vmem:[#allocation91_spill] sm:$0xff] %v21473_v10  ;;  %26352 = vst [vmem:[#allocation92_spill] sm:$0xff] %v21477_v7  ;;  %v21496_v7 = vpop.f32.mrf.mxu1 }
 0x2f3   :  { %v17476_v6 = vpop.f32.mrf.mxu0  ;;  %26359 = vst [vmem:[#allocation99_spill] sm:$0xff] %v21496_v7 }
 0x2f4   :  { %v21480_v35 = vadd.f32 %v17476_v6, %v20988_v61  ;;  %v5762_v6 = vadd.f32 %v21011_v46, %v21014_v30  ;;  %v5763_v30 = vadd.f32 %v21262_v21, %v21181_v57  ;;  %v5765_v57 = vadd.f32 %v21282_v38, %v21265_v52 }
 0x2f5   :  { %v21484_v28 = vpop.f32.mrf.mxu0 }
 0x2f6   :  { %26353 = vst [vmem:[#allocation93_spill] sm:$0xff] %v21480_v35  ;;  %26354 = vst [vmem:[#allocation94_spill] sm:$0xff] %v21484_v28 }
 0x2f7   :  { %v17479_v19 = vpop.f32.mrf.mxu0 }
 0x2f8   :  { %v21487_v53 = vadd.f32 %v17479_v19, %v20998_v42  ;;  %v21505_v42 = vld [vmem:[%s25802_s2] ss:$0 sm:$0xff]  ;;  %v5761_v19 = vadd.f32 %v21017_v58, %v21020_v33 }
 0x2f9   :  { %v21491_v47 = vpop.f32.mrf.mxu0 }
 0x2fa   :  { %26355 = vst [vmem:[#allocation95_spill] sm:$0xff] %v21487_v53  ;;  %26357 = vst [vmem:[#allocation97_spill] sm:$0xff] %v21491_v47  ;;  %v21509_v47 = vpop.f32.mrf.mxu1 }
 0x2fb   :  { %v17482_v22 = vpop.f32.mrf.mxu0 }
 0x2fc   :  { %v21494_v10 = vadd.f32 %v17482_v22, %v21008_v14  ;;  %v5764_v22 = vadd.f32 %v21031_v51, %v21024_v3  ;;  %v21517_v45 = vpop.f32.mrf.mxu1 }
 0x2fd   :  { %v21498_v61 = vpop.f32.mrf.mxu0 }
 0x2fe   :  { %26358 = vst [vmem:[#allocation98_spill] sm:$0xff] %v21494_v10  ;;  %26360 = vst [vmem:[#allocation100_spill] sm:$0xff] %v21498_v61 }
 0x2ff   :  { %v17585_v35 = vpop.f32.mrf.mxu0 }
 0x300   :  { %v6472_v53 = vadd.f32 %v17585_v35, %v5762_v6  ;;  %v5766_v35 = vadd.f32 %v21272_v37, %v21258_v44 }
 0x301   :  { %v6152_v14 = vpop.f32.mrf.mxu0 }
 0x302   :  { %v6543_v10 = vadd.f32 %v21505_v42, %v6472_v53  ;;  %v6471_v61 = vadd.f32 %v6152_v14, %v5761_v19  ;;  %v5768_v19 = vadd.f32 %v21292_v13, %v21269_v15  ;;  %v21533_v14 = vpop.f32.mrf.mxu1 }
 0x303   :  { %v17588_v46 = vpop.f32.mrf.mxu0 }
 0x304   :  { %v6542_v28 = vadd.f32 %v21505_v42, %v6471_v61  ;;  %v6474_v7 = vadd.f32 %v17588_v46, %v5764_v22  ;;  %v21519_v58 = vmax.f32 %v6543_v10, 0.0 }
 0x305   :  { %v6162_v33 = vpop.f32.mrf.mxu0 }
 0x306   :  { %v21523_v6 = vmax.f32 %v6542_v28, 0.0  ;;  %v6545_v3 = vadd.f32 %v21505_v42, %v6474_v7  ;;  %v6473_v51 = vadd.f32 %v6162_v33, %v5763_v30  ;;  %v6672_v44 = vsel %vm6670_vm3, %v21519_v58, 0.0 }
 0x307   :  { %v17591_v53 = vpop.f32.mrf.mxu0  ;;  %v5767_v30 = vadd.f32 %v21302_v34, %v21275_v43 }
 0x308   :  { %v6671_v21 = vsel %vm6670_vm3, %v21523_v6, 0.0  ;;  %v6544_v61 = vadd.f32 %v21505_v42, %v6473_v51  ;;  %v6476_v10 = vadd.f32 %v17591_v53, %v5766_v35  ;;  %v21537_v7 = vmax.f32 %v6545_v3, 0.0  ;;  %v21549_v3 = vpop.f32.mrf.mxu1 }
 0x309   :  { %v6172_v37 = vpop.f32.mrf.mxu0  ;;  %v6673_v22 = vadd.f32 %v6672_v44, %v6671_v21  ;;  %v5770_v35 = vadd.f32 %v21312_v31, %v21279_v56 }
 0x30a   :  { %v21539_v28 = vmax.f32 %v6544_v61, 0.0  ;;  %v6547_v52 = vadd.f32 %v21505_v42, %v6476_v10  ;;  %v6475_v38 = vadd.f32 %v6172_v37, %v5765_v57  ;;  %v6676_v21 = vsel %vm6670_vm3, %v21537_v7, 0.0 }
 0x30b   :  { %v17594_v46 = vpop.f32.mrf.mxu0 }
 0x30c   :  { %v6674_v15 = vsel %vm6670_vm3, %v21539_v28, 0.0  ;;  %v6546_v13 = vadd.f32 %v21505_v42, %v6475_v38  ;;  %v6478_v33 = vadd.f32 %v17594_v46, %v5768_v19  ;;  %v21551_v53 = vmax.f32 %v6547_v52, 0.0  ;;  %v21565_v38 = vpop.f32.mrf.mxu1 }
 0x30d   :  { %v6675_v51 = vadd.f32 %v6674_v15, %v6673_v22  ;;  %v6182_v57 = vpop.f32.mrf.mxu0  ;;  %v5769_v19 = vadd.f32 %v21322_v26, %v21285_v17  ;;  %v5772_v52 = vadd.f32 %v21331_v25, %v21289_v27 }
 0x30e   :  { %v21555_v61 = vmax.f32 %v6546_v13, 0.0  ;;  %v6549_v43 = vadd.f32 %v21505_v42, %v6478_v33  ;;  %v6477_v34 = vadd.f32 %v6182_v57, %v5767_v30  ;;  %v6680_v22 = vsel %vm6670_vm3, %v21551_v53, 0.0 }
 0x30f   :  { %v6677_v10 = vadd.f32 %v6676_v21, %v6675_v51  ;;  %v17597_v44 = vpop.f32.mrf.mxu0  ;;  %v5774_v21 = vadd.f32 %v21349_v20, %v21299_v60 }
 0x310   :  { %v6678_v56 = vsel %vm6670_vm3, %v21555_v61, 0.0  ;;  %v6548_v31 = vadd.f32 %v21505_v42, %v6477_v34  ;;  %v6480_v37 = vadd.f32 %v17597_v44, %v5770_v35  ;;  %v21569_v15 = vmax.f32 %v6549_v43, 0.0  ;;  %v21581_v43 = vpop.f32.mrf.mxu1 }
 0x311   :  { %v6679_v46 = vadd.f32 %v6678_v56, %v6677_v10  ;;  %v6192_v30 = vpop.f32.mrf.mxu0  ;;  %v5771_v35 = vadd.f32 %v21340_v40, %v21295_v36 }
 0x312   :  { %v21571_v13 = vmax.f32 %v6548_v31, 0.0  ;;  %v6551_v17 = vadd.f32 %v21505_v42, %v6480_v37  ;;  %v6479_v26 = vadd.f32 %v6192_v30, %v5769_v19  ;;  %v6684_v19 = vsel %vm6670_vm3, %v21569_v15, 0.0 }
 0x313   :  { %v6681_v33 = vadd.f32 %v6680_v22, %v6679_v46  ;;  %v17600_v51 = vpop.f32.mrf.mxu0  ;;  %v26361_v46 = vld [vmem:[#allocation54_spill] sm:$0xff] }
 0x314   :  { %v6682_v27 = vsel %vm6670_vm3, %v21571_v13, 0.0  ;;  %v6550_v25 = vadd.f32 %v21505_v42, %v6479_v26  ;;  %v6482_v57 = vadd.f32 %v17600_v51, %v5772_v52  ;;  %v21583_v10 = vmax.f32 %v6551_v17, 0.0  ;;  %v21599_v26 = vpop.f32.mrf.mxu1 }
 0x315   :  { %v6683_v34 = vadd.f32 %v6682_v27, %v6681_v33  ;;  %v6202_v44 = vpop.f32.mrf.mxu0  ;;  %v5773_v52 = vadd.f32 %v21358_v9, %v21305_v0  ;;  %v4356_v30 = vadd.f32 %v26361_v46, %v20752_v59  ;;  %v5776_v17 = vadd.f32 %v21367_v29, %v21309_v18 }
 0x316   :  { %v21587_v56 = vmax.f32 %v6550_v25, 0.0  ;;  %v6553_v40 = vadd.f32 %v21505_v42, %v6482_v57  ;;  %v6481_v36 = vadd.f32 %v6202_v44, %v5771_v35  ;;  %v6688_v33 = vsel %vm6670_vm3, %v21583_v10, 0.0 }
 0x317   :  { %v6685_v31 = vadd.f32 %v6684_v19, %v6683_v34  ;;  %v17603_v37 = vpop.f32.mrf.mxu0  ;;  %v5775_v59 = vadd.f32 %v21376_v4, %v21315_v39  ;;  %v5067_v18 = vadd.f32 %v21324_v12, %v4356_v30  ;;  %v26362_v19 = vld [vmem:[#allocation56_spill] sm:$0xff] }
 0x318   :  { %v6686_v60 = vsel %vm6670_vm3, %v21587_v56, 0.0  ;;  %v6552_v20 = vadd.f32 %v21505_v42, %v6481_v36  ;;  %v6484_v22 = vadd.f32 %v17603_v37, %v5774_v21  ;;  %v21603_v0 = vmax.f32 %v6553_v40, 0.0  ;;  %v26363_v40 = vld [vmem:[#allocation55_spill] sm:$0xff]  ;;  %v21618_v37 = vpop.f32.mrf.mxu1 }
 0x319   :  { %v6687_v51 = vadd.f32 %v6686_v60, %v6685_v31  ;;  %v6212_v35 = vpop.f32.mrf.mxu0  ;;  %v4358_v36 = vadd.f32 %v26363_v40, %v26362_v19  ;;  %v5778_v31 = vadd.f32 %v21384_v63, %v21319_v24  ;;  %v5777_v63 = vadd.f32 %v21391_v54, %v5067_v18 }
 0x31a   :  { %v21605_v9 = vmax.f32 %v6552_v20, 0.0  ;;  %v6555_v27 = vadd.f32 %v21505_v42, %v6484_v22  ;;  %v6483_v25 = vadd.f32 %v6212_v35, %v5773_v52  ;;  %v6692_v12 = vsel %vm6670_vm3, %v21603_v0, 0.0  ;;  %v26364_v35 = vld [vmem:[#allocation58_spill] sm:$0xff] }
 0x31b   :  { %v6689_v57 = vadd.f32 %v6688_v33, %v6687_v51  ;;  %v17606_v21 = vpop.f32.mrf.mxu0  ;;  %v5069_v46 = vadd.f32 %v21333_v41, %v4358_v36 }
 0x31c   :  { %v6690_v29 = vsel %vm6670_vm3, %v21605_v9, 0.0  ;;  %v6554_v34 = vadd.f32 %v21505_v42, %v6483_v25  ;;  %v6486_v44 = vadd.f32 %v17606_v21, %v5776_v17  ;;  %v21620_v39 = vmax.f32 %v6555_v27, 0.0  ;;  %v26365_v27 = vld [vmem:[#allocation57_spill] sm:$0xff] }
 0x31d   :  { %v6691_v52 = vadd.f32 %v6690_v29, %v6689_v57  ;;  %v6222_v4 = vpop.f32.mrf.mxu0  ;;  %v4360_v25 = vadd.f32 %v26365_v27, %v26364_v35  ;;  %v26366_v57 = vld [vmem:[#allocation29_spill] sm:$0xff]  ;;  %v21636_v29 = vpop.f32.mrf.mxu1  ;;  %v5779_v40 = vadd.f32 %v21405_v48, %v5069_v46 }
 0x31e   :  { %v21624_v60 = vmax.f32 %v6554_v34, 0.0  ;;  %v6557_v20 = vadd.f32 %v21505_v42, %v6486_v44  ;;  %v6485_v22 = vadd.f32 %v6222_v4, %v5775_v59  ;;  %v5780_v21 = vadd.f32 %v21398_v11, %v26366_v57 }
 0x31f   :  { %v6693_v30 = vadd.f32 %v6692_v12, %v6691_v52  ;;  %v17609_v17 = vpop.f32.mrf.mxu0  ;;  %v6696_v41 = vsel %vm6670_vm3, %v21620_v39, 0.0  ;;  %v26367_v52 = vld [vmem:[#allocation31_spill] sm:$0xff] }
 0x320   :  { %v6694_v24 = vsel %vm6670_vm3, %v21624_v60, 0.0  ;;  %v6556_v33 = vadd.f32 %v21505_v42, %v6485_v22  ;;  %v6488_v51 = vadd.f32 %v17609_v17, %v5778_v31  ;;  %v21640_v54 = vmax.f32 %v6557_v20, 0.0  ;;  %v26369_v20 = vld [vmem:[#allocation59_spill] sm:$0xff] }
 0x321   :  { %v6695_v59 = vadd.f32 %v6694_v24, %v6693_v30  ;;  %v6232_v34 = vpop.f32.mrf.mxu0  ;;  %v5071_v11 = vadd.f32 %v26367_v52, %v4360_v25  ;;  %v26368_v30 = vld [vmem:[#allocation60_spill] sm:$0xff]  ;;  %v26370_v24 = vld [vmem:[#allocation30_spill] sm:$0xff]  ;;  %v26373_v52 = vld [vmem:[#allocation61_spill] sm:$0xff] }
 0x322   :  { %v21642_v18 = vmax.f32 %v6556_v33, 0.0  ;;  %v6559_v44 = vadd.f32 %v21505_v42, %v6488_v51  ;;  %v6487_v19 = vadd.f32 %v6232_v34, %v5777_v63  ;;  %v4362_v17 = vadd.f32 %v26369_v20, %v26368_v30  ;;  %v21654_v51 = vpop.f32.mrf.mxu1 }
 0x323   :  { %v6697_v36 = vadd.f32 %v6696_v41, %v6695_v59  ;;  %v17612_v31 = vpop.f32.mrf.mxu0  ;;  %v5782_v33 = vadd.f32 %v21412_v16, %v26370_v24  ;;  %v6700_v35 = vsel %vm6670_vm3, %v21640_v54, 0.0  ;;  %v5781_v16 = vadd.f32 %v21419_v49, %v5071_v11 }
 0x324   :  { %v6698_v4 = vsel %vm6670_vm3, %v21642_v18, 0.0  ;;  %v6558_v12 = vadd.f32 %v21505_v42, %v6487_v19  ;;  %v6490_v22 = vadd.f32 %v17612_v31, %v5780_v21  ;;  %v21656_v48 = vmax.f32 %v6559_v44, 0.0  ;;  %v26371_v21 = vld [vmem:[#allocation81_spill] sm:$0xff]  ;;  %v26372_v31 = vld [vmem:[#allocation62_spill] sm:$0xff] }
 0x325   :  { %v6699_v63 = vadd.f32 %v6698_v4, %v6697_v36  ;;  %v6242_v46 = vpop.f32.mrf.mxu0  ;;  %v5073_v41 = vadd.f32 %v26371_v21, %v4362_v17  ;;  %v4364_v4 = vadd.f32 %v26373_v52, %v26372_v31 }
 0x326   :  { %v21660_v27 = vmax.f32 %v6558_v12, 0.0  ;;  %v6561_v25 = vadd.f32 %v21505_v42, %v6490_v22  ;;  %v6489_v57 = vadd.f32 %v6242_v46, %v5779_v40  ;;  %v26374_v12 = vld [vmem:[#allocation32_spill] sm:$0xff]  ;;  %v21672_v22 = vpop.f32.mrf.mxu1  ;;  %v6704_v40 = vsel %vm6670_vm3, %v21656_v48, 0.0 }
 0x327   :  { %v6701_v59 = vadd.f32 %v6700_v35, %v6699_v63  ;;  %v17615_v34 = vpop.f32.mrf.mxu0  ;;  %v5784_v30 = vadd.f32 %v21426_v62, %v26374_v12  ;;  %v5783_v63 = vadd.f32 %v21433_v50, %v5073_v41 }
 0x328   :  { %v6702_v19 = vsel %vm6670_vm3, %v21660_v27, 0.0  ;;  %v6560_v44 = vadd.f32 %v21505_v42, %v6489_v57  ;;  %v6492_v36 = vadd.f32 %v17615_v34, %v5782_v33  ;;  %v21676_v49 = vmax.f32 %v6561_v25, 0.0  ;;  %v26376_v57 = vld [vmem:[#allocation34_spill] sm:$0xff]  ;;  %v26378_v25 = vld [vmem:[#allocation63_spill] sm:$0xff] }
 0x329   :  { %v6703_v20 = vadd.f32 %v6702_v19, %v6701_v59  ;;  %v6252_v17 = vpop.f32.mrf.mxu0  ;;  %v5075_v62 = vadd.f32 %v26376_v57, %v4364_v4  ;;  %v26377_v19 = vld [vmem:[#allocation64_spill] sm:$0xff] }
 0x32a   :  { %26375 = vst [vmem:[#allocation54_spill] sm:$0xff] %v21676_v49  ;;  %v21678_v11 = vmax.f32 %v6560_v44, 0.0  ;;  %v6563_v24 = vadd.f32 %v21505_v42, %v6492_v36  ;;  %v6491_v33 = vadd.f32 %v6252_v17, %v5781_v16  ;;  %v4366_v31 = vadd.f32 %v26378_v25, %v26377_v19  ;;  %v26379_v44 = vld [vmem:[#allocation33_spill] sm:$0xff]  ;;  %v21690_v36 = vpop.f32.mrf.mxu1 }
 0x32b   :  { %v6705_v46 = vadd.f32 %v6704_v40, %v6703_v20  ;;  %v17618_v35 = vpop.f32.mrf.mxu0  ;;  %v5786_v52 = vadd.f32 %v21440_v2, %v26379_v44  ;;  %v6708_v4 = vsel %vm6670_vm3, %v21676_v49, 0.0  ;;  %v26382_v20 = vld [vmem:[#allocation35_spill] sm:$0xff]  ;;  %v5785_v2 = vadd.f32 %v21447_v8, %v5075_v62  ;;  %v26384_v19 = vld [vmem:[#allocation65_spill] sm:$0xff] }
 0x32c   :  { %v6706_v21 = vsel %vm6670_vm3, %v21678_v11, 0.0  ;;  %v6562_v34 = vadd.f32 %v21505_v42, %v6491_v33  ;;  %v6494_v59 = vadd.f32 %v17618_v35, %v5784_v30  ;;  %v21692_v50 = vmax.f32 %v6563_v24, 0.0 }
 0x32d   :  { %v6707_v16 = vadd.f32 %v6706_v21, %v6705_v46  ;;  %v6262_v41 = vpop.f32.mrf.mxu0  ;;  %v5077_v17 = vadd.f32 %v26382_v20, %v4366_v31  ;;  %v26383_v21 = vld [vmem:[#allocation67_spill] sm:$0xff] }
 0x32e   :  { %26380 = vst [vmem:[#allocation56_spill] sm:$0xff] %v21692_v50  ;;  %v21696_v12 = vmax.f32 %v6562_v34, 0.0  ;;  %v6565_v40 = vadd.f32 %v21505_v42, %v6494_v59  ;;  %v6493_v30 = vadd.f32 %v6262_v41, %v5783_v63  ;;  %v4368_v25 = vadd.f32 %v26384_v19, %v26383_v21  ;;  %v26385_v34 = vld [vmem:[#allocation82_spill] sm:$0xff]  ;;  %v21708_v59 = vpop.f32.mrf.mxu1 }
 0x32f   :  { %v6709_v33 = vadd.f32 %v6708_v4, %v6707_v16  ;;  %v17621_v35 = vpop.f32.mrf.mxu0  ;;  %v5788_v44 = vadd.f32 %v21454_v32, %v26385_v34  ;;  %v6712_v63 = vsel %vm6670_vm3, %v21692_v50, 0.0  ;;  %v5787_v4 = vadd.f32 %v21461_v5, %v5077_v17 }
 0x330   :  { %26381 = vst [vmem:[#allocation55_spill] sm:$0xff] %v21696_v12  ;;  %v6710_v46 = vsel %vm6670_vm3, %v21696_v12, 0.0  ;;  %v6564_v24 = vadd.f32 %v21505_v42, %v6493_v30  ;;  %v6496_v57 = vadd.f32 %v17621_v35, %v5786_v52  ;;  %v21712_v8 = vmax.f32 %v6565_v40, 0.0  ;;  %v26388_v35 = vld [vmem:[#allocation38_spill] sm:$0xff] }
 0x331   :  { %v6711_v31 = vadd.f32 %v6710_v46, %v6709_v33  ;;  %v6272_v16 = vpop.f32.mrf.mxu0  ;;  %v5079_v32 = vadd.f32 %v26388_v35, %v4368_v25  ;;  %v26389_v46 = vld [vmem:[#allocation68_spill] sm:$0xff]  ;;  %v26390_v40 = vld [vmem:[#allocation66_spill] sm:$0xff] }
 0x332   :  { %26386 = vst [vmem:[#allocation58_spill] sm:$0xff] %v21712_v8  ;;  %v21714_v62 = vmax.f32 %v6564_v24, 0.0  ;;  %v6567_v41 = vadd.f32 %v21505_v42, %v6496_v57  ;;  %v6495_v52 = vadd.f32 %v6272_v16, %v5785_v2  ;;  %v4370_v34 = vadd.f32 %v26390_v40, %v26389_v46  ;;  %v26391_v24 = vld [vmem:[#allocation36_spill] sm:$0xff]  ;;  %v21726_v57 = vpop.f32.mrf.mxu1  ;;  %v26394_v16 = vld [vmem:[#allocation39_spill] sm:$0xff]  ;;  %v26396_v40 = vld [vmem:[#allocation69_spill] sm:$0xff] }
 0x333   :  { %v6713_v30 = vadd.f32 %v6712_v63, %v6711_v31  ;;  %v17624_v20 = vpop.f32.mrf.mxu0  ;;  %v5790_v50 = vadd.f32 %v21468_v23, %v26391_v24  ;;  %v6716_v25 = vsel %vm6670_vm3, %v21712_v8, 0.0  ;;  %v5789_v23 = vadd.f32 %v21475_v55, %v5079_v32  ;;  %v26395_v46 = vld [vmem:[#allocation71_spill] sm:$0xff] }
 0x334   :  { %26387 = vst [vmem:[#allocation57_spill] sm:$0xff] %v21714_v62  ;;  %v6714_v21 = vsel %vm6670_vm3, %v21714_v62, 0.0  ;;  %v6566_v19 = vadd.f32 %v21505_v42, %v6495_v52  ;;  %v6498_v33 = vadd.f32 %v17624_v20, %v5788_v44  ;;  %v21728_v5 = vmax.f32 %v6567_v41, 0.0 }
 0x335   :  { %v6715_v2 = vadd.f32 %v6714_v21, %v6713_v30  ;;  %v6282_v17 = vpop.f32.mrf.mxu0  ;;  %v5081_v52 = vadd.f32 %v26394_v16, %v4370_v34  ;;  %v4372_v24 = vadd.f32 %v26396_v40, %v26395_v46  ;;  %v26401_v46 = vld [vmem:[#allocation7_spill] sm:$0xff] }
 0x336   :  { %26392 = vst [vmem:[#allocation29_spill] sm:$0xff] %v21728_v5  ;;  %v21732_v63 = vmax.f32 %v6566_v19, 0.0  ;;  %v6569_v31 = vadd.f32 %v21505_v42, %v6498_v33  ;;  %v6497_v44 = vadd.f32 %v6282_v17, %v5787_v4  ;;  %v26397_v19 = vld [vmem:[#allocation37_spill] sm:$0xff]  ;;  %v21744_v33 = vpop.f32.mrf.mxu1  ;;  %v6720_v4 = vsel %vm6670_vm3, %v21728_v5, 0.0 }
 0x337   :  { %v6717_v20 = vadd.f32 %v6716_v25, %v6715_v2  ;;  %v17627_v35 = vpop.f32.mrf.mxu0  ;;  %v5792_v8 = vadd.f32 %v21482_v1, %v26397_v19  ;;  %v26400_v25 = vld [vmem:[#allocation96_spill] sm:$0xff]  ;;  %v5083_v1 = vadd.f32 %v26401_v46, %v4372_v24 }
 0x338   :  { %26393 = vst [vmem:[#allocation31_spill] sm:$0xff] %v21732_v63  ;;  %v6718_v30 = vsel %vm6670_vm3, %v21732_v63, 0.0  ;;  %v6568_v41 = vadd.f32 %v21505_v42, %v6497_v44  ;;  %v6500_v21 = vadd.f32 %v17627_v35, %v5790_v50  ;;  %v21748_v55 = vmax.f32 %v6569_v31, 0.0  ;;  %v26403_v31 = vld [vmem:[#allocation70_spill] sm:$0xff]  ;;  %v26405_v63 = vld [vmem:[#allocation99_spill] sm:$0xff] }
 0x339   :  { %v6719_v34 = vadd.f32 %v6718_v30, %v6717_v20  ;;  %v6292_v2 = vpop.f32.mrf.mxu0  ;;  %v5791_v44 = vadd.f32 %v26400_v25, %v5081_v52  ;;  %v26402_v30 = vld [vmem:[#allocation72_spill] sm:$0xff] }
 0x33a   :  { %26398 = vst [vmem:[#allocation60_spill] sm:$0xff] %v21748_v55  ;;  %v21750_v32 = vmax.f32 %v6568_v41, 0.0  ;;  %v6571_v17 = vadd.f32 %v21505_v42, %v6500_v21  ;;  %v6499_v50 = vadd.f32 %v6292_v2, %v5789_v23  ;;  %v4374_v5 = vadd.f32 %v26403_v31, %v26402_v30  ;;  %v26404_v41 = vld [vmem:[#allocation40_spill] sm:$0xff]  ;;  %v21762_v21 = vpop.f32.mrf.mxu1  ;;  %v26409_v30 = vld [vmem:[#allocation74_spill] sm:$0xff]  ;;  %v26410_v31 = vld [vmem:[#allocation73_spill] sm:$0xff] }
 0x33b   :  { %v6721_v16 = vadd.f32 %v6720_v4, %v6719_v34  ;;  %v17630_v35 = vpop.f32.mrf.mxu0  ;;  %v5794_v62 = vadd.f32 %v26405_v63, %v26404_v41  ;;  %v6724_v24 = vsel %vm6670_vm3, %v21748_v55, 0.0  ;;  %v5793_v63 = vadd.f32 %v21509_v47, %v5083_v1 }
 0x33c   :  { %26399 = vst [vmem:[#allocation59_spill] sm:$0xff] %v21750_v32  ;;  %v6722_v40 = vsel %vm6670_vm3, %v21750_v32, 0.0  ;;  %v6570_v19 = vadd.f32 %v21505_v42, %v6499_v50  ;;  %v6502_v20 = vadd.f32 %v17630_v35, %v5792_v8  ;;  %v21764_v52 = vmax.f32 %v6571_v17, 0.0  ;;  %v26408_v50 = vld [vmem:[#allocation42_spill] sm:$0xff] }
 0x33d   :  { %v6723_v23 = vadd.f32 %v6722_v40, %v6721_v16  ;;  %v6302_v4 = vpop.f32.mrf.mxu0  ;;  %v5085_v25 = vadd.f32 %v26408_v50, %v4374_v5  ;;  %v4376_v41 = vadd.f32 %v26410_v31, %v26409_v30 }
 0x33e   :  { %26406 = vst [vmem:[#allocation30_spill] sm:$0xff] %v21764_v52  ;;  %v21768_v34 = vmax.f32 %v6570_v19, 0.0  ;;  %v6573_v2 = vadd.f32 %v21505_v42, %v6502_v20  ;;  %v6501_v8 = vadd.f32 %v6302_v4, %v5791_v44  ;;  %v26411_v19 = vld [vmem:[#allocation8_spill] sm:$0xff]  ;;  %v21780_v20 = vpop.f32.mrf.mxu1  ;;  %v6728_v5 = vsel %vm6670_vm3, %v21764_v52, 0.0 }
 0x33f   :  { %v6725_v35 = vadd.f32 %v6724_v24, %v6723_v23  ;;  %v17633_v46 = vpop.f32.mrf.mxu0  ;;  %v5796_v55 = vadd.f32 %v21517_v45, %v26411_v19  ;;  %v5795_v24 = vadd.f32 %v21533_v14, %v5085_v25 }
 0x340   :  { %26407 = vst [vmem:[#allocation81_spill] sm:$0xff] %v21768_v34  ;;  %v6726_v16 = vsel %vm6670_vm3, %v21768_v34, 0.0  ;;  %v6572_v17 = vadd.f32 %v21505_v42, %v6501_v8  ;;  %v6504_v40 = vadd.f32 %v17633_v46, %v5794_v62  ;;  %v21784_v47 = vmax.f32 %v6573_v2, 0.0  ;;  %v26414_v46 = vld [vmem:[#allocation43_spill] sm:$0xff]  ;;  %v26416_v2 = vld [vmem:[#allocation9_spill] sm:$0xff] }
 0x341   :  { %v6727_v44 = vadd.f32 %v6726_v16, %v6725_v35  ;;  %v6312_v23 = vpop.f32.mrf.mxu0  ;;  %v5087_v45 = vadd.f32 %v26414_v46, %v4376_v41  ;;  %v26415_v16 = vld [vmem:[#allocation10_spill] sm:$0xff] }
 0x342   :  { %26412 = vst [vmem:[#allocation62_spill] sm:$0xff] %v21784_v47  ;;  %v21786_v1 = vmax.f32 %v6572_v17, 0.0  ;;  %v6575_v4 = vadd.f32 %v21505_v42, %v6504_v40  ;;  %v6503_v62 = vadd.f32 %v6312_v23, %v5793_v63  ;;  %v4378_v19 = vadd.f32 %v26416_v2, %v26415_v16  ;;  %v26417_v17 = vld [vmem:[#allocation41_spill] sm:$0xff]  ;;  %v21798_v40 = vpop.f32.mrf.mxu1  ;;  %v26420_v23 = vld [vmem:[#allocation46_spill] sm:$0xff]  ;;  %v26421_v16 = vld [vmem:[#allocation76_spill] sm:$0xff] }
 0x343   :  { %v6729_v8 = vadd.f32 %v6728_v5, %v6727_v44  ;;  %v17636_v50 = vpop.f32.mrf.mxu0  ;;  %v5798_v52 = vadd.f32 %v21549_v3, %v26417_v17  ;;  %v6732_v41 = vsel %vm6670_vm3, %v21784_v47, 0.0  ;;  %v5797_v3 = vadd.f32 %v21565_v38, %v5087_v45  ;;  %v26422_v2 = vld [vmem:[#allocation75_spill] sm:$0xff] }
 0x344   :  { %26413 = vst [vmem:[#allocation61_spill] sm:$0xff] %v21786_v1  ;;  %v6730_v30 = vsel %vm6670_vm3, %v21786_v1, 0.0  ;;  %v6574_v31 = vadd.f32 %v21505_v42, %v6503_v62  ;;  %v6506_v35 = vadd.f32 %v17636_v50, %v5796_v55  ;;  %v21800_v14 = vmax.f32 %v6575_v4, 0.0 }
 0x345   :  { %v6731_v63 = vadd.f32 %v6730_v30, %v6729_v8  ;;  %v6322_v25 = vpop.f32.mrf.mxu0  ;;  %v5089_v62 = vadd.f32 %v26420_v23, %v4378_v19  ;;  %v4380_v17 = vadd.f32 %v26422_v2, %v26421_v16 }
 0x346   :  { %26418 = vst [vmem:[#allocation32_spill] sm:$0xff] %v21800_v14  ;;  %v21804_v5 = vmax.f32 %v6574_v31, 0.0  ;;  %v6577_v44 = vadd.f32 %v21505_v42, %v6506_v35  ;;  %v6505_v55 = vadd.f32 %v6322_v25, %v5795_v24  ;;  %v26423_v31 = vld [vmem:[#allocation44_spill] sm:$0xff]  ;;  %v21816_v35 = vpop.f32.mrf.mxu1  ;;  %v6736_v24 = vsel %vm6670_vm3, %v21800_v14, 0.0 }
 0x347   :  { %v6733_v50 = vadd.f32 %v6732_v41, %v6731_v63  ;;  %v17639_v46 = vpop.f32.mrf.mxu0  ;;  %v5800_v47 = vadd.f32 %v21581_v43, %v26423_v31  ;;  %v5799_v41 = vadd.f32 %v21599_v26, %v5089_v62 }
 0x348   :  { %26419 = vst [vmem:[#allocation34_spill] sm:$0xff] %v21804_v5  ;;  %v6734_v8 = vsel %vm6670_vm3, %v21804_v5, 0.0  ;;  %v6576_v4 = vadd.f32 %v21505_v42, %v6505_v55  ;;  %v6508_v30 = vadd.f32 %v17639_v46, %v5798_v52  ;;  %v21820_v38 = vmax.f32 %v6577_v44, 0.0  ;;  %v26426_v46 = vld [vmem:[#allocation47_spill] sm:$0xff] }
 0x349   :  { %v6735_v19 = vadd.f32 %v6734_v8, %v6733_v50  ;;  %v6332_v63 = vpop.f32.mrf.mxu0  ;;  %v5091_v43 = vadd.f32 %v26426_v46, %v4380_v17  ;;  %v26427_v8 = vld [vmem:[#allocation12_spill] sm:$0xff]  ;;  %v26428_v44 = vld [vmem:[#allocation11_spill] sm:$0xff] }
 0x34a   :  { %26424 = vst [vmem:[#allocation64_spill] sm:$0xff] %v21820_v38  ;;  %v21822_v45 = vmax.f32 %v6576_v4, 0.0  ;;  %v6579_v25 = vadd.f32 %v21505_v42, %v6508_v30  ;;  %v6507_v52 = vadd.f32 %v6332_v63, %v5797_v3  ;;  %v4382_v31 = vadd.f32 %v26428_v44, %v26427_v8  ;;  %v26429_v4 = vld [vmem:[#allocation45_spill] sm:$0xff]  ;;  %v21834_v30 = vpop.f32.mrf.mxu1 }
 0x34b   :  { %v6737_v55 = vadd.f32 %v6736_v24, %v6735_v19  ;;  %v17642_v23 = vpop.f32.mrf.mxu0  ;;  %v5802_v14 = vadd.f32 %v21618_v37, %v26429_v4  ;;  %v6740_v17 = vsel %vm6670_vm3, %v21820_v38, 0.0  ;;  %v26431_v63 = vld [vmem:[#allocation49_spill] sm:$0xff]  ;;  %v5801_v37 = vadd.f32 %v21636_v29, %v5091_v43 }
 0x34c   :  { %26425 = vst [vmem:[#allocation63_spill] sm:$0xff] %v21822_v45  ;;  %v6738_v16 = vsel %vm6670_vm3, %v21822_v45, 0.0  ;;  %v6578_v2 = vadd.f32 %v21505_v42, %v6507_v52  ;;  %v6510_v50 = vadd.f32 %v17642_v23, %v5800_v47  ;;  %v21836_v26 = vmax.f32 %v6579_v25, 0.0  ;;  %v26432_v8 = vld [vmem:[#allocation77_spill] sm:$0xff] }
 0x34d   :  { %v6739_v3 = vadd.f32 %v6738_v16, %v6737_v55  ;;  %v6342_v62 = vpop.f32.mrf.mxu0  ;;  %v5093_v52 = vadd.f32 %v26431_v63, %v4382_v31  ;;  %v26433_v44 = vld [vmem:[#allocation13_spill] sm:$0xff] }
 0x34e   :  { %26430 = vst [vmem:[#allocation33_spill] sm:$0xff] %v21836_v26  ;;  %v21840_v24 = vmax.f32 %v6578_v2, 0.0  ;;  %v6581_v19 = vadd.f32 %v21505_v42, %v6510_v50  ;;  %v6509_v47 = vadd.f32 %v6342_v62, %v5799_v41  ;;  %v4384_v4 = vadd.f32 %v26433_v44, %v26432_v8  ;;  %v26434_v2 = vld [vmem:[#allocation48_spill] sm:$0xff]  ;;  %v21852_v50 = vpop.f32.mrf.mxu1 }
 0x34f   :  { %v6741_v23 = vadd.f32 %v6740_v17, %v6739_v3  ;;  %v17645_v46 = vpop.f32.mrf.mxu0  ;;  %v5804_v38 = vadd.f32 %v21654_v51, %v26434_v2  ;;  %v6744_v41 = vsel %vm6670_vm3, %v21836_v26, 0.0  ;;  %v5803_v17 = vadd.f32 %v21672_v22, %v5093_v52 }
 0x350   :  { %v6742_v55 = vsel %vm6670_vm3, %v21840_v24, 0.0  ;;  %v6580_v25 = vadd.f32 %v21505_v42, %v6509_v47  ;;  %v6512_v16 = vadd.f32 %v17645_v46, %v5802_v14  ;;  %v21856_v29 = vmax.f32 %v6581_v19, 0.0  ;;  %v26437_v46 = vld [vmem:[#allocation51_spill] sm:$0xff]  ;;  %v26439_v19 = vld [vmem:[#allocation78_spill] sm:$0xff] }
 0x351   :  { %v6743_v31 = vadd.f32 %v6742_v55, %v6741_v23  ;;  %v6352_v3 = vpop.f32.mrf.mxu0  ;;  %v5095_v51 = vadd.f32 %v26437_v46, %v4384_v4  ;;  %v26438_v55 = vld [vmem:[#allocation79_spill] sm:$0xff] }
 0x352   :  { %26435 = vst [vmem:[#allocation35_spill] sm:$0xff] %v21856_v29  ;;  %v21858_v43 = vmax.f32 %v6580_v25, 0.0  ;;  %v6583_v62 = vadd.f32 %v21505_v42, %v6512_v16  ;;  %v6511_v14 = vadd.f32 %v6352_v3, %v5801_v37  ;;  %v4386_v2 = vadd.f32 %v26439_v19, %v26438_v55  ;;  %v26440_v25 = vld [vmem:[#allocation50_spill] sm:$0xff]  ;;  %v21870_v16 = vpop.f32.mrf.mxu1  ;;  %v26442_v3 = vld [vmem:[#allocation53_spill] sm:$0xff]  ;;  %v26444_v19 = vld [vmem:[#allocation80_spill] sm:$0xff] }
 0x353   :  { %v6745_v47 = vadd.f32 %v6744_v41, %v6743_v31  ;;  %v17648_v63 = vpop.f32.mrf.mxu0  ;;  %v5806_v26 = vadd.f32 %v21690_v36, %v26440_v25  ;;  %v6748_v4 = vsel %vm6670_vm3, %v21856_v29, 0.0  ;;  %v5805_v36 = vadd.f32 %v21708_v59, %v5095_v51  ;;  %v26443_v55 = vld [vmem:[#allocation14_spill] sm:$0xff] }
 0x354   :  { %26436 = vst [vmem:[#allocation67_spill] sm:$0xff] %v21858_v43  ;;  %v6746_v8 = vsel %vm6670_vm3, %v21858_v43, 0.0  ;;  %v6582_v44 = vadd.f32 %v21505_v42, %v6511_v14  ;;  %v6514_v23 = vadd.f32 %v17648_v63, %v5804_v38  ;;  %v21872_v22 = vmax.f32 %v6583_v62, 0.0 }
 0x355   :  { %v6747_v37 = vadd.f32 %v6746_v8, %v6745_v47  ;;  %v6362_v52 = vpop.f32.mrf.mxu0  ;;  %v5097_v14 = vadd.f32 %v26442_v3, %v4386_v2  ;;  %v4388_v25 = vadd.f32 %v26444_v19, %v26443_v55 }
 0x356   :  { %26441 = vst [vmem:[#allocation65_spill] sm:$0xff] %v21872_v22  ;;  %v21876_v41 = vmax.f32 %v6582_v44, 0.0  ;;  %v6585_v31 = vadd.f32 %v21505_v42, %v6514_v23  ;;  %v6513_v38 = vadd.f32 %v6362_v52, %v5803_v17  ;;  %v26445_v44 = vld [vmem:[#allocation52_spill] sm:$0xff]  ;;  %v21888_v23 = vpop.f32.mrf.mxu1  ;;  %v6752_v17 = vsel %vm6670_vm3, %v21872_v22, 0.0 }
 0x357   :  { %v6749_v63 = vadd.f32 %v6748_v4, %v6747_v37  ;;  %v17651_v46 = vpop.f32.mrf.mxu0  ;;  %v5808_v29 = vadd.f32 %v21726_v57, %v26445_v44  ;;  %v5807_v4 = vadd.f32 %v21744_v33, %v5097_v14 }
 0x358   :  { %v6750_v47 = vsel %vm6670_vm3, %v21876_v41, 0.0  ;;  %v6584_v62 = vadd.f32 %v21505_v42, %v6513_v38  ;;  %v6516_v8 = vadd.f32 %v17651_v46, %v5806_v26  ;;  %v21892_v59 = vmax.f32 %v6585_v31, 0.0  ;;  %v26448_v46 = vld [vmem:[#allocation84_spill] sm:$0xff]  ;;  %v26450_v31 = vld [vmem:[#allocation15_spill] sm:$0xff] }
 0x359   :  { %v6751_v2 = vadd.f32 %v6750_v47, %v6749_v63  ;;  %v6372_v37 = vpop.f32.mrf.mxu0  ;;  %v5099_v57 = vadd.f32 %v26448_v46, %v4388_v25  ;;  %v26449_v47 = vld [vmem:[#allocation16_spill] sm:$0xff] }
 0x35a   :  { %26446 = vst [vmem:[#allocation82_spill] sm:$0xff] %v21892_v59  ;;  %v21894_v51 = vmax.f32 %v6584_v62, 0.0  ;;  %v6587_v52 = vadd.f32 %v21505_v42, %v6516_v8  ;;  %v6515_v26 = vadd.f32 %v6372_v37, %v5805_v36  ;;  %v4390_v44 = vadd.f32 %v26450_v31, %v26449_v47  ;;  %v26451_v62 = vld [vmem:[#allocation83_spill] sm:$0xff]  ;;  %v21906_v8 = vpop.f32.mrf.mxu1  ;;  %v26454_v37 = vld [vmem:[#allocation86_spill] sm:$0xff]  ;;  %v26456_v31 = vld [vmem:[#allocation17_spill] sm:$0xff] }
 0x35b   :  { %v6753_v38 = vadd.f32 %v6752_v17, %v6751_v2  ;;  %v17654_v3 = vpop.f32.mrf.mxu0  ;;  %v5810_v22 = vadd.f32 %v21762_v21, %v26451_v62  ;;  %v6756_v25 = vsel %vm6670_vm3, %v21892_v59, 0.0  ;;  %v5809_v21 = vadd.f32 %v21780_v20, %v5099_v57  ;;  %v26455_v47 = vld [vmem:[#allocation18_spill] sm:$0xff] }
 0x35c   :  { %26447 = vst [vmem:[#allocation38_spill] sm:$0xff] %v21894_v51  ;;  %v6754_v55 = vsel %vm6670_vm3, %v21894_v51, 0.0  ;;  %v6586_v19 = vadd.f32 %v21505_v42, %v6515_v26  ;;  %v6518_v63 = vadd.f32 %v17654_v3, %v5808_v29  ;;  %v21908_v33 = vmax.f32 %v6587_v52, 0.0 }
 0x35d   :  { %v6755_v36 = vadd.f32 %v6754_v55, %v6753_v38  ;;  %v6382_v14 = vpop.f32.mrf.mxu0  ;;  %v5101_v26 = vadd.f32 %v26454_v37, %v4390_v44  ;;  %v4392_v62 = vadd.f32 %v26456_v31, %v26455_v47 }
 0x35e   :  { %26452 = vst [vmem:[#allocation68_spill] sm:$0xff] %v21908_v33  ;;  %v21912_v17 = vmax.f32 %v6586_v19, 0.0  ;;  %v6589_v2 = vadd.f32 %v21505_v42, %v6518_v63  ;;  %v6517_v29 = vadd.f32 %v6382_v14, %v5807_v4  ;;  %v26457_v19 = vld [vmem:[#allocation85_spill] sm:$0xff]  ;;  %v5722_v63 = vpop.f32.mrf.mxu1  ;;  %v6760_v4 = vsel %vm6670_vm3, %v21908_v33, 0.0 }
 0x35f   :  { %v6757_v3 = vadd.f32 %v6756_v25, %v6755_v36  ;;  %v17657_v46 = vpop.f32.mrf.mxu0  ;;  %v5812_v59 = vadd.f32 %v21798_v40, %v26457_v19 }
 0x360   :  { %26453 = vst [vmem:[#allocation66_spill] sm:$0xff] %v21912_v17  ;;  %v6758_v38 = vsel %vm6670_vm3, %v21912_v17, 0.0  ;;  %v6588_v52 = vadd.f32 %v21505_v42, %v6517_v29  ;;  %v6520_v55 = vadd.f32 %v17657_v46, %v5810_v22  ;;  %v21926_v14 = vmax.f32 %v6589_v2, 0.0  ;;  %v26460_v46 = vld [vmem:[#allocation88_spill] sm:$0xff]  ;;  %v26462_v2 = vld [vmem:[#allocation19_spill] sm:$0xff] }
 0x361   :  { %v6759_v44 = vadd.f32 %v6758_v38, %v6757_v3  ;;  %v6392_v36 = vpop.f32.mrf.mxu0  ;;  %v5811_v22 = vadd.f32 %v21816_v35, %v5101_v26  ;;  %v5103_v47 = vadd.f32 %v26460_v46, %v4392_v62  ;;  %v26461_v38 = vld [vmem:[#allocation20_spill] sm:$0xff] }
 0x362   :  { %26458 = vst [vmem:[#allocation36_spill] sm:$0xff] %v21926_v14  ;;  %v21928_v20 = vmax.f32 %v6588_v52, 0.0  ;;  %v6591_v57 = vadd.f32 %v21505_v42, %v6520_v55  ;;  %v6519_v25 = vadd.f32 %v6392_v36, %v5809_v21  ;;  %v4394_v19 = vadd.f32 %v26462_v2, %v26461_v38  ;;  %v26463_v52 = vld [vmem:[#allocation87_spill] sm:$0xff]  ;;  %v17574_v55 = vpop.f32.mrf.mxu1  ;;  %v26468_v2 = vld [vmem:[#allocation21_spill] sm:$0xff] }
 0x363   :  { %v6761_v29 = vadd.f32 %v6760_v4, %v6759_v44  ;;  %v17660_v37 = vpop.f32.mrf.mxu0  ;;  %v5814_v33 = vadd.f32 %v21834_v30, %v26463_v52  ;;  %v6764_v26 = vsel %vm6670_vm3, %v21926_v14, 0.0  ;;  %v5813_v38 = vadd.f32 %v21852_v50, %v5103_v47 }
 0x364   :  { %26459 = vst [vmem:[#allocation39_spill] sm:$0xff] %v21928_v20  ;;  %v6762_v40 = vsel %vm6670_vm3, %v21928_v20, 0.0  ;;  %v6590_v31 = vadd.f32 %v21505_v42, %v6519_v25  ;;  %v6522_v3 = vadd.f32 %v17660_v37, %v5812_v59  ;;  %v21940_v36 = vmax.f32 %v6591_v57, 0.0  ;;  %v26466_v59 = vld [vmem:[#allocation90_spill] sm:$0xff] }
 0x365   :  { %v6763_v21 = vadd.f32 %v6762_v40, %v6761_v29  ;;  %v6402_v35 = vpop.f32.mrf.mxu0  ;;  %v5105_v25 = vadd.f32 %v26466_v59, %v4394_v19  ;;  %v26467_v40 = vld [vmem:[#allocation22_spill] sm:$0xff] }
 0x366   :  { %26464 = vst [vmem:[#allocation71_spill] sm:$0xff] %v21940_v36  ;;  %v21944_v62 = vmax.f32 %v6590_v31, 0.0  ;;  %v6593_v4 = vadd.f32 %v21505_v42, %v6522_v3  ;;  %v6521_v44 = vadd.f32 %v6402_v35, %v5811_v22  ;;  %v4396_v52 = vadd.f32 %v26468_v2, %v26467_v40  ;;  %v26469_v31 = vld [vmem:[#allocation89_spill] sm:$0xff]  ;;  %v5732_v3 = vpop.f32.mrf.mxu1 }
 0x367   :  { %v6765_v37 = vadd.f32 %v6764_v26, %v6763_v21  ;;  %v17663_v46 = vpop.f32.mrf.mxu0  ;;  %v5816_v14 = vadd.f32 %v21870_v16, %v26469_v31  ;;  %v6768_v22 = vsel %vm6670_vm3, %v21940_v36, 0.0 }
 0x368   :  { %26465 = vst [vmem:[#allocation69_spill] sm:$0xff] %v21944_v62  ;;  %v6766_v30 = vsel %vm6670_vm3, %v21944_v62, 0.0  ;;  %v6592_v57 = vadd.f32 %v21505_v42, %v6521_v44  ;;  %v6524_v29 = vadd.f32 %v17663_v46, %v5814_v33  ;;  %v21958_v35 = vmax.f32 %v6593_v4, 0.0  ;;  %v26472_v46 = vld [vmem:[#allocation92_spill] sm:$0xff]  ;;  %v26474_v4 = vld [vmem:[#allocation23_spill] sm:$0xff] }
 0x369   :  { %v6767_v19 = vadd.f32 %v6766_v30, %v6765_v37  ;;  %v6412_v21 = vpop.f32.mrf.mxu0  ;;  %v5815_v33 = vadd.f32 %v21888_v23, %v5105_v25  ;;  %v5107_v40 = vadd.f32 %v26472_v46, %v4396_v52  ;;  %v26473_v30 = vld [vmem:[#allocation24_spill] sm:$0xff] }
 0x36a   :  { %26470 = vst [vmem:[#allocation37_spill] sm:$0xff] %v21958_v35  ;;  %v21960_v50 = vmax.f32 %v6592_v57, 0.0  ;;  %v6595_v47 = vadd.f32 %v21505_v42, %v6524_v29  ;;  %v6523_v26 = vadd.f32 %v6412_v21, %v5813_v38  ;;  %v4398_v31 = vadd.f32 %v26474_v4, %v26473_v30  ;;  %v26475_v57 = vld [vmem:[#allocation91_spill] sm:$0xff]  ;;  %v17577_v29 = vpop.f32.mrf.mxu1  ;;  %v26479_v4 = vld [vmem:[#allocation25_spill] sm:$0xff] }
 0x36b   :  { %v6769_v44 = vadd.f32 %v6768_v22, %v6767_v19  ;;  %v17666_v59 = vpop.f32.mrf.mxu0  ;;  %v5818_v36 = vadd.f32 %v21906_v8, %v26475_v57  ;;  %v6772_v25 = vsel %vm6670_vm3, %v21958_v35, 0.0  ;;  %v5817_v30 = vadd.f32 %v5722_v63, %v5107_v40  ;;  %v26480_v35 = vld [vmem:[#allocation93_spill] sm:$0xff] }
 0x36c   :  { %26471 = vst [vmem:[#allocation96_spill] sm:$0xff] %v21960_v50  ;;  %v6770_v16 = vsel %vm6670_vm3, %v21960_v50, 0.0  ;;  %v6594_v2 = vadd.f32 %v21505_v42, %v6523_v26  ;;  %v6526_v37 = vadd.f32 %v17666_v59, %v5816_v14  ;;  %v21972_v21 = vmax.f32 %v6595_v47, 0.0  ;;  %v26477_v14 = vld [vmem:[#allocation94_spill] sm:$0xff]  ;;  %v5742_v50 = vpop.f32.mrf.mxu1 }
 0x36d   :  { %v6771_v38 = vadd.f32 %v6770_v16, %v6769_v44  ;;  %v6422_v23 = vpop.f32.mrf.mxu0  ;;  %v5109_v26 = vadd.f32 %v26477_v14, %v4398_v31  ;;  %v26478_v16 = vld [vmem:[#allocation26_spill] sm:$0xff]  ;;  %v26481_v14 = vld [vmem:[#allocation97_spill] sm:$0xff] }
 0x36e   :  { %26476 = vst [vmem:[#allocation7_spill] sm:$0xff] %v21972_v21  ;;  %v21976_v52 = vmax.f32 %v6594_v2, 0.0  ;;  %v6597_v22 = vadd.f32 %v21505_v42, %v6526_v37  ;;  %v6525_v19 = vadd.f32 %v6422_v23, %v5815_v33  ;;  %v4400_v57 = vadd.f32 %v26479_v4, %v26478_v16  ;;  %v17580_v4 = vpop.f32.mrf.mxu1 }
 0x36f   :  { %v6773_v59 = vadd.f32 %v6772_v25, %v6771_v38  ;;  %v17669_v46 = vpop.f32.mrf.mxu0  ;;  %v5820_v2 = vadd.f32 %v17574_v55, %v26480_v35  ;;  %v6776_v33 = vsel %vm6670_vm3, %v21972_v21, 0.0  ;;  %v5819_v25 = vadd.f32 %v5732_v3, %v5109_v26 }
 0x370   :  { %v6774_v8 = vsel %vm6670_vm3, %v21976_v52, 0.0  ;;  %v6596_v47 = vadd.f32 %v21505_v42, %v6525_v19  ;;  %v6528_v44 = vadd.f32 %v17669_v46, %v5818_v36  ;;  %v21988_v38 = vmax.f32 %v6597_v22, 0.0 }
 0x371   :  { %v6775_v37 = vadd.f32 %v6774_v8, %v6773_v59  ;;  %v6432_v31 = vpop.f32.mrf.mxu0  ;;  %v5111_v46 = vadd.f32 %v26481_v14, %v4400_v57  ;;  %v26482_v59 = vld [vmem:[#allocation28_spill] sm:$0xff]  ;;  %v26483_v8 = vld [vmem:[#allocation27_spill] sm:$0xff] }
 0x372   :  { %v21990_v63 = vmax.f32 %v6596_v47, 0.0  ;;  %v6599_v40 = vadd.f32 %v21505_v42, %v6528_v44  ;;  %v6527_v23 = vadd.f32 %v6432_v31, %v5817_v30  ;;  %v4402_v22 = vadd.f32 %v26483_v8, %v26482_v59 }
 0x373   :  { %v6777_v36 = vadd.f32 %v6776_v33, %v6775_v37  ;;  %v17672_v19 = vpop.f32.mrf.mxu0  ;;  %v6780_v3 = vsel %vm6670_vm3, %v21988_v38, 0.0  ;;  %v26484_v33 = vld [vmem:[#allocation95_spill] sm:$0xff] }
 0x374   :  { %v6778_v55 = vsel %vm6670_vm3, %v21990_v63, 0.0  ;;  %v6598_v35 = vadd.f32 %v21505_v42, %v6527_v23  ;;  %v6530_v16 = vadd.f32 %v17672_v19, %v5820_v2  ;;  %v21999_v21 = vmax.f32 %v6599_v40, 0.0  ;;  %v26485_v19 = vld [vmem:[#allocation100_spill] sm:$0xff] }
 0x375   :  { %v6779_v47 = vadd.f32 %v6778_v55, %v6777_v36  ;;  %v6442_v44 = vpop.f32.mrf.mxu0  ;;  %v5822_v37 = vadd.f32 %v17577_v29, %v26484_v33  ;;  %v5821_v23 = vadd.f32 %v5742_v50, %v5111_v46  ;;  %v5113_v14 = vadd.f32 %v26485_v19, %v4402_v22  ;;  %v5752_v55 = vpop.f32.mrf.mxu1 }
 0x376   :  { %v22003_v26 = vmax.f32 %v6598_v35, 0.0  ;;  %v6601_v30 = vadd.f32 %v21505_v42, %v6530_v16  ;;  %v6529_v57 = vadd.f32 %v6442_v44, %v5819_v25  ;;  %v6784_v35 = vsel %vm6670_vm3, %v21999_v21, 0.0 }
 0x377   :  { %v6781_v31 = vadd.f32 %v6780_v3, %v6779_v47  ;;  %v17675_v2 = vpop.f32.mrf.mxu0  ;;  %v5823_v22 = vadd.f32 %v5752_v55, %v5113_v14 }
 0x378   :  { %v6782_v40 = vsel %vm6670_vm3, %v22003_v26, 0.0  ;;  %v6600_v36 = vadd.f32 %v21505_v42, %v6529_v57  ;;  %v22013_v16 = vmax.f32 %v6601_v30, 0.0  ;;  %v6532_v29 = vadd.f32 %v17675_v2, %v5822_v37  ;;  %v26488_v2 = vld [vmem:[#allocation98_spill] sm:$0xff] }
 0x379   :  { %v6783_v59 = vadd.f32 %v6782_v40, %v6781_v31  ;;  %v6452_v8 = vpop.f32.mrf.mxu0 }
 0x37a   :  { %26486 = vst [vmem:[#allocation72_spill] sm:$0xff] %v22013_v16  ;;  %v22015_v25 = vmax.f32 %v6600_v36, 0.0  ;;  %v6531_v47 = vadd.f32 %v6452_v8, %v5821_v23  ;;  %v6788_v31 = vsel %vm6670_vm3, %v22013_v16, 0.0  ;;  %v6603_v30 = vadd.f32 %v21505_v42, %v6532_v29  ;;  %v18567_v36 = vld [vmem:[%s25802_s2] ss:$0 sm:$0xff] }
 0x37b   :  { %v6785_v50 = vadd.f32 %v6784_v35, %v6783_v59  ;;  %v17678_v46 = vpop.f32.mrf.mxu0  ;;  %v5824_v23 = vadd.f32 %v17580_v4, %v26488_v2 }
 0x37c   :  { %v6786_v44 = vsel %vm6670_vm3, %v22015_v25, 0.0  ;;  %v6602_v3 = vadd.f32 %v21505_v42, %v6531_v47  ;;  %v22031_v35 = vmax.f32 %v6603_v30, 0.0 }
 0x37d   :  { %v6787_v57 = vadd.f32 %v6786_v44, %v6785_v50  ;;  %v6462_v33 = vpop.f32.mrf.mxu0  ;;  %v6534_v59 = vadd.f32 %v17678_v46, %v5824_v23 }
 0x37e   :  { %v22023_v19 = vmax.f32 %v6602_v3, 0.0  ;;  %v6533_v40 = vadd.f32 %v6462_v33, %v5823_v22  ;;  %26489 = vst [vmem:[#allocation40_spill] sm:$0xff] %v22031_v35  ;;  %v6792_v42 = vsel %vm6670_vm3, %v22031_v35, 0.0 }
 0x37f   :  { %v6789_v37 = vadd.f32 %v6788_v31, %v6787_v57  ;;  %v6605_v29 = vadd.f32 %v18567_v36, %v6534_v59 }
 0x380   :  { %26487 = vst [vmem:[#allocation70_spill] sm:$0xff] %v22023_v19  ;;  %v6790_v14 = vsel %vm6670_vm3, %v22023_v19, 0.0  ;;  %v6604_v55 = vadd.f32 %v18567_v36, %v6533_v40 }
 0x381   :  { %v6791_v8 = vadd.f32 %v6790_v14, %v6789_v37  ;;  %v22039_v22 = vmax.f32 %v6605_v29, 0.0 }
 0x382   :  { %v22033_v47 = vmax.f32 %v6604_v55, 0.0 }
 0x383   :  { %v6793_v50 = vadd.f32 %v6792_v42, %v6791_v8  ;;  %26490 = vst [vmem:[#allocation99_spill] sm:$0xff] %v22039_v22  ;;  %v6796_v3 = vsel %vm6670_vm3, %v22039_v22, 0.0 }
 0x384   :  { %v6794_v4 = vsel %vm6670_vm3, %v22033_v47, 0.0 }
 0x385   :  { %v6795_v44 = vadd.f32 %v6794_v4, %v6793_v50 }
 0x387   :  { %v6797_v57 = vadd.f32 %v6796_v3, %v6795_v44 }
 0x389   :  { %v6798_v33 = vrot.slane %v6797_v57, 4 }
 0x38b   :  { %v6799_v46 = vadd.f32 %v6798_v33, %v6797_v57 }
 0x38d   :  { %v6800_v31 = vrot.slane %v6799_v46, 2 }
 0x38f   :  { %v6801_v30 = vadd.f32 %v6800_v31, %v6799_v46 }
 0x391   :  { %v6802_v40 = vrot.slane %v6801_v30, 1 }
 0x393   :  { %v6803_v37 = vadd.f32 %v6802_v40, %v6801_v30 }
 0x395   :  { %v22043_v2 = vmul.f32 0.001953125, %v6803_v37 }
 0x397   :  { %v6806_v23 = vsub.f32 %v21523_v6, %v22043_v2  ;;  %v6807_v14 = vsub.f32 %v21519_v58, %v22043_v2  ;;  %v6808_v36 = vsub.f32 %v21539_v28, %v22043_v2  ;;  %v6809_v55 = vsub.f32 %v21537_v7, %v22043_v2 }
 0x398   :  { %v6810_v42 = vsub.f32 %v21555_v61, %v22043_v2  ;;  %v6811_v50 = vsub.f32 %v21551_v53, %v22043_v2  ;;  %v6812_v33 = vsub.f32 %v21571_v13, %v22043_v2  ;;  %v6813_v40 = vsub.f32 %v21569_v15, %v22043_v2 }
 0x399   :  { %v6870_v59 = vmul.f32 %v6806_v23, %v6806_v23  ;;  %v6871_v8 = vmul.f32 %v6807_v14, %v6807_v14  ;;  %v6872_v29 = vmul.f32 %v6808_v36, %v6808_v36  ;;  %v6873_v4 = vmul.f32 %v6809_v55, %v6809_v55 }
 0x39a   :  { %v6874_v46 = vmul.f32 %v6810_v42, %v6810_v42  ;;  %v6875_v37 = vmul.f32 %v6811_v50, %v6811_v50  ;;  %v6814_v36 = vsub.f32 %v21587_v56, %v22043_v2  ;;  %v6876_v55 = vmul.f32 %v6812_v33, %v6812_v33 }
 0x39b   :  { %v6934_v44 = vsel %vm6670_vm3, %v6870_v59, 0.0  ;;  %v6935_v3 = vsel %vm6670_vm3, %v6871_v8, 0.0  ;;  %v6937_v31 = vsel %vm6670_vm3, %v6872_v29, 0.0  ;;  %v6939_v23 = vsel %vm6670_vm3, %v6873_v4, 0.0 }
 0x39c   :  { %v6936_v57 = vadd.f32 %v6935_v3, %v6934_v44  ;;  %v6941_v59 = vsel %vm6670_vm3, %v6874_v46, 0.0  ;;  %v6815_v42 = vsub.f32 %v21583_v10, %v22043_v2  ;;  %v6877_v44 = vmul.f32 %v6813_v40, %v6813_v40 }
 0x39d   :  { %v6943_v29 = vsel %vm6670_vm3, %v6875_v37, 0.0  ;;  %v6816_v50 = vsub.f32 %v21605_v9, %v22043_v2  ;;  %v6945_v4 = vsel %vm6670_vm3, %v6876_v55, 0.0  ;;  %v6817_v33 = vsub.f32 %v21603_v0, %v22043_v2 }
 0x39e   :  { %v6938_v30 = vadd.f32 %v6937_v31, %v6936_v57  ;;  %v6878_v57 = vmul.f32 %v6814_v36, %v6814_v36  ;;  %v6947_v46 = vsel %vm6670_vm3, %v6877_v44, 0.0  ;;  %v6818_v40 = vsub.f32 %v21624_v60, %v22043_v2 }
 0x39f   :  { %v6819_v36 = vsub.f32 %v21620_v39, %v22043_v2 }
 0x3a0   :  { %v6940_v14 = vadd.f32 %v6939_v23, %v6938_v30  ;;  %v6879_v30 = vmul.f32 %v6815_v42, %v6815_v42  ;;  %v6949_v37 = vsel %vm6670_vm3, %v6878_v57, 0.0  ;;  %v6820_v42 = vsub.f32 %v21642_v18, %v22043_v2 }
 0x3a2   :  { %v6942_v8 = vadd.f32 %v6941_v59, %v6940_v14  ;;  %v6880_v14 = vmul.f32 %v6816_v50, %v6816_v50  ;;  %v6951_v55 = vsel %vm6670_vm3, %v6879_v30, 0.0  ;;  %v6821_v50 = vsub.f32 %v21640_v54, %v22043_v2 }
 0x3a4   :  { %v6944_v3 = vadd.f32 %v6943_v29, %v6942_v8  ;;  %v6881_v8 = vmul.f32 %v6817_v33, %v6817_v33  ;;  %v6953_v44 = vsel %vm6670_vm3, %v6880_v14, 0.0  ;;  %v6822_v33 = vsub.f32 %v21660_v27, %v22043_v2 }
 0x3a6   :  { %v6946_v31 = vadd.f32 %v6945_v4, %v6944_v3  ;;  %v6882_v3 = vmul.f32 %v6818_v40, %v6818_v40  ;;  %v6955_v57 = vsel %vm6670_vm3, %v6881_v8, 0.0  ;;  %v6823_v40 = vsub.f32 %v21656_v48, %v22043_v2 }
 0x3a8   :  { %v6948_v23 = vadd.f32 %v6947_v46, %v6946_v31  ;;  %v6883_v31 = vmul.f32 %v6819_v36, %v6819_v36  ;;  %v6957_v30 = vsel %vm6670_vm3, %v6882_v3, 0.0  ;;  %v6824_v36 = vsub.f32 %v21678_v11, %v22043_v2 }
 0x3aa   :  { %v6950_v59 = vadd.f32 %v6949_v37, %v6948_v23  ;;  %v6884_v23 = vmul.f32 %v6820_v42, %v6820_v42  ;;  %v6959_v14 = vsel %vm6670_vm3, %v6883_v31, 0.0  ;;  %v6825_v42 = vsub.f32 %v21676_v49, %v22043_v2 }
 0x3ac   :  { %v6952_v29 = vadd.f32 %v6951_v55, %v6950_v59  ;;  %v6885_v59 = vmul.f32 %v6821_v50, %v6821_v50  ;;  %v6961_v8 = vsel %vm6670_vm3, %v6884_v23, 0.0  ;;  %v6826_v50 = vsub.f32 %v21696_v12, %v22043_v2 }
 0x3ae   :  { %v6954_v4 = vadd.f32 %v6953_v44, %v6952_v29  ;;  %v6886_v29 = vmul.f32 %v6822_v33, %v6822_v33  ;;  %v6963_v3 = vsel %vm6670_vm3, %v6885_v59, 0.0  ;;  %v6890_v49 = vmul.f32 %v6826_v50, %v6826_v50 }
 0x3b0   :  { %v6956_v46 = vadd.f32 %v6955_v57, %v6954_v4  ;;  %v6887_v4 = vmul.f32 %v6823_v40, %v6823_v40  ;;  %v6965_v31 = vsel %vm6670_vm3, %v6886_v29, 0.0 }
 0x3b2   :  { %v6958_v37 = vadd.f32 %v6957_v30, %v6956_v46  ;;  %v6888_v46 = vmul.f32 %v6824_v36, %v6824_v36  ;;  %v6967_v23 = vsel %vm6670_vm3, %v6887_v4, 0.0  ;;  %v6973_v4 = vsel %vm6670_vm3, %v6890_v49, 0.0 }
 0x3b4   :  { %v6960_v55 = vadd.f32 %v6959_v14, %v6958_v37  ;;  %v26491_v37 = vld [vmem:[#allocation56_spill] sm:$0xff]  ;;  %v6889_v14 = vmul.f32 %v6825_v42, %v6825_v42  ;;  %v6969_v59 = vsel %vm6670_vm3, %v6888_v46, 0.0 }
 0x3b5   :  { %v6827_v33 = vsub.f32 %v26491_v37, %v22043_v2 }
 0x3b6   :  { %v6962_v44 = vadd.f32 %v6961_v8, %v6960_v55  ;;  %v26492_v8 = vld [vmem:[#allocation57_spill] sm:$0xff]  ;;  %v6971_v29 = vsel %vm6670_vm3, %v6889_v14, 0.0 }
 0x3b7   :  { %v6828_v40 = vsub.f32 %v26492_v8, %v22043_v2  ;;  %v6891_v12 = vmul.f32 %v6827_v33, %v6827_v33  ;;  %v6832_v33 = vsub.f32 %v21750_v32, %v22043_v2 }
 0x3b8   :  { %v6964_v57 = vadd.f32 %v6963_v3, %v6962_v44  ;;  %v26493_v3 = vld [vmem:[#allocation58_spill] sm:$0xff] }
 0x3b9   :  { %v6829_v36 = vsub.f32 %v26493_v3, %v22043_v2  ;;  %v6892_v37 = vmul.f32 %v6828_v40, %v6828_v40  ;;  %v6975_v46 = vsel %vm6670_vm3, %v6891_v12, 0.0 }
 0x3ba   :  { %v6966_v30 = vadd.f32 %v6965_v31, %v6964_v57  ;;  %v26494_v31 = vld [vmem:[#allocation31_spill] sm:$0xff] }
 0x3bb   :  { %v6830_v42 = vsub.f32 %v26494_v31, %v22043_v2  ;;  %v6893_v8 = vmul.f32 %v6829_v36, %v6829_v36  ;;  %v6977_v14 = vsel %vm6670_vm3, %v6892_v37, 0.0  ;;  %v6834_v36 = vsub.f32 %v21768_v34, %v22043_v2 }
 0x3bc   :  { %v6968_v55 = vadd.f32 %v6967_v23, %v6966_v30  ;;  %v26495_v23 = vld [vmem:[#allocation29_spill] sm:$0xff] }
 0x3bd   :  { %v6831_v50 = vsub.f32 %v26495_v23, %v22043_v2  ;;  %v6979_v49 = vsel %vm6670_vm3, %v6893_v8, 0.0 }
 0x3be   :  { %v6970_v44 = vadd.f32 %v6969_v59, %v6968_v55  ;;  %v6894_v59 = vmul.f32 %v6830_v42, %v6830_v42 }
 0x3bf   :  { %v6895_v31 = vmul.f32 %v6831_v50, %v6831_v50  ;;  %v6836_v50 = vsub.f32 %v21786_v1, %v22043_v2 }
 0x3c0   :  { %v6972_v57 = vadd.f32 %v6971_v29, %v6970_v44  ;;  %v26496_v29 = vld [vmem:[#allocation60_spill] sm:$0xff]  ;;  %v6981_v12 = vsel %vm6670_vm3, %v6894_v59, 0.0 }
 0x3c1   :  { %v6833_v40 = vsub.f32 %v26496_v29, %v22043_v2  ;;  %v6983_v37 = vsel %vm6670_vm3, %v6895_v31, 0.0 }
 0x3c2   :  { %v6974_v30 = vadd.f32 %v6973_v4, %v6972_v57  ;;  %v6896_v4 = vmul.f32 %v6832_v33, %v6832_v33 }
 0x3c3   :  { %v6897_v32 = vmul.f32 %v6833_v40, %v6833_v40  ;;  %v6838_v40 = vsub.f32 %v21804_v5, %v22043_v2 }
 0x3c4   :  { %v6976_v55 = vadd.f32 %v6975_v46, %v6974_v30  ;;  %v26497_v46 = vld [vmem:[#allocation30_spill] sm:$0xff]  ;;  %v6985_v8 = vsel %vm6670_vm3, %v6896_v4, 0.0 }
 0x3c5   :  { %v6835_v42 = vsub.f32 %v26497_v46, %v22043_v2  ;;  %v6987_v59 = vsel %vm6670_vm3, %v6897_v32, 0.0 }
 0x3c6   :  { %v6978_v44 = vadd.f32 %v6977_v14, %v6976_v55  ;;  %v6898_v14 = vmul.f32 %v6834_v36, %v6834_v36 }
 0x3c7   :  { %v6899_v34 = vmul.f32 %v6835_v42, %v6835_v42  ;;  %v6840_v42 = vsub.f32 %v21822_v45, %v22043_v2 }
 0x3c8   :  { %v6980_v57 = vadd.f32 %v6979_v49, %v6978_v44  ;;  %v26498_v49 = vld [vmem:[#allocation62_spill] sm:$0xff]  ;;  %v6989_v31 = vsel %vm6670_vm3, %v6898_v14, 0.0 }
 0x3c9   :  { %v6837_v33 = vsub.f32 %v26498_v49, %v22043_v2  ;;  %v6991_v4 = vsel %vm6670_vm3, %v6899_v34, 0.0 }
 0x3ca   :  { %v6982_v30 = vadd.f32 %v6981_v12, %v6980_v57  ;;  %v6900_v12 = vmul.f32 %v6836_v50, %v6836_v50 }
 0x3cb   :  { %v6901_v1 = vmul.f32 %v6837_v33, %v6837_v33  ;;  %v6842_v33 = vsub.f32 %v21840_v24, %v22043_v2 }
 0x3cc   :  { %v6984_v55 = vadd.f32 %v6983_v37, %v6982_v30  ;;  %v26499_v37 = vld [vmem:[#allocation32_spill] sm:$0xff]  ;;  %v6993_v32 = vsel %vm6670_vm3, %v6900_v12, 0.0 }
 0x3cd   :  { %v6839_v36 = vsub.f32 %v26499_v37, %v22043_v2  ;;  %v6995_v14 = vsel %vm6670_vm3, %v6901_v1, 0.0 }
 0x3ce   :  { %v6986_v44 = vadd.f32 %v6985_v8, %v6984_v55  ;;  %v6902_v8 = vmul.f32 %v6838_v40, %v6838_v40 }
 0x3cf   :  { %v6903_v5 = vmul.f32 %v6839_v36, %v6839_v36  ;;  %v6844_v36 = vsub.f32 %v21858_v43, %v22043_v2 }
 0x3d0   :  { %v6988_v57 = vadd.f32 %v6987_v59, %v6986_v44  ;;  %v26500_v59 = vld [vmem:[#allocation64_spill] sm:$0xff]  ;;  %v6997_v34 = vsel %vm6670_vm3, %v6902_v8, 0.0  ;;  %v7453_v8 = vld [vmem:[%s25805_s5] sm:$0xff] }
 0x3d1   :  { %v6841_v50 = vsub.f32 %v26500_v59, %v22043_v2  ;;  %v6999_v12 = vsel %vm6670_vm3, %v6903_v5, 0.0  ;;  %17777 = vmatprep.subr.mxu0 %v7453_v8 }
 0x3d2   :  { %v6990_v30 = vadd.f32 %v6989_v31, %v6988_v57  ;;  %v6904_v31 = vmul.f32 %v6840_v42, %v6840_v42  ;;  %v15042_v42 = vld [vmem:[%s25805_s5 + $0x8] sm:$0xff]  ;;  %17778 = vmatpush3.msra.mxu0 %v7453_v8 }
 0x3d3   :  { %v6905_v45 = vmul.f32 %v6841_v50, %v6841_v50  ;;  %v26502_v50 = vld [vmem:[#allocation35_spill] sm:$0xff]  ;;  %17679 = vmatprep.subr.mxu1 %v15042_v42 }
 0x3d4   :  { %v6992_v55 = vadd.f32 %v6991_v4, %v6990_v30  ;;  %v26501_v4 = vld [vmem:[#allocation33_spill] sm:$0xff]  ;;  %v7001_v1 = vsel %vm6670_vm3, %v6904_v31, 0.0  ;;  %v6845_v5 = vsub.f32 %v26502_v50, %v22043_v2  ;;  %17680 = vmatpush3.msra.mxu1 %v15042_v42  ;;  %v6908_v50 = vmul.f32 %v6844_v36, %v6844_v36 }
 0x3d5   :  { %v6843_v40 = vsub.f32 %v26501_v4, %v22043_v2  ;;  %v7455_v31 = vld [vmem:[#allocation3 + $0x9] sm:$0xff]  ;;  %v6848_v36 = vsub.f32 %v21894_v51, %v22043_v2 }
 0x3d6   :  { %v6994_v44 = vadd.f32 %v6993_v32, %v6992_v55  ;;  %v6906_v32 = vmul.f32 %v6842_v33, %v6842_v33  ;;  %v7389_v33 = vld [vmem:[#allocation3] sm:$0xff]  ;;  %v7009_v8 = vsel %vm6670_vm3, %v6908_v50, 0.0 }
 0x3d7   :  { %17779 = vmatprep.mubr.msk.f32.mxu0 %vm6670_vm3, %v7389_v33 }
 0x3d8   :  { %v6996_v57 = vadd.f32 %v6995_v14, %v6994_v44  ;;  %v7454_v14 = vld [vmem:[#allocation3 + $0x1] sm:$0xff] }
 0x3d9   :  { %17681 = vmatprep.mubr.msk.f32.mxu1 %vm6670_vm3, %v7454_v14  ;;  %v6909_v14 = vmul.f32 %v6845_v5, %v6845_v5  ;;  %v6850_v5 = vsub.f32 %v21912_v17, %v22043_v2 }
 0x3da   :  { %v6998_v30 = vadd.f32 %v6997_v34, %v6996_v57  ;;  %v6907_v57 = vmul.f32 %v6843_v40, %v6843_v40  ;;  %v7003_v34 = vsel %vm6670_vm3, %v6905_v45, 0.0  ;;  %v7005_v40 = vsel %vm6670_vm3, %v6906_v32, 0.0  ;;  %17682 = vmatmul.mubr.msk.f32.vlgmr.msra.gmra.mxu1 %vm6670_vm3, %v7455_v31  ;;  %v26504_v31 = vld [vmem:[#allocation82_spill] sm:$0xff] }
 0x3dc   :  { %v7000_v55 = vadd.f32 %v6999_v12, %v6998_v30  ;;  %v7390_v30 = vld [vmem:[#allocation3 + $0x8] sm:$0xff] }
 0x3dd   :  { %17780 = vmatmul.mubr.msk.f32.vlgmr.msra.gmra.mxu0 %vm6670_vm3, %v7390_v30 }
 0x3de   :  { %v7002_v44 = vadd.f32 %v7001_v1, %v7000_v55  ;;  %v15171_v55 = vld [vmem:[%s25805_s5 + $0x10] sm:$0xff]  ;;  %v6846_v1 = vsub.f32 %v21876_v41, %v22043_v2 }
 0x3df   :  { %17875 = vmatprep.subr.mxu1 %v15171_v55 }
 0x3e0   :  { %v7004_v12 = vadd.f32 %v7003_v34, %v7002_v44  ;;  %v26503_v44 = vld [vmem:[#allocation65_spill] sm:$0xff]  ;;  %v7007_v34 = vsel %vm6670_vm3, %v6907_v57, 0.0  ;;  %17876 = vmatpush3.msra.mxu1 %v15171_v55  ;;  %v6910_v32 = vmul.f32 %v6846_v1, %v6846_v1  ;;  %v6912_v57 = vmul.f32 %v6848_v36, %v6848_v36 }
 0x3e1   :  { %v6847_v42 = vsub.f32 %v26503_v44, %v22043_v2 }
 0x3e2   :  { %v7006_v45 = vadd.f32 %v7005_v40, %v7004_v12  ;;  %v6849_v12 = vsub.f32 %v26504_v31, %v22043_v2  ;;  %v7011_v40 = vsel %vm6670_vm3, %v6909_v14, 0.0  ;;  %v7013_v55 = vsel %vm6670_vm3, %v6910_v32, 0.0 }
 0x3e3   :  { %v6911_v30 = vmul.f32 %v6847_v42, %v6847_v42  ;;  %v6852_v42 = vsub.f32 %v21928_v20, %v22043_v2  ;;  %v7017_v14 = vsel %vm6670_vm3, %v6912_v57, 0.0 }
 0x3e4   :  { %v7008_v43 = vadd.f32 %v7007_v34, %v7006_v45  ;;  %v26505_v34 = vld [vmem:[#allocation68_spill] sm:$0xff]  ;;  %v6913_v51 = vmul.f32 %v6849_v12, %v6849_v12  ;;  %v6854_v12 = vsub.f32 %v21944_v62, %v22043_v2 }
 0x3e5   :  { %v6851_v1 = vsub.f32 %v26505_v34, %v22043_v2 }
 0x3e6   :  { %v7010_v33 = vadd.f32 %v7009_v8, %v7008_v43  ;;  %v7015_v43 = vsel %vm6670_vm3, %v6911_v30, 0.0  ;;  %v6914_v8 = vmul.f32 %v6850_v5, %v6850_v5 }
 0x3e7   :  { %v6915_v17 = vmul.f32 %v6851_v1, %v6851_v1 }
 0x3e8   :  { %v7012_v44 = vadd.f32 %v7011_v40, %v7010_v33  ;;  %v26506_v40 = vld [vmem:[#allocation36_spill] sm:$0xff]  ;;  %v7021_v30 = vsel %vm6670_vm3, %v6914_v8, 0.0 }
 0x3e9   :  { %v6853_v36 = vsub.f32 %v26506_v40, %v22043_v2  ;;  %v7023_v57 = vsel %vm6670_vm3, %v6915_v17, 0.0  ;;  %v6918_v40 = vmul.f32 %v6854_v12, %v6854_v12 }
 0x3ea   :  { %v7014_v45 = vadd.f32 %v7013_v55, %v7012_v44  ;;  %v7019_v44 = vsel %vm6670_vm3, %v6913_v51, 0.0  ;;  %v6916_v55 = vmul.f32 %v6852_v42, %v6852_v42 }
 0x3eb   :  { %v6917_v20 = vmul.f32 %v6853_v36, %v6853_v36  ;;  %v6858_v36 = vsub.f32 %v21976_v52, %v22043_v2  ;;  %v7029_v17 = vsel %vm6670_vm3, %v6918_v40, 0.0 }
 0x3ec   :  { %v7016_v50 = vadd.f32 %v7015_v43, %v7014_v45  ;;  %v26507_v43 = vld [vmem:[#allocation71_spill] sm:$0xff]  ;;  %v7025_v51 = vsel %vm6670_vm3, %v6916_v55, 0.0 }
 0x3ed   :  { %v6855_v5 = vsub.f32 %v26507_v43, %v22043_v2  ;;  %v7027_v8 = vsel %vm6670_vm3, %v6917_v20, 0.0 }
 0x3ee   :  { %v7018_v33 = vadd.f32 %v7017_v14, %v7016_v50  ;;  %v26508_v14 = vld [vmem:[#allocation96_spill] sm:$0xff] }
 0x3ef   :  { %v6856_v1 = vsub.f32 %v26508_v14, %v22043_v2  ;;  %v6919_v62 = vmul.f32 %v6855_v5, %v6855_v5  ;;  %v6860_v5 = vsub.f32 %v21990_v63, %v22043_v2 }
 0x3f0   :  { %v7020_v32 = vadd.f32 %v7019_v44, %v7018_v33  ;;  %v26509_v44 = vld [vmem:[#allocation37_spill] sm:$0xff] }
 0x3f1   :  { %v6857_v42 = vsub.f32 %v26509_v44, %v22043_v2  ;;  %v7031_v55 = vsel %vm6670_vm3, %v6919_v62, 0.0 }
 0x3f2   :  { %v7022_v45 = vadd.f32 %v7021_v30, %v7020_v32  ;;  %v6920_v30 = vmul.f32 %v6856_v1, %v6856_v1  ;;  %v6861_v1 = vsub.f32 %v21988_v38, %v22043_v2 }
 0x3f3   :  { %v6921_v14 = vmul.f32 %v6857_v42, %v6857_v42  ;;  %v6862_v42 = vsub.f32 %v22003_v26, %v22043_v2 }
 0x3f4   :  { %v7024_v50 = vadd.f32 %v7023_v57, %v7022_v45  ;;  %v26510_v57 = vld [vmem:[#allocation7_spill] sm:$0xff]  ;;  %v7033_v20 = vsel %vm6670_vm3, %v6920_v30, 0.0 }
 0x3f5   :  { %v6859_v12 = vsub.f32 %v26510_v57, %v22043_v2  ;;  %v7035_v40 = vsel %vm6670_vm3, %v6921_v14, 0.0 }
 0x3f6   :  { %v7026_v33 = vadd.f32 %v7025_v51, %v7024_v50  ;;  %v6922_v51 = vmul.f32 %v6858_v36, %v6858_v36  ;;  %v6863_v36 = vsub.f32 %v21999_v21, %v22043_v2 }
 0x3f8   :  { %v7028_v32 = vadd.f32 %v7027_v8, %v7026_v33  ;;  %v6923_v8 = vmul.f32 %v6859_v12, %v6859_v12  ;;  %v7037_v62 = vsel %vm6670_vm3, %v6922_v51, 0.0  ;;  %v6864_v12 = vsub.f32 %v22015_v25, %v22043_v2 }
 0x3fa   :  { %v7030_v45 = vadd.f32 %v7029_v17, %v7028_v32  ;;  %v6924_v17 = vmul.f32 %v6860_v5, %v6860_v5  ;;  %v7039_v30 = vsel %vm6670_vm3, %v6923_v8, 0.0  ;;  %v6865_v5 = vsub.f32 %v22013_v16, %v22043_v2 }
 0x3fc   :  { %v7032_v50 = vadd.f32 %v7031_v55, %v7030_v45  ;;  %v6925_v55 = vmul.f32 %v6861_v1, %v6861_v1  ;;  %v7041_v14 = vsel %vm6670_vm3, %v6924_v17, 0.0  ;;  %v6866_v1 = vsub.f32 %v22023_v19, %v22043_v2 }
 0x3fe   :  { %v7034_v33 = vadd.f32 %v7033_v20, %v7032_v50  ;;  %v6926_v20 = vmul.f32 %v6862_v42, %v6862_v42  ;;  %v7043_v51 = vsel %vm6670_vm3, %v6925_v55, 0.0  ;;  %v6867_v42 = vsub.f32 %v22031_v35, %v22043_v2 }
 0x400   :  { %v7036_v32 = vadd.f32 %v7035_v40, %v7034_v33  ;;  %v6927_v40 = vmul.f32 %v6863_v36, %v6863_v36  ;;  %v7045_v8 = vsel %vm6670_vm3, %v6926_v20, 0.0  ;;  %v6868_v36 = vsub.f32 %v22033_v47, %v22043_v2 }
 0x402   :  { %v7038_v45 = vadd.f32 %v7037_v62, %v7036_v32  ;;  %v6928_v62 = vmul.f32 %v6864_v12, %v6864_v12  ;;  %v7047_v17 = vsel %vm6670_vm3, %v6927_v40, 0.0  ;;  %v6869_v12 = vsub.f32 %v22039_v22, %v22043_v2 }
 0x404   :  { %v7040_v50 = vadd.f32 %v7039_v30, %v7038_v45  ;;  %v6929_v30 = vmul.f32 %v6865_v5, %v6865_v5  ;;  %v7049_v55 = vsel %vm6670_vm3, %v6928_v62, 0.0  ;;  %v6933_v40 = vmul.f32 %v6869_v12, %v6869_v12 }
 0x406   :  { %v7042_v33 = vadd.f32 %v7041_v14, %v7040_v50  ;;  %v6930_v14 = vmul.f32 %v6866_v1, %v6866_v1  ;;  %v7051_v20 = vsel %vm6670_vm3, %v6929_v30, 0.0  ;;  %v7059_v62 = vsel %vm6670_vm3, %v6933_v40, 0.0 }
 0x408   :  { %v7044_v32 = vadd.f32 %v7043_v51, %v7042_v33  ;;  %v6931_v51 = vmul.f32 %v6867_v42, %v6867_v42  ;;  %v7053_v5 = vsel %vm6670_vm3, %v6930_v14, 0.0  ;;  %v7076_v14 = vlaneseq }
 0x40a   :  { %v7046_v45 = vadd.f32 %v7045_v8, %v7044_v32  ;;  %v6932_v8 = vmul.f32 %v6868_v36, %v6868_v36  ;;  %v7077_v12 = vshrl.u32 %v7076_v14, 7 }
 0x40c   :  { %v7048_v50 = vadd.f32 %v7047_v17, %v7046_v45  ;;  %v7055_v45 = vsel %vm6670_vm3, %v6931_v51, 0.0  ;;  %v7057_v1 = vsel %vm6670_vm3, %v6932_v8, 0.0  ;;  %v22253_v51 = vsub.s32 0, %v7077_v12  ;;  %v26517_v12 = vld [vmem:[#allocation59_spill] sm:$0xff] }
 0x40e   :  { %v7050_v33 = vadd.f32 %v7049_v55, %v7048_v50  ;;  %26511 = vst [vmem:[#allocation42_spill] sm:$0xff] %v22253_v51 }
 0x410   :  { %v7052_v32 = vadd.f32 %v7051_v20, %v7050_v33 }
 0x412   :  { %v7054_v35 = vadd.f32 %v7053_v5, %v7052_v32 }
 0x414   :  { %v7056_v17 = vadd.f32 %v7055_v45, %v7054_v35  ;;  %v7068_v35 = vld [vmem:[%s25803_s3] sm:$0x1] }
 0x416   :  { %v7058_v19 = vadd.f32 %v7057_v1, %v7056_v17 }
 0x418   :  { %v7060_v50 = vadd.f32 %v7059_v62, %v7058_v19  ;;  %v7072_v19 = vld [vmem:[%s25804_s4] sm:$0x1] }
 0x41a   :  { %v7061_v55 = vrot.slane %v7060_v50, 4 }
 0x41c   :  { %v7062_v22 = vadd.f32 %v7061_v55, %v7060_v50  ;;  %v26512_v55 = vld [vmem:[#allocation54_spill] sm:$0xff] }
 0x41e   :  { %v7063_v42 = vrot.slane %v7062_v22, 2 }
 0x420   :  { %v7064_v16 = vadd.f32 %v7063_v42, %v7062_v22 }
 0x422   :  { %v7065_v30 = vrot.slane %v7064_v16, 1 }
 0x424   :  { %v7066_v33 = vadd.f32 %v7065_v30, %v7064_v16 }
 0x426   :  { %v7067_v36 = vmul.f32 0.001953125, %v7066_v33 }
 0x428   :  { %v7069_v20 = vadd.f32 1e-05, %v7067_v36  ;;  %v26516_v36 = vld [vmem:[#allocation31_spill] sm:$0xff] }
 0x42a   :  { %18563 = vrsqrt.f32 %v7069_v20 }
 0x437   :  { %v18564_v32 = vpop.eup %18563 }
 0x438   :  { %v7071_v8 = vmul.f32 %v18564_v32, %v7068_v35 }
 0x43a   :  { %v7073_v22 = vmul.f32 %v7071_v8, %v22043_v2  ;;  %v22260_v16 = vrot.slane %v7071_v8, %v22253_v51  ;;  %v26518_v8 = vld [vmem:[#allocation81_spill] sm:$0xff] }
 0x43c   :  { %v7074_v5 = vsub.f32 %v7072_v19, %v7073_v22  ;;  %v7143_v40 = vmul.f32 %v22260_v16, %v22033_v47  ;;  %v22266_v45 = vmul.f32 %v22260_v16, %v21523_v6  ;;  %v22270_v17 = vmul.f32 %v22260_v16, %v21519_v58  ;;  %v26519_v22 = vld [vmem:[#allocation61_spill] sm:$0xff] }
 0x43d   :  { %v22274_v1 = vmul.f32 %v22260_v16, %v21539_v28  ;;  %v22278_v2 = vmul.f32 %v22260_v16, %v21537_v7  ;;  %v22282_v62 = vmul.f32 %v22260_v16, %v21555_v61  ;;  %v22286_v6 = vmul.f32 %v22260_v16, %v21551_v53 }
 0x43e   :  { %v22289_v47 = vrot.slane %v7074_v5, %v22253_v51  ;;  %v22293_v58 = vmul.f32 %v22260_v16, %v21571_v13  ;;  %v22297_v28 = vmul.f32 %v22260_v16, %v21569_v15  ;;  %v22301_v7 = vmul.f32 %v22260_v16, %v21587_v56  ;;  %v26530_v51 = vld [vmem:[#allocation36_spill] sm:$0xff] }
 0x43f   :  { %v22305_v61 = vmul.f32 %v22260_v16, %v21583_v10  ;;  %v22309_v53 = vmul.f32 %v22260_v16, %v21605_v9  ;;  %v22313_v13 = vmul.f32 %v22260_v16, %v21603_v0  ;;  %v22317_v15 = vmul.f32 %v22260_v16, %v21624_v60 }
 0x440   :  { %v7213_v50 = vadd.f32 %v22289_v47, %v7143_v40  ;;  %v22322_v56 = vmul.f32 %v22260_v16, %v21620_v39  ;;  %v22326_v10 = vmul.f32 %v22260_v16, %v21642_v18  ;;  %v22330_v9 = vmul.f32 %v22260_v16, %v21640_v54  ;;  %v26513_v54 = vld [vmem:[#allocation55_spill] sm:$0xff]  ;;  %v26520_v40 = vld [vmem:[#allocation34_spill] sm:$0xff] }
 0x441   :  { %v22334_v0 = vmul.f32 %v22260_v16, %v21660_v27  ;;  %v22338_v60 = vmul.f32 %v22260_v16, %v21656_v48  ;;  %v22342_v39 = vmul.f32 %v22260_v16, %v21678_v11  ;;  %v22346_v18 = vmul.f32 %v22260_v16, %v26512_v55  ;;  %v26514_v27 = vld [vmem:[#allocation56_spill] sm:$0xff]  ;;  %v26515_v48 = vld [vmem:[#allocation57_spill] sm:$0xff]  ;;  %v26521_v55 = vld [vmem:[#allocation63_spill] sm:$0xff] }
 0x442   :  { %7387 = vst.msk [vmem:[#allocation3 + $0x331] sm:$0xff] %vm6670_vm3, %v7213_v50  ;;  %v22351_v42 = vmul.f32 %v22260_v16, %v26513_v54  ;;  %v22355_v30 = vmul.f32 %v22260_v16, %v26514_v27  ;;  %v22359_v33 = vmul.f32 %v22260_v16, %v26515_v48  ;;  %v22363_v11 = vmul.f32 %v22260_v16, %v26493_v3  ;;  %v26522_v48 = vld [vmem:[#allocation67_spill] sm:$0xff] }
 0x443   :  { %v22367_v20 = vmul.f32 %v22260_v16, %v26516_v36  ;;  %v22371_v14 = vmul.f32 %v22260_v16, %v26495_v23  ;;  %v22375_v35 = vmul.f32 %v22260_v16, %v26517_v12  ;;  %v22379_v32 = vmul.f32 %v22260_v16, %v26496_v29  ;;  %v26523_v36 = vld [vmem:[#allocation35_spill] sm:$0xff] }
 0x444   :  { %v22383_v3 = vmul.f32 %v22260_v16, %v26518_v8  ;;  %v22387_v19 = vmul.f32 %v22260_v16, %v26497_v46  ;;  %v22391_v23 = vmul.f32 %v22260_v16, %v26519_v22  ;;  %v22395_v5 = vmul.f32 %v22260_v16, %v26498_v49  ;;  %v26524_v8 = vld [vmem:[#allocation65_spill] sm:$0xff]  ;;  %v26525_v22 = vld [vmem:[#allocation38_spill] sm:$0xff] }
 0x445   :  { %v22399_v29 = vmul.f32 %v22260_v16, %v26520_v40  ;;  %v22403_v50 = vmul.f32 %v22260_v16, %v26499_v37  ;;  %v22407_v46 = vmul.f32 %v22260_v16, %v26521_v55  ;;  %v22411_v54 = vmul.f32 %v22260_v16, %v26500_v59  ;;  %v26527_v55 = vld [vmem:[#allocation66_spill] sm:$0xff] }
 0x446   :  { %v22415_v49 = vmul.f32 %v22260_v16, %v21840_v24  ;;  %v22419_v27 = vmul.f32 %v22260_v16, %v26501_v4  ;;  %v22423_v37 = vmul.f32 %v22260_v16, %v26522_v48  ;;  %v22427_v12 = vmul.f32 %v22260_v16, %v26523_v36  ;;  %v26529_v36 = vld [vmem:[#allocation39_spill] sm:$0xff] }
 0x447   :  { %v22431_v59 = vmul.f32 %v22260_v16, %v21876_v41  ;;  %v22435_v24 = vmul.f32 %v22260_v16, %v26524_v8  ;;  %v22439_v4 = vmul.f32 %v22260_v16, %v26525_v22  ;;  %v22443_v40 = vmul.f32 %v22260_v16, %v26504_v31 }
 0x448   :  { %v22447_v48 = vmul.f32 %v22260_v16, %v26527_v55  ;;  %v22451_v41 = vmul.f32 %v22260_v16, %v26505_v34  ;;  %v22455_v8 = vmul.f32 %v22260_v16, %v26529_v36  ;;  %v22459_v22 = vmul.f32 %v22260_v16, %v26530_v51 }
 0x449   :  { %26526 = vst [vmem:[#allocation74_spill] sm:$0xff] %v22439_v4  ;;  %v26531_v4 = vld [vmem:[#allocation69_spill] sm:$0xff]  ;;  %v22467_v55 = vmul.f32 %v22260_v16, %v26507_v43  ;;  %v22475_v36 = vmul.f32 %v22260_v16, %v26509_v44  ;;  %v22479_v51 = vmul.f32 %v22260_v16, %v21976_v52  ;;  %v22487_v43 = vmul.f32 %v22260_v16, %v21990_v63 }
 0x44a   :  { %26528 = vst [vmem:[#allocation73_spill] sm:$0xff] %v22447_v48  ;;  %v22463_v31 = vmul.f32 %v22260_v16, %v26531_v4  ;;  %v26532_v48 = vld [vmem:[#allocation96_spill] sm:$0xff]  ;;  %v22483_v4 = vmul.f32 %v22260_v16, %v26510_v57  ;;  %v22495_v44 = vmul.f32 %v22260_v16, %v22003_v26  ;;  %v22499_v52 = vmul.f32 %v22260_v16, %v21999_v21 }
 0x44b   :  { %v22471_v34 = vmul.f32 %v22260_v16, %v26532_v48  ;;  %26534 = vst [vmem:[#allocation43_spill] sm:$0xff] %v22487_v43  ;;  %v22491_v48 = vmul.f32 %v22260_v16, %v21988_v38  ;;  %v22503_v57 = vmul.f32 %v22260_v16, %v22015_v25  ;;  %v26539_v43 = vld [vmem:[#allocation70_spill] sm:$0xff]  ;;  %v7151_v25 = vadd.f32 %v22289_v47, %v22266_v45 }
 0x44c   :  { %26533 = vst [vmem:[#allocation8_spill] sm:$0xff] %v22483_v4  ;;  %26536 = vst [vmem:[#allocation9_spill] sm:$0xff] %v22495_v44  ;;  %v26538_v4 = vld [vmem:[#allocation72_spill] sm:$0xff]  ;;  %v22511_v38 = vmul.f32 %v22260_v16, %v26539_v43  ;;  %v26542_v44 = vld [vmem:[#allocation99_spill] sm:$0xff]  ;;  %v7154_v43 = vadd.f32 %v22289_v47, %v22278_v2  ;;  %v7158_v45 = vadd.f32 %v22289_v47, %v22297_v28 }
 0x44d   :  { %26535 = vst [vmem:[#allocation10_spill] sm:$0xff] %v22491_v48  ;;  %26537 = vst [vmem:[#allocation41_spill] sm:$0xff] %v22503_v57  ;;  %v22507_v63 = vmul.f32 %v22260_v16, %v26538_v4  ;;  %v26540_v48 = vld [vmem:[#allocation40_spill] sm:$0xff]  ;;  %v22519_v21 = vmul.f32 %v22260_v16, %v26542_v44  ;;  %v7152_v57 = vadd.f32 %v22289_v47, %v22270_v17 }
 0x44e   :  { %v22515_v26 = vmul.f32 %v22260_v16, %v26540_v48  ;;  %v7153_v4 = vadd.f32 %v22289_v47, %v22274_v1  ;;  %v7155_v48 = vadd.f32 %v22289_v47, %v22282_v62  ;;  %v7157_v16 = vadd.f32 %v22289_v47, %v22293_v58  ;;  %7325 = vst.msk [vmem:[#allocation3 + $0x19] sm:$0xff] %vm6670_vm3, %v7151_v25 }
 0x44f   :  { %v7159_v17 = vadd.f32 %v22289_v47, %v22301_v7  ;;  %v7160_v1 = vadd.f32 %v22289_v47, %v22305_v61  ;;  %v7161_v2 = vadd.f32 %v22289_v47, %v22309_v53  ;;  %v7162_v62 = vadd.f32 %v22289_v47, %v22313_v13  ;;  %7326 = vst.msk [vmem:[#allocation3 + $0x21] sm:$0xff] %vm6670_vm3, %v7152_v57 }
 0x450   :  { %26541 = vst [vmem:[#allocation46_spill] sm:$0xff] %v22515_v26  ;;  %v7156_v26 = vadd.f32 %v22289_v47, %v22286_v6  ;;  %v7163_v6 = vadd.f32 %v22289_v47, %v22317_v15  ;;  %7327 = vst.msk [vmem:[#allocation3 + $0x31] sm:$0xff] %vm6670_vm3, %v7153_v4  ;;  %v7164_v58 = vadd.f32 %v22289_v47, %v22322_v56 }
 0x451   :  { %7328 = vst.msk [vmem:[#allocation3 + $0x39] sm:$0xff] %vm6670_vm3, %v7154_v43  ;;  %7329 = vst.msk [vmem:[#allocation3 + $0x49] sm:$0xff] %vm6670_vm3, %v7155_v48  ;;  %v7165_v28 = vadd.f32 %v22289_v47, %v22326_v10  ;;  %v7166_v7 = vadd.f32 %v22289_v47, %v22330_v9  ;;  %v7167_v61 = vadd.f32 %v22289_v47, %v22334_v0  ;;  %v15236_v10 = vld [vmem:[%s25805_s5 + $0x18] sm:$0xff]  ;;  %v26544_v25 = vld [vmem:[#allocation73_spill] sm:$0xff] }
 0x452   :  { %7330 = vst.msk [vmem:[#allocation3 + $0x51] sm:$0xff] %vm6670_vm3, %v7156_v26  ;;  %7331 = vst.msk [vmem:[#allocation3 + $0x61] sm:$0xff] %vm6670_vm3, %v7157_v16  ;;  %v7168_v53 = vadd.f32 %v22289_v47, %v22338_v60  ;;  %v7169_v13 = vadd.f32 %v22289_v47, %v22342_v39  ;;  %v7170_v15 = vadd.f32 %v22289_v47, %v22346_v18  ;;  %17973 = vmatprep.subr.mxu0 %v15236_v10  ;;  %v22594_v18 = vld [vmem:[%s25805_s5 + $0x20] sm:$0xff] }
 0x453   :  { %7332 = vst.msk [vmem:[#allocation3 + $0x69] sm:$0xff] %vm6670_vm3, %v7158_v45  ;;  %7333 = vst.msk [vmem:[#allocation3 + $0x79] sm:$0xff] %vm6670_vm3, %v7159_v17  ;;  %v7171_v56 = vadd.f32 %v22289_v47, %v22351_v42  ;;  %v7172_v9 = vadd.f32 %v22289_v47, %v22355_v30  ;;  %v7173_v0 = vadd.f32 %v22289_v47, %v22359_v33  ;;  %17974 = vmatpush3.msra.mxu0 %v15236_v10  ;;  %v26545_v16 = vld [vmem:[#allocation8_spill] sm:$0xff]  ;;  %v26546_v45 = vld [vmem:[#allocation43_spill] sm:$0xff] }
 0x454   :  { %7334 = vst.msk [vmem:[#allocation3 + $0x81] sm:$0xff] %vm6670_vm3, %v7160_v1  ;;  %7335 = vst.msk [vmem:[#allocation3 + $0x91] sm:$0xff] %vm6670_vm3, %v7161_v2  ;;  %v7174_v60 = vadd.f32 %v22289_v47, %v22363_v11  ;;  %v7175_v39 = vadd.f32 %v22289_v47, %v22367_v20  ;;  %v7176_v42 = vadd.f32 %v22289_v47, %v22371_v14  ;;  %18071 = vmatprep.subr.mxu1 %v22594_v18  ;;  %v26547_v17 = vld [vmem:[#allocation10_spill] sm:$0xff]  ;;  %v26548_v1 = vld [vmem:[#allocation9_spill] sm:$0xff] }
 0x455   :  { %7336 = vst.msk [vmem:[#allocation3 + $0x99] sm:$0xff] %vm6670_vm3, %v7162_v62  ;;  %7337 = vst.msk [vmem:[#allocation3 + $0xa9] sm:$0xff] %vm6670_vm3, %v7163_v6  ;;  %v7177_v30 = vadd.f32 %v22289_v47, %v22375_v35  ;;  %v7178_v33 = vadd.f32 %v22289_v47, %v22379_v32  ;;  %v7179_v11 = vadd.f32 %v22289_v47, %v22383_v3  ;;  %v22633_v44 = vld [vmem:[#allocation3 + $0x18] sm:$0xff] }
 0x456   :  { %7338 = vst.msk [vmem:[#allocation3 + $0xb1] sm:$0xff] %vm6670_vm3, %v7164_v58  ;;  %7339 = vst.msk [vmem:[#allocation3 + $0xc1] sm:$0xff] %vm6670_vm3, %v7165_v28  ;;  %v7180_v20 = vadd.f32 %v22289_v47, %v22387_v19  ;;  %v7181_v14 = vadd.f32 %v22289_v47, %v22391_v23  ;;  %v7182_v35 = vadd.f32 %v22289_v47, %v22395_v5  ;;  %v22648_v57 = vld [vmem:[#allocation3 + $0x20] sm:$0xff]  ;;  %17782 = vmatprep.mubr.msk.f32.mxu0 %vm6670_vm3, %v22633_v44  ;;  %v26549_v58 = vld [vmem:[#allocation41_spill] sm:$0xff] }
 0x457   :  { %7340 = vst.msk [vmem:[#allocation3 + $0xc9] sm:$0xff] %vm6670_vm3, %v7166_v7  ;;  %7341 = vst.msk [vmem:[#allocation3 + $0xd9] sm:$0xff] %vm6670_vm3, %v7167_v61  ;;  %v7183_v32 = vadd.f32 %v22289_v47, %v22399_v29  ;;  %v7184_v3 = vadd.f32 %v22289_v47, %v22403_v50  ;;  %v7185_v19 = vadd.f32 %v22289_v47, %v22407_v46  ;;  %v7456_v29 = vld [vmem:[#allocation3 + $0x19] sm:$0xff]  ;;  %17783 = vmatmul.mubr.msk.f32.gmra.mxu0 %vm6670_vm3, %v22648_v57  ;;  %v22704_v62 = vld [vmem:[#allocation3 + $0x30] sm:$0xff] }
 0x458   :  { %7342 = vst.msk [vmem:[#allocation3 + $0xe1] sm:$0xff] %vm6670_vm3, %v7168_v53  ;;  %7343 = vst.msk [vmem:[#allocation3 + $0xf1] sm:$0xff] %vm6670_vm3, %v7169_v13  ;;  %v7186_v23 = vadd.f32 %v22289_v47, %v22411_v54  ;;  %v7187_v5 = vadd.f32 %v22289_v47, %v22415_v49  ;;  %v7188_v50 = vadd.f32 %v22289_v47, %v22419_v27  ;;  %17684 = vmatprep.mubr.msk.f32.mxu1 %vm6670_vm3, %v7456_v29  ;;  %v7457_v27 = vld [vmem:[#allocation3 + $0x21] sm:$0xff]  ;;  %v26550_v53 = vld [vmem:[#allocation46_spill] sm:$0xff] }
 0x459   :  { %7344 = vst.msk [vmem:[#allocation3 + $0xf9] sm:$0xff] %vm6670_vm3, %v7170_v15  ;;  %7345 = vst.msk [vmem:[#allocation3 + $0x109] sm:$0xff] %vm6670_vm3, %v7171_v56  ;;  %v7189_v46 = vadd.f32 %v22289_v47, %v22423_v37  ;;  %v7190_v54 = vadd.f32 %v22289_v47, %v22427_v12  ;;  %v7191_v49 = vadd.f32 %v22289_v47, %v22431_v59  ;;  %v26543_v12 = vld [vmem:[#allocation74_spill] sm:$0xff]  ;;  %17685 = vmatmul.mubr.msk.f32.gmra.mxu1 %vm6670_vm3, %v7457_v27  ;;  %v7460_v15 = vld [vmem:[#allocation3 + $0x49] sm:$0xff] }
 0x45a   :  { %7346 = vst.msk [vmem:[#allocation3 + $0x111] sm:$0xff] %vm6670_vm3, %v7172_v9  ;;  %7347 = vst.msk [vmem:[#allocation3 + $0x121] sm:$0xff] %vm6670_vm3, %v7173_v0  ;;  %v7192_v37 = vadd.f32 %v22289_v47, %v22435_v24  ;;  %v7193_v26 = vadd.f32 %v22289_v47, %v26543_v12  ;;  %v7194_v59 = vadd.f32 %v22289_v47, %v22443_v40  ;;  %17785 = vmatprep.mubr.msk.f32.mxu0 %vm6670_vm3, %v22704_v62  ;;  %v22745_v56 = vld [vmem:[#allocation3 + $0x50] sm:$0xff]  ;;  %v7462_v10 = vld [vmem:[#allocation3 + $0x61] sm:$0xff] }
 0x45b   :  { %7348 = vst.msk [vmem:[#allocation3 + $0x129] sm:$0xff] %vm6670_vm3, %v7174_v60  ;;  %7349 = vst.msk [vmem:[#allocation3 + $0x139] sm:$0xff] %vm6670_vm3, %v7175_v39  ;;  %v7195_v4 = vadd.f32 %v22289_v47, %v26544_v25  ;;  %v7196_v24 = vadd.f32 %v22289_v47, %v22451_v41  ;;  %v7197_v40 = vadd.f32 %v22289_v47, %v22455_v8  ;;  %v22750_v9 = vld [vmem:[#allocation3 + $0x60] sm:$0xff]  ;;  %v7463_v0 = vld [vmem:[#allocation3 + $0x69] sm:$0xff] }
 0x45c   :  { %7350 = vst.msk [vmem:[#allocation3 + $0x141] sm:$0xff] %vm6670_vm3, %v7176_v42  ;;  %7351 = vst.msk [vmem:[#allocation3 + $0x151] sm:$0xff] %vm6670_vm3, %v7177_v30  ;;  %v7198_v43 = vadd.f32 %v22289_v47, %v22459_v22  ;;  %v7199_v48 = vadd.f32 %v22289_v47, %v22463_v31  ;;  %v7200_v41 = vadd.f32 %v22289_v47, %v22467_v55  ;;  %v7458_v55 = vld [vmem:[#allocation3 + $0x31] sm:$0xff]  ;;  %v22755_v60 = vld [vmem:[#allocation3 + $0x68] sm:$0xff] }
 0x45d   :  { %7352 = vst.msk [vmem:[#allocation3 + $0x159] sm:$0xff] %vm6670_vm3, %v7178_v33  ;;  %7353 = vst.msk [vmem:[#allocation3 + $0x169] sm:$0xff] %vm6670_vm3, %v7179_v11  ;;  %v7201_v8 = vadd.f32 %v22289_v47, %v22471_v34  ;;  %v7202_v22 = vadd.f32 %v22289_v47, %v22475_v36  ;;  %v7203_v31 = vadd.f32 %v22289_v47, %v22479_v51  ;;  %17687 = vmatprep.mubr.msk.f32.mxu1 %vm6670_vm3, %v7458_v55  ;;  %v7464_v39 = vld [vmem:[#allocation3 + $0x79] sm:$0xff]  ;;  %v7465_v30 = vld [vmem:[#allocation3 + $0x81] sm:$0xff] }
 0x45e   :  { %7354 = vst.msk [vmem:[#allocation3 + $0x171] sm:$0xff] %vm6670_vm3, %v7180_v20  ;;  %7355 = vst.msk [vmem:[#allocation3 + $0x181] sm:$0xff] %vm6670_vm3, %v7181_v14  ;;  %v7204_v34 = vadd.f32 %v22289_v47, %v26545_v16  ;;  %v7205_v36 = vadd.f32 %v22289_v47, %v26546_v45  ;;  %v7206_v51 = vadd.f32 %v22289_v47, %v26547_v17  ;;  %v22760_v42 = vld [vmem:[#allocation3 + $0x78] sm:$0xff]  ;;  %v22765_v33 = vld [vmem:[#allocation3 + $0x80] sm:$0xff] }
 0x45f   :  { %7356 = vst.msk [vmem:[#allocation3 + $0x189] sm:$0xff] %vm6670_vm3, %v7182_v35  ;;  %7357 = vst.msk [vmem:[#allocation3 + $0x1c9] sm:$0xff] %vm6670_vm3, %v7183_v32  ;;  %v7207_v2 = vadd.f32 %v22289_v47, %v26548_v1  ;;  %v7208_v6 = vadd.f32 %v22289_v47, %v22499_v52  ;;  %v7209_v28 = vadd.f32 %v22289_v47, %v26549_v58  ;;  %v7459_v52 = vld [vmem:[#allocation3 + $0x39] sm:$0xff]  ;;  %v7466_v11 = vld [vmem:[#allocation3 + $0x91] sm:$0xff] }
 0x460   :  { %7358 = vst.msk [vmem:[#allocation3 + $0x1d1] sm:$0xff] %vm6670_vm3, %v7184_v3  ;;  %7359 = vst.msk [vmem:[#allocation3 + $0x1e1] sm:$0xff] %vm6670_vm3, %v7185_v19  ;;  %v7210_v7 = vadd.f32 %v22289_v47, %v22507_v63  ;;  %v7211_v61 = vadd.f32 %v22289_v47, %v22511_v38  ;;  %v7212_v13 = vadd.f32 %v22289_v47, %v26550_v53  ;;  %17688 = vmatmul.mubr.msk.f32.gmra.mxu1 %vm6670_vm3, %v7459_v52  ;;  %v22729_v38 = vld [vmem:[#allocation3 + $0x38] sm:$0xff]  ;;  %v22770_v20 = vld [vmem:[#allocation3 + $0x90] sm:$0xff] }
 0x461   :  { %7360 = vst.msk [vmem:[#allocation3 + $0x1e9] sm:$0xff] %vm6670_vm3, %v7186_v23  ;;  %7361 = vst.msk [vmem:[#allocation3 + $0x1f9] sm:$0xff] %vm6670_vm3, %v7187_v5  ;;  %v7214_v63 = vadd.f32 %v22289_v47, %v22519_v21  ;;  %17786 = vmatmul.mubr.msk.f32.gmra.mxu0 %vm6670_vm3, %v22729_v38  ;;  %17690 = vmatprep.mubr.msk.f32.mxu1 %vm6670_vm3, %v7460_v15  ;;  %v22738_v47 = vld [vmem:[#allocation3 + $0x48] sm:$0xff]  ;;  %v7461_v21 = vld [vmem:[#allocation3 + $0x51] sm:$0xff] }
 0x462   :  { %7362 = vst.msk [vmem:[#allocation3 + $0x201] sm:$0xff] %vm6670_vm3, %v7188_v50  ;;  %7363 = vst.msk [vmem:[#allocation3 + $0x211] sm:$0xff] %vm6670_vm3, %v7189_v46  ;;  %17788 = vmatprep.mubr.msk.f32.mxu0 %vm6670_vm3, %v22738_v47  ;;  %v7467_v14 = vld [vmem:[#allocation3 + $0x99] sm:$0xff]  ;;  %v7468_v32 = vld [vmem:[#allocation3 + $0xa9] sm:$0xff] }
 0x463   :  { %7364 = vst.msk [vmem:[#allocation3 + $0x219] sm:$0xff] %vm6670_vm3, %v7190_v54  ;;  %7365 = vst.msk [vmem:[#allocation3 + $0x229] sm:$0xff] %vm6670_vm3, %v7191_v49  ;;  %v22775_v35 = vld [vmem:[#allocation3 + $0x98] sm:$0xff]  ;;  %v22780_v3 = vld [vmem:[#allocation3 + $0xa8] sm:$0xff] }
 0x464   :  { %7366 = vst.msk [vmem:[#allocation3 + $0x231] sm:$0xff] %vm6670_vm3, %v7192_v37  ;;  %7367 = vst.msk [vmem:[#allocation3 + $0x241] sm:$0xff] %vm6670_vm3, %v7193_v26  ;;  %17691 = vmatmul.mubr.msk.f32.gmra.mxu1 %vm6670_vm3, %v7461_v21  ;;  %v7469_v19 = vld [vmem:[#allocation3 + $0xb1] sm:$0xff]  ;;  %v7470_v5 = vld [vmem:[#allocation3 + $0xc1] sm:$0xff] }
 0x465   :  { %7368 = vst.msk [vmem:[#allocation3 + $0x249] sm:$0xff] %vm6670_vm3, %v7194_v59  ;;  %7369 = vst.msk [vmem:[#allocation3 + $0x259] sm:$0xff] %vm6670_vm3, %v7195_v4  ;;  %17789 = vmatmul.mubr.msk.f32.gmra.mxu0 %vm6670_vm3, %v22745_v56  ;;  %17693 = vmatprep.mubr.msk.f32.mxu1 %vm6670_vm3, %v7462_v10  ;;  %v22785_v23 = vld [vmem:[#allocation3 + $0xb0] sm:$0xff]  ;;  %v22790_v29 = vld [vmem:[#allocation3 + $0xc0] sm:$0xff] }
 0x466   :  { %7370 = vst.msk [vmem:[#allocation3 + $0x261] sm:$0xff] %vm6670_vm3, %v7196_v24  ;;  %7371 = vst.msk [vmem:[#allocation3 + $0x271] sm:$0xff] %vm6670_vm3, %v7197_v40  ;;  %17791 = vmatprep.mubr.msk.f32.mxu0 %vm6670_vm3, %v22750_v9  ;;  %v7471_v50 = vld [vmem:[#allocation3 + $0xc9] sm:$0xff]  ;;  %v7472_v54 = vld [vmem:[#allocation3 + $0xd9] sm:$0xff] }
 0x467   :  { %7372 = vst.msk [vmem:[#allocation3 + $0x279] sm:$0xff] %vm6670_vm3, %v7198_v43  ;;  %7373 = vst.msk [vmem:[#allocation3 + $0x289] sm:$0xff] %vm6670_vm3, %v7199_v48  ;;  %v22795_v46 = vld [vmem:[#allocation3 + $0xc8] sm:$0xff]  ;;  %v22800_v49 = vld [vmem:[#allocation3 + $0xd8] sm:$0xff] }
 0x468   :  { %7374 = vst.msk [vmem:[#allocation3 + $0x291] sm:$0xff] %vm6670_vm3, %v7200_v41  ;;  %7375 = vst.msk [vmem:[#allocation3 + $0x2a1] sm:$0xff] %vm6670_vm3, %v7201_v8  ;;  %17694 = vmatmul.mubr.msk.f32.gmra.mxu1 %vm6670_vm3, %v7463_v0  ;;  %v7473_v27 = vld [vmem:[#allocation3 + $0xe1] sm:$0xff]  ;;  %v7474_v12 = vld [vmem:[#allocation3 + $0xf1] sm:$0xff] }
 0x469   :  { %7376 = vst.msk [vmem:[#allocation3 + $0x2a9] sm:$0xff] %vm6670_vm3, %v7202_v22  ;;  %7377 = vst.msk [vmem:[#allocation3 + $0x2b9] sm:$0xff] %vm6670_vm3, %v7203_v31  ;;  %17792 = vmatmul.mubr.msk.f32.gmra.mxu0 %vm6670_vm3, %v22755_v60  ;;  %17696 = vmatprep.mubr.msk.f32.mxu1 %vm6670_vm3, %v7464_v39  ;;  %v22805_v37 = vld [vmem:[#allocation3 + $0xe0] sm:$0xff]  ;;  %v22810_v26 = vld [vmem:[#allocation3 + $0xf0] sm:$0xff] }
 0x46a   :  { %7378 = vst.msk [vmem:[#allocation3 + $0x2c1] sm:$0xff] %vm6670_vm3, %v7204_v34  ;;  %7379 = vst.msk [vmem:[#allocation3 + $0x2d1] sm:$0xff] %vm6670_vm3, %v7205_v36  ;;  %17794 = vmatprep.mubr.msk.f32.mxu0 %vm6670_vm3, %v22760_v42  ;;  %v7475_v59 = vld [vmem:[#allocation3 + $0xf9] sm:$0xff]  ;;  %v7476_v4 = vld [vmem:[#allocation3 + $0x109] sm:$0xff] }
 0x46b   :  { %7380 = vst.msk [vmem:[#allocation3 + $0x2d9] sm:$0xff] %vm6670_vm3, %v7206_v51  ;;  %7381 = vst.msk [vmem:[#allocation3 + $0x2e9] sm:$0xff] %vm6670_vm3, %v7207_v2  ;;  %v22815_v25 = vld [vmem:[#allocation3 + $0xf8] sm:$0xff]  ;;  %v22820_v24 = vld [vmem:[#allocation3 + $0x108] sm:$0xff] }
 0x46c   :  { %7382 = vst.msk [vmem:[#allocation3 + $0x2f1] sm:$0xff] %vm6670_vm3, %v7208_v6  ;;  %7383 = vst.msk [vmem:[#allocation3 + $0x301] sm:$0xff] %vm6670_vm3, %v7209_v28  ;;  %17697 = vmatmul.mubr.msk.f32.gmra.mxu1 %vm6670_vm3, %v7465_v30  ;;  %v7477_v40 = vld [vmem:[#allocation3 + $0x111] sm:$0xff]  ;;  %v7478_v48 = vld [vmem:[#allocation3 + $0x121] sm:$0xff] }
 0x46d   :  { %7384 = vst.msk [vmem:[#allocation3 + $0x309] sm:$0xff] %vm6670_vm3, %v7210_v7  ;;  %7385 = vst.msk [vmem:[#allocation3 + $0x319] sm:$0xff] %vm6670_vm3, %v7211_v61  ;;  %17795 = vmatmul.mubr.msk.f32.gmra.mxu0 %vm6670_vm3, %v22765_v33  ;;  %17699 = vmatprep.mubr.msk.f32.mxu1 %vm6670_vm3, %v7466_v11  ;;  %v22825_v43 = vld [vmem:[#allocation3 + $0x110] sm:$0xff]  ;;  %v22830_v41 = vld [vmem:[#allocation3 + $0x120] sm:$0xff] }
 0x46e   :  { %7386 = vst.msk [vmem:[#allocation3 + $0x321] sm:$0xff] %vm6670_vm3, %v7212_v13  ;;  %7388 = vst.msk [vmem:[#allocation3 + $0x339] sm:$0xff] %vm6670_vm3, %v7214_v63  ;;  %17797 = vmatprep.mubr.msk.f32.mxu0 %vm6670_vm3, %v22770_v20  ;;  %v7479_v8 = vld [vmem:[#allocation3 + $0x129] sm:$0xff]  ;;  %v7480_v31 = vld [vmem:[#allocation3 + $0x139] sm:$0xff] }
 0x46f   :  { %v22835_v22 = vld [vmem:[#allocation3 + $0x128] sm:$0xff]  ;;  %v22840_v55 = vld [vmem:[#allocation3 + $0x138] sm:$0xff]  ;;  %v22845_v34 = vld [vmem:[#allocation3 + $0x140] sm:$0xff] }
 0x470   :  { %17700 = vmatmul.mubr.msk.f32.gmra.mxu1 %vm6670_vm3, %v7467_v14  ;;  %v7481_v16 = vld [vmem:[#allocation3 + $0x141] sm:$0xff]  ;;  %v7482_v45 = vld [vmem:[#allocation3 + $0x151] sm:$0xff]  ;;  %v7483_v17 = vld [vmem:[#allocation3 + $0x159] sm:$0xff] }
 0x471   :  { %17798 = vmatmul.mubr.msk.f32.gmra.mxu0 %vm6670_vm3, %v22775_v35  ;;  %17702 = vmatprep.mubr.msk.f32.mxu1 %vm6670_vm3, %v7468_v32  ;;  %v22850_v36 = vld [vmem:[#allocation3 + $0x150] sm:$0xff]  ;;  %v22855_v51 = vld [vmem:[#allocation3 + $0x158] sm:$0xff]  ;;  %v22860_v2 = vld [vmem:[#allocation3 + $0x168] sm:$0xff] }
 0x472   :  { %17800 = vmatprep.mubr.msk.f32.mxu0 %vm6670_vm3, %v22780_v3  ;;  %v7484_v1 = vld [vmem:[#allocation3 + $0x169] sm:$0xff]  ;;  %v7486_v6 = vld [vmem:[#allocation3 + $0x1b1] sm:$0xff]  ;;  %v7487_v61 = vld [vmem:[#allocation3 + $0x1b9] sm:$0xff] }
 0x473   :  { %v7485_v58 = vld [vmem:[#allocation3 + $0x171] sm:$0xff]  ;;  %v7488_v53 = vld [vmem:[#allocation3 + $0x1c9] sm:$0xff]  ;;  %v7490_v21 = vld [vmem:[#allocation3 + $0x1e1] sm:$0xff] }
 0x474   :  { %17703 = vmatmul.mubr.msk.f32.gmra.mxu1 %vm6670_vm3, %v7469_v19  ;;  %v7421_v28 = vld [vmem:[#allocation3 + $0x1b0] sm:$0xff]  ;;  %v7422_v52 = vld [vmem:[#allocation3 + $0x1b8] sm:$0xff]  ;;  %v22874_v13 = vld [vmem:[#allocation3 + $0x1c8] sm:$0xff] }
 0x475   :  { %17801 = vmatmul.mubr.msk.f32.gmra.mxu0 %vm6670_vm3, %v22785_v23  ;;  %17705 = vmatprep.mubr.msk.f32.mxu1 %vm6670_vm3, %v7470_v5  ;;  %v22865_v7 = vld [vmem:[#allocation3 + $0x170] sm:$0xff]  ;;  %v22884_v10 = vld [vmem:[#allocation3 + $0x1e0] sm:$0xff]  ;;  %v22889_v39 = vld [vmem:[#allocation3 + $0x1e8] sm:$0xff] }
 0x476   :  { %17803 = vmatprep.mubr.msk.f32.mxu0 %vm6670_vm3, %v22790_v29  ;;  %v7489_v63 = vld [vmem:[#allocation3 + $0x1d1] sm:$0xff]  ;;  %v7491_v0 = vld [vmem:[#allocation3 + $0x1e9] sm:$0xff]  ;;  %v7492_v30 = vld [vmem:[#allocation3 + $0x1f9] sm:$0xff] }
 0x477   :  { %v22879_v15 = vld [vmem:[#allocation3 + $0x1d0] sm:$0xff]  ;;  %v22894_v11 = vld [vmem:[#allocation3 + $0x1f8] sm:$0xff]  ;;  %v7493_v14 = vld [vmem:[#allocation3 + $0x201] sm:$0xff] }
 0x478   :  { %17706 = vmatmul.mubr.msk.f32.gmra.mxu1 %vm6670_vm3, %v7471_v50  ;;  %v22899_v32 = vld [vmem:[#allocation3 + $0x200] sm:$0xff]  ;;  %v7494_v19 = vld [vmem:[#allocation3 + $0x211] sm:$0xff] }
 0x479   :  { %17804 = vmatmul.mubr.msk.f32.gmra.mxu0 %vm6670_vm3, %v22795_v46  ;;  %17708 = vmatprep.mubr.msk.f32.mxu1 %vm6670_vm3, %v7472_v54  ;;  %v22904_v5 = vld [vmem:[#allocation3 + $0x210] sm:$0xff] }
 0x47a   :  { %17806 = vmatprep.mubr.msk.f32.mxu0 %vm6670_vm3, %v22800_v49 }
 0x47c   :  { %17709 = vmatmul.mubr.msk.f32.gmra.mxu1 %vm6670_vm3, %v7473_v27  ;;  %v7495_v27 = vld [vmem:[#allocation3 + $0x219] sm:$0xff] }
 0x47d   :  { %17807 = vmatmul.mubr.msk.f32.gmra.mxu0 %vm6670_vm3, %v22805_v37  ;;  %17711 = vmatprep.mubr.msk.f32.mxu1 %vm6670_vm3, %v7474_v12 }
 0x47e   :  { %17809 = vmatprep.mubr.msk.f32.mxu0 %vm6670_vm3, %v22810_v26 }
 0x480   :  { %17712 = vmatmul.mubr.msk.f32.gmra.mxu1 %vm6670_vm3, %v7475_v59  ;;  %v22911_v59 = vld [vmem:[#allocation3 + $0x218] sm:$0xff] }
 0x481   :  { %17810 = vmatmul.mubr.msk.f32.gmra.mxu0 %vm6670_vm3, %v22815_v25  ;;  %17714 = vmatprep.mubr.msk.f32.mxu1 %vm6670_vm3, %v7476_v4  ;;  %v7496_v4 = vld [vmem:[#allocation3 + $0x229] sm:$0xff] }
 0x482   :  { %17812 = vmatprep.mubr.msk.f32.mxu0 %vm6670_vm3, %v22820_v24 }
 0x484   :  { %17715 = vmatmul.mubr.msk.f32.gmra.mxu1 %vm6670_vm3, %v7477_v40  ;;  %v22916_v40 = vld [vmem:[#allocation3 + $0x228] sm:$0xff] }
 0x485   :  { %17813 = vmatmul.mubr.msk.f32.gmra.mxu0 %vm6670_vm3, %v22825_v43  ;;  %17717 = vmatprep.mubr.msk.f32.mxu1 %vm6670_vm3, %v7478_v48  ;;  %v7497_v48 = vld [vmem:[#allocation3 + $0x231] sm:$0xff] }
 0x486   :  { %17815 = vmatprep.mubr.msk.f32.mxu0 %vm6670_vm3, %v22830_v41 }
 0x488   :  { %17718 = vmatmul.mubr.msk.f32.gmra.mxu1 %vm6670_vm3, %v7479_v8  ;;  %v22921_v8 = vld [vmem:[#allocation3 + $0x230] sm:$0xff] }
 0x489   :  { %17816 = vmatmul.mubr.msk.f32.gmra.mxu0 %vm6670_vm3, %v22835_v22  ;;  %17720 = vmatprep.mubr.msk.f32.mxu1 %vm6670_vm3, %v7480_v31  ;;  %v7498_v31 = vld [vmem:[#allocation3 + $0x241] sm:$0xff] }
 0x48a   :  { %17818 = vmatprep.mubr.msk.f32.mxu0 %vm6670_vm3, %v22840_v55 }
 0x48c   :  { %17721 = vmatmul.mubr.msk.f32.gmra.mxu1 %vm6670_vm3, %v7481_v16  ;;  %v22926_v16 = vld [vmem:[#allocation3 + $0x240] sm:$0xff] }
 0x48d   :  { %17819 = vmatmul.mubr.msk.f32.gmra.mxu0 %vm6670_vm3, %v22845_v34  ;;  %17723 = vmatprep.mubr.msk.f32.mxu1 %vm6670_vm3, %v7482_v45  ;;  %v7499_v45 = vld [vmem:[#allocation3 + $0x249] sm:$0xff] }
 0x48e   :  { %17821 = vmatprep.mubr.msk.f32.mxu0 %vm6670_vm3, %v22850_v36 }
 0x490   :  { %17724 = vmatmul.mubr.msk.f32.gmra.mxu1 %vm6670_vm3, %v7483_v17  ;;  %v22931_v17 = vld [vmem:[#allocation3 + $0x248] sm:$0xff] }
 0x491   :  { %17822 = vmatmul.mubr.msk.f32.gmra.mxu0 %vm6670_vm3, %v22855_v51  ;;  %17726 = vmatprep.mubr.msk.f32.mxu1 %vm6670_vm3, %v7484_v1  ;;  %v7500_v1 = vld [vmem:[#allocation3 + $0x259] sm:$0xff] }
 0x492   :  { %17824 = vmatprep.mubr.msk.f32.mxu0 %vm6670_vm3, %v22860_v2 }
 0x494   :  { %17727 = vmatmul.mubr.msk.f32.gmra.mxu1 %vm6670_vm3, %v7485_v58  ;;  %v7501_v58 = vld [vmem:[#allocation3 + $0x261] sm:$0xff] }
 0x495   :  { %17825 = vmatmul.mubr.msk.f32.gmra.mxu0 %vm6670_vm3, %v22865_v7  ;;  %17729 = vmatprep.mubr.msk.f32.mxu1 %vm6670_vm3, %v7486_v6  ;;  %v22936_v6 = vld [vmem:[#allocation3 + $0x258] sm:$0xff] }
 0x496   :  { %17827 = vmatprep.mubr.msk.f32.mxu0 %vm6670_vm3, %v7421_v28  ;;  %v22941_v28 = vld [vmem:[#allocation3 + $0x260] sm:$0xff] }
 0x498   :  { %17730 = vmatmul.mubr.msk.f32.gmra.mxu1 %vm6670_vm3, %v7487_v61  ;;  %v7502_v61 = vld [vmem:[#allocation3 + $0x271] sm:$0xff] }
 0x499   :  { %17828 = vmatmul.mubr.msk.f32.gmra.mxu0 %vm6670_vm3, %v7422_v52  ;;  %17732 = vmatprep.mubr.msk.f32.mxu1 %vm6670_vm3, %v7488_v53  ;;  %v22946_v52 = vld [vmem:[#allocation3 + $0x270] sm:$0xff]  ;;  %v7503_v53 = vld [vmem:[#allocation3 + $0x279] sm:$0xff] }
 0x49a   :  { %17830 = vmatprep.mubr.msk.f32.mxu0 %vm6670_vm3, %v22874_v13  ;;  %v17683_v50 = vpop.f32.mrf.mxu1 }
 0x49c   :  { %17733 = vmatmul.mubr.msk.f32.gmra.mxu1 %vm6670_vm3, %v7489_v63  ;;  %v22951_v63 = vld [vmem:[#allocation3 + $0x278] sm:$0xff] }
 0x49d   :  { %17831 = vmatmul.mubr.msk.f32.gmra.mxu0 %vm6670_vm3, %v22879_v15  ;;  %17735 = vmatprep.mubr.msk.f32.mxu1 %vm6670_vm3, %v7490_v21  ;;  %v17781_v54 = vpop.f32.mrf.mxu0  ;;  %v7504_v21 = vld [vmem:[#allocation3 + $0x289] sm:$0xff] }
 0x49e   :  { %17833 = vmatprep.mubr.msk.f32.mxu0 %vm6670_vm3, %v22884_v10  ;;  %v22908_v12 = vadd.f32 %v17781_v54, %v17683_v50  ;;  %v22966_v50 = vld [vmem:[#allocation3 + $0x2a0] sm:$0xff]  ;;  %v7507_v54 = vld [vmem:[#allocation3 + $0x2a9] sm:$0xff] }
 0x4a0   :  { %17736 = vmatmul.mubr.msk.f32.gmra.mxu1 %vm6670_vm3, %v7491_v0  ;;  %26551 = vst [vmem:[#allocation76_spill] sm:$0xff] %v22908_v12  ;;  %v22956_v0 = vld [vmem:[#allocation3 + $0x288] sm:$0xff] }
 0x4a1   :  { %17834 = vmatmul.mubr.msk.f32.gmra.mxu0 %vm6670_vm3, %v22889_v39  ;;  %17738 = vmatprep.mubr.msk.f32.mxu1 %vm6670_vm3, %v7492_v30  ;;  %v7505_v30 = vld [vmem:[#allocation3 + $0x291] sm:$0xff]  ;;  %v7517_v12 = vld [vmem:[#allocation3 + $0x321] sm:$0xff] }
 0x4a2   :  { %17836 = vmatprep.mubr.msk.f32.mxu0 %vm6670_vm3, %v22894_v11 }
 0x4a4   :  { %17739 = vmatmul.mubr.msk.f32.gmra.mxu1 %vm6670_vm3, %v7493_v14  ;;  %v22961_v14 = vld [vmem:[#allocation3 + $0x290] sm:$0xff] }
 0x4a5   :  { %17837 = vmatmul.mubr.msk.f32.gmra.mxu0 %vm6670_vm3, %v22899_v32  ;;  %17741 = vmatprep.mubr.msk.f32.mxu1 %vm6670_vm3, %v7494_v19  ;;  %v7506_v19 = vld [vmem:[#allocation3 + $0x2a1] sm:$0xff] }
 0x4a6   :  { %17839 = vmatprep.mubr.msk.f32.mxu0 %vm6670_vm3, %v22904_v5 }
 0x4a8   :  { %17742 = vmatmul.mubr.msk.f32.gmra.mxu1 %vm6670_vm3, %v7495_v27  ;;  %v22971_v27 = vld [vmem:[#allocation3 + $0x2a8] sm:$0xff] }
 0x4a9   :  { %17840 = vmatmul.mubr.msk.f32.gmra.mxu0 %vm6670_vm3, %v22911_v59  ;;  %17744 = vmatprep.mubr.msk.f32.mxu1 %vm6670_vm3, %v7496_v4  ;;  %v7508_v4 = vld [vmem:[#allocation3 + $0x2b9] sm:$0xff] }
 0x4aa   :  { %17842 = vmatprep.mubr.msk.f32.mxu0 %vm6670_vm3, %v22916_v40 }
 0x4ac   :  { %17745 = vmatmul.mubr.msk.f32.gmra.mxu1 %vm6670_vm3, %v7497_v48  ;;  %v22976_v48 = vld [vmem:[#allocation3 + $0x2b8] sm:$0xff] }
 0x4ad   :  { %17843 = vmatmul.mubr.msk.f32.gmra.mxu0 %vm6670_vm3, %v22921_v8  ;;  %17747 = vmatprep.mubr.msk.f32.mxu1 %vm6670_vm3, %v7498_v31  ;;  %v7509_v31 = vld [vmem:[#allocation3 + $0x2c1] sm:$0xff] }
 0x4ae   :  { %17845 = vmatprep.mubr.msk.f32.mxu0 %vm6670_vm3, %v22926_v16 }
 0x4b0   :  { %17748 = vmatmul.mubr.msk.f32.gmra.mxu1 %vm6670_vm3, %v7499_v45  ;;  %v22981_v45 = vld [vmem:[#allocation3 + $0x2c0] sm:$0xff] }
 0x4b1   :  { %17846 = vmatmul.mubr.msk.f32.gmra.mxu0 %vm6670_vm3, %v22931_v17  ;;  %17750 = vmatprep.mubr.msk.f32.mxu1 %vm6670_vm3, %v7500_v1  ;;  %v7510_v1 = vld [vmem:[#allocation3 + $0x2d1] sm:$0xff] }
 0x4b2   :  { %17848 = vmatprep.mubr.msk.f32.mxu0 %vm6670_vm3, %v22936_v6 }
 0x4b4   :  { %17751 = vmatmul.mubr.msk.f32.gmra.mxu1 %vm6670_vm3, %v7501_v58  ;;  %v22986_v58 = vld [vmem:[#allocation3 + $0x2d0] sm:$0xff] }
 0x4b5   :  { %17849 = vmatmul.mubr.msk.f32.gmra.mxu0 %vm6670_vm3, %v22941_v28  ;;  %17753 = vmatprep.mubr.msk.f32.mxu1 %vm6670_vm3, %v7502_v61  ;;  %v7511_v61 = vld [vmem:[#allocation3 + $0x2d9] sm:$0xff] }
 0x4b6   :  { %17851 = vmatprep.mubr.msk.f32.mxu0 %vm6670_vm3, %v22946_v52 }
 0x4b8   :  { %17754 = vmatmul.mubr.msk.f32.gmra.mxu1 %vm6670_vm3, %v7503_v53  ;;  %v22991_v53 = vld [vmem:[#allocation3 + $0x2d8] sm:$0xff] }
 0x4b9   :  { %17852 = vmatmul.mubr.msk.f32.gmra.mxu0 %vm6670_vm3, %v22951_v63  ;;  %17756 = vmatprep.mubr.msk.f32.mxu1 %vm6670_vm3, %v7504_v21  ;;  %v7512_v21 = vld [vmem:[#allocation3 + $0x2e9] sm:$0xff] }
 0x4ba   :  { %17854 = vmatprep.mubr.msk.f32.mxu0 %vm6670_vm3, %v22956_v0 }
 0x4bc   :  { %17757 = vmatmul.mubr.msk.f32.gmra.mxu1 %vm6670_vm3, %v7505_v30  ;;  %v22996_v30 = vld [vmem:[#allocation3 + $0x2e8] sm:$0xff] }
 0x4bd   :  { %17855 = vmatmul.mubr.msk.f32.gmra.mxu0 %vm6670_vm3, %v22961_v14  ;;  %17759 = vmatprep.mubr.msk.f32.mxu1 %vm6670_vm3, %v7506_v19  ;;  %v7513_v19 = vld [vmem:[#allocation3 + $0x2f1] sm:$0xff] }
 0x4be   :  { %17857 = vmatprep.mubr.msk.f32.mxu0 %vm6670_vm3, %v22966_v50 }
 0x4c0   :  { %17760 = vmatmul.mubr.msk.f32.gmra.mxu1 %vm6670_vm3, %v7507_v54  ;;  %v23001_v54 = vld [vmem:[#allocation3 + $0x2f0] sm:$0xff] }
 0x4c1   :  { %17858 = vmatmul.mubr.msk.f32.gmra.mxu0 %vm6670_vm3, %v22971_v27  ;;  %17762 = vmatprep.mubr.msk.f32.mxu1 %vm6670_vm3, %v7508_v4  ;;  %v7514_v4 = vld [vmem:[#allocation3 + $0x301] sm:$0xff] }
 0x4c2   :  { %17860 = vmatprep.mubr.msk.f32.mxu0 %vm6670_vm3, %v22976_v48 }
 0x4c4   :  { %17763 = vmatmul.mubr.msk.f32.gmra.mxu1 %vm6670_vm3, %v7509_v31  ;;  %v23006_v31 = vld [vmem:[#allocation3 + $0x300] sm:$0xff] }
 0x4c5   :  { %17861 = vmatmul.mubr.msk.f32.gmra.mxu0 %vm6670_vm3, %v22981_v45  ;;  %17765 = vmatprep.mubr.msk.f32.mxu1 %vm6670_vm3, %v7510_v1  ;;  %26552 = vst [vmem:[#allocation75_spill] sm:$0xff] %v23006_v31  ;;  %v7515_v1 = vld [vmem:[#allocation3 + $0x309] sm:$0xff] }
 0x4c6   :  { %17863 = vmatprep.mubr.msk.f32.mxu0 %vm6670_vm3, %v22986_v58 }
 0x4c8   :  { %17766 = vmatmul.mubr.msk.f32.gmra.mxu1 %vm6670_vm3, %v7511_v61  ;;  %v23011_v61 = vld [vmem:[#allocation3 + $0x308] sm:$0xff] }
 0x4c9   :  { %17864 = vmatmul.mubr.msk.f32.gmra.mxu0 %vm6670_vm3, %v22991_v53  ;;  %17768 = vmatprep.mubr.msk.f32.mxu1 %vm6670_vm3, %v7512_v21  ;;  %v7516_v21 = vld [vmem:[#allocation3 + $0x319] sm:$0xff] }
 0x4ca   :  { %17866 = vmatprep.mubr.msk.f32.mxu0 %vm6670_vm3, %v22996_v30 }
 0x4cc   :  { %17769 = vmatmul.mubr.msk.f32.gmra.mxu1 %vm6670_vm3, %v7513_v19  ;;  %v23016_v19 = vld [vmem:[#allocation3 + $0x318] sm:$0xff] }
 0x4cd   :  { %17867 = vmatmul.mubr.msk.f32.gmra.mxu0 %vm6670_vm3, %v23001_v54  ;;  %17771 = vmatprep.mubr.msk.f32.mxu1 %vm6670_vm3, %v7514_v4  ;;  %v8674_v4 = vld [vmem:[#allocation3 + $0x2] sm:$0xff] }
 0x4ce   :  { %17869 = vmatprep.mubr.msk.f32.mxu0 %vm6670_vm3, %v23006_v31  ;;  %v23021_v31 = vld [vmem:[#allocation3 + $0x320] sm:$0xff] }
 0x4d0   :  { %17772 = vmatmul.mubr.msk.f32.gmra.mxu1 %vm6670_vm3, %v7515_v1  ;;  %v8675_v1 = vld [vmem:[#allocation3 + $0xa] sm:$0xff] }
 0x4d1   :  { %17870 = vmatmul.mubr.msk.f32.gmra.mxu0 %vm6670_vm3, %v23011_v61  ;;  %17774 = vmatprep.mubr.msk.f32.mxu1 %vm6670_vm3, %v7516_v21  ;;  %v15366_v21 = vld [vmem:[%s25805_s5 + $0x28] sm:$0xff] }
 0x4d2   :  { %17872 = vmatprep.mubr.msk.f32.mxu0 %vm6670_vm3, %v23016_v19  ;;  %18169 = vmatprep.subr.mxu0 %v15366_v21 }
 0x4d4   :  { %17775 = vmatmul.mubr.msk.f32.gmra.mxu1 %vm6670_vm3, %v7517_v12  ;;  %v23035_v12 = vld [vmem:[%s25805_s5 + $0x30] sm:$0xff] }
 0x4d5   :  { %17873 = vmatmul.mubr.msk.f32.gmra.mxu0 %vm6670_vm3, %v23021_v31  ;;  %17877 = vmatprep.mubr.msk.f32.mxu1 %vm6670_vm3, %v8674_v4  ;;  %v23040_v4 = vld [vmem:[#allocation3 + $0x1a] sm:$0xff] }
 0x4d6   :  { %17975 = vmatprep.mubr.msk.f32.mxu0 %vm6670_vm3, %v22633_v44  ;;  %v23046_v44 = vld [vmem:[#allocation3 + $0x22] sm:$0xff] }
 0x4d8   :  { %17878 = vmatmul.mubr.msk.f32.vlgmr.msra.gmra.mxu1 %vm6670_vm3, %v8675_v1  ;;  %v23051_v1 = vld [vmem:[#allocation3 + $0x32] sm:$0xff] }
 0x4d9   :  { %17976 = vmatmul.mubr.msk.f32.vlgmr.msra.gmra.mxu0 %vm6670_vm3, %v22648_v57  ;;  %18072 = vmatpush3.msra.mxu1 %v22594_v18  ;;  %v23059_v18 = vld [vmem:[#allocation3 + $0x3a] sm:$0xff]  ;;  %v23063_v57 = vld [vmem:[#allocation3 + $0x4a] sm:$0xff] }
 0x4da   :  { %17880 = vmatprep.mubr.msk.f32.mxu1 %vm6670_vm3, %v23040_v4  ;;  %17978 = vmatprep.mubr.msk.f32.mxu0 %vm6670_vm3, %v22704_v62  ;;  %v23071_v62 = vld [vmem:[#allocation3 + $0x52] sm:$0xff] }
 0x4db   :  { %18170 = vmatpush3.msra.mxu0 %v15366_v21  ;;  %18267 = vmatprep.subr.mxu1 %v23035_v12  ;;  %v23214_v21 = vld [vmem:[#allocation3 + $0x172] sm:$0xff] }
 0x4dc   :  { %17881 = vmatmul.mubr.msk.f32.gmra.mxu1 %vm6670_vm3, %v23046_v44  ;;  %26555 = vst [vmem:[#allocation12_spill] sm:$0xff] %v23214_v21 }
 0x4dd   :  { %17979 = vmatmul.mubr.msk.f32.gmra.mxu0 %vm6670_vm3, %v22729_v38  ;;  %17883 = vmatprep.mubr.msk.f32.mxu1 %vm6670_vm3, %v23051_v1  ;;  %v23075_v38 = vld [vmem:[#allocation3 + $0x62] sm:$0xff] }
 0x4de   :  { %17981 = vmatprep.mubr.msk.f32.mxu0 %vm6670_vm3, %v22738_v47  ;;  %v23083_v47 = vld [vmem:[#allocation3 + $0x6a] sm:$0xff] }
 0x4e0   :  { %17884 = vmatmul.mubr.msk.f32.gmra.mxu1 %vm6670_vm3, %v23059_v18 }
 0x4e1   :  { %17982 = vmatmul.mubr.msk.f32.gmra.mxu0 %vm6670_vm3, %v22745_v56  ;;  %17886 = vmatprep.mubr.msk.f32.mxu1 %vm6670_vm3, %v23063_v57  ;;  %v23087_v56 = vld [vmem:[#allocation3 + $0x7a] sm:$0xff] }
 0x4e2   :  { %17984 = vmatprep.mubr.msk.f32.mxu0 %vm6670_vm3, %v22750_v9  ;;  %v23095_v9 = vld [vmem:[#allocation3 + $0x82] sm:$0xff] }
 0x4e4   :  { %17887 = vmatmul.mubr.msk.f32.gmra.mxu1 %vm6670_vm3, %v23071_v62 }
 0x4e5   :  { %17985 = vmatmul.mubr.msk.f32.gmra.mxu0 %vm6670_vm3, %v22755_v60  ;;  %17889 = vmatprep.mubr.msk.f32.mxu1 %vm6670_vm3, %v23075_v38  ;;  %v23099_v60 = vld [vmem:[#allocation3 + $0x92] sm:$0xff] }
 0x4e6   :  { %17987 = vmatprep.mubr.msk.f32.mxu0 %vm6670_vm3, %v22760_v42  ;;  %v23107_v42 = vld [vmem:[#allocation3 + $0x9a] sm:$0xff] }
 0x4e8   :  { %17890 = vmatmul.mubr.msk.f32.gmra.mxu1 %vm6670_vm3, %v23083_v47 }
 0x4e9   :  { %17988 = vmatmul.mubr.msk.f32.gmra.mxu0 %vm6670_vm3, %v22765_v33  ;;  %17892 = vmatprep.mubr.msk.f32.mxu1 %vm6670_vm3, %v23087_v56  ;;  %v23111_v33 = vld [vmem:[#allocation3 + $0xaa] sm:$0xff] }
 0x4ea   :  { %17990 = vmatprep.mubr.msk.f32.mxu0 %vm6670_vm3, %v22770_v20  ;;  %v23119_v20 = vld [vmem:[#allocation3 + $0xb2] sm:$0xff] }
 0x4ec   :  { %17893 = vmatmul.mubr.msk.f32.gmra.mxu1 %vm6670_vm3, %v23095_v9 }
 0x4ed   :  { %17991 = vmatmul.mubr.msk.f32.gmra.mxu0 %vm6670_vm3, %v22775_v35  ;;  %17895 = vmatprep.mubr.msk.f32.mxu1 %vm6670_vm3, %v23099_v60  ;;  %v23123_v35 = vld [vmem:[#allocation3 + $0xc2] sm:$0xff] }
 0x4ee   :  { %17993 = vmatprep.mubr.msk.f32.mxu0 %vm6670_vm3, %v22780_v3  ;;  %v23131_v3 = vld [vmem:[#allocation3 + $0xca] sm:$0xff] }
 0x4f0   :  { %17896 = vmatmul.mubr.msk.f32.gmra.mxu1 %vm6670_vm3, %v23107_v42 }
 0x4f1   :  { %17994 = vmatmul.mubr.msk.f32.gmra.mxu0 %vm6670_vm3, %v22785_v23  ;;  %17898 = vmatprep.mubr.msk.f32.mxu1 %vm6670_vm3, %v23111_v33  ;;  %v23135_v23 = vld [vmem:[#allocation3 + $0xda] sm:$0xff] }
 0x4f2   :  { %17996 = vmatprep.mubr.msk.f32.mxu0 %vm6670_vm3, %v22790_v29  ;;  %v23143_v29 = vld [vmem:[#allocation3 + $0xe2] sm:$0xff] }
 0x4f4   :  { %17899 = vmatmul.mubr.msk.f32.gmra.mxu1 %vm6670_vm3, %v23119_v20 }
 0x4f5   :  { %17997 = vmatmul.mubr.msk.f32.gmra.mxu0 %vm6670_vm3, %v22795_v46  ;;  %17901 = vmatprep.mubr.msk.f32.mxu1 %vm6670_vm3, %v23123_v35  ;;  %v23147_v46 = vld [vmem:[#allocation3 + $0xf2] sm:$0xff] }
 0x4f6   :  { %17999 = vmatprep.mubr.msk.f32.mxu0 %vm6670_vm3, %v22800_v49  ;;  %v23155_v49 = vld [vmem:[#allocation3 + $0xfa] sm:$0xff] }
 0x4f8   :  { %17902 = vmatmul.mubr.msk.f32.gmra.mxu1 %vm6670_vm3, %v23131_v3 }
 0x4f9   :  { %18000 = vmatmul.mubr.msk.f32.gmra.mxu0 %vm6670_vm3, %v22805_v37  ;;  %17904 = vmatprep.mubr.msk.f32.mxu1 %vm6670_vm3, %v23135_v23  ;;  %v23159_v37 = vld [vmem:[#allocation3 + $0x10a] sm:$0xff] }
 0x4fa   :  { %18002 = vmatprep.mubr.msk.f32.mxu0 %vm6670_vm3, %v22810_v26  ;;  %v23167_v26 = vld [vmem:[#allocation3 + $0x112] sm:$0xff] }
 0x4fc   :  { %17905 = vmatmul.mubr.msk.f32.gmra.mxu1 %vm6670_vm3, %v23143_v29 }
 0x4fd   :  { %18003 = vmatmul.mubr.msk.f32.gmra.mxu0 %vm6670_vm3, %v22815_v25  ;;  %17907 = vmatprep.mubr.msk.f32.mxu1 %vm6670_vm3, %v23147_v46  ;;  %v23171_v25 = vld [vmem:[#allocation3 + $0x122] sm:$0xff] }
 0x4fe   :  { %18005 = vmatprep.mubr.msk.f32.mxu0 %vm6670_vm3, %v22820_v24  ;;  %v23179_v24 = vld [vmem:[#allocation3 + $0x12a] sm:$0xff] }
 0x500   :  { %17908 = vmatmul.mubr.msk.f32.gmra.mxu1 %vm6670_vm3, %v23155_v49 }
 0x501   :  { %18006 = vmatmul.mubr.msk.f32.gmra.mxu0 %vm6670_vm3, %v22825_v43  ;;  %17910 = vmatprep.mubr.msk.f32.mxu1 %vm6670_vm3, %v23159_v37  ;;  %v23183_v43 = vld [vmem:[#allocation3 + $0x13a] sm:$0xff] }
 0x502   :  { %18008 = vmatprep.mubr.msk.f32.mxu0 %vm6670_vm3, %v22830_v41  ;;  %v23191_v41 = vld [vmem:[#allocation3 + $0x142] sm:$0xff] }
 0x504   :  { %17911 = vmatmul.mubr.msk.f32.gmra.mxu1 %vm6670_vm3, %v23167_v26 }
 0x505   :  { %18009 = vmatmul.mubr.msk.f32.gmra.mxu0 %vm6670_vm3, %v22835_v22  ;;  %17913 = vmatprep.mubr.msk.f32.mxu1 %vm6670_vm3, %v23171_v25  ;;  %v23195_v22 = vld [vmem:[#allocation3 + $0x152] sm:$0xff] }
 0x506   :  { %18011 = vmatprep.mubr.msk.f32.mxu0 %vm6670_vm3, %v22840_v55  ;;  %v23203_v55 = vld [vmem:[#allocation3 + $0x15a] sm:$0xff] }
 0x507   :  { %26553 = vst [vmem:[#allocation44_spill] sm:$0xff] %v23203_v55 }
 0x508   :  { %17914 = vmatmul.mubr.msk.f32.gmra.mxu1 %vm6670_vm3, %v23179_v24 }
 0x509   :  { %18012 = vmatmul.mubr.msk.f32.gmra.mxu0 %vm6670_vm3, %v22845_v34  ;;  %17916 = vmatprep.mubr.msk.f32.mxu1 %vm6670_vm3, %v23183_v43  ;;  %v23207_v34 = vld [vmem:[#allocation3 + $0x16a] sm:$0xff] }
 0x50a   :  { %18014 = vmatprep.mubr.msk.f32.mxu0 %vm6670_vm3, %v22850_v36  ;;  %26554 = vst [vmem:[#allocation47_spill] sm:$0xff] %v23207_v34  ;;  %v9411_v36 = vld [vmem:[#allocation3 + $0x180] sm:$0xff] }
 0x50c   :  { %17917 = vmatmul.mubr.msk.f32.gmra.mxu1 %vm6670_vm3, %v23191_v41 }
 0x50d   :  { %18015 = vmatmul.mubr.msk.f32.gmra.mxu0 %vm6670_vm3, %v22855_v51  ;;  %17919 = vmatprep.mubr.msk.f32.mxu1 %vm6670_vm3, %v23195_v22  ;;  %v8706_v51 = vld [vmem:[#allocation3 + $0x1b2] sm:$0xff] }
 0x50e   :  { %18017 = vmatprep.mubr.msk.f32.mxu0 %vm6670_vm3, %v22860_v2  ;;  %v9412_v2 = vld [vmem:[#allocation3 + $0x188] sm:$0xff] }
 0x510   :  { %17920 = vmatmul.mubr.msk.f32.gmra.mxu1 %vm6670_vm3, %v23203_v55  ;;  %v8707_v55 = vld [vmem:[#allocation3 + $0x1ba] sm:$0xff] }
 0x511   :  { %18018 = vmatmul.mubr.msk.f32.gmra.mxu0 %vm6670_vm3, %v22865_v7  ;;  %17922 = vmatprep.mubr.msk.f32.mxu1 %vm6670_vm3, %v23207_v34  ;;  %v23223_v7 = vld [vmem:[#allocation3 + $0x1ca] sm:$0xff]  ;;  %v23255_v34 = vld [vmem:[#allocation3 + $0x1fa] sm:$0xff] }
 0x512   :  { %18020 = vmatprep.mubr.msk.f32.mxu0 %vm6670_vm3, %v9411_v36  ;;  %26556 = vst [vmem:[#allocation11_spill] sm:$0xff] %v23223_v7  ;;  %v23229_v36 = vpop.f32.mrf.mxu1 }
 0x513   :  { %26557 = vst [vmem:[#allocation45_spill] sm:$0xff] %v23229_v36  ;;  %v23249_v36 = vld [vmem:[#allocation3 + $0x1ea] sm:$0xff] }
 0x514   :  { %17923 = vmatmul.mubr.msk.f32.gmra.mxu1 %vm6670_vm3, %v23214_v21  ;;  %26560 = vst [vmem:[#allocation13_spill] sm:$0xff] %v23249_v36 }
 0x515   :  { %18021 = vmatmul.mubr.msk.f32.gmra.mxu0 %vm6670_vm3, %v9412_v2  ;;  %17925 = vmatprep.mubr.msk.f32.mxu1 %vm6670_vm3, %v8706_v51  ;;  %v23233_v51 = vpop.f32.mrf.mxu0  ;;  %v23235_v2 = vld [vmem:[#allocation3 + $0x1d2] sm:$0xff] }
 0x516   :  { %18023 = vmatprep.mubr.msk.f32.mxu0 %vm6670_vm3, %v22874_v13  ;;  %26558 = vst [vmem:[#allocation49_spill] sm:$0xff] %v23233_v51  ;;  %26559 = vst [vmem:[#allocation77_spill] sm:$0xff] %v23235_v2 }
 0x517   :  { %v17784_v21 = vpop.f32.mrf.mxu0 }
 0x518   :  { %17926 = vmatmul.mubr.msk.f32.gmra.mxu1 %vm6670_vm3, %v8707_v55  ;;  %v23239_v55 = vld [vmem:[#allocation3 + $0x1e2] sm:$0xff] }
 0x519   :  { %18024 = vmatmul.mubr.msk.f32.gmra.mxu0 %vm6670_vm3, %v22879_v15  ;;  %17928 = vmatprep.mubr.msk.f32.mxu1 %vm6670_vm3, %v23223_v7  ;;  %v17686_v13 = vpop.f32.mrf.mxu1  ;;  %v8365_v51 = vpop.f32.mrf.mxu0 }
 0x51a   :  { %18026 = vmatprep.mubr.msk.f32.mxu0 %vm6670_vm3, %v22884_v10  ;;  %v23245_v15 = vadd.f32 %v17784_v21, %v17686_v13  ;;  %v23265_v13 = vld [vmem:[#allocation3 + $0x202] sm:$0xff] }
 0x51b   :  { %v7788_v10 = vpop.f32.mrf.mxu1  ;;  %26562 = vst [vmem:[#allocation51_spill] sm:$0xff] %v23265_v13 }
 0x51c   :  { %17929 = vmatmul.mubr.msk.f32.gmra.mxu1 %vm6670_vm3, %v23235_v2  ;;  %v23251_v7 = vadd.f32 %v8365_v51, %v7788_v10 }
 0x51d   :  { %18027 = vmatmul.mubr.msk.f32.gmra.mxu0 %vm6670_vm3, %v22889_v39  ;;  %17931 = vmatprep.mubr.msk.f32.mxu1 %vm6670_vm3, %v23239_v55 }
 0x51e   :  { %18029 = vmatprep.mubr.msk.f32.mxu0 %vm6670_vm3, %v22894_v11  ;;  %26561 = vst [vmem:[#allocation48_spill] sm:$0xff] %v23251_v7 }
 0x520   :  { %v17689_v2 = vpop.f32.mrf.mxu1  ;;  %17932 = vmatmul.mubr.msk.f32.gmra.mxu1 %vm6670_vm3, %v23249_v36  ;;  %v23271_v36 = vld [vmem:[#allocation3 + $0x212] sm:$0xff] }
 0x521   :  { %v17787_v39 = vpop.f32.mrf.mxu0  ;;  %18030 = vmatmul.mubr.msk.f32.gmra.mxu0 %vm6670_vm3, %v22899_v32  ;;  %17934 = vmatprep.mubr.msk.f32.mxu1 %vm6670_vm3, %v23255_v34 }
 0x522   :  { %v23261_v11 = vadd.f32 %v17787_v39, %v17689_v2  ;;  %18032 = vmatprep.mubr.msk.f32.mxu0 %vm6670_vm3, %v22904_v5  ;;  %v7798_v21 = vpop.f32.mrf.mxu1 }
 0x523   :  { %v8375_v51 = vpop.f32.mrf.mxu0 }
 0x524   :  { %v23267_v10 = vadd.f32 %v8375_v51, %v7798_v21  ;;  %v17692_v7 = vpop.f32.mrf.mxu1  ;;  %17935 = vmatmul.mubr.msk.f32.gmra.mxu1 %vm6670_vm3, %v23265_v13  ;;  %v23281_v21 = vld [vmem:[#allocation3 + $0x21a] sm:$0xff]  ;;  %v23287_v13 = vld [vmem:[#allocation3 + $0x22a] sm:$0xff] }
 0x525   :  { %v17790_v32 = vpop.f32.mrf.mxu0  ;;  %18033 = vmatmul.mubr.msk.f32.gmra.mxu0 %vm6670_vm3, %v22911_v59  ;;  %17937 = vmatprep.mubr.msk.f32.mxu1 %vm6670_vm3, %v23271_v36  ;;  %26564 = vst [vmem:[#allocation78_spill] sm:$0xff] %v23281_v21 }
 0x526   :  { %26563 = vst [vmem:[#allocation79_spill] sm:$0xff] %v23267_v10  ;;  %v23277_v5 = vadd.f32 %v17790_v32, %v17692_v7  ;;  %18035 = vmatprep.mubr.msk.f32.mxu0 %vm6670_vm3, %v22916_v40  ;;  %v7808_v2 = vpop.f32.mrf.mxu1 }
 0x527   :  { %v8385_v39 = vpop.f32.mrf.mxu0 }
 0x528   :  { %v23283_v51 = vadd.f32 %v8385_v39, %v7808_v2  ;;  %v17695_v10 = vpop.f32.mrf.mxu1  ;;  %17938 = vmatmul.mubr.msk.f32.gmra.mxu1 %vm6670_vm3, %v23281_v21  ;;  %v23297_v2 = vld [vmem:[#allocation3 + $0x232] sm:$0xff]  ;;  %v23303_v21 = vld [vmem:[#allocation3 + $0x242] sm:$0xff] }
 0x529   :  { %v17793_v59 = vpop.f32.mrf.mxu0  ;;  %18036 = vmatmul.mubr.msk.f32.gmra.mxu0 %vm6670_vm3, %v22921_v8  ;;  %17940 = vmatprep.mubr.msk.f32.mxu1 %vm6670_vm3, %v23287_v13  ;;  %26566 = vst [vmem:[#allocation53_spill] sm:$0xff] %v23297_v2 }
 0x52a   :  { %26565 = vst [vmem:[#allocation50_spill] sm:$0xff] %v23283_v51  ;;  %v23293_v40 = vadd.f32 %v17793_v59, %v17695_v10  ;;  %18038 = vmatprep.mubr.msk.f32.mxu0 %vm6670_vm3, %v22926_v16  ;;  %v7818_v7 = vpop.f32.mrf.mxu1 }
 0x52b   :  { %v8395_v32 = vpop.f32.mrf.mxu0 }
 0x52c   :  { %v23299_v39 = vadd.f32 %v8395_v32, %v7818_v7  ;;  %v17698_v51 = vpop.f32.mrf.mxu1  ;;  %17941 = vmatmul.mubr.msk.f32.gmra.mxu1 %vm6670_vm3, %v23297_v2  ;;  %v23313_v7 = vld [vmem:[#allocation3 + $0x24a] sm:$0xff]  ;;  %v23319_v2 = vld [vmem:[#allocation3 + $0x25a] sm:$0xff] }
 0x52d   :  { %v17796_v8 = vpop.f32.mrf.mxu0  ;;  %18039 = vmatmul.mubr.msk.f32.gmra.mxu0 %vm6670_vm3, %v22931_v17  ;;  %17943 = vmatprep.mubr.msk.f32.mxu1 %vm6670_vm3, %v23303_v21  ;;  %26568 = vst [vmem:[#allocation80_spill] sm:$0xff] %v23313_v7 }
 0x52e   :  { %26567 = vst [vmem:[#allocation14_spill] sm:$0xff] %v23299_v39  ;;  %v23309_v16 = vadd.f32 %v17796_v8, %v17698_v51  ;;  %18041 = vmatprep.mubr.msk.f32.mxu0 %vm6670_vm3, %v22936_v6  ;;  %v7828_v10 = vpop.f32.mrf.mxu1 }
 0x52f   :  { %v8405_v59 = vpop.f32.mrf.mxu0 }
 0x530   :  { %v23315_v32 = vadd.f32 %v8405_v59, %v7828_v10  ;;  %v17701_v39 = vpop.f32.mrf.mxu1  ;;  %17944 = vmatmul.mubr.msk.f32.gmra.mxu1 %vm6670_vm3, %v23313_v7  ;;  %v23329_v10 = vld [vmem:[#allocation3 + $0x262] sm:$0xff]  ;;  %v23335_v7 = vld [vmem:[#allocation3 + $0x272] sm:$0xff] }
 0x531   :  { %v17799_v17 = vpop.f32.mrf.mxu0  ;;  %18042 = vmatmul.mubr.msk.f32.gmra.mxu0 %vm6670_vm3, %v22941_v28  ;;  %17946 = vmatprep.mubr.msk.f32.mxu1 %vm6670_vm3, %v23319_v2  ;;  %26570 = vst [vmem:[#allocation84_spill] sm:$0xff] %v23329_v10 }
 0x532   :  { %26569 = vst [vmem:[#allocation52_spill] sm:$0xff] %v23315_v32  ;;  %v23325_v6 = vadd.f32 %v17799_v17, %v17701_v39  ;;  %18044 = vmatprep.mubr.msk.f32.mxu0 %vm6670_vm3, %v22946_v52  ;;  %v7838_v51 = vpop.f32.mrf.mxu1 }
 0x533   :  { %v8415_v8 = vpop.f32.mrf.mxu0 }
 0x534   :  { %v23331_v59 = vadd.f32 %v8415_v8, %v7838_v51  ;;  %v17704_v32 = vpop.f32.mrf.mxu1  ;;  %17947 = vmatmul.mubr.msk.f32.gmra.mxu1 %vm6670_vm3, %v23329_v10  ;;  %v23345_v51 = vld [vmem:[#allocation3 + $0x27a] sm:$0xff]  ;;  %v23351_v10 = vld [vmem:[#allocation3 + $0x28a] sm:$0xff] }
 0x535   :  { %v17802_v28 = vpop.f32.mrf.mxu0  ;;  %18045 = vmatmul.mubr.msk.f32.gmra.mxu0 %vm6670_vm3, %v22951_v63  ;;  %17949 = vmatprep.mubr.msk.f32.mxu1 %vm6670_vm3, %v23335_v7  ;;  %26572 = vst [vmem:[#allocation15_spill] sm:$0xff] %v23345_v51 }
 0x536   :  { %26571 = vst [vmem:[#allocation16_spill] sm:$0xff] %v23331_v59  ;;  %v23341_v52 = vadd.f32 %v17802_v28, %v17704_v32  ;;  %18047 = vmatprep.mubr.msk.f32.mxu0 %vm6670_vm3, %v22956_v0  ;;  %v7848_v39 = vpop.f32.mrf.mxu1 }
 0x537   :  { %v8425_v17 = vpop.f32.mrf.mxu0 }
 0x538   :  { %v23347_v8 = vadd.f32 %v8425_v17, %v7848_v39  ;;  %v17707_v59 = vpop.f32.mrf.mxu1  ;;  %17950 = vmatmul.mubr.msk.f32.gmra.mxu1 %vm6670_vm3, %v23345_v51  ;;  %v23361_v39 = vld [vmem:[#allocation3 + $0x292] sm:$0xff]  ;;  %v23367_v51 = vld [vmem:[#allocation3 + $0x2a2] sm:$0xff] }
 0x539   :  { %v17805_v63 = vpop.f32.mrf.mxu0  ;;  %18048 = vmatmul.mubr.msk.f32.gmra.mxu0 %vm6670_vm3, %v22961_v14  ;;  %17952 = vmatprep.mubr.msk.f32.mxu1 %vm6670_vm3, %v23351_v10  ;;  %26574 = vst [vmem:[#allocation86_spill] sm:$0xff] %v23361_v39 }
 0x53a   :  { %26573 = vst [vmem:[#allocation83_spill] sm:$0xff] %v23347_v8  ;;  %v23357_v0 = vadd.f32 %v17805_v63, %v17707_v59  ;;  %18050 = vmatprep.mubr.msk.f32.mxu0 %vm6670_vm3, %v22966_v50  ;;  %v7858_v32 = vpop.f32.mrf.mxu1 }
 0x53b   :  { %v8435_v28 = vpop.f32.mrf.mxu0 }
 0x53c   :  { %v23363_v17 = vadd.f32 %v8435_v28, %v7858_v32  ;;  %v17710_v8 = vpop.f32.mrf.mxu1  ;;  %17953 = vmatmul.mubr.msk.f32.gmra.mxu1 %vm6670_vm3, %v23361_v39  ;;  %v23377_v32 = vld [vmem:[#allocation3 + $0x2aa] sm:$0xff]  ;;  %v23383_v39 = vld [vmem:[#allocation3 + $0x2ba] sm:$0xff] }
 0x53d   :  { %v17808_v14 = vpop.f32.mrf.mxu0  ;;  %18051 = vmatmul.mubr.msk.f32.gmra.mxu0 %vm6670_vm3, %v22971_v27  ;;  %17955 = vmatprep.mubr.msk.f32.mxu1 %vm6670_vm3, %v23367_v51  ;;  %26576 = vst [vmem:[#allocation17_spill] sm:$0xff] %v23377_v32 }
 0x53e   :  { %26575 = vst [vmem:[#allocation18_spill] sm:$0xff] %v23363_v17  ;;  %v23373_v50 = vadd.f32 %v17808_v14, %v17710_v8  ;;  %18053 = vmatprep.mubr.msk.f32.mxu0 %vm6670_vm3, %v22976_v48  ;;  %v7868_v59 = vpop.f32.mrf.mxu1 }
 0x53f   :  { %v8445_v63 = vpop.f32.mrf.mxu0 }
 0x540   :  { %v23379_v28 = vadd.f32 %v8445_v63, %v7868_v59  ;;  %v17713_v17 = vpop.f32.mrf.mxu1  ;;  %17956 = vmatmul.mubr.msk.f32.gmra.mxu1 %vm6670_vm3, %v23377_v32  ;;  %v23393_v59 = vld [vmem:[#allocation3 + $0x2c2] sm:$0xff]  ;;  %v23399_v32 = vld [vmem:[#allocation3 + $0x2d2] sm:$0xff] }
 0x541   :  { %v17811_v27 = vpop.f32.mrf.mxu0  ;;  %18054 = vmatmul.mubr.msk.f32.gmra.mxu0 %vm6670_vm3, %v22981_v45  ;;  %17958 = vmatprep.mubr.msk.f32.mxu1 %vm6670_vm3, %v23383_v39  ;;  %26578 = vst [vmem:[#allocation88_spill] sm:$0xff] %v23393_v59 }
 0x542   :  { %26577 = vst [vmem:[#allocation85_spill] sm:$0xff] %v23379_v28  ;;  %v23389_v48 = vadd.f32 %v17811_v27, %v17713_v17  ;;  %18056 = vmatprep.mubr.msk.f32.mxu0 %vm6670_vm3, %v22986_v58  ;;  %v7878_v8 = vpop.f32.mrf.mxu1 }
 0x543   :  { %v8455_v14 = vpop.f32.mrf.mxu0 }
 0x544   :  { %v23395_v63 = vadd.f32 %v8455_v14, %v7878_v8  ;;  %v17716_v28 = vpop.f32.mrf.mxu1  ;;  %17959 = vmatmul.mubr.msk.f32.gmra.mxu1 %vm6670_vm3, %v23393_v59  ;;  %v23409_v8 = vld [vmem:[#allocation3 + $0x2da] sm:$0xff]  ;;  %v23415_v59 = vld [vmem:[#allocation3 + $0x2ea] sm:$0xff] }
 0x545   :  { %v17814_v45 = vpop.f32.mrf.mxu0  ;;  %18057 = vmatmul.mubr.msk.f32.gmra.mxu0 %vm6670_vm3, %v22991_v53  ;;  %17961 = vmatprep.mubr.msk.f32.mxu1 %vm6670_vm3, %v23399_v32  ;;  %26581 = vst [vmem:[#allocation87_spill] sm:$0xff] %v23409_v8 }
 0x546   :  { %26579 = vst [vmem:[#allocation20_spill] sm:$0xff] %v23395_v63  ;;  %v23405_v58 = vadd.f32 %v17814_v45, %v17716_v28  ;;  %18059 = vmatprep.mubr.msk.f32.mxu0 %vm6670_vm3, %v22996_v30  ;;  %v7888_v17 = vpop.f32.mrf.mxu1  ;;  %v26583_v28 = vld [vmem:[#allocation75_spill] sm:$0xff] }
 0x547   :  { %v8465_v27 = vpop.f32.mrf.mxu0 }
 0x548   :  { %26580 = vst [vmem:[#allocation19_spill] sm:$0xff] %v23405_v58  ;;  %v23411_v14 = vadd.f32 %v8465_v27, %v7888_v17  ;;  %v17719_v63 = vpop.f32.mrf.mxu1  ;;  %17962 = vmatmul.mubr.msk.f32.gmra.mxu1 %vm6670_vm3, %v23409_v8  ;;  %v23425_v27 = vld [vmem:[#allocation3 + $0x2f2] sm:$0xff]  ;;  %v23431_v58 = vld [vmem:[#allocation3 + $0x302] sm:$0xff] }
 0x549   :  { %v17817_v53 = vpop.f32.mrf.mxu0  ;;  %18060 = vmatmul.mubr.msk.f32.gmra.mxu0 %vm6670_vm3, %v23001_v54  ;;  %17964 = vmatprep.mubr.msk.f32.mxu1 %vm6670_vm3, %v23415_v59  ;;  %26584 = vst [vmem:[#allocation22_spill] sm:$0xff] %v23425_v27  ;;  %26586 = vst [vmem:[#allocation89_spill] sm:$0xff] %v23431_v58 }
 0x54a   :  { %26582 = vst [vmem:[#allocation90_spill] sm:$0xff] %v23411_v14  ;;  %v23421_v30 = vadd.f32 %v17817_v53, %v17719_v63  ;;  %18062 = vmatprep.mubr.msk.f32.mxu0 %vm6670_vm3, %v26583_v28  ;;  %v7898_v45 = vpop.f32.mrf.mxu1 }
 0x54b   :  { %v8475_v17 = vpop.f32.mrf.mxu0 }
 0x54c   :  { %v23427_v14 = vadd.f32 %v8475_v17, %v7898_v45  ;;  %v17722_v8 = vpop.f32.mrf.mxu1  ;;  %17965 = vmatmul.mubr.msk.f32.gmra.mxu1 %vm6670_vm3, %v23425_v27  ;;  %v23441_v45 = vld [vmem:[#allocation3 + $0x30a] sm:$0xff]  ;;  %v23447_v27 = vld [vmem:[#allocation3 + $0x31a] sm:$0xff] }
 0x54d   :  { %v17820_v54 = vpop.f32.mrf.mxu0  ;;  %18063 = vmatmul.mubr.msk.f32.gmra.mxu0 %vm6670_vm3, %v23011_v61  ;;  %17967 = vmatprep.mubr.msk.f32.mxu1 %vm6670_vm3, %v23431_v58  ;;  %26588 = vst [vmem:[#allocation24_spill] sm:$0xff] %v23441_v45 }
 0x54e   :  { %26585 = vst [vmem:[#allocation21_spill] sm:$0xff] %v23427_v14  ;;  %v23437_v63 = vadd.f32 %v17820_v54, %v17722_v8  ;;  %18065 = vmatprep.mubr.msk.f32.mxu0 %vm6670_vm3, %v23016_v19  ;;  %v7908_v53 = vpop.f32.mrf.mxu1  ;;  %v9443_v19 = vld [vmem:[#allocation3 + $0x330] sm:$0xff] }
 0x54f   :  { %v8485_v28 = vpop.f32.mrf.mxu0 }
 0x550   :  { %26587 = vst [vmem:[#allocation92_spill] sm:$0xff] %v23437_v63  ;;  %v23443_v17 = vadd.f32 %v8485_v28, %v7908_v53  ;;  %v17725_v14 = vpop.f32.mrf.mxu1  ;;  %17968 = vmatmul.mubr.msk.f32.gmra.mxu1 %vm6670_vm3, %v23441_v45  ;;  %v23456_v28 = vld [vmem:[#allocation3 + $0x322] sm:$0xff]  ;;  %v9444_v63 = vld [vmem:[#allocation3 + $0x338] sm:$0xff] }
 0x551   :  { %v17823_v61 = vpop.f32.mrf.mxu0  ;;  %18066 = vmatmul.mubr.msk.f32.gmra.mxu0 %vm6670_vm3, %v23021_v31  ;;  %17970 = vmatprep.mubr.msk.f32.mxu1 %vm6670_vm3, %v23447_v27  ;;  %26590 = vst [vmem:[#allocation91_spill] sm:$0xff] %v23456_v28  ;;  %v10088_v31 = vld [vmem:[#allocation3 + $0x19] sm:$0xff] }
 0x552   :  { %26589 = vst [vmem:[#allocation23_spill] sm:$0xff] %v23443_v17  ;;  %v23453_v8 = vadd.f32 %v17823_v61, %v17725_v14  ;;  %18068 = vmatprep.mubr.msk.f32.mxu0 %vm6670_vm3, %v9443_v19  ;;  %v7918_v54 = vpop.f32.mrf.mxu1 }
 0x553   :  { %v8495_v53 = vpop.f32.mrf.mxu0 }
 0x554   :  { %v23458_v17 = vadd.f32 %v8495_v53, %v7918_v54  ;;  %v17728_v45 = vpop.f32.mrf.mxu1  ;;  %17971 = vmatmul.mubr.msk.f32.gmra.mxu1 %vm6670_vm3, %v23456_v28  ;;  %v10089_v54 = vld [vmem:[#allocation3 + $0x21] sm:$0xff]  ;;  %v15496_v53 = vld [vmem:[%s25805_s5 + $0x38] sm:$0xff] }
 0x555   :  { %v17826_v58 = vpop.f32.mrf.mxu0  ;;  %18069 = vmatmul.mubr.msk.f32.gmra.mxu0 %vm6670_vm3, %v9444_v63  ;;  %18073 = vmatprep.mubr.msk.f32.mxu1 %vm6670_vm3, %v10088_v31 }
 0x556   :  { %26591 = vst [vmem:[#allocation94_spill] sm:$0xff] %v23458_v17  ;;  %v23464_v14 = vadd.f32 %v17826_v58, %v17728_v45  ;;  %18171 = vmatprep.mubr.msk.f32.mxu0 %vm6670_vm3, %v23040_v4  ;;  %v7928_v61 = vpop.f32.mrf.mxu1  ;;  %18365 = vmatprep.subr.mxu0 %v15496_v53  ;;  %v23477_v4 = vld [vmem:[#allocation3 + $0x31] sm:$0xff]  ;;  %v23482_v58 = vld [vmem:[%s25805_s5 + $0x40] sm:$0xff] }
 0x557   :  { %v8505_v19 = vpop.f32.mrf.mxu0  ;;  %26592 = vst [vmem:[#allocation26_spill] sm:$0xff] %v23482_v58 }
 0x558   :  { %v23471_v17 = vadd.f32 %v8505_v19, %v7928_v61  ;;  %v17731_v28 = vpop.f32.mrf.mxu1  ;;  %18074 = vmatmul.mubr.msk.f32.vlgmr.msra.gmra.mxu1 %vm6670_vm3, %v10089_v54 }
 0x559   :  { %v17829_v63 = vpop.f32.mrf.mxu0  ;;  %18172 = vmatmul.mubr.msk.f32.vlgmr.msra.gmra.mxu0 %vm6670_vm3, %v23046_v44  ;;  %18268 = vmatpush3.msra.mxu1 %v23035_v12  ;;  %v23490_v44 = vld [vmem:[#allocation3 + $0x39] sm:$0xff] }
 0x55a   :  { %v23484_v45 = vadd.f32 %v17829_v63, %v17731_v28  ;;  %18076 = vmatprep.mubr.msk.f32.mxu1 %vm6670_vm3, %v23477_v4  ;;  %18174 = vmatprep.mubr.msk.f32.mxu0 %vm6670_vm3, %v23051_v1  ;;  %v7938_v31 = vpop.f32.mrf.mxu1  ;;  %v23497_v28 = vld [vmem:[#allocation3 + $0x49] sm:$0xff] }
 0x55b   :  { %v8515_v61 = vpop.f32.mrf.mxu0  ;;  %18366 = vmatpush3.msra.mxu0 %v15496_v53  ;;  %18463 = vmatprep.subr.mxu1 %v23482_v58  ;;  %v23513_v58 = vld [vmem:[#allocation3 + $0x61] sm:$0xff] }
 0x55c   :  { %v23493_v12 = vadd.f32 %v8515_v61, %v7938_v31  ;;  %v17734_v19 = vpop.f32.mrf.mxu1  ;;  %18077 = vmatmul.mubr.msk.f32.gmra.mxu1 %vm6670_vm3, %v23490_v44  ;;  %v23507_v31 = vld [vmem:[#allocation3 + $0x51] sm:$0xff] }
 0x55d   :  { %v17832_v54 = vpop.f32.mrf.mxu0  ;;  %18175 = vmatmul.mubr.msk.f32.gmra.mxu0 %vm6670_vm3, %v23059_v18  ;;  %18079 = vmatprep.mubr.msk.f32.mxu1 %vm6670_vm3, %v23497_v28  ;;  %26594 = vst [vmem:[#allocation93_spill] sm:$0xff] %v23507_v31 }
 0x55e   :  { %26593 = vst [vmem:[#allocation25_spill] sm:$0xff] %v23493_v12  ;;  %v23503_v1 = vadd.f32 %v17832_v54, %v17734_v19  ;;  %18177 = vmatprep.mubr.msk.f32.mxu0 %vm6670_vm3, %v23063_v57  ;;  %v7948_v53 = vpop.f32.mrf.mxu1 }
 0x55f   :  { %v8525_v63 = vpop.f32.mrf.mxu0 }
 0x560   :  { %v23509_v61 = vadd.f32 %v8525_v63, %v7948_v53  ;;  %v17737_v12 = vpop.f32.mrf.mxu1  ;;  %18080 = vmatmul.mubr.msk.f32.gmra.mxu1 %vm6670_vm3, %v23507_v31  ;;  %v23523_v53 = vld [vmem:[#allocation3 + $0x69] sm:$0xff]  ;;  %v23529_v31 = vld [vmem:[#allocation3 + $0x79] sm:$0xff] }
 0x561   :  { %v17835_v18 = vpop.f32.mrf.mxu0  ;;  %18178 = vmatmul.mubr.msk.f32.gmra.mxu0 %vm6670_vm3, %v23071_v62  ;;  %18082 = vmatprep.mubr.msk.f32.mxu1 %vm6670_vm3, %v23513_v58  ;;  %26596 = vst [vmem:[#allocation28_spill] sm:$0xff] %v23523_v53 }
 0x562   :  { %26595 = vst [vmem:[#allocation97_spill] sm:$0xff] %v23509_v61  ;;  %v23519_v57 = vadd.f32 %v17835_v18, %v17737_v12  ;;  %18180 = vmatprep.mubr.msk.f32.mxu0 %vm6670_vm3, %v23075_v38  ;;  %v7958_v19 = vpop.f32.mrf.mxu1 }
 0x563   :  { %v8535_v54 = vpop.f32.mrf.mxu0 }
 0x564   :  { %v23525_v63 = vadd.f32 %v8535_v54, %v7958_v19  ;;  %v17740_v61 = vpop.f32.mrf.mxu1  ;;  %18083 = vmatmul.mubr.msk.f32.gmra.mxu1 %vm6670_vm3, %v23523_v53  ;;  %v23539_v19 = vld [vmem:[#allocation3 + $0x81] sm:$0xff]  ;;  %v23545_v53 = vld [vmem:[#allocation3 + $0x91] sm:$0xff] }
 0x565   :  { %v17838_v62 = vpop.f32.mrf.mxu0  ;;  %18181 = vmatmul.mubr.msk.f32.gmra.mxu0 %vm6670_vm3, %v23083_v47  ;;  %18085 = vmatprep.mubr.msk.f32.mxu1 %vm6670_vm3, %v23529_v31  ;;  %26598 = vst [vmem:[#allocation95_spill] sm:$0xff] %v23539_v19 }
 0x566   :  { %26597 = vst [vmem:[#allocation27_spill] sm:$0xff] %v23525_v63  ;;  %v23535_v38 = vadd.f32 %v17838_v62, %v17740_v61  ;;  %18183 = vmatprep.mubr.msk.f32.mxu0 %vm6670_vm3, %v23087_v56  ;;  %v7968_v12 = vpop.f32.mrf.mxu1 }
 0x567   :  { %v8545_v18 = vpop.f32.mrf.mxu0 }
 0x568   :  { %v23541_v54 = vadd.f32 %v8545_v18, %v7968_v12  ;;  %v17743_v63 = vpop.f32.mrf.mxu1  ;;  %18086 = vmatmul.mubr.msk.f32.gmra.mxu1 %vm6670_vm3, %v23539_v19  ;;  %v23555_v12 = vld [vmem:[#allocation3 + $0x99] sm:$0xff]  ;;  %v23561_v19 = vld [vmem:[#allocation3 + $0xa9] sm:$0xff] }
 0x569   :  { %v17841_v47 = vpop.f32.mrf.mxu0  ;;  %18184 = vmatmul.mubr.msk.f32.gmra.mxu0 %vm6670_vm3, %v23095_v9  ;;  %18088 = vmatprep.mubr.msk.f32.mxu1 %vm6670_vm3, %v23545_v53  ;;  %26600 = vst [vmem:[#allocation98_spill] sm:$0xff] %v23555_v12 }
 0x56a   :  { %26599 = vst [vmem:[#allocation100_spill] sm:$0xff] %v23541_v54  ;;  %v23551_v56 = vadd.f32 %v17841_v47, %v17743_v63  ;;  %18186 = vmatprep.mubr.msk.f32.mxu0 %vm6670_vm3, %v23099_v60  ;;  %v7978_v61 = vpop.f32.mrf.mxu1 }
 0x56b   :  { %v8555_v62 = vpop.f32.mrf.mxu0 }
 0x56c   :  { %v23557_v18 = vadd.f32 %v8555_v62, %v7978_v61  ;;  %v17746_v54 = vpop.f32.mrf.mxu1  ;;  %18089 = vmatmul.mubr.msk.f32.gmra.mxu1 %vm6670_vm3, %v23555_v12  ;;  %v23571_v61 = vld [vmem:[#allocation3 + $0xb1] sm:$0xff]  ;;  %v23577_v12 = vld [vmem:[#allocation3 + $0xc1] sm:$0xff] }
 0x56d   :  { %v17844_v9 = vpop.f32.mrf.mxu0  ;;  %18187 = vmatmul.mubr.msk.f32.gmra.mxu0 %vm6670_vm3, %v23107_v42  ;;  %18091 = vmatprep.mubr.msk.f32.mxu1 %vm6670_vm3, %v23561_v19  ;;  %26602 = vst [vmem:[#allocation29_spill] sm:$0xff] %v23571_v61 }
 0x56e   :  { %26601 = vst [vmem:[#allocation58_spill] sm:$0xff] %v23557_v18  ;;  %v23567_v60 = vadd.f32 %v17844_v9, %v17746_v54  ;;  %18189 = vmatprep.mubr.msk.f32.mxu0 %vm6670_vm3, %v23111_v33  ;;  %v7988_v63 = vpop.f32.mrf.mxu1 }
 0x56f   :  { %v8565_v47 = vpop.f32.mrf.mxu0 }
 0x570   :  { %v23573_v62 = vadd.f32 %v8565_v47, %v7988_v63  ;;  %v17749_v18 = vpop.f32.mrf.mxu1  ;;  %18092 = vmatmul.mubr.msk.f32.gmra.mxu1 %vm6670_vm3, %v23571_v61  ;;  %v23587_v63 = vld [vmem:[#allocation3 + $0xc9] sm:$0xff]  ;;  %v23593_v61 = vld [vmem:[#allocation3 + $0xd9] sm:$0xff] }
 0x571   :  { %v17847_v42 = vpop.f32.mrf.mxu0  ;;  %18190 = vmatmul.mubr.msk.f32.gmra.mxu0 %vm6670_vm3, %v23119_v20  ;;  %18094 = vmatprep.mubr.msk.f32.mxu1 %vm6670_vm3, %v23577_v12  ;;  %26604 = vst [vmem:[#allocation30_spill] sm:$0xff] %v23587_v63 }
 0x572   :  { %26603 = vst [vmem:[#allocation60_spill] sm:$0xff] %v23573_v62  ;;  %v23583_v33 = vadd.f32 %v17847_v42, %v17749_v18  ;;  %18192 = vmatprep.mubr.msk.f32.mxu0 %vm6670_vm3, %v23123_v35  ;;  %v7998_v54 = vpop.f32.mrf.mxu1 }
 0x573   :  { %v8575_v9 = vpop.f32.mrf.mxu0 }
 0x574   :  { %v23589_v47 = vadd.f32 %v8575_v9, %v7998_v54  ;;  %v17752_v62 = vpop.f32.mrf.mxu1  ;;  %18095 = vmatmul.mubr.msk.f32.gmra.mxu1 %vm6670_vm3, %v23587_v63  ;;  %v23603_v54 = vld [vmem:[#allocation3 + $0xe1] sm:$0xff]  ;;  %v23609_v63 = vld [vmem:[#allocation3 + $0xf1] sm:$0xff] }
 0x575   :  { %v17850_v20 = vpop.f32.mrf.mxu0  ;;  %18193 = vmatmul.mubr.msk.f32.gmra.mxu0 %vm6670_vm3, %v23131_v3  ;;  %18097 = vmatprep.mubr.msk.f32.mxu1 %vm6670_vm3, %v23593_v61  ;;  %26606 = vst [vmem:[#allocation32_spill] sm:$0xff] %v23603_v54 }
 0x576   :  { %26605 = vst [vmem:[#allocation62_spill] sm:$0xff] %v23589_v47  ;;  %v23599_v35 = vadd.f32 %v17850_v20, %v17752_v62  ;;  %18195 = vmatprep.mubr.msk.f32.mxu0 %vm6670_vm3, %v23135_v23  ;;  %v8008_v18 = vpop.f32.mrf.mxu1 }
 0x577   :  { %v8585_v42 = vpop.f32.mrf.mxu0 }
 0x578   :  { %v23605_v9 = vadd.f32 %v8585_v42, %v8008_v18  ;;  %v17755_v47 = vpop.f32.mrf.mxu1  ;;  %18098 = vmatmul.mubr.msk.f32.gmra.mxu1 %vm6670_vm3, %v23603_v54  ;;  %v23619_v18 = vld [vmem:[#allocation3 + $0xf9] sm:$0xff]  ;;  %v23625_v54 = vld [vmem:[#allocation3 + $0x109] sm:$0xff] }
 0x579   :  { %v17853_v3 = vpop.f32.mrf.mxu0  ;;  %18196 = vmatmul.mubr.msk.f32.gmra.mxu0 %vm6670_vm3, %v23143_v29  ;;  %18100 = vmatprep.mubr.msk.f32.mxu1 %vm6670_vm3, %v23609_v63  ;;  %26608 = vst [vmem:[#allocation33_spill] sm:$0xff] %v23619_v18 }
 0x57a   :  { %26607 = vst [vmem:[#allocation64_spill] sm:$0xff] %v23605_v9  ;;  %v23615_v23 = vadd.f32 %v17853_v3, %v17755_v47  ;;  %18198 = vmatprep.mubr.msk.f32.mxu0 %vm6670_vm3, %v23147_v46  ;;  %v8018_v62 = vpop.f32.mrf.mxu1 }
 0x57b   :  { %v8595_v20 = vpop.f32.mrf.mxu0 }
 0x57c   :  { %v23621_v42 = vadd.f32 %v8595_v20, %v8018_v62  ;;  %v17758_v9 = vpop.f32.mrf.mxu1  ;;  %18101 = vmatmul.mubr.msk.f32.gmra.mxu1 %vm6670_vm3, %v23619_v18  ;;  %v23635_v62 = vld [vmem:[#allocation3 + $0x111] sm:$0xff]  ;;  %v23641_v18 = vld [vmem:[#allocation3 + $0x121] sm:$0xff] }
 0x57d   :  { %v17856_v29 = vpop.f32.mrf.mxu0  ;;  %18199 = vmatmul.mubr.msk.f32.gmra.mxu0 %vm6670_vm3, %v23155_v49  ;;  %18103 = vmatprep.mubr.msk.f32.mxu1 %vm6670_vm3, %v23625_v54  ;;  %26610 = vst [vmem:[#allocation68_spill] sm:$0xff] %v23635_v62 }
 0x57e   :  { %26609 = vst [vmem:[#allocation82_spill] sm:$0xff] %v23621_v42  ;;  %v23631_v46 = vadd.f32 %v17856_v29, %v17758_v9  ;;  %18201 = vmatprep.mubr.msk.f32.mxu0 %vm6670_vm3, %v23159_v37  ;;  %v8028_v47 = vpop.f32.mrf.mxu1 }
 0x57f   :  { %v8605_v3 = vpop.f32.mrf.mxu0 }
 0x580   :  { %v23637_v20 = vadd.f32 %v8605_v3, %v8028_v47  ;;  %v17761_v42 = vpop.f32.mrf.mxu1  ;;  %18104 = vmatmul.mubr.msk.f32.gmra.mxu1 %vm6670_vm3, %v23635_v62  ;;  %v23651_v47 = vld [vmem:[#allocation3 + $0x129] sm:$0xff]  ;;  %v23657_v62 = vld [vmem:[#allocation3 + $0x139] sm:$0xff] }
 0x581   :  { %v17859_v49 = vpop.f32.mrf.mxu0  ;;  %18202 = vmatmul.mubr.msk.f32.gmra.mxu0 %vm6670_vm3, %v23167_v26  ;;  %18106 = vmatprep.mubr.msk.f32.mxu1 %vm6670_vm3, %v23641_v18  ;;  %26613 = vst [vmem:[#allocation7_spill] sm:$0xff] %v23651_v47  ;;  %26615 = vst [vmem:[#allocation55_spill] sm:$0xff] %v23657_v62 }
 0x582   :  { %26611 = vst [vmem:[#allocation71_spill] sm:$0xff] %v23637_v20  ;;  %v23647_v37 = vadd.f32 %v17859_v49, %v17761_v42  ;;  %18204 = vmatprep.mubr.msk.f32.mxu0 %vm6670_vm3, %v23171_v25  ;;  %v8038_v9 = vpop.f32.mrf.mxu1 }
 0x583   :  { %v8615_v29 = vpop.f32.mrf.mxu0 }
 0x584   :  { %26612 = vst [vmem:[#allocation37_spill] sm:$0xff] %v23647_v37  ;;  %v23653_v3 = vadd.f32 %v8615_v29, %v8038_v9  ;;  %v17764_v20 = vpop.f32.mrf.mxu1  ;;  %18107 = vmatmul.mubr.msk.f32.gmra.mxu1 %vm6670_vm3, %v23651_v47  ;;  %v23667_v9 = vld [vmem:[#allocation3 + $0x141] sm:$0xff]  ;;  %v23673_v47 = vld [vmem:[#allocation3 + $0x151] sm:$0xff] }
 0x585   :  { %v17862_v26 = vpop.f32.mrf.mxu0  ;;  %18205 = vmatmul.mubr.msk.f32.gmra.mxu0 %vm6670_vm3, %v23179_v24  ;;  %18109 = vmatprep.mubr.msk.f32.mxu1 %vm6670_vm3, %v23657_v62  ;;  %26617 = vst [vmem:[#allocation57_spill] sm:$0xff] %v23667_v9  ;;  %26619 = vst [vmem:[#allocation59_spill] sm:$0xff] %v23673_v47  ;;  %v26638_v62 = vld [vmem:[#allocation49_spill] sm:$0xff]  ;;  %v26639_v37 = vld [vmem:[#allocation76_spill] sm:$0xff] }
 0x586   :  { %26614 = vst [vmem:[#allocation54_spill] sm:$0xff] %v23653_v3  ;;  %v23663_v25 = vadd.f32 %v17862_v26, %v17764_v20  ;;  %18207 = vmatprep.mubr.msk.f32.mxu0 %vm6670_vm3, %v23183_v43  ;;  %v8048_v42 = vpop.f32.mrf.mxu1 }
 0x587   :  { %v8625_v49 = vpop.f32.mrf.mxu0 }
 0x588   :  { %26616 = vst [vmem:[#allocation56_spill] sm:$0xff] %v23663_v25  ;;  %v23669_v29 = vadd.f32 %v8625_v49, %v8048_v42  ;;  %v17767_v3 = vpop.f32.mrf.mxu1  ;;  %18110 = vmatmul.mubr.msk.f32.gmra.mxu1 %vm6670_vm3, %v23667_v9  ;;  %v23683_v42 = vld [vmem:[#allocation3 + $0x159] sm:$0xff]  ;;  %v23689_v9 = vld [vmem:[#allocation3 + $0x169] sm:$0xff] }
 0x589   :  { %v17865_v24 = vpop.f32.mrf.mxu0  ;;  %18208 = vmatmul.mubr.msk.f32.gmra.mxu0 %vm6670_vm3, %v23191_v41  ;;  %18112 = vmatprep.mubr.msk.f32.mxu1 %vm6670_vm3, %v23673_v47  ;;  %26621 = vst [vmem:[#allocation61_spill] sm:$0xff] %v23683_v42  ;;  %26623 = vst [vmem:[#allocation63_spill] sm:$0xff] %v23689_v9  ;;  %v26624_v25 = vld [vmem:[#allocation44_spill] sm:$0xff] }
 0x58a   :  { %26618 = vst [vmem:[#allocation31_spill] sm:$0xff] %v23669_v29  ;;  %v23679_v43 = vadd.f32 %v17865_v24, %v17767_v3  ;;  %18210 = vmatprep.mubr.msk.f32.mxu0 %vm6670_vm3, %v23195_v22  ;;  %v8058_v20 = vpop.f32.mrf.mxu1  ;;  %v26626_v3 = vld [vmem:[#allocation47_spill] sm:$0xff]  ;;  %v26630_v47 = vld [vmem:[#allocation12_spill] sm:$0xff] }
 0x58b   :  { %v8635_v26 = vpop.f32.mrf.mxu0 }
 0x58c   :  { %26620 = vst [vmem:[#allocation81_spill] sm:$0xff] %v23679_v43  ;;  %v23685_v49 = vadd.f32 %v8635_v26, %v8058_v20  ;;  %v17770_v29 = vpop.f32.mrf.mxu1  ;;  %18113 = vmatmul.mubr.msk.f32.gmra.mxu1 %vm6670_vm3, %v23683_v42  ;;  %v23699_v26 = vld [vmem:[#allocation3 + $0x171] sm:$0xff]  ;;  %v23705_v43 = vld [vmem:[#allocation3 + $0x181] sm:$0xff] }
 0x58d   :  { %v17868_v41 = vpop.f32.mrf.mxu0  ;;  %18211 = vmatmul.mubr.msk.f32.gmra.mxu0 %vm6670_vm3, %v26624_v25  ;;  %18115 = vmatprep.mubr.msk.f32.mxu1 %vm6670_vm3, %v23689_v9  ;;  %26627 = vst [vmem:[#allocation35_spill] sm:$0xff] %v23699_v26  ;;  %26629 = vst [vmem:[#allocation38_spill] sm:$0xff] %v23705_v43 }
 0x58e   :  { %26622 = vst [vmem:[#allocation34_spill] sm:$0xff] %v23685_v49  ;;  %v23695_v22 = vadd.f32 %v17868_v41, %v17770_v29  ;;  %18213 = vmatprep.mubr.msk.f32.mxu0 %vm6670_vm3, %v26626_v3  ;;  %v8068_v24 = vpop.f32.mrf.mxu1  ;;  %v10825_v29 = vld [vmem:[#allocation3 + $0x182] sm:$0xff] }
 0x58f   :  { %v8645_v20 = vpop.f32.mrf.mxu0 }
 0x590   :  { %26625 = vst [vmem:[#allocation67_spill] sm:$0xff] %v23695_v22  ;;  %v23701_v49 = vadd.f32 %v8645_v20, %v8068_v24  ;;  %v17773_v42 = vpop.f32.mrf.mxu1  ;;  %18116 = vmatmul.mubr.msk.f32.gmra.mxu1 %vm6670_vm3, %v23699_v26  ;;  %v23714_v20 = vld [vmem:[#allocation3 + $0x189] sm:$0xff] }
 0x591   :  { %v17871_v25 = vpop.f32.mrf.mxu0  ;;  %18214 = vmatmul.mubr.msk.f32.gmra.mxu0 %vm6670_vm3, %v26630_v47  ;;  %18118 = vmatprep.mubr.msk.f32.mxu1 %vm6670_vm3, %v23705_v43  ;;  %26632 = vst [vmem:[#allocation39_spill] sm:$0xff] %v23714_v20  ;;  %v10826_v22 = vld [vmem:[#allocation3 + $0x18a] sm:$0xff] }
 0x592   :  { %26628 = vst [vmem:[#allocation65_spill] sm:$0xff] %v23701_v49  ;;  %v23711_v41 = vadd.f32 %v17871_v25, %v17773_v42  ;;  %18216 = vmatprep.mubr.msk.f32.mxu0 %vm6670_vm3, %v10825_v29  ;;  %v8078_v3 = vpop.f32.mrf.mxu1  ;;  %v10120_v47 = vld [vmem:[#allocation3 + $0x1c9] sm:$0xff]  ;;  %v26634_v25 = vld [vmem:[#allocation11_spill] sm:$0xff] }
 0x593   :  { %v8655_v24 = vpop.f32.mrf.mxu0  ;;  %v26637_v43 = vld [vmem:[#allocation45_spill] sm:$0xff] }
 0x594   :  { %26631 = vst [vmem:[#allocation66_spill] sm:$0xff] %v23711_v41  ;;  %v23716_v49 = vadd.f32 %v8655_v24, %v8078_v3  ;;  %v17776_v26 = vpop.f32.mrf.mxu1  ;;  %18119 = vmatmul.mubr.msk.f32.gmra.mxu1 %vm6670_vm3, %v23714_v20  ;;  %v10121_v3 = vld [vmem:[#allocation3 + $0x1d1] sm:$0xff]  ;;  %v23729_v20 = vld [vmem:[#allocation3 + $0x1e1] sm:$0xff] }
 0x595   :  { %v17874_v9 = vpop.f32.mrf.mxu0  ;;  %18217 = vmatmul.mubr.msk.f32.gmra.mxu0 %vm6670_vm3, %v10826_v22  ;;  %18121 = vmatprep.mubr.msk.f32.mxu1 %vm6670_vm3, %v10120_v47  ;;  %26636 = vst [vmem:[#allocation96_spill] sm:$0xff] %v23729_v20  ;;  %v8356_v22 = vadd.f32 %v26638_v62, %v26637_v43 }
 0x596   :  { %26633 = vst [vmem:[#allocation36_spill] sm:$0xff] %v23716_v49  ;;  %v23722_v42 = vadd.f32 %v17874_v9, %v17776_v26  ;;  %18219 = vmatprep.mubr.msk.f32.mxu0 %vm6670_vm3, %v26634_v25  ;;  %v8088_v29 = vpop.f32.mrf.mxu1  ;;  %v26640_v26 = vld [vmem:[#allocation77_spill] sm:$0xff] }
 0x597   :  { %v8665_v41 = vpop.f32.mrf.mxu0 }
 0x598   :  { %v23726_v24 = vadd.f32 %v8665_v41, %v8088_v29  ;;  %v17879_v49 = vpop.f32.mrf.mxu1  ;;  %18122 = vmatmul.mubr.msk.f32.gmra.mxu1 %vm6670_vm3, %v10121_v3 }
 0x599   :  { %v9318_v47 = vadd.f32 %v17879_v49, %v26639_v37  ;;  %v17977_v9 = vpop.f32.mrf.mxu0  ;;  %18220 = vmatmul.mubr.msk.f32.gmra.mxu0 %vm6670_vm3, %v26640_v26  ;;  %18124 = vmatprep.mubr.msk.f32.mxu1 %vm6670_vm3, %v23729_v20  ;;  %v23746_v37 = vld [vmem:[#allocation3 + $0x1f9] sm:$0xff]  ;;  %v26642_v20 = vld [vmem:[#allocation13_spill] sm:$0xff] }
 0x59a   :  { %26635 = vst [vmem:[#allocation69_spill] sm:$0xff] %v23726_v24  ;;  %18222 = vmatprep.mubr.msk.f32.mxu0 %vm6670_vm3, %v23239_v55  ;;  %v8998_v41 = vpop.f32.mrf.mxu1  ;;  %v23742_v24 = vld [vmem:[#allocation3 + $0x1e9] sm:$0xff] }
 0x59b   :  { %v23740_v25 = vadd.f32 %v17977_v9, %v9318_v47  ;;  %v9317_v29 = vadd.f32 %v8998_v41, %v8356_v22  ;;  %v9705_v3 = vpop.f32.mrf.mxu0  ;;  %v26643_v47 = vld [vmem:[#allocation48_spill] sm:$0xff] }
 0x59c   :  { %v17882_v62 = vpop.f32.mrf.mxu1  ;;  %18125 = vmatmul.mubr.msk.f32.gmra.mxu1 %vm6670_vm3, %v23742_v24 }
 0x59d   :  { %v23748_v43 = vadd.f32 %v9705_v3, %v9317_v29  ;;  %v9320_v49 = vadd.f32 %v17882_v62, %v23245_v15  ;;  %v17980_v26 = vpop.f32.mrf.mxu0  ;;  %18223 = vmatmul.mubr.msk.f32.gmra.mxu0 %vm6670_vm3, %v26642_v20  ;;  %18127 = vmatprep.mubr.msk.f32.mxu1 %vm6670_vm3, %v23746_v37  ;;  %v23760_v29 = vld [vmem:[#allocation3 + $0x201] sm:$0xff]  ;;  %v23764_v15 = vld [vmem:[#allocation3 + $0x211] sm:$0xff] }
 0x59e   :  { %18225 = vmatprep.mubr.msk.f32.mxu0 %vm6670_vm3, %v23255_v34  ;;  %v9008_v55 = vpop.f32.mrf.mxu1  ;;  %26644 = vst [vmem:[#allocation70_spill] sm:$0xff] %v23760_v29  ;;  %v26646_v34 = vld [vmem:[#allocation51_spill] sm:$0xff] }
 0x59f   :  { %26641 = vst [vmem:[#allocation72_spill] sm:$0xff] %v23748_v43  ;;  %v23757_v22 = vadd.f32 %v17980_v26, %v9320_v49  ;;  %v9319_v9 = vadd.f32 %v9008_v55, %v26643_v47  ;;  %v9715_v41 = vpop.f32.mrf.mxu0  ;;  %v26647_v55 = vld [vmem:[#allocation79_spill] sm:$0xff] }
 0x5a0   :  { %v17885_v3 = vpop.f32.mrf.mxu1  ;;  %18128 = vmatmul.mubr.msk.f32.gmra.mxu1 %vm6670_vm3, %v23760_v29 }
 0x5a1   :  { %v23766_v20 = vadd.f32 %v9715_v41, %v9319_v9  ;;  %v9322_v62 = vadd.f32 %v17885_v3, %v23261_v11  ;;  %v17983_v43 = vpop.f32.mrf.mxu0  ;;  %18226 = vmatmul.mubr.msk.f32.gmra.mxu0 %vm6670_vm3, %v26646_v34  ;;  %18130 = vmatprep.mubr.msk.f32.mxu1 %vm6670_vm3, %v23764_v15  ;;  %v23778_v9 = vld [vmem:[#allocation3 + $0x219] sm:$0xff]  ;;  %v23782_v11 = vld [vmem:[#allocation3 + $0x229] sm:$0xff] }
 0x5a2   :  { %18228 = vmatprep.mubr.msk.f32.mxu0 %vm6670_vm3, %v23271_v36  ;;  %v9018_v49 = vpop.f32.mrf.mxu1  ;;  %26648 = vst [vmem:[#allocation99_spill] sm:$0xff] %v23778_v9  ;;  %v26650_v36 = vld [vmem:[#allocation78_spill] sm:$0xff] }
 0x5a3   :  { %26645 = vst [vmem:[#allocation40_spill] sm:$0xff] %v23766_v20  ;;  %v23775_v26 = vadd.f32 %v17983_v43, %v9322_v62  ;;  %v9321_v47 = vadd.f32 %v9018_v49, %v26647_v55  ;;  %v9725_v29 = vpop.f32.mrf.mxu0  ;;  %v26651_v49 = vld [vmem:[#allocation50_spill] sm:$0xff] }
 0x5a4   :  { %v17888_v41 = vpop.f32.mrf.mxu1  ;;  %18131 = vmatmul.mubr.msk.f32.gmra.mxu1 %vm6670_vm3, %v23778_v9 }
 0x5a5   :  { %v23784_v3 = vadd.f32 %v9725_v29, %v9321_v47  ;;  %v9324_v34 = vadd.f32 %v17888_v41, %v23277_v5  ;;  %v17986_v20 = vpop.f32.mrf.mxu0  ;;  %18229 = vmatmul.mubr.msk.f32.gmra.mxu0 %vm6670_vm3, %v26650_v36  ;;  %18133 = vmatprep.mubr.msk.f32.mxu1 %vm6670_vm3, %v23782_v11  ;;  %v23796_v29 = vld [vmem:[#allocation3 + $0x231] sm:$0xff]  ;;  %v23800_v5 = vld [vmem:[#allocation3 + $0x241] sm:$0xff] }
 0x5a6   :  { %18231 = vmatprep.mubr.msk.f32.mxu0 %vm6670_vm3, %v23287_v13  ;;  %v9028_v43 = vpop.f32.mrf.mxu1  ;;  %26652 = vst [vmem:[#allocation73_spill] sm:$0xff] %v23796_v29  ;;  %v26654_v13 = vld [vmem:[#allocation53_spill] sm:$0xff] }
 0x5a7   :  { %26649 = vst [vmem:[#allocation74_spill] sm:$0xff] %v23784_v3  ;;  %v23793_v62 = vadd.f32 %v17986_v20, %v9324_v34  ;;  %v9323_v55 = vadd.f32 %v9028_v43, %v26651_v49  ;;  %v9735_v9 = vpop.f32.mrf.mxu0  ;;  %v26655_v43 = vld [vmem:[#allocation14_spill] sm:$0xff] }
 0x5a8   :  { %v17891_v47 = vpop.f32.mrf.mxu1  ;;  %18134 = vmatmul.mubr.msk.f32.gmra.mxu1 %vm6670_vm3, %v23796_v29 }
 0x5a9   :  { %v23802_v41 = vadd.f32 %v9735_v9, %v9323_v55  ;;  %v9326_v36 = vadd.f32 %v17891_v47, %v23293_v40  ;;  %v17989_v3 = vpop.f32.mrf.mxu0  ;;  %18232 = vmatmul.mubr.msk.f32.gmra.mxu0 %vm6670_vm3, %v26654_v13  ;;  %18136 = vmatprep.mubr.msk.f32.mxu1 %vm6670_vm3, %v23800_v5  ;;  %v23814_v9 = vld [vmem:[#allocation3 + $0x249] sm:$0xff]  ;;  %v23818_v40 = vld [vmem:[#allocation3 + $0x259] sm:$0xff] }
 0x5aa   :  { %18234 = vmatprep.mubr.msk.f32.mxu0 %vm6670_vm3, %v23303_v21  ;;  %v9038_v20 = vpop.f32.mrf.mxu1  ;;  %26656 = vst [vmem:[#allocation43_spill] sm:$0xff] %v23814_v9  ;;  %v26658_v21 = vld [vmem:[#allocation80_spill] sm:$0xff] }
 0x5ab   :  { %26653 = vst [vmem:[#allocation8_spill] sm:$0xff] %v23802_v41  ;;  %v23811_v34 = vadd.f32 %v17989_v3, %v9326_v36  ;;  %v9325_v49 = vadd.f32 %v9038_v20, %v26655_v43  ;;  %v9745_v29 = vpop.f32.mrf.mxu0  ;;  %v26659_v20 = vld [vmem:[#allocation52_spill] sm:$0xff] }
 0x5ac   :  { %v17894_v55 = vpop.f32.mrf.mxu1  ;;  %18137 = vmatmul.mubr.msk.f32.gmra.mxu1 %vm6670_vm3, %v23814_v9 }
 0x5ad   :  { %v23820_v47 = vadd.f32 %v9745_v29, %v9325_v49  ;;  %v9328_v13 = vadd.f32 %v17894_v55, %v23309_v16  ;;  %v17992_v41 = vpop.f32.mrf.mxu0  ;;  %18235 = vmatmul.mubr.msk.f32.gmra.mxu0 %vm6670_vm3, %v26658_v21  ;;  %18139 = vmatprep.mubr.msk.f32.mxu1 %vm6670_vm3, %v23818_v40  ;;  %v23832_v29 = vld [vmem:[#allocation3 + $0x261] sm:$0xff]  ;;  %v23836_v16 = vld [vmem:[#allocation3 + $0x271] sm:$0xff] }
 0x5ae   :  { %18237 = vmatprep.mubr.msk.f32.mxu0 %vm6670_vm3, %v23319_v2  ;;  %v9048_v3 = vpop.f32.mrf.mxu1  ;;  %26660 = vst [vmem:[#allocation9_spill] sm:$0xff] %v23832_v29  ;;  %v26662_v2 = vld [vmem:[#allocation84_spill] sm:$0xff] }
 0x5af   :  { %26657 = vst [vmem:[#allocation10_spill] sm:$0xff] %v23820_v47  ;;  %v23829_v36 = vadd.f32 %v17992_v41, %v9328_v13  ;;  %v9327_v43 = vadd.f32 %v9048_v3, %v26659_v20  ;;  %v9755_v9 = vpop.f32.mrf.mxu0  ;;  %v26663_v3 = vld [vmem:[#allocation16_spill] sm:$0xff] }
 0x5b0   :  { %v17897_v49 = vpop.f32.mrf.mxu1  ;;  %18140 = vmatmul.mubr.msk.f32.gmra.mxu1 %vm6670_vm3, %v23832_v29 }
 0x5b1   :  { %v23838_v55 = vadd.f32 %v9755_v9, %v9327_v43  ;;  %v9330_v21 = vadd.f32 %v17897_v49, %v23325_v6  ;;  %v17995_v47 = vpop.f32.mrf.mxu0  ;;  %18238 = vmatmul.mubr.msk.f32.gmra.mxu0 %vm6670_vm3, %v26662_v2  ;;  %18142 = vmatprep.mubr.msk.f32.mxu1 %vm6670_vm3, %v23836_v16  ;;  %v23850_v9 = vld [vmem:[#allocation3 + $0x279] sm:$0xff]  ;;  %v23854_v6 = vld [vmem:[#allocation3 + $0x289] sm:$0xff] }
 0x5b2   :  { %18240 = vmatprep.mubr.msk.f32.mxu0 %vm6670_vm3, %v23335_v7  ;;  %v9058_v41 = vpop.f32.mrf.mxu1  ;;  %26664 = vst [vmem:[#allocation46_spill] sm:$0xff] %v23850_v9  ;;  %v26666_v7 = vld [vmem:[#allocation15_spill] sm:$0xff] }
 0x5b3   :  { %26661 = vst [vmem:[#allocation41_spill] sm:$0xff] %v23838_v55  ;;  %v23847_v13 = vadd.f32 %v17995_v47, %v9330_v21  ;;  %v9329_v20 = vadd.f32 %v9058_v41, %v26663_v3  ;;  %v9765_v29 = vpop.f32.mrf.mxu0  ;;  %v26667_v41 = vld [vmem:[#allocation83_spill] sm:$0xff] }
 0x5b4   :  { %v17900_v43 = vpop.f32.mrf.mxu1  ;;  %18143 = vmatmul.mubr.msk.f32.gmra.mxu1 %vm6670_vm3, %v23850_v9 }
 0x5b5   :  { %v23856_v49 = vadd.f32 %v9765_v29, %v9329_v20  ;;  %v9332_v2 = vadd.f32 %v17900_v43, %v23341_v52  ;;  %v17998_v55 = vpop.f32.mrf.mxu0  ;;  %18241 = vmatmul.mubr.msk.f32.gmra.mxu0 %vm6670_vm3, %v26666_v7  ;;  %18145 = vmatprep.mubr.msk.f32.mxu1 %vm6670_vm3, %v23854_v6  ;;  %v23868_v29 = vld [vmem:[#allocation3 + $0x291] sm:$0xff]  ;;  %v23872_v52 = vld [vmem:[#allocation3 + $0x2a1] sm:$0xff] }
 0x5b6   :  { %18243 = vmatprep.mubr.msk.f32.mxu0 %vm6670_vm3, %v23351_v10  ;;  %v9068_v47 = vpop.f32.mrf.mxu1  ;;  %26668 = vst [vmem:[#allocation44_spill] sm:$0xff] %v23868_v29  ;;  %v26670_v10 = vld [vmem:[#allocation86_spill] sm:$0xff] }
 0x5b7   :  { %26665 = vst [vmem:[#allocation75_spill] sm:$0xff] %v23856_v49  ;;  %v23865_v21 = vadd.f32 %v17998_v55, %v9332_v2  ;;  %v9331_v3 = vadd.f32 %v9068_v47, %v26667_v41  ;;  %v9775_v9 = vpop.f32.mrf.mxu0  ;;  %v26671_v47 = vld [vmem:[#allocation18_spill] sm:$0xff] }
 0x5b8   :  { %v17903_v20 = vpop.f32.mrf.mxu1  ;;  %18146 = vmatmul.mubr.msk.f32.gmra.mxu1 %vm6670_vm3, %v23868_v29 }
 0x5b9   :  { %v23874_v43 = vadd.f32 %v9775_v9, %v9331_v3  ;;  %v9334_v7 = vadd.f32 %v17903_v20, %v23357_v0  ;;  %v18001_v49 = vpop.f32.mrf.mxu0  ;;  %18244 = vmatmul.mubr.msk.f32.gmra.mxu0 %vm6670_vm3, %v26670_v10  ;;  %18148 = vmatprep.mubr.msk.f32.mxu1 %vm6670_vm3, %v23872_v52  ;;  %v23886_v9 = vld [vmem:[#allocation3 + $0x2a9] sm:$0xff]  ;;  %v23890_v0 = vld [vmem:[#allocation3 + $0x2b9] sm:$0xff] }
 0x5ba   :  { %18246 = vmatprep.mubr.msk.f32.mxu0 %vm6670_vm3, %v23367_v51  ;;  %v9078_v55 = vpop.f32.mrf.mxu1  ;;  %26672 = vst [vmem:[#allocation12_spill] sm:$0xff] %v23886_v9  ;;  %v26674_v51 = vld [vmem:[#allocation17_spill] sm:$0xff] }
 0x5bb   :  { %26669 = vst [vmem:[#allocation47_spill] sm:$0xff] %v23874_v43  ;;  %v23883_v2 = vadd.f32 %v18001_v49, %v9334_v7  ;;  %v9333_v41 = vadd.f32 %v9078_v55, %v26671_v47  ;;  %v9785_v29 = vpop.f32.mrf.mxu0  ;;  %v26675_v55 = vld [vmem:[#allocation85_spill] sm:$0xff] }
 0x5bc   :  { %v17906_v3 = vpop.f32.mrf.mxu1  ;;  %18149 = vmatmul.mubr.msk.f32.gmra.mxu1 %vm6670_vm3, %v23886_v9 }
 0x5bd   :  { %v23892_v20 = vadd.f32 %v9785_v29, %v9333_v41  ;;  %v9336_v10 = vadd.f32 %v17906_v3, %v23373_v50  ;;  %v18004_v43 = vpop.f32.mrf.mxu0  ;;  %18247 = vmatmul.mubr.msk.f32.gmra.mxu0 %vm6670_vm3, %v26674_v51  ;;  %18151 = vmatprep.mubr.msk.f32.mxu1 %vm6670_vm3, %v23890_v0  ;;  %v23904_v29 = vld [vmem:[#allocation3 + $0x2c1] sm:$0xff]  ;;  %v23908_v50 = vld [vmem:[#allocation3 + $0x2d1] sm:$0xff] }
 0x5be   :  { %18249 = vmatprep.mubr.msk.f32.mxu0 %vm6670_vm3, %v23383_v39  ;;  %v9088_v49 = vpop.f32.mrf.mxu1  ;;  %26676 = vst [vmem:[#allocation45_spill] sm:$0xff] %v23904_v29  ;;  %26677 = vst [vmem:[#allocation49_spill] sm:$0xff] %v23908_v50  ;;  %v26679_v39 = vld [vmem:[#allocation88_spill] sm:$0xff] }
 0x5bf   :  { %26673 = vst [vmem:[#allocation11_spill] sm:$0xff] %v23892_v20  ;;  %v23901_v7 = vadd.f32 %v18004_v43, %v9336_v10  ;;  %v9335_v47 = vadd.f32 %v9088_v49, %v26675_v55  ;;  %v9795_v9 = vpop.f32.mrf.mxu0  ;;  %v26680_v49 = vld [vmem:[#allocation20_spill] sm:$0xff] }
 0x5c0   :  { %v17909_v41 = vpop.f32.mrf.mxu1  ;;  %18152 = vmatmul.mubr.msk.f32.gmra.mxu1 %vm6670_vm3, %v23904_v29 }
 0x5c1   :  { %v23910_v3 = vadd.f32 %v9795_v9, %v9335_v47  ;;  %v9338_v51 = vadd.f32 %v17909_v41, %v23389_v48  ;;  %v18007_v20 = vpop.f32.mrf.mxu0  ;;  %18250 = vmatmul.mubr.msk.f32.gmra.mxu0 %vm6670_vm3, %v26679_v39  ;;  %18154 = vmatprep.mubr.msk.f32.mxu1 %vm6670_vm3, %v23908_v50  ;;  %v23922_v9 = vld [vmem:[#allocation3 + $0x2d9] sm:$0xff]  ;;  %v23926_v48 = vld [vmem:[#allocation3 + $0x2e9] sm:$0xff] }
 0x5c2   :  { %18252 = vmatprep.mubr.msk.f32.mxu0 %vm6670_vm3, %v23399_v32  ;;  %v9098_v43 = vpop.f32.mrf.mxu1  ;;  %26681 = vst [vmem:[#allocation77_spill] sm:$0xff] %v23922_v9  ;;  %v26683_v39 = vld [vmem:[#allocation19_spill] sm:$0xff] }
 0x5c3   :  { %26678 = vst [vmem:[#allocation76_spill] sm:$0xff] %v23910_v3  ;;  %v23919_v10 = vadd.f32 %v18007_v20, %v9338_v51  ;;  %v9337_v55 = vadd.f32 %v9098_v43, %v26680_v49  ;;  %v9805_v29 = vpop.f32.mrf.mxu0  ;;  %v26684_v32 = vld [vmem:[#allocation87_spill] sm:$0xff]  ;;  %v26686_v43 = vld [vmem:[#allocation90_spill] sm:$0xff] }
 0x5c4   :  { %v17912_v47 = vpop.f32.mrf.mxu1  ;;  %18155 = vmatmul.mubr.msk.f32.gmra.mxu1 %vm6670_vm3, %v23922_v9 }
 0x5c5   :  { %v23928_v41 = vadd.f32 %v9805_v29, %v9337_v55  ;;  %v9340_v3 = vadd.f32 %v17912_v47, %v26683_v39  ;;  %v18010_v50 = vpop.f32.mrf.mxu0  ;;  %18253 = vmatmul.mubr.msk.f32.gmra.mxu0 %vm6670_vm3, %v26684_v32  ;;  %18157 = vmatprep.mubr.msk.f32.mxu1 %vm6670_vm3, %v23926_v48  ;;  %v23940_v29 = vld [vmem:[#allocation3 + $0x2f1] sm:$0xff]  ;;  %v23944_v47 = vld [vmem:[#allocation3 + $0x301] sm:$0xff] }
 0x5c6   :  { %18255 = vmatprep.mubr.msk.f32.mxu0 %vm6670_vm3, %v23415_v59  ;;  %v9108_v20 = vpop.f32.mrf.mxu1  ;;  %26687 = vst [vmem:[#allocation51_spill] sm:$0xff] %v23940_v29  ;;  %26688 = vst [vmem:[#allocation79_spill] sm:$0xff] %v23944_v47  ;;  %v26690_v59 = vld [vmem:[#allocation22_spill] sm:$0xff] }
 0x5c7   :  { %26682 = vst [vmem:[#allocation13_spill] sm:$0xff] %v23928_v41  ;;  %v23937_v51 = vadd.f32 %v18010_v50, %v9340_v3  ;;  %v9339_v49 = vadd.f32 %v9108_v20, %v26686_v43  ;;  %v9815_v9 = vpop.f32.mrf.mxu0  ;;  %v26691_v50 = vld [vmem:[#allocation89_spill] sm:$0xff] }
 0x5c8   :  { %v17915_v55 = vpop.f32.mrf.mxu1  ;;  %18158 = vmatmul.mubr.msk.f32.gmra.mxu1 %vm6670_vm3, %v23940_v29  ;;  %v26692_v43 = vld [vmem:[#allocation21_spill] sm:$0xff] }
 0x5c9   :  { %26685 = vst [vmem:[#allocation48_spill] sm:$0xff] %v23937_v51  ;;  %v23946_v39 = vadd.f32 %v9815_v9, %v9339_v49  ;;  %v9342_v32 = vadd.f32 %v17915_v55, %v23421_v30  ;;  %v18013_v41 = vpop.f32.mrf.mxu0  ;;  %18256 = vmatmul.mubr.msk.f32.gmra.mxu0 %vm6670_vm3, %v26690_v59  ;;  %18160 = vmatprep.mubr.msk.f32.mxu1 %vm6670_vm3, %v23944_v47  ;;  %v23958_v9 = vld [vmem:[#allocation3 + $0x309] sm:$0xff]  ;;  %v23962_v30 = vld [vmem:[#allocation3 + $0x319] sm:$0xff] }
 0x5ca   :  { %18258 = vmatprep.mubr.msk.f32.mxu0 %vm6670_vm3, %v26691_v50  ;;  %v9118_v3 = vpop.f32.mrf.mxu1  ;;  %26693 = vst [vmem:[#allocation50_spill] sm:$0xff] %v23958_v9  ;;  %v26695_v59 = vld [vmem:[#allocation92_spill] sm:$0xff] }
 0x5cb   :  { %26689 = vst [vmem:[#allocation78_spill] sm:$0xff] %v23946_v39  ;;  %v23955_v20 = vadd.f32 %v18013_v41, %v9342_v32  ;;  %v9341_v29 = vadd.f32 %v9118_v3, %v26692_v43  ;;  %v9825_v51 = vpop.f32.mrf.mxu0  ;;  %v26696_v50 = vld [vmem:[#allocation24_spill] sm:$0xff]  ;;  %v26698_v3 = vld [vmem:[#allocation23_spill] sm:$0xff] }
 0x5cc   :  { %v17918_v49 = vpop.f32.mrf.mxu1  ;;  %18161 = vmatmul.mubr.msk.f32.gmra.mxu1 %vm6670_vm3, %v23958_v9 }
 0x5cd   :  { %v23964_v55 = vadd.f32 %v9825_v51, %v9341_v29  ;;  %v9344_v39 = vadd.f32 %v17918_v49, %v26695_v59  ;;  %v18016_v47 = vpop.f32.mrf.mxu0  ;;  %18259 = vmatmul.mubr.msk.f32.gmra.mxu0 %vm6670_vm3, %v26696_v50  ;;  %18163 = vmatprep.mubr.msk.f32.mxu1 %vm6670_vm3, %v23962_v30  ;;  %v23976_v51 = vld [vmem:[#allocation3 + $0x321] sm:$0xff]  ;;  %v23980_v49 = vld [vmem:[#allocation3 + $0x331] sm:$0xff] }
 0x5ce   :  { %18261 = vmatprep.mubr.msk.f32.mxu0 %vm6670_vm3, %v23447_v27  ;;  %v9128_v41 = vpop.f32.mrf.mxu1  ;;  %26699 = vst [vmem:[#allocation80_spill] sm:$0xff] %v23976_v51  ;;  %26700 = vst [vmem:[#allocation52_spill] sm:$0xff] %v23980_v49  ;;  %v26702_v27 = vld [vmem:[#allocation91_spill] sm:$0xff] }
 0x5cf   :  { %26694 = vst [vmem:[#allocation53_spill] sm:$0xff] %v23964_v55  ;;  %v23973_v32 = vadd.f32 %v18016_v47, %v9344_v39  ;;  %v9343_v43 = vadd.f32 %v9128_v41, %v26698_v3  ;;  %v9835_v9 = vpop.f32.mrf.mxu0  ;;  %v10857_v47 = vld [vmem:[#allocation3 + $0x332] sm:$0xff] }
 0x5d0   :  { %v17921_v29 = vpop.f32.mrf.mxu1  ;;  %18164 = vmatmul.mubr.msk.f32.gmra.mxu1 %vm6670_vm3, %v23976_v51  ;;  %v26703_v3 = vld [vmem:[#allocation94_spill] sm:$0xff] }
 0x5d1   :  { %26697 = vst [vmem:[#allocation14_spill] sm:$0xff] %v23973_v32  ;;  %v23982_v59 = vadd.f32 %v9835_v9, %v9343_v43  ;;  %v9346_v50 = vadd.f32 %v17921_v29, %v23453_v8  ;;  %v18019_v55 = vpop.f32.mrf.mxu0  ;;  %18262 = vmatmul.mubr.msk.f32.gmra.mxu0 %vm6670_vm3, %v26702_v27  ;;  %18166 = vmatprep.mubr.msk.f32.mxu1 %vm6670_vm3, %v23980_v49  ;;  %v23993_v9 = vld [vmem:[#allocation3 + $0x339] sm:$0xff]  ;;  %v11503_v29 = vld [vmem:[#allocation3 + $0x30] sm:$0xff] }
 0x5d2   :  { %18264 = vmatprep.mubr.msk.f32.mxu0 %vm6670_vm3, %v10857_v47  ;;  %v9138_v39 = vpop.f32.mrf.mxu1  ;;  %26704 = vst [vmem:[#allocation16_spill] sm:$0xff] %v23993_v9  ;;  %v10858_v8 = vld [vmem:[#allocation3 + $0x33a] sm:$0xff] }
 0x5d3   :  { %26701 = vst [vmem:[#allocation84_spill] sm:$0xff] %v23982_v59  ;;  %v23990_v41 = vadd.f32 %v18019_v55, %v9346_v50  ;;  %v9345_v51 = vadd.f32 %v9138_v39, %v26703_v3  ;;  %v9845_v32 = vpop.f32.mrf.mxu0  ;;  %v11504_v3 = vld [vmem:[#allocation3 + $0x38] sm:$0xff] }
 0x5d4   :  { %v17924_v43 = vpop.f32.mrf.mxu1  ;;  %18167 = vmatmul.mubr.msk.f32.gmra.mxu1 %vm6670_vm3, %v23993_v9 }
 0x5d5   :  { %v23997_v27 = vadd.f32 %v9845_v32, %v9345_v51  ;;  %v9348_v59 = vadd.f32 %v17924_v43, %v23464_v14  ;;  %v18022_v49 = vpop.f32.mrf.mxu0  ;;  %18265 = vmatmul.mubr.msk.f32.gmra.mxu0 %vm6670_vm3, %v10858_v8  ;;  %18269 = vmatprep.mubr.msk.f32.mxu1 %vm6670_vm3, %v11503_v29  ;;  %v26705_v43 = vld [vmem:[#allocation26_spill] sm:$0xff] }
 0x5d6   :  { %18367 = vmatprep.mubr.msk.f32.mxu0 %vm6670_vm3, %v23477_v4  ;;  %v9148_v55 = vpop.f32.mrf.mxu1  ;;  %v11505_v4 = vld [vmem:[#allocation3 + $0x48] sm:$0xff] }
 0x5d7   :  { %v24004_v50 = vadd.f32 %v18022_v49, %v9348_v59  ;;  %v9347_v47 = vadd.f32 %v9148_v55, %v23471_v17  ;;  %v9855_v39 = vpop.f32.mrf.mxu0  ;;  %v26706_v59 = vld [vmem:[#allocation25_spill] sm:$0xff] }
 0x5d8   :  { %v17927_v9 = vpop.f32.mrf.mxu1  ;;  %18270 = vmatmul.mubr.msk.f32.vlgmr.msra.gmra.mxu1 %vm6670_vm3, %v11504_v3  ;;  %v11506_v55 = vld [vmem:[#allocation3 + $0x50] sm:$0xff] }
 0x5d9   :  { %v24008_v32 = vadd.f32 %v9855_v39, %v9347_v47  ;;  %v9350_v14 = vadd.f32 %v17927_v9, %v23484_v45  ;;  %v18025_v51 = vpop.f32.mrf.mxu0  ;;  %18368 = vmatmul.mubr.msk.f32.vlgmr.msra.gmra.mxu0 %vm6670_vm3, %v23490_v44  ;;  %18464 = vmatpush3.msra.mxu1 %v26705_v43  ;;  %v11507_v9 = vld [vmem:[#allocation3 + $0x60] sm:$0xff]  ;;  %v26707_v3 = vld [vmem:[#allocation93_spill] sm:$0xff] }
 0x5da   :  { %18272 = vmatprep.mubr.msk.f32.mxu1 %vm6670_vm3, %v11505_v4  ;;  %18370 = vmatprep.mubr.msk.f32.mxu0 %vm6670_vm3, %v23497_v28  ;;  %v9158_v17 = vpop.f32.mrf.mxu1 }
 0x5db   :  { %v24017_v49 = vadd.f32 %v18025_v51, %v9350_v14  ;;  %v9349_v8 = vadd.f32 %v9158_v17, %v26706_v59  ;;  %v9865_v29 = vpop.f32.mrf.mxu0  ;;  %v26708_v51 = vld [vmem:[#allocation97_spill] sm:$0xff]  ;;  %v11508_v17 = vld [vmem:[#allocation3 + $0x68] sm:$0xff] }
 0x5dc   :  { %v17930_v45 = vpop.f32.mrf.mxu1  ;;  %18273 = vmatmul.mubr.msk.f32.gmra.mxu1 %vm6670_vm3, %v11506_v55 }
 0x5dd   :  { %v24021_v44 = vadd.f32 %v9865_v29, %v9349_v8  ;;  %v9352_v47 = vadd.f32 %v17930_v45, %v23503_v1  ;;  %v18028_v39 = vpop.f32.mrf.mxu0  ;;  %18371 = vmatmul.mubr.msk.f32.gmra.mxu0 %vm6670_vm3, %v26707_v3  ;;  %18275 = vmatprep.mubr.msk.f32.mxu1 %vm6670_vm3, %v11507_v9  ;;  %v11509_v1 = vld [vmem:[#allocation3 + $0x78] sm:$0xff]  ;;  %v26709_v45 = vld [vmem:[#allocation28_spill] sm:$0xff] }
 0x5de   :  { %18373 = vmatprep.mubr.msk.f32.mxu0 %vm6670_vm3, %v23513_v58  ;;  %v9168_v28 = vpop.f32.mrf.mxu1 }
 0x5df   :  { %v24029_v14 = vadd.f32 %v18028_v39, %v9352_v47  ;;  %v9351_v43 = vadd.f32 %v9168_v28, %v26708_v51  ;;  %v9875_v4 = vpop.f32.mrf.mxu0  ;;  %v26710_v47 = vld [vmem:[#allocation27_spill] sm:$0xff] }
 0x5e0   :  { %v17933_v59 = vpop.f32.mrf.mxu1  ;;  %18276 = vmatmul.mubr.msk.f32.gmra.mxu1 %vm6670_vm3, %v11508_v17  ;;  %v11510_v28 = vld [vmem:[#allocation3 + $0x80] sm:$0xff] }
 0x5e1   :  { %v24033_v8 = vadd.f32 %v9875_v4, %v9351_v43  ;;  %v9354_v29 = vadd.f32 %v17933_v59, %v23519_v57  ;;  %v18031_v55 = vpop.f32.mrf.mxu0  ;;  %18374 = vmatmul.mubr.msk.f32.gmra.mxu0 %vm6670_vm3, %v26709_v45  ;;  %18278 = vmatprep.mubr.msk.f32.mxu1 %vm6670_vm3, %v11509_v1  ;;  %v11511_v57 = vld [vmem:[#allocation3 + $0x90] sm:$0xff]  ;;  %v26711_v59 = vld [vmem:[#allocation95_spill] sm:$0xff] }
 0x5e2   :  { %18376 = vmatprep.mubr.msk.f32.mxu0 %vm6670_vm3, %v23529_v31  ;;  %v9178_v58 = vpop.f32.mrf.mxu1 }
 0x5e3   :  { %v24041_v9 = vadd.f32 %v18031_v55, %v9354_v29  ;;  %v9353_v39 = vadd.f32 %v9178_v58, %v26710_v47  ;;  %v9885_v3 = vpop.f32.mrf.mxu0  ;;  %v26712_v29 = vld [vmem:[#allocation100_spill] sm:$0xff]  ;;  %v11512_v58 = vld [vmem:[#allocation3 + $0x98] sm:$0xff] }
 0x5e4   :  { %v17936_v51 = vpop.f32.mrf.mxu1  ;;  %18279 = vmatmul.mubr.msk.f32.gmra.mxu1 %vm6670_vm3, %v11510_v28 }
 0x5e5   :  { %v24045_v43 = vadd.f32 %v9885_v3, %v9353_v39  ;;  %v9356_v4 = vadd.f32 %v17936_v51, %v23535_v38  ;;  %v18034_v17 = vpop.f32.mrf.mxu0  ;;  %18377 = vmatmul.mubr.msk.f32.gmra.mxu0 %vm6670_vm3, %v26711_v59  ;;  %18281 = vmatprep.mubr.msk.f32.mxu1 %vm6670_vm3, %v11511_v57  ;;  %v11513_v38 = vld [vmem:[#allocation3 + $0xa8] sm:$0xff]  ;;  %v26713_v51 = vld [vmem:[#allocation98_spill] sm:$0xff] }
 0x5e6   :  { %18379 = vmatprep.mubr.msk.f32.mxu0 %vm6670_vm3, %v23545_v53  ;;  %v9188_v31 = vpop.f32.mrf.mxu1 }
 0x5e7   :  { %v24053_v1 = vadd.f32 %v18034_v17, %v9356_v4  ;;  %v9355_v55 = vadd.f32 %v9188_v31, %v26712_v29  ;;  %v9895_v45 = vpop.f32.mrf.mxu0  ;;  %v26714_v4 = vld [vmem:[#allocation58_spill] sm:$0xff]  ;;  %v11514_v31 = vld [vmem:[#allocation3 + $0xb0] sm:$0xff] }
 0x5e8   :  { %v17939_v47 = vpop.f32.mrf.mxu1  ;;  %18282 = vmatmul.mubr.msk.f32.gmra.mxu1 %vm6670_vm3, %v11512_v58 }
 0x5e9   :  { %v24057_v39 = vadd.f32 %v9895_v45, %v9355_v55  ;;  %v9358_v3 = vadd.f32 %v17939_v47, %v23551_v56  ;;  %v18037_v28 = vpop.f32.mrf.mxu0  ;;  %18380 = vmatmul.mubr.msk.f32.gmra.mxu0 %vm6670_vm3, %v26713_v51  ;;  %18284 = vmatprep.mubr.msk.f32.mxu1 %vm6670_vm3, %v11513_v38  ;;  %v11515_v56 = vld [vmem:[#allocation3 + $0xc0] sm:$0xff]  ;;  %v26715_v47 = vld [vmem:[#allocation29_spill] sm:$0xff] }
 0x5ea   :  { %18382 = vmatprep.mubr.msk.f32.mxu0 %vm6670_vm3, %v23561_v19  ;;  %v9198_v53 = vpop.f32.mrf.mxu1 }
 0x5eb   :  { %v24065_v57 = vadd.f32 %v18037_v28, %v9358_v3  ;;  %v9357_v17 = vadd.f32 %v9198_v53, %v26714_v4  ;;  %v9905_v59 = vpop.f32.mrf.mxu0  ;;  %v26716_v3 = vld [vmem:[#allocation60_spill] sm:$0xff] }
 0x5ec   :  { %v17942_v29 = vpop.f32.mrf.mxu1  ;;  %18285 = vmatmul.mubr.msk.f32.gmra.mxu1 %vm6670_vm3, %v11514_v31  ;;  %v11516_v53 = vld [vmem:[#allocation3 + $0xc8] sm:$0xff] }
 0x5ed   :  { %v24069_v55 = vadd.f32 %v9905_v59, %v9357_v17  ;;  %v9360_v45 = vadd.f32 %v17942_v29, %v23567_v60  ;;  %v18040_v58 = vpop.f32.mrf.mxu0  ;;  %18383 = vmatmul.mubr.msk.f32.gmra.mxu0 %vm6670_vm3, %v26715_v47  ;;  %18287 = vmatprep.mubr.msk.f32.mxu1 %vm6670_vm3, %v11515_v56  ;;  %v11517_v60 = vld [vmem:[#allocation3 + $0xd8] sm:$0xff] }
 0x5ee   :  { %18385 = vmatprep.mubr.msk.f32.mxu0 %vm6670_vm3, %v23577_v12  ;;  %v9208_v19 = vpop.f32.mrf.mxu1  ;;  %v26717_v29 = vld [vmem:[#allocation30_spill] sm:$0xff] }
 0x5ef   :  { %v24077_v38 = vadd.f32 %v18040_v58, %v9360_v45  ;;  %v9359_v28 = vadd.f32 %v9208_v19, %v26716_v3  ;;  %v9915_v51 = vpop.f32.mrf.mxu0  ;;  %v26718_v45 = vld [vmem:[#allocation62_spill] sm:$0xff]  ;;  %v11518_v19 = vld [vmem:[#allocation3 + $0xe0] sm:$0xff] }
 0x5f0   :  { %v17945_v4 = vpop.f32.mrf.mxu1  ;;  %18288 = vmatmul.mubr.msk.f32.gmra.mxu1 %vm6670_vm3, %v11516_v53 }
 0x5f1   :  { %v24081_v17 = vadd.f32 %v9915_v51, %v9359_v28  ;;  %v9362_v59 = vadd.f32 %v17945_v4, %v23583_v33  ;;  %v18043_v31 = vpop.f32.mrf.mxu0  ;;  %18386 = vmatmul.mubr.msk.f32.gmra.mxu0 %vm6670_vm3, %v26717_v29  ;;  %18290 = vmatprep.mubr.msk.f32.mxu1 %vm6670_vm3, %v11517_v60  ;;  %v11519_v33 = vld [vmem:[#allocation3 + $0xf0] sm:$0xff]  ;;  %v26719_v4 = vld [vmem:[#allocation32_spill] sm:$0xff] }
 0x5f2   :  { %18388 = vmatprep.mubr.msk.f32.mxu0 %vm6670_vm3, %v23593_v61  ;;  %v9218_v12 = vpop.f32.mrf.mxu1 }
 0x5f3   :  { %v24089_v56 = vadd.f32 %v18043_v31, %v9362_v59  ;;  %v9361_v58 = vadd.f32 %v9218_v12, %v26718_v45  ;;  %v9925_v47 = vpop.f32.mrf.mxu0  ;;  %v26720_v59 = vld [vmem:[#allocation64_spill] sm:$0xff]  ;;  %v11520_v12 = vld [vmem:[#allocation3 + $0xf8] sm:$0xff] }
 0x5f4   :  { %v17948_v3 = vpop.f32.mrf.mxu1  ;;  %18291 = vmatmul.mubr.msk.f32.gmra.mxu1 %vm6670_vm3, %v11518_v19 }
 0x5f5   :  { %v24093_v28 = vadd.f32 %v9925_v47, %v9361_v58  ;;  %v9364_v51 = vadd.f32 %v17948_v3, %v23599_v35  ;;  %v18046_v53 = vpop.f32.mrf.mxu0  ;;  %18389 = vmatmul.mubr.msk.f32.gmra.mxu0 %vm6670_vm3, %v26719_v4  ;;  %18293 = vmatprep.mubr.msk.f32.mxu1 %vm6670_vm3, %v11519_v33  ;;  %v11521_v35 = vld [vmem:[#allocation3 + $0x108] sm:$0xff]  ;;  %v26721_v3 = vld [vmem:[#allocation33_spill] sm:$0xff] }
 0x5f6   :  { %18391 = vmatprep.mubr.msk.f32.mxu0 %vm6670_vm3, %v23609_v63  ;;  %v9228_v61 = vpop.f32.mrf.mxu1 }
 0x5f7   :  { %v24101_v60 = vadd.f32 %v18046_v53, %v9364_v51  ;;  %v9363_v31 = vadd.f32 %v9228_v61, %v26720_v59  ;;  %v9935_v29 = vpop.f32.mrf.mxu0  ;;  %v26722_v51 = vld [vmem:[#allocation82_spill] sm:$0xff]  ;;  %v11522_v61 = vld [vmem:[#allocation3 + $0x110] sm:$0xff] }
 0x5f8   :  { %v17951_v45 = vpop.f32.mrf.mxu1  ;;  %18294 = vmatmul.mubr.msk.f32.gmra.mxu1 %vm6670_vm3, %v11520_v12 }
 0x5f9   :  { %v24105_v58 = vadd.f32 %v9935_v29, %v9363_v31  ;;  %v9366_v47 = vadd.f32 %v17951_v45, %v23615_v23  ;;  %v18049_v19 = vpop.f32.mrf.mxu0  ;;  %18392 = vmatmul.mubr.msk.f32.gmra.mxu0 %vm6670_vm3, %v26721_v3  ;;  %18296 = vmatprep.mubr.msk.f32.mxu1 %vm6670_vm3, %v11521_v35  ;;  %v11523_v23 = vld [vmem:[#allocation3 + $0x120] sm:$0xff]  ;;  %v26723_v45 = vld [vmem:[#allocation68_spill] sm:$0xff] }
 0x5fa   :  { %18394 = vmatprep.mubr.msk.f32.mxu0 %vm6670_vm3, %v23625_v54  ;;  %v9238_v63 = vpop.f32.mrf.mxu1 }
 0x5fb   :  { %v24113_v33 = vadd.f32 %v18049_v19, %v9366_v47  ;;  %v9365_v53 = vadd.f32 %v9238_v63, %v26722_v51  ;;  %v9945_v4 = vpop.f32.mrf.mxu0  ;;  %v26725_v47 = vld [vmem:[#allocation71_spill] sm:$0xff]  ;;  %v11524_v63 = vld [vmem:[#allocation3 + $0x128] sm:$0xff] }
 0x5fc   :  { %v17954_v59 = vpop.f32.mrf.mxu1  ;;  %18297 = vmatmul.mubr.msk.f32.gmra.mxu1 %vm6670_vm3, %v11522_v61 }
 0x5fd   :  { %v24117_v31 = vadd.f32 %v9945_v4, %v9365_v53  ;;  %v9368_v29 = vadd.f32 %v17954_v59, %v23631_v46  ;;  %v18052_v12 = vpop.f32.mrf.mxu0  ;;  %18395 = vmatmul.mubr.msk.f32.gmra.mxu0 %vm6670_vm3, %v26723_v45  ;;  %18299 = vmatprep.mubr.msk.f32.mxu1 %vm6670_vm3, %v11523_v23  ;;  %v11525_v46 = vld [vmem:[#allocation3 + $0x138] sm:$0xff]  ;;  %v26727_v4 = vld [vmem:[#allocation37_spill] sm:$0xff]  ;;  %v26728_v23 = vld [vmem:[#allocation7_spill] sm:$0xff] }
 0x5fe   :  { %18397 = vmatprep.mubr.msk.f32.mxu0 %vm6670_vm3, %v23641_v18  ;;  %v9248_v54 = vpop.f32.mrf.mxu1  ;;  %v26729_v18 = vld [vmem:[#allocation55_spill] sm:$0xff]  ;;  %v26731_v45 = vld [vmem:[#allocation54_spill] sm:$0xff] }
 0x5ff   :  { %v24125_v35 = vadd.f32 %v18052_v12, %v9368_v29  ;;  %v9367_v19 = vadd.f32 %v9248_v54, %v26725_v47  ;;  %v9955_v3 = vpop.f32.mrf.mxu0 }
 0x600   :  { %v17957_v51 = vpop.f32.mrf.mxu1  ;;  %18300 = vmatmul.mubr.msk.f32.gmra.mxu1 %vm6670_vm3, %v11524_v63  ;;  %v11526_v63 = vld [vmem:[#allocation3 + $0x140] sm:$0xff] }
 0x601   :  { %26724 = vst [vmem:[#allocation15_spill] sm:$0xff] %v24125_v35  ;;  %v24129_v53 = vadd.f32 %v9955_v3, %v9367_v19  ;;  %v9370_v61 = vadd.f32 %v17957_v51, %v26727_v4  ;;  %v18055_v59 = vpop.f32.mrf.mxu0  ;;  %18398 = vmatmul.mubr.msk.f32.gmra.mxu0 %vm6670_vm3, %v26728_v23  ;;  %18302 = vmatprep.mubr.msk.f32.mxu1 %vm6670_vm3, %v11525_v46  ;;  %v11527_v3 = vld [vmem:[#allocation3 + $0x150] sm:$0xff]  ;;  %v26733_v4 = vld [vmem:[#allocation56_spill] sm:$0xff]  ;;  %v26751_v35 = vld [vmem:[#allocation39_spill] sm:$0xff] }
 0x602   :  { %18400 = vmatprep.mubr.msk.f32.mxu0 %vm6670_vm3, %v26729_v18  ;;  %v9258_v29 = vpop.f32.mrf.mxu1  ;;  %v26734_v46 = vld [vmem:[#allocation57_spill] sm:$0xff] }
 0x603   :  { %26726 = vst [vmem:[#allocation83_spill] sm:$0xff] %v24129_v53  ;;  %v24137_v12 = vadd.f32 %v18055_v59, %v9370_v61  ;;  %v9369_v54 = vadd.f32 %v9258_v29, %v26731_v45  ;;  %v9965_v47 = vpop.f32.mrf.mxu0  ;;  %v26735_v61 = vld [vmem:[#allocation59_spill] sm:$0xff] }
 0x604   :  { %v17960_v19 = vpop.f32.mrf.mxu1  ;;  %18303 = vmatmul.mubr.msk.f32.gmra.mxu1 %vm6670_vm3, %v11526_v63  ;;  %v26737_v29 = vld [vmem:[#allocation31_spill] sm:$0xff] }
 0x605   :  { %26730 = vst [vmem:[#allocation86_spill] sm:$0xff] %v24137_v12  ;;  %v24141_v51 = vadd.f32 %v9965_v47, %v9369_v54  ;;  %v9372_v23 = vadd.f32 %v17960_v19, %v26733_v4  ;;  %v18058_v53 = vpop.f32.mrf.mxu0  ;;  %18401 = vmatmul.mubr.msk.f32.gmra.mxu0 %vm6670_vm3, %v26734_v46  ;;  %18305 = vmatprep.mubr.msk.f32.mxu1 %vm6670_vm3, %v11527_v3  ;;  %v11528_v12 = vld [vmem:[#allocation3 + $0x158] sm:$0xff]  ;;  %v11529_v47 = vld [vmem:[#allocation3 + $0x168] sm:$0xff]  ;;  %v26739_v4 = vld [vmem:[#allocation81_spill] sm:$0xff] }
 0x606   :  { %18403 = vmatprep.mubr.msk.f32.mxu0 %vm6670_vm3, %v26735_v61  ;;  %v9268_v59 = vpop.f32.mrf.mxu1  ;;  %v26740_v3 = vld [vmem:[#allocation61_spill] sm:$0xff] }
 0x607   :  { %26732 = vst [vmem:[#allocation18_spill] sm:$0xff] %v24141_v51  ;;  %v24149_v18 = vadd.f32 %v18058_v53, %v9372_v23  ;;  %v9371_v45 = vadd.f32 %v9268_v59, %v26737_v29  ;;  %v9975_v63 = vpop.f32.mrf.mxu0  ;;  %v26741_v53 = vld [vmem:[#allocation63_spill] sm:$0xff]  ;;  %v26743_v59 = vld [vmem:[#allocation34_spill] sm:$0xff] }
 0x608   :  { %v17963_v54 = vpop.f32.mrf.mxu1  ;;  %18306 = vmatmul.mubr.msk.f32.gmra.mxu1 %vm6670_vm3, %v11528_v12 }
 0x609   :  { %26736 = vst [vmem:[#allocation17_spill] sm:$0xff] %v24149_v18  ;;  %v24153_v19 = vadd.f32 %v9975_v63, %v9371_v45  ;;  %v9374_v46 = vadd.f32 %v17963_v54, %v26739_v4  ;;  %v18061_v51 = vpop.f32.mrf.mxu0  ;;  %18404 = vmatmul.mubr.msk.f32.gmra.mxu0 %vm6670_vm3, %v26740_v3  ;;  %18308 = vmatprep.mubr.msk.f32.mxu1 %vm6670_vm3, %v11529_v47  ;;  %v11530_v18 = vld [vmem:[#allocation3 + $0x170] sm:$0xff]  ;;  %v11531_v63 = vld [vmem:[#allocation3 + $0x180] sm:$0xff] }
 0x60a   :  { %18406 = vmatprep.mubr.msk.f32.mxu0 %vm6670_vm3, %v26741_v53  ;;  %v9278_v23 = vpop.f32.mrf.mxu1  ;;  %v26745_v4 = vld [vmem:[#allocation67_spill] sm:$0xff]  ;;  %v11533_v53 = vld [vmem:[#allocation3 + $0x198] sm:$0xff] }
 0x60b   :  { %26738 = vst [vmem:[#allocation85_spill] sm:$0xff] %v24153_v19  ;;  %v24161_v61 = vadd.f32 %v18061_v51, %v9374_v46  ;;  %v9373_v29 = vadd.f32 %v9278_v23, %v26743_v59  ;;  %v9985_v12 = vpop.f32.mrf.mxu0  ;;  %v26746_v47 = vld [vmem:[#allocation35_spill] sm:$0xff]  ;;  %v26747_v51 = vld [vmem:[#allocation38_spill] sm:$0xff]  ;;  %v26749_v59 = vld [vmem:[#allocation65_spill] sm:$0xff] }
 0x60c   :  { %v17966_v45 = vpop.f32.mrf.mxu1  ;;  %18309 = vmatmul.mubr.msk.f32.gmra.mxu1 %vm6670_vm3, %v11530_v18 }
 0x60d   :  { %26742 = vst [vmem:[#allocation88_spill] sm:$0xff] %v24161_v61  ;;  %v24165_v54 = vadd.f32 %v9985_v12, %v9373_v29  ;;  %v9376_v3 = vadd.f32 %v17966_v45, %v26745_v4  ;;  %v18064_v19 = vpop.f32.mrf.mxu0  ;;  %18407 = vmatmul.mubr.msk.f32.gmra.mxu0 %vm6670_vm3, %v26746_v47  ;;  %18311 = vmatprep.mubr.msk.f32.mxu1 %vm6670_vm3, %v11531_v63  ;;  %v11532_v29 = vld [vmem:[#allocation3 + $0x188] sm:$0xff]  ;;  %v12240_v12 = vld [vmem:[#allocation3 + $0x199] sm:$0xff] }
 0x60e   :  { %18409 = vmatprep.mubr.msk.f32.mxu0 %vm6670_vm3, %v26747_v51  ;;  %v9288_v46 = vpop.f32.mrf.mxu1  ;;  %v26750_v4 = vld [vmem:[#allocation66_spill] sm:$0xff]  ;;  %v12241_v51 = vld [vmem:[#allocation3 + $0x1a1] sm:$0xff] }
 0x60f   :  { %26744 = vst [vmem:[#allocation20_spill] sm:$0xff] %v24165_v54  ;;  %v24173_v23 = vadd.f32 %v18064_v19, %v9376_v3  ;;  %v9375_v18 = vadd.f32 %v9288_v46, %v26749_v59  ;;  %v9995_v61 = vpop.f32.mrf.mxu0  ;;  %v11534_v19 = vld [vmem:[#allocation3 + $0x1a0] sm:$0xff]  ;;  %v26753_v59 = vld [vmem:[#allocation36_spill] sm:$0xff] }
 0x610   :  { %v17969_v54 = vpop.f32.mrf.mxu1  ;;  %18312 = vmatmul.mubr.msk.f32.gmra.mxu1 %vm6670_vm3, %v11532_v29 }
 0x611   :  { %26748 = vst [vmem:[#allocation19_spill] sm:$0xff] %v24173_v23  ;;  %v24177_v45 = vadd.f32 %v9995_v61, %v9375_v18  ;;  %v9378_v47 = vadd.f32 %v17969_v54, %v26750_v4  ;;  %v18067_v63 = vpop.f32.mrf.mxu0  ;;  %18410 = vmatmul.mubr.msk.f32.gmra.mxu0 %vm6670_vm3, %v26751_v35  ;;  %18314 = vmatprep.mubr.msk.f32.mxu1 %vm6670_vm3, %v11533_v53  ;;  %v11535_v54 = vld [vmem:[#allocation3 + $0x1e0] sm:$0xff]  ;;  %v26754_v53 = vld [vmem:[#allocation96_spill] sm:$0xff] }
 0x612   :  { %v9298_v3 = vpop.f32.mrf.mxu1  ;;  %18412 = vmatprep.mubr.msk.f32.mxu0 %vm6670_vm3, %v12240_v12 }
 0x613   :  { %v24184_v46 = vadd.f32 %v18067_v63, %v9378_v47  ;;  %v9377_v23 = vadd.f32 %v9298_v3, %v26753_v59  ;;  %v10005_v29 = vpop.f32.mrf.mxu0  ;;  %v26755_v63 = vld [vmem:[#allocation69_spill] sm:$0xff] }
 0x614   :  { %v17972_v61 = vpop.f32.mrf.mxu1  ;;  %18315 = vmatmul.mubr.msk.f32.gmra.mxu1 %vm6670_vm3, %v11534_v19  ;;  %v11536_v19 = vld [vmem:[#allocation3 + $0x1e8] sm:$0xff] }
 0x615   :  { %26752 = vst [vmem:[#allocation87_spill] sm:$0xff] %v24184_v46  ;;  %v24188_v18 = vadd.f32 %v10005_v29, %v9377_v23  ;;  %v9380_v35 = vadd.f32 %v17972_v61, %v23722_v42  ;;  %v18070_v4 = vpop.f32.mrf.mxu0  ;;  %18413 = vmatmul.mubr.msk.f32.gmra.mxu0 %vm6670_vm3, %v12241_v51  ;;  %18317 = vmatprep.mubr.msk.f32.mxu1 %vm6670_vm3, %v11535_v54  ;;  %v11537_v23 = vld [vmem:[#allocation3 + $0x1f8] sm:$0xff] }
 0x616   :  { %18415 = vmatprep.mubr.msk.f32.mxu0 %vm6670_vm3, %v26754_v53  ;;  %v9308_v12 = vpop.f32.mrf.mxu1 }
 0x617   :  { %v24195_v47 = vadd.f32 %v18070_v4, %v9380_v35  ;;  %v9379_v3 = vadd.f32 %v9308_v12, %v26755_v63  ;;  %v10015_v59 = vpop.f32.mrf.mxu0  ;;  %v26756_v35 = vld [vmem:[#allocation72_spill] sm:$0xff]  ;;  %v11538_v12 = vld [vmem:[#allocation3 + $0x200] sm:$0xff] }
 0x618   :  { %v18075_v46 = vpop.f32.mrf.mxu1  ;;  %18318 = vmatmul.mubr.msk.f32.gmra.mxu1 %vm6670_vm3, %v11536_v19 }
 0x619   :  { %v24199_v42 = vadd.f32 %v10015_v59, %v9379_v3  ;;  %v10732_v51 = vadd.f32 %v18075_v46, %v23740_v25  ;;  %v18173_v29 = vpop.f32.mrf.mxu0  ;;  %18416 = vmatmul.mubr.msk.f32.gmra.mxu0 %vm6670_vm3, %v23742_v24  ;;  %18320 = vmatprep.mubr.msk.f32.mxu1 %vm6670_vm3, %v11537_v23  ;;  %v11539_v25 = vld [vmem:[#allocation3 + $0x210] sm:$0xff]  ;;  %v26757_v59 = vld [vmem:[#allocation70_spill] sm:$0xff]  ;;  %v26758_v23 = vld [vmem:[#allocation40_spill] sm:$0xff] }
 0x61a   :  { %18418 = vmatprep.mubr.msk.f32.mxu0 %vm6670_vm3, %v23746_v37  ;;  %v10412_v61 = vpop.f32.mrf.mxu1 }
 0x61b   :  { %v24207_v54 = vadd.f32 %v18173_v29, %v10732_v51  ;;  %v10731_v4 = vadd.f32 %v10412_v61, %v26756_v35  ;;  %v11119_v53 = vpop.f32.mrf.mxu0  ;;  %v11540_v61 = vld [vmem:[#allocation3 + $0x218] sm:$0xff] }
 0x61c   :  { %v18078_v63 = vpop.f32.mrf.mxu1  ;;  %18321 = vmatmul.mubr.msk.f32.gmra.mxu1 %vm6670_vm3, %v11538_v12 }
 0x61d   :  { %v24211_v46 = vadd.f32 %v11119_v53, %v10731_v4  ;;  %v10734_v24 = vadd.f32 %v18078_v63, %v23757_v22  ;;  %v18176_v3 = vpop.f32.mrf.mxu0  ;;  %18419 = vmatmul.mubr.msk.f32.gmra.mxu0 %vm6670_vm3, %v26757_v59  ;;  %18323 = vmatprep.mubr.msk.f32.mxu1 %vm6670_vm3, %v11539_v25  ;;  %v11541_v22 = vld [vmem:[#allocation3 + $0x228] sm:$0xff]  ;;  %v26759_v63 = vld [vmem:[#allocation99_spill] sm:$0xff] }
 0x61e   :  { %18421 = vmatprep.mubr.msk.f32.mxu0 %vm6670_vm3, %v23764_v15  ;;  %v10422_v37 = vpop.f32.mrf.mxu1 }
 0x61f   :  { %v24219_v19 = vadd.f32 %v18176_v3, %v10734_v24  ;;  %v10733_v51 = vadd.f32 %v10422_v37, %v26758_v23  ;;  %v11129_v29 = vpop.f32.mrf.mxu0  ;;  %v26760_v24 = vld [vmem:[#allocation74_spill] sm:$0xff]  ;;  %v11542_v37 = vld [vmem:[#allocation3 + $0x230] sm:$0xff] }
 0x620   :  { %v18081_v35 = vpop.f32.mrf.mxu1  ;;  %18324 = vmatmul.mubr.msk.f32.gmra.mxu1 %vm6670_vm3, %v11540_v61 }
 0x621   :  { %v24223_v4 = vadd.f32 %v11129_v29, %v10733_v51  ;;  %v10736_v53 = vadd.f32 %v18081_v35, %v23775_v26  ;;  %v18179_v12 = vpop.f32.mrf.mxu0  ;;  %18422 = vmatmul.mubr.msk.f32.gmra.mxu0 %vm6670_vm3, %v26759_v63  ;;  %18326 = vmatprep.mubr.msk.f32.mxu1 %vm6670_vm3, %v11541_v22  ;;  %v11543_v26 = vld [vmem:[#allocation3 + $0x240] sm:$0xff]  ;;  %v26761_v35 = vld [vmem:[#allocation73_spill] sm:$0xff] }
 0x622   :  { %18424 = vmatprep.mubr.msk.f32.mxu0 %vm6670_vm3, %v23782_v11  ;;  %v10432_v15 = vpop.f32.mrf.mxu1 }
 0x623   :  { %v24231_v25 = vadd.f32 %v18179_v12, %v10736_v53  ;;  %v10735_v3 = vadd.f32 %v10432_v15, %v26760_v24  ;;  %v11139_v59 = vpop.f32.mrf.mxu0  ;;  %v26762_v53 = vld [vmem:[#allocation8_spill] sm:$0xff] }
 0x624   :  { %v18084_v23 = vpop.f32.mrf.mxu1  ;;  %18327 = vmatmul.mubr.msk.f32.gmra.mxu1 %vm6670_vm3, %v11542_v37  ;;  %v11544_v15 = vld [vmem:[#allocation3 + $0x248] sm:$0xff] }
 0x625   :  { %v24235_v51 = vadd.f32 %v11139_v59, %v10735_v3  ;;  %v10738_v29 = vadd.f32 %v18084_v23, %v23793_v62  ;;  %v18182_v61 = vpop.f32.mrf.mxu0  ;;  %18425 = vmatmul.mubr.msk.f32.gmra.mxu0 %vm6670_vm3, %v26761_v35  ;;  %18329 = vmatprep.mubr.msk.f32.mxu1 %vm6670_vm3, %v11543_v26  ;;  %v11545_v62 = vld [vmem:[#allocation3 + $0x258] sm:$0xff]  ;;  %v26763_v23 = vld [vmem:[#allocation43_spill] sm:$0xff] }
 0x626   :  { %18427 = vmatprep.mubr.msk.f32.mxu0 %vm6670_vm3, %v23800_v5  ;;  %v10442_v11 = vpop.f32.mrf.mxu1 }
 0x627   :  { %v24243_v22 = vadd.f32 %v18182_v61, %v10738_v29  ;;  %v10737_v12 = vadd.f32 %v10442_v11, %v26762_v53  ;;  %v11149_v63 = vpop.f32.mrf.mxu0  ;;  %v26764_v29 = vld [vmem:[#allocation10_spill] sm:$0xff]  ;;  %v11546_v11 = vld [vmem:[#allocation3 + $0x260] sm:$0xff] }
 0x628   :  { %v18087_v24 = vpop.f32.mrf.mxu1  ;;  %18330 = vmatmul.mubr.msk.f32.gmra.mxu1 %vm6670_vm3, %v11544_v15 }
 0x629   :  { %v24247_v3 = vadd.f32 %v11149_v63, %v10737_v12  ;;  %v10740_v59 = vadd.f32 %v18087_v24, %v23811_v34  ;;  %v18185_v37 = vpop.f32.mrf.mxu0  ;;  %18428 = vmatmul.mubr.msk.f32.gmra.mxu0 %vm6670_vm3, %v26763_v23  ;;  %18332 = vmatprep.mubr.msk.f32.mxu1 %vm6670_vm3, %v11545_v62  ;;  %v11547_v34 = vld [vmem:[#allocation3 + $0x270] sm:$0xff] }
 0x62a   :  { %18430 = vmatprep.mubr.msk.f32.mxu0 %vm6670_vm3, %v23818_v40  ;;  %v10452_v5 = vpop.f32.mrf.mxu1  ;;  %v26765_v24 = vld [vmem:[#allocation9_spill] sm:$0xff] }
 0x62b   :  { %v24255_v26 = vadd.f32 %v18185_v37, %v10740_v59  ;;  %v10739_v61 = vadd.f32 %v10452_v5, %v26764_v29  ;;  %v11159_v35 = vpop.f32.mrf.mxu0  ;;  %v26766_v59 = vld [vmem:[#allocation41_spill] sm:$0xff]  ;;  %v11548_v5 = vld [vmem:[#allocation3 + $0x278] sm:$0xff] }
 0x62c   :  { %v18090_v53 = vpop.f32.mrf.mxu1  ;;  %18333 = vmatmul.mubr.msk.f32.gmra.mxu1 %vm6670_vm3, %v11546_v11 }
 0x62d   :  { %v24259_v12 = vadd.f32 %v11159_v35, %v10739_v61  ;;  %v10742_v63 = vadd.f32 %v18090_v53, %v23829_v36  ;;  %v18188_v15 = vpop.f32.mrf.mxu0  ;;  %18431 = vmatmul.mubr.msk.f32.gmra.mxu0 %vm6670_vm3, %v26765_v24  ;;  %18335 = vmatprep.mubr.msk.f32.mxu1 %vm6670_vm3, %v11547_v34  ;;  %v11549_v36 = vld [vmem:[#allocation3 + $0x288] sm:$0xff]  ;;  %v26767_v53 = vld [vmem:[#allocation46_spill] sm:$0xff] }
 0x62e   :  { %18433 = vmatprep.mubr.msk.f32.mxu0 %vm6670_vm3, %v23836_v16  ;;  %v10462_v40 = vpop.f32.mrf.mxu1 }
 0x62f   :  { %v24267_v62 = vadd.f32 %v18188_v15, %v10742_v63  ;;  %v10741_v37 = vadd.f32 %v10462_v40, %v26766_v59  ;;  %v11169_v23 = vpop.f32.mrf.mxu0  ;;  %v26768_v63 = vld [vmem:[#allocation75_spill] sm:$0xff]  ;;  %v11550_v40 = vld [vmem:[#allocation3 + $0x290] sm:$0xff] }
 0x630   :  { %v18093_v29 = vpop.f32.mrf.mxu1  ;;  %18336 = vmatmul.mubr.msk.f32.gmra.mxu1 %vm6670_vm3, %v11548_v5 }
 0x631   :  { %v24271_v61 = vadd.f32 %v11169_v23, %v10741_v37  ;;  %v10744_v35 = vadd.f32 %v18093_v29, %v23847_v13  ;;  %v18191_v11 = vpop.f32.mrf.mxu0  ;;  %18434 = vmatmul.mubr.msk.f32.gmra.mxu0 %vm6670_vm3, %v26767_v53  ;;  %18338 = vmatprep.mubr.msk.f32.mxu1 %vm6670_vm3, %v11549_v36  ;;  %v11551_v13 = vld [vmem:[#allocation3 + $0x2a0] sm:$0xff]  ;;  %v26769_v29 = vld [vmem:[#allocation44_spill] sm:$0xff] }
 0x632   :  { %18436 = vmatprep.mubr.msk.f32.mxu0 %vm6670_vm3, %v23854_v6  ;;  %v10472_v16 = vpop.f32.mrf.mxu1 }
 0x633   :  { %v24279_v34 = vadd.f32 %v18191_v11, %v10744_v35  ;;  %v10743_v15 = vadd.f32 %v10472_v16, %v26768_v63  ;;  %v11179_v24 = vpop.f32.mrf.mxu0  ;;  %v26770_v35 = vld [vmem:[#allocation47_spill] sm:$0xff]  ;;  %v11552_v16 = vld [vmem:[#allocation3 + $0x2a8] sm:$0xff] }
 0x634   :  { %v18096_v59 = vpop.f32.mrf.mxu1  ;;  %18339 = vmatmul.mubr.msk.f32.gmra.mxu1 %vm6670_vm3, %v11550_v40 }
 0x635   :  { %v24283_v37 = vadd.f32 %v11179_v24, %v10743_v15  ;;  %v10746_v23 = vadd.f32 %v18096_v59, %v23865_v21  ;;  %v18194_v5 = vpop.f32.mrf.mxu0  ;;  %18437 = vmatmul.mubr.msk.f32.gmra.mxu0 %vm6670_vm3, %v26769_v29  ;;  %18341 = vmatprep.mubr.msk.f32.mxu1 %vm6670_vm3, %v11551_v13  ;;  %v11553_v21 = vld [vmem:[#allocation3 + $0x2b8] sm:$0xff]  ;;  %v26771_v59 = vld [vmem:[#allocation12_spill] sm:$0xff] }
 0x636   :  { %18439 = vmatprep.mubr.msk.f32.mxu0 %vm6670_vm3, %v23872_v52  ;;  %v10482_v6 = vpop.f32.mrf.mxu1 }
 0x637   :  { %v24291_v36 = vadd.f32 %v18194_v5, %v10746_v23  ;;  %v10745_v11 = vadd.f32 %v10482_v6, %v26770_v35  ;;  %v11189_v53 = vpop.f32.mrf.mxu0  ;;  %v26772_v23 = vld [vmem:[#allocation11_spill] sm:$0xff] }
 0x638   :  { %v18099_v63 = vpop.f32.mrf.mxu1  ;;  %18342 = vmatmul.mubr.msk.f32.gmra.mxu1 %vm6670_vm3, %v11552_v16  ;;  %v11554_v6 = vld [vmem:[#allocation3 + $0x2c0] sm:$0xff] }
 0x639   :  { %v24295_v15 = vadd.f32 %v11189_v53, %v10745_v11  ;;  %v10748_v24 = vadd.f32 %v18099_v63, %v23883_v2  ;;  %v18197_v40 = vpop.f32.mrf.mxu0  ;;  %18440 = vmatmul.mubr.msk.f32.gmra.mxu0 %vm6670_vm3, %v26771_v59  ;;  %18344 = vmatprep.mubr.msk.f32.mxu1 %vm6670_vm3, %v11553_v21  ;;  %v11555_v2 = vld [vmem:[#allocation3 + $0x2d0] sm:$0xff] }
 0x63a   :  { %18442 = vmatprep.mubr.msk.f32.mxu0 %vm6670_vm3, %v23890_v0  ;;  %v10492_v52 = vpop.f32.mrf.mxu1  ;;  %v26773_v63 = vld [vmem:[#allocation45_spill] sm:$0xff] }
 0x63b   :  { %v24303_v13 = vadd.f32 %v18197_v40, %v10748_v24  ;;  %v10747_v5 = vadd.f32 %v10492_v52, %v26772_v23  ;;  %v11199_v29 = vpop.f32.mrf.mxu0  ;;  %v26774_v0 = vld [vmem:[#allocation49_spill] sm:$0xff]  ;;  %v26775_v40 = vld [vmem:[#allocation76_spill] sm:$0xff]  ;;  %v11556_v23 = vld [vmem:[#allocation3 + $0x2d8] sm:$0xff] }
 0x63c   :  { %v18102_v35 = vpop.f32.mrf.mxu1  ;;  %18345 = vmatmul.mubr.msk.f32.gmra.mxu1 %vm6670_vm3, %v11554_v6 }
 0x63d   :  { %v24307_v11 = vadd.f32 %v11199_v29, %v10747_v5  ;;  %v10750_v53 = vadd.f32 %v18102_v35, %v23901_v7  ;;  %v18200_v16 = vpop.f32.mrf.mxu0  ;;  %18443 = vmatmul.mubr.msk.f32.gmra.mxu0 %vm6670_vm3, %v26773_v63  ;;  %18347 = vmatprep.mubr.msk.f32.mxu1 %vm6670_vm3, %v11555_v2  ;;  %v11557_v7 = vld [vmem:[#allocation3 + $0x2e8] sm:$0xff]  ;;  %v26776_v2 = vld [vmem:[#allocation77_spill] sm:$0xff] }
 0x63e   :  { %18445 = vmatprep.mubr.msk.f32.mxu0 %vm6670_vm3, %v26774_v0  ;;  %v10502_v21 = vpop.f32.mrf.mxu1  ;;  %v26778_v63 = vld [vmem:[#allocation13_spill] sm:$0xff] }
 0x63f   :  { %v24315_v24 = vadd.f32 %v18200_v16, %v10750_v53  ;;  %v10749_v59 = vadd.f32 %v10502_v21, %v26775_v40  ;;  %v11209_v52 = vpop.f32.mrf.mxu0  ;;  %v11558_v40 = vld [vmem:[#allocation3 + $0x2f0] sm:$0xff] }
 0x640   :  { %v18105_v5 = vpop.f32.mrf.mxu1  ;;  %18348 = vmatmul.mubr.msk.f32.gmra.mxu1 %vm6670_vm3, %v11556_v23  ;;  %v26779_v23 = vld [vmem:[#allocation48_spill] sm:$0xff] }
 0x641   :  { %v24319_v29 = vadd.f32 %v11209_v52, %v10749_v59  ;;  %v10752_v6 = vadd.f32 %v18105_v5, %v23919_v10  ;;  %v18203_v35 = vpop.f32.mrf.mxu0  ;;  %18446 = vmatmul.mubr.msk.f32.gmra.mxu0 %vm6670_vm3, %v26776_v2  ;;  %18350 = vmatprep.mubr.msk.f32.mxu1 %vm6670_vm3, %v11557_v7  ;;  %v11559_v10 = vld [vmem:[#allocation3 + $0x300] sm:$0xff] }
 0x642   :  { %18448 = vmatprep.mubr.msk.f32.mxu0 %vm6670_vm3, %v23926_v48  ;;  %v10512_v53 = vpop.f32.mrf.mxu1  ;;  %v26780_v7 = vld [vmem:[#allocation51_spill] sm:$0xff] }
 0x643   :  { %v24327_v16 = vadd.f32 %v18203_v35, %v10752_v6  ;;  %v10751_v0 = vadd.f32 %v10512_v53, %v26778_v63  ;;  %v11219_v21 = vpop.f32.mrf.mxu0  ;;  %v26781_v48 = vld [vmem:[#allocation79_spill] sm:$0xff]  ;;  %v26782_v53 = vld [vmem:[#allocation78_spill] sm:$0xff] }
 0x644   :  { %v18108_v59 = vpop.f32.mrf.mxu1  ;;  %18351 = vmatmul.mubr.msk.f32.gmra.mxu1 %vm6670_vm3, %v11558_v40 }
 0x645   :  { %26777 = vst [vmem:[#allocation90_spill] sm:$0xff] %v24327_v16  ;;  %v24331_v52 = vadd.f32 %v11219_v21, %v10751_v0  ;;  %v10754_v5 = vadd.f32 %v18108_v59, %v26779_v23  ;;  %v18206_v2 = vpop.f32.mrf.mxu0  ;;  %18449 = vmatmul.mubr.msk.f32.gmra.mxu0 %vm6670_vm3, %v26780_v7  ;;  %18353 = vmatprep.mubr.msk.f32.mxu1 %vm6670_vm3, %v11559_v10  ;;  %v11560_v16 = vld [vmem:[#allocation3 + $0x308] sm:$0xff]  ;;  %v11561_v21 = vld [vmem:[#allocation3 + $0x318] sm:$0xff] }
 0x646   :  { %18451 = vmatprep.mubr.msk.f32.mxu0 %vm6670_vm3, %v26781_v48  ;;  %v10522_v6 = vpop.f32.mrf.mxu1  ;;  %v26784_v10 = vld [vmem:[#allocation50_spill] sm:$0xff]  ;;  %v26786_v48 = vld [vmem:[#allocation53_spill] sm:$0xff] }
 0x647   :  { %v24339_v35 = vadd.f32 %v18206_v2, %v10754_v5  ;;  %v10753_v63 = vadd.f32 %v10522_v6, %v26782_v53  ;;  %v11229_v40 = vpop.f32.mrf.mxu0  ;;  %v11562_v53 = vld [vmem:[#allocation3 + $0x320] sm:$0xff] }
 0x648   :  { %v18111_v0 = vpop.f32.mrf.mxu1  ;;  %18354 = vmatmul.mubr.msk.f32.gmra.mxu1 %vm6670_vm3, %v11560_v16 }
 0x649   :  { %v24343_v59 = vadd.f32 %v11229_v40, %v10753_v63  ;;  %v10756_v23 = vadd.f32 %v18111_v0, %v23955_v20  ;;  %v18209_v7 = vpop.f32.mrf.mxu0  ;;  %18452 = vmatmul.mubr.msk.f32.gmra.mxu0 %vm6670_vm3, %v26784_v10  ;;  %18356 = vmatprep.mubr.msk.f32.mxu1 %vm6670_vm3, %v11561_v21  ;;  %v11563_v20 = vld [vmem:[#allocation3 + $0x330] sm:$0xff]  ;;  %v26788_v0 = vld [vmem:[#allocation14_spill] sm:$0xff]  ;;  %v26789_v21 = vld [vmem:[#allocation80_spill] sm:$0xff] }
 0x64a   :  { %18454 = vmatprep.mubr.msk.f32.mxu0 %vm6670_vm3, %v23962_v30  ;;  %v10532_v5 = vpop.f32.mrf.mxu1  ;;  %v26790_v30 = vld [vmem:[#allocation52_spill] sm:$0xff] }
 0x64b   :  { %26783 = vst [vmem:[#allocation22_spill] sm:$0xff] %v24343_v59  ;;  %v24351_v2 = vadd.f32 %v18209_v7, %v10756_v23  ;;  %v10755_v6 = vadd.f32 %v10532_v5, %v26786_v48  ;;  %v11239_v16 = vpop.f32.mrf.mxu0  ;;  %v11565_v7 = vld [vmem:[#allocation3 + $0x348] sm:$0xff] }
 0x64c   :  { %v18114_v63 = vpop.f32.mrf.mxu1  ;;  %18357 = vmatmul.mubr.msk.f32.gmra.mxu1 %vm6670_vm3, %v11562_v53  ;;  %v26791_v48 = vld [vmem:[#allocation84_spill] sm:$0xff] }
 0x64d   :  { %26785 = vst [vmem:[#allocation89_spill] sm:$0xff] %v24351_v2  ;;  %v24355_v40 = vadd.f32 %v11239_v16, %v10755_v6  ;;  %v10758_v10 = vadd.f32 %v18114_v63, %v26788_v0  ;;  %v18212_v59 = vpop.f32.mrf.mxu0  ;;  %18455 = vmatmul.mubr.msk.f32.gmra.mxu0 %vm6670_vm3, %v26789_v21  ;;  %18359 = vmatprep.mubr.msk.f32.mxu1 %vm6670_vm3, %v11563_v20  ;;  %v11564_v6 = vld [vmem:[#allocation3 + $0x338] sm:$0xff]  ;;  %v12272_v16 = vld [vmem:[#allocation3 + $0x349] sm:$0xff] }
 0x64e   :  { %18457 = vmatprep.mubr.msk.f32.mxu0 %vm6670_vm3, %v26790_v30  ;;  %v10542_v23 = vpop.f32.mrf.mxu1  ;;  %v26792_v21 = vld [vmem:[#allocation16_spill] sm:$0xff]  ;;  %v12273_v30 = vld [vmem:[#allocation3 + $0x351] sm:$0xff] }
 0x64f   :  { %26787 = vst [vmem:[#allocation21_spill] sm:$0xff] %v24355_v40  ;;  %v24363_v5 = vadd.f32 %v18212_v59, %v10758_v10  ;;  %v10757_v53 = vadd.f32 %v10542_v23, %v26791_v48  ;;  %v11249_v2 = vpop.f32.mrf.mxu0  ;;  %v11566_v59 = vld [vmem:[#allocation3 + $0x350] sm:$0xff] }
 0x650   :  { %v18117_v40 = vpop.f32.mrf.mxu1  ;;  %18360 = vmatmul.mubr.msk.f32.gmra.mxu1 %vm6670_vm3, %v11564_v6 }
 0x651   :  { %v24367_v63 = vadd.f32 %v11249_v2, %v10757_v53  ;;  %v10760_v0 = vadd.f32 %v18117_v40, %v23990_v41  ;;  %v18215_v20 = vpop.f32.mrf.mxu0  ;;  %18458 = vmatmul.mubr.msk.f32.gmra.mxu0 %vm6670_vm3, %v26792_v21  ;;  %18362 = vmatprep.mubr.msk.f32.mxu1 %vm6670_vm3, %v11565_v7  ;;  %v12917_v41 = vld [vmem:[#allocation3 + $0x32] sm:$0xff] }
 0x652   :  { %v10552_v10 = vpop.f32.mrf.mxu1  ;;  %18460 = vmatprep.mubr.msk.f32.mxu0 %vm6670_vm3, %v12272_v16 }
 0x653   :  { %v24374_v23 = vadd.f32 %v18215_v20, %v10760_v0  ;;  %v10759_v48 = vadd.f32 %v10552_v10, %v23997_v27  ;;  %v11259_v6 = vpop.f32.mrf.mxu0  ;;  %v12918_v20 = vld [vmem:[#allocation3 + $0x3a] sm:$0xff] }
 0x654   :  { %v18120_v2 = vpop.f32.mrf.mxu1  ;;  %18363 = vmatmul.mubr.msk.f32.gmra.mxu1 %vm6670_vm3, %v11566_v59  ;;  %v12919_v59 = vld [vmem:[#allocation3 + $0x4a] sm:$0xff] }
 0x655   :  { %v24378_v40 = vadd.f32 %v11259_v6, %v10759_v48  ;;  %v10762_v53 = vadd.f32 %v18120_v2, %v24004_v50  ;;  %v18218_v21 = vpop.f32.mrf.mxu0  ;;  %18465 = vmatprep.mubr.msk.f32.mxu1 %vm6670_vm3, %v12917_v41  ;;  %18461 = vmatmul.mubr.msk.f32.gmra.mxu0 %vm6670_vm3, %v12273_v30 }
 0x656   :  { %v10562_v7 = vpop.f32.mrf.mxu1 }
 0x657   :  { %v24383_v16 = vadd.f32 %v18218_v21, %v10762_v53  ;;  %v10761_v0 = vadd.f32 %v10562_v7, %v24008_v32  ;;  %v11269_v27 = vpop.f32.mrf.mxu0  ;;  %v12920_v32 = vld [vmem:[#allocation3 + $0x52] sm:$0xff]  ;;  %v12921_v7 = vld [vmem:[#allocation3 + $0x62] sm:$0xff] }
 0x658   :  { %v18123_v10 = vpop.f32.mrf.mxu1  ;;  %18466 = vmatmul.mubr.msk.f32.vlgmr.msra.gmra.mxu1 %vm6670_vm3, %v12918_v20 }
 0x659   :  { %v24387_v48 = vadd.f32 %v11269_v27, %v10761_v0  ;;  %v10764_v50 = vadd.f32 %v18123_v10, %v24017_v49  ;;  %v18221_v6 = vpop.f32.mrf.mxu0  ;;  %18468 = vmatprep.mubr.msk.f32.mxu1 %vm6670_vm3, %v12919_v59 }
 0x65a   :  { %v10572_v2 = vpop.f32.mrf.mxu1 }
 0x65b   :  { %v24391_v30 = vadd.f32 %v18221_v6, %v10764_v50  ;;  %v10763_v41 = vadd.f32 %v10572_v2, %v24021_v44  ;;  %v11279_v53 = vpop.f32.mrf.mxu0  ;;  %v12922_v44 = vld [vmem:[#allocation3 + $0x6a] sm:$0xff]  ;;  %v12923_v2 = vld [vmem:[#allocation3 + $0x7a] sm:$0xff] }
 0x65c   :  { %v18126_v21 = vpop.f32.mrf.mxu1  ;;  %18469 = vmatmul.mubr.msk.f32.gmra.mxu1 %vm6670_vm3, %v12920_v32 }
 0x65d   :  { %v24395_v20 = vadd.f32 %v11279_v53, %v10763_v41  ;;  %v10766_v0 = vadd.f32 %v18126_v21, %v24029_v14  ;;  %v18224_v27 = vpop.f32.mrf.mxu0  ;;  %18471 = vmatprep.mubr.msk.f32.mxu1 %vm6670_vm3, %v12921_v7 }
 0x65e   :  { %v10582_v49 = vpop.f32.mrf.mxu1 }
 0x65f   :  { %v24399_v10 = vadd.f32 %v18224_v27, %v10766_v0  ;;  %v10765_v59 = vadd.f32 %v10582_v49, %v24033_v8  ;;  %v11289_v50 = vpop.f32.mrf.mxu0  ;;  %v12924_v8 = vld [vmem:[#allocation3 + $0x82] sm:$0xff]  ;;  %v12925_v49 = vld [vmem:[#allocation3 + $0x92] sm:$0xff] }
 0x660   :  { %v18129_v6 = vpop.f32.mrf.mxu1  ;;  %18472 = vmatmul.mubr.msk.f32.gmra.mxu1 %vm6670_vm3, %v12922_v44 }
 0x661   :  { %v24403_v32 = vadd.f32 %v11289_v50, %v10765_v59  ;;  %v10768_v41 = vadd.f32 %v18129_v6, %v24041_v9  ;;  %v18227_v53 = vpop.f32.mrf.mxu0  ;;  %18474 = vmatprep.mubr.msk.f32.mxu1 %vm6670_vm3, %v12923_v2 }
 0x662   :  { %v10592_v14 = vpop.f32.mrf.mxu1 }
 0x663   :  { %v24407_v21 = vadd.f32 %v18227_v53, %v10768_v41  ;;  %v10767_v7 = vadd.f32 %v10592_v14, %v24045_v43  ;;  %v11299_v0 = vpop.f32.mrf.mxu0  ;;  %v12926_v43 = vld [vmem:[#allocation3 + $0x9a] sm:$0xff]  ;;  %v12927_v14 = vld [vmem:[#allocation3 + $0xaa] sm:$0xff] }
 0x664   :  { %v18132_v27 = vpop.f32.mrf.mxu1  ;;  %18475 = vmatmul.mubr.msk.f32.gmra.mxu1 %vm6670_vm3, %v12924_v8 }
 0x665   :  { %v24411_v44 = vadd.f32 %v11299_v0, %v10767_v7  ;;  %v10770_v59 = vadd.f32 %v18132_v27, %v24053_v1  ;;  %v18230_v50 = vpop.f32.mrf.mxu0  ;;  %18477 = vmatprep.mubr.msk.f32.mxu1 %vm6670_vm3, %v12925_v49 }
 0x666   :  { %v10602_v9 = vpop.f32.mrf.mxu1 }
 0x667   :  { %v24415_v6 = vadd.f32 %v18230_v50, %v10770_v59  ;;  %v10769_v2 = vadd.f32 %v10602_v9, %v24057_v39  ;;  %v11309_v41 = vpop.f32.mrf.mxu0  ;;  %v12928_v39 = vld [vmem:[#allocation3 + $0xb2] sm:$0xff]  ;;  %v12929_v9 = vld [vmem:[#allocation3 + $0xc2] sm:$0xff] }
 0x668   :  { %v18135_v53 = vpop.f32.mrf.mxu1  ;;  %18478 = vmatmul.mubr.msk.f32.gmra.mxu1 %vm6670_vm3, %v12926_v43 }
 0x669   :  { %v24419_v8 = vadd.f32 %v11309_v41, %v10769_v2  ;;  %v10772_v7 = vadd.f32 %v18135_v53, %v24065_v57  ;;  %v18233_v0 = vpop.f32.mrf.mxu0  ;;  %18480 = vmatprep.mubr.msk.f32.mxu1 %vm6670_vm3, %v12927_v14 }
 0x66a   :  { %v10612_v1 = vpop.f32.mrf.mxu1 }
 0x66b   :  { %v24423_v27 = vadd.f32 %v18233_v0, %v10772_v7  ;;  %v10771_v49 = vadd.f32 %v10612_v1, %v24069_v55  ;;  %v11319_v59 = vpop.f32.mrf.mxu0  ;;  %v12930_v55 = vld [vmem:[#allocation3 + $0xca] sm:$0xff]  ;;  %v12931_v1 = vld [vmem:[#allocation3 + $0xda] sm:$0xff] }
 0x66c   :  { %v18138_v50 = vpop.f32.mrf.mxu1  ;;  %18481 = vmatmul.mubr.msk.f32.gmra.mxu1 %vm6670_vm3, %v12928_v39 }
 0x66d   :  { %v24427_v43 = vadd.f32 %v11319_v59, %v10771_v49  ;;  %v10774_v2 = vadd.f32 %v18138_v50, %v24077_v38  ;;  %v18236_v41 = vpop.f32.mrf.mxu0  ;;  %18483 = vmatprep.mubr.msk.f32.mxu1 %vm6670_vm3, %v12929_v9 }
 0x66e   :  { %v10622_v57 = vpop.f32.mrf.mxu1 }
 0x66f   :  { %v24431_v53 = vadd.f32 %v18236_v41, %v10774_v2  ;;  %v10773_v14 = vadd.f32 %v10622_v57, %v24081_v17  ;;  %v11329_v7 = vpop.f32.mrf.mxu0  ;;  %v12932_v17 = vld [vmem:[#allocation3 + $0xe2] sm:$0xff]  ;;  %v12933_v57 = vld [vmem:[#allocation3 + $0xf2] sm:$0xff] }
 0x670   :  { %v18141_v0 = vpop.f32.mrf.mxu1  ;;  %18484 = vmatmul.mubr.msk.f32.gmra.mxu1 %vm6670_vm3, %v12930_v55 }
 0x671   :  { %v24435_v39 = vadd.f32 %v11329_v7, %v10773_v14  ;;  %v10776_v49 = vadd.f32 %v18141_v0, %v24089_v56  ;;  %v18239_v59 = vpop.f32.mrf.mxu0  ;;  %18486 = vmatprep.mubr.msk.f32.mxu1 %vm6670_vm3, %v12931_v1 }
 0x672   :  { %v10632_v38 = vpop.f32.mrf.mxu1 }
 0x673   :  { %v24439_v50 = vadd.f32 %v18239_v59, %v10776_v49  ;;  %v10775_v9 = vadd.f32 %v10632_v38, %v24093_v28  ;;  %v11339_v2 = vpop.f32.mrf.mxu0  ;;  %v12934_v28 = vld [vmem:[#allocation3 + $0xfa] sm:$0xff]  ;;  %v12935_v38 = vld [vmem:[#allocation3 + $0x10a] sm:$0xff] }
 0x674   :  { %v18144_v41 = vpop.f32.mrf.mxu1  ;;  %18487 = vmatmul.mubr.msk.f32.gmra.mxu1 %vm6670_vm3, %v12932_v17 }
 0x675   :  { %v24443_v55 = vadd.f32 %v11339_v2, %v10775_v9  ;;  %v10778_v14 = vadd.f32 %v18144_v41, %v24101_v60  ;;  %v18242_v7 = vpop.f32.mrf.mxu0  ;;  %18489 = vmatprep.mubr.msk.f32.mxu1 %vm6670_vm3, %v12933_v57 }
 0x676   :  { %v10642_v56 = vpop.f32.mrf.mxu1 }
 0x677   :  { %v24447_v0 = vadd.f32 %v18242_v7, %v10778_v14  ;;  %v10777_v1 = vadd.f32 %v10642_v56, %v24105_v58  ;;  %v11349_v49 = vpop.f32.mrf.mxu0  ;;  %v12936_v58 = vld [vmem:[#allocation3 + $0x112] sm:$0xff]  ;;  %v12937_v56 = vld [vmem:[#allocation3 + $0x122] sm:$0xff] }
 0x678   :  { %v18147_v59 = vpop.f32.mrf.mxu1  ;;  %18490 = vmatmul.mubr.msk.f32.gmra.mxu1 %vm6670_vm3, %v12934_v28 }
 0x679   :  { %v24451_v17 = vadd.f32 %v11349_v49, %v10777_v1  ;;  %v10780_v9 = vadd.f32 %v18147_v59, %v24113_v33  ;;  %v18245_v2 = vpop.f32.mrf.mxu0  ;;  %18492 = vmatprep.mubr.msk.f32.mxu1 %vm6670_vm3, %v12935_v38  ;;  %v26796_v1 = vld [vmem:[#allocation15_spill] sm:$0xff] }
 0x67a   :  { %v10652_v60 = vpop.f32.mrf.mxu1  ;;  %v26798_v38 = vld [vmem:[#allocation83_spill] sm:$0xff] }
 0x67b   :  { %26793 = vst [vmem:[#allocation92_spill] sm:$0xff] %v24451_v17  ;;  %v24455_v41 = vadd.f32 %v18245_v2, %v10780_v9  ;;  %v10779_v57 = vadd.f32 %v10652_v60, %v24117_v31  ;;  %v11359_v14 = vpop.f32.mrf.mxu0  ;;  %v12938_v31 = vld [vmem:[#allocation3 + $0x12a] sm:$0xff] }
 0x67c   :  { %v18150_v7 = vpop.f32.mrf.mxu1  ;;  %18493 = vmatmul.mubr.msk.f32.gmra.mxu1 %vm6670_vm3, %v12936_v58 }
 0x67d   :  { %26794 = vst [vmem:[#allocation24_spill] sm:$0xff] %v24455_v41  ;;  %v24459_v28 = vadd.f32 %v11359_v14, %v10779_v57  ;;  %v10782_v49 = vadd.f32 %v18150_v7, %v26796_v1  ;;  %v18248_v17 = vpop.f32.mrf.mxu0  ;;  %18495 = vmatprep.mubr.msk.f32.mxu1 %vm6670_vm3, %v12937_v56  ;;  %v12939_v41 = vld [vmem:[#allocation3 + $0x13a] sm:$0xff] }
 0x67e   :  { %v10662_v33 = vpop.f32.mrf.mxu1  ;;  %v26800_v57 = vld [vmem:[#allocation86_spill] sm:$0xff] }
 0x67f   :  { %26795 = vst [vmem:[#allocation23_spill] sm:$0xff] %v24459_v28  ;;  %v24463_v59 = vadd.f32 %v18248_v17, %v10782_v49  ;;  %v10781_v9 = vadd.f32 %v10662_v33, %v26798_v38  ;;  %v11369_v2 = vpop.f32.mrf.mxu0  ;;  %v26802_v17 = vld [vmem:[#allocation18_spill] sm:$0xff]  ;;  %v12940_v33 = vld [vmem:[#allocation3 + $0x142] sm:$0xff] }
 0x680   :  { %v18153_v60 = vpop.f32.mrf.mxu1  ;;  %18496 = vmatmul.mubr.msk.f32.gmra.mxu1 %vm6670_vm3, %v12938_v31 }
 0x681   :  { %26797 = vst [vmem:[#allocation91_spill] sm:$0xff] %v24463_v59  ;;  %v24467_v58 = vadd.f32 %v11369_v2, %v10781_v9  ;;  %v10784_v14 = vadd.f32 %v18153_v60, %v26800_v57  ;;  %v18251_v28 = vpop.f32.mrf.mxu0  ;;  %18498 = vmatprep.mubr.msk.f32.mxu1 %vm6670_vm3, %v12939_v41  ;;  %v12941_v59 = vld [vmem:[#allocation3 + $0x152] sm:$0xff] }
 0x682   :  { %v10672_v7 = vpop.f32.mrf.mxu1  ;;  %v26804_v9 = vld [vmem:[#allocation17_spill] sm:$0xff] }
 0x683   :  { %26799 = vst [vmem:[#allocation94_spill] sm:$0xff] %v24467_v58  ;;  %v24471_v56 = vadd.f32 %v18251_v28, %v10784_v14  ;;  %v10783_v1 = vadd.f32 %v10672_v7, %v26802_v17  ;;  %v11379_v49 = vpop.f32.mrf.mxu0  ;;  %v26806_v28 = vld [vmem:[#allocation85_spill] sm:$0xff]  ;;  %v12942_v7 = vld [vmem:[#allocation3 + $0x15a] sm:$0xff] }
 0x684   :  { %v18156_v38 = vpop.f32.mrf.mxu1  ;;  %18499 = vmatmul.mubr.msk.f32.gmra.mxu1 %vm6670_vm3, %v12940_v33 }
 0x685   :  { %26801 = vst [vmem:[#allocation26_spill] sm:$0xff] %v24471_v56  ;;  %v24475_v31 = vadd.f32 %v11379_v49, %v10783_v1  ;;  %v10786_v2 = vadd.f32 %v18156_v38, %v26804_v9  ;;  %v18254_v58 = vpop.f32.mrf.mxu0  ;;  %18501 = vmatprep.mubr.msk.f32.mxu1 %vm6670_vm3, %v12941_v59  ;;  %v12943_v56 = vld [vmem:[#allocation3 + $0x16a] sm:$0xff] }
 0x686   :  { %v10682_v60 = vpop.f32.mrf.mxu1  ;;  %v26808_v1 = vld [vmem:[#allocation88_spill] sm:$0xff] }
 0x687   :  { %26803 = vst [vmem:[#allocation25_spill] sm:$0xff] %v24475_v31  ;;  %v24479_v41 = vadd.f32 %v18254_v58, %v10786_v2  ;;  %v10785_v57 = vadd.f32 %v10682_v60, %v26806_v28  ;;  %v11389_v14 = vpop.f32.mrf.mxu0  ;;  %v26809_v58 = vld [vmem:[#allocation20_spill] sm:$0xff]  ;;  %v12944_v60 = vld [vmem:[#allocation3 + $0x172] sm:$0xff] }
 0x688   :  { %v18159_v17 = vpop.f32.mrf.mxu1  ;;  %18502 = vmatmul.mubr.msk.f32.gmra.mxu1 %vm6670_vm3, %v12942_v7 }
 0x689   :  { %26805 = vst [vmem:[#allocation93_spill] sm:$0xff] %v24479_v41  ;;  %v24483_v33 = vadd.f32 %v11389_v14, %v10785_v57  ;;  %v10788_v49 = vadd.f32 %v18159_v17, %v26808_v1  ;;  %v18257_v31 = vpop.f32.mrf.mxu0  ;;  %18504 = vmatprep.mubr.msk.f32.mxu1 %vm6670_vm3, %v12943_v56  ;;  %v12945_v41 = vld [vmem:[#allocation3 + $0x182] sm:$0xff]  ;;  %v12947_v56 = vld [vmem:[#allocation3 + $0x19a] sm:$0xff] }
 0x68a   :  { %v10692_v38 = vpop.f32.mrf.mxu1  ;;  %v26811_v57 = vld [vmem:[#allocation19_spill] sm:$0xff] }
 0x68b   :  { %26807 = vst [vmem:[#allocation97_spill] sm:$0xff] %v24483_v33  ;;  %v24487_v59 = vadd.f32 %v18257_v31, %v10788_v49  ;;  %v10787_v9 = vadd.f32 %v10692_v38, %v26809_v58  ;;  %v11399_v2 = vpop.f32.mrf.mxu0  ;;  %v12946_v38 = vld [vmem:[#allocation3 + $0x18a] sm:$0xff] }
 0x68c   :  { %v18162_v28 = vpop.f32.mrf.mxu1  ;;  %18505 = vmatmul.mubr.msk.f32.gmra.mxu1 %vm6670_vm3, %v12944_v60 }
 0x68d   :  { %v24491_v7 = vadd.f32 %v11399_v2, %v10787_v9  ;;  %v10790_v14 = vadd.f32 %v18162_v28, %v26811_v57  ;;  %v18260_v33 = vpop.f32.mrf.mxu0  ;;  %18507 = vmatprep.mubr.msk.f32.mxu1 %vm6670_vm3, %v12945_v41  ;;  %v26813_v9 = vld [vmem:[#allocation87_spill] sm:$0xff] }
 0x68e   :  { %v10702_v17 = vpop.f32.mrf.mxu1  ;;  %v12948_v28 = vld [vmem:[#allocation3 + $0x1a2] sm:$0xff] }
 0x68f   :  { %26810 = vst [vmem:[#allocation28_spill] sm:$0xff] %v24491_v7  ;;  %v24495_v1 = vadd.f32 %v18260_v33, %v10790_v14  ;;  %v10789_v31 = vadd.f32 %v10702_v17, %v24177_v45  ;;  %v11409_v49 = vpop.f32.mrf.mxu0  ;;  %v12949_v17 = vld [vmem:[#allocation3 + $0x1e2] sm:$0xff] }
 0x690   :  { %v18165_v58 = vpop.f32.mrf.mxu1  ;;  %18508 = vmatmul.mubr.msk.f32.gmra.mxu1 %vm6670_vm3, %v12946_v38 }
 0x691   :  { %26812 = vst [vmem:[#allocation27_spill] sm:$0xff] %v24495_v1  ;;  %v24499_v60 = vadd.f32 %v11409_v49, %v10789_v31  ;;  %v10792_v2 = vadd.f32 %v18165_v58, %v26813_v9  ;;  %v18263_v7 = vpop.f32.mrf.mxu0  ;;  %18510 = vmatprep.mubr.msk.f32.mxu1 %vm6670_vm3, %v12947_v56  ;;  %v12950_v9 = vld [vmem:[#allocation3 + $0x1ea] sm:$0xff] }
 0x692   :  { %v10712_v41 = vpop.f32.mrf.mxu1 }
 0x693   :  { %v24503_v57 = vadd.f32 %v18263_v7, %v10792_v2  ;;  %v10791_v33 = vadd.f32 %v10712_v41, %v24188_v18  ;;  %v11419_v14 = vpop.f32.mrf.mxu0  ;;  %v12951_v2 = vld [vmem:[#allocation3 + $0x1fa] sm:$0xff] }
 0x694   :  { %v18168_v45 = vpop.f32.mrf.mxu1  ;;  %18511 = vmatmul.mubr.msk.f32.gmra.mxu1 %vm6670_vm3, %v12948_v28 }
 0x695   :  { %v24507_v1 = vadd.f32 %v11419_v14, %v10791_v33  ;;  %v10794_v31 = vadd.f32 %v18168_v45, %v24195_v47  ;;  %v18266_v49 = vpop.f32.mrf.mxu0  ;;  %18513 = vmatprep.mubr.msk.f32.mxu1 %vm6670_vm3, %v12949_v17 }
 0x696   :  { %v10722_v38 = vpop.f32.mrf.mxu1 }
 0x697   :  { %v24511_v56 = vadd.f32 %v18266_v49, %v10794_v31  ;;  %v10793_v7 = vadd.f32 %v10722_v38, %v24199_v42  ;;  %v11429_v58 = vpop.f32.mrf.mxu0  ;;  %v12952_v42 = vld [vmem:[#allocation3 + $0x202] sm:$0xff]  ;;  %v12953_v31 = vld [vmem:[#allocation3 + $0x212] sm:$0xff] }
 0x698   :  { %v18271_v18 = vpop.f32.mrf.mxu1  ;;  %18514 = vmatmul.mubr.msk.f32.gmra.mxu1 %vm6670_vm3, %v12950_v9  ;;  %v12955_v9 = vld [vmem:[#allocation3 + $0x22a] sm:$0xff] }
 0x699   :  { %v24515_v28 = vadd.f32 %v11429_v58, %v10793_v7  ;;  %v24518_v41 = vadd.f32 %v18271_v18, %v24207_v54  ;;  %v24520_v47 = vpop.f32.mrf.mxu0  ;;  %18516 = vmatprep.mubr.msk.f32.mxu1 %vm6670_vm3, %v12951_v2  ;;  %v12954_v7 = vld [vmem:[#allocation3 + $0x21a] sm:$0xff] }
 0x69a   :  { %v11827_v33 = vpop.f32.mrf.mxu1 }
 0x69b   :  { %v24524_v14 = vadd.f32 %v11827_v33, %v24211_v46  ;;  %v24526_v45 = vpop.f32.mrf.mxu0  ;;  %v12956_v33 = vld [vmem:[#allocation3 + $0x232] sm:$0xff] }
 0x69c   :  { %v18274_v17 = vpop.f32.mrf.mxu1  ;;  %18517 = vmatmul.mubr.msk.f32.gmra.mxu1 %vm6670_vm3, %v12952_v42 }
 0x69d   :  { %v24530_v49 = vadd.f32 %v18274_v17, %v24219_v19  ;;  %18519 = vmatprep.mubr.msk.f32.mxu1 %vm6670_vm3, %v12953_v31  ;;  %v24536_v58 = vpop.f32.mrf.mxu0  ;;  %v12957_v17 = vld [vmem:[#allocation3 + $0x242] sm:$0xff] }
 0x69e   :  { %v11837_v54 = vpop.f32.mrf.mxu1 }
 0x69f   :  { %v24534_v38 = vadd.f32 %v11837_v54, %v24223_v4  ;;  %v24546_v42 = vpop.f32.mrf.mxu0 }
 0x6a0   :  { %v18277_v46 = vpop.f32.mrf.mxu1  ;;  %18520 = vmatmul.mubr.msk.f32.gmra.mxu1 %vm6670_vm3, %v12954_v7  ;;  %v12958_v7 = vld [vmem:[#allocation3 + $0x24a] sm:$0xff] }
 0x6a1   :  { %v24540_v18 = vadd.f32 %v18277_v46, %v24231_v25  ;;  %18522 = vmatprep.mubr.msk.f32.mxu1 %vm6670_vm3, %v12955_v9  ;;  %v24556_v46 = vpop.f32.mrf.mxu0  ;;  %v12959_v9 = vld [vmem:[#allocation3 + $0x25a] sm:$0xff] }
 0x6a2   :  { %v11847_v19 = vpop.f32.mrf.mxu1 }
 0x6a3   :  { %v24544_v2 = vadd.f32 %v11847_v19, %v24235_v51 }
 0x6a4   :  { %v18280_v4 = vpop.f32.mrf.mxu1  ;;  %18523 = vmatmul.mubr.msk.f32.gmra.mxu1 %vm6670_vm3, %v12956_v33 }
 0x6a5   :  { %v24550_v31 = vadd.f32 %v18280_v4, %v24243_v22  ;;  %18525 = vmatprep.mubr.msk.f32.mxu1 %vm6670_vm3, %v12957_v17  ;;  %v12960_v4 = vld [vmem:[#allocation3 + $0x262] sm:$0xff]  ;;  %v24566_v17 = vpop.f32.mrf.mxu0 }
 0x6a6   :  { %v11857_v25 = vpop.f32.mrf.mxu1 }
 0x6a7   :  { %v24554_v54 = vadd.f32 %v11857_v25, %v24247_v3  ;;  %v12961_v25 = vld [vmem:[#allocation3 + $0x272] sm:$0xff] }
 0x6a8   :  { %v18283_v51 = vpop.f32.mrf.mxu1  ;;  %18526 = vmatmul.mubr.msk.f32.gmra.mxu1 %vm6670_vm3, %v12958_v7 }
 0x6a9   :  { %26814 = vst [vmem:[#allocation95_spill] sm:$0xff] %v24554_v54  ;;  %v24560_v19 = vadd.f32 %v18283_v51, %v24255_v26  ;;  %18528 = vmatprep.mubr.msk.f32.mxu1 %vm6670_vm3, %v12959_v9  ;;  %v12962_v51 = vld [vmem:[#allocation3 + $0x27a] sm:$0xff]  ;;  %v24576_v9 = vpop.f32.mrf.mxu0 }
 0x6aa   :  { %v11867_v22 = vpop.f32.mrf.mxu1 }
 0x6ab   :  { %v24564_v33 = vadd.f32 %v11867_v22, %v24259_v12  ;;  %v12963_v22 = vld [vmem:[#allocation3 + $0x28a] sm:$0xff] }
 0x6ac   :  { %v18286_v3 = vpop.f32.mrf.mxu1  ;;  %18529 = vmatmul.mubr.msk.f32.gmra.mxu1 %vm6670_vm3, %v12960_v4 }
 0x6ad   :  { %26815 = vst [vmem:[#allocation100_spill] sm:$0xff] %v24564_v33  ;;  %v24570_v54 = vadd.f32 %v18286_v3, %v24267_v62  ;;  %18531 = vmatprep.mubr.msk.f32.mxu1 %vm6670_vm3, %v12961_v25  ;;  %v12964_v3 = vld [vmem:[#allocation3 + $0x292] sm:$0xff]  ;;  %v24586_v25 = vpop.f32.mrf.mxu0 }
 0x6ae   :  { %v11877_v26 = vpop.f32.mrf.mxu1 }
 0x6af   :  { %v24574_v7 = vadd.f32 %v11877_v26, %v24271_v61  ;;  %v12965_v26 = vld [vmem:[#allocation3 + $0x2a2] sm:$0xff] }
 0x6b0   :  { %v18289_v12 = vpop.f32.mrf.mxu1  ;;  %18532 = vmatmul.mubr.msk.f32.gmra.mxu1 %vm6670_vm3, %v12962_v51 }
 0x6b1   :  { %26816 = vst [vmem:[#allocation98_spill] sm:$0xff] %v24574_v7  ;;  %v24580_v33 = vadd.f32 %v18289_v12, %v24279_v34  ;;  %18534 = vmatprep.mubr.msk.f32.mxu1 %vm6670_vm3, %v12963_v22  ;;  %v12966_v12 = vld [vmem:[#allocation3 + $0x2aa] sm:$0xff]  ;;  %v24596_v22 = vpop.f32.mrf.mxu0 }
 0x6b2   :  { %v11887_v62 = vpop.f32.mrf.mxu1 }
 0x6b3   :  { %v24584_v4 = vadd.f32 %v11887_v62, %v24283_v37  ;;  %v12967_v62 = vld [vmem:[#allocation3 + $0x2ba] sm:$0xff] }
 0x6b4   :  { %v18292_v61 = vpop.f32.mrf.mxu1  ;;  %18535 = vmatmul.mubr.msk.f32.gmra.mxu1 %vm6670_vm3, %v12964_v3 }
 0x6b5   :  { %26817 = vst [vmem:[#allocation58_spill] sm:$0xff] %v24584_v4  ;;  %v24590_v7 = vadd.f32 %v18292_v61, %v24291_v36  ;;  %18537 = vmatprep.mubr.msk.f32.mxu1 %vm6670_vm3, %v12965_v26  ;;  %v12968_v61 = vld [vmem:[#allocation3 + $0x2c2] sm:$0xff]  ;;  %v24606_v26 = vpop.f32.mrf.mxu0 }
 0x6b6   :  { %v11897_v34 = vpop.f32.mrf.mxu1 }
 0x6b7   :  { %v24594_v51 = vadd.f32 %v11897_v34, %v24295_v15  ;;  %v12969_v34 = vld [vmem:[#allocation3 + $0x2d2] sm:$0xff] }
 0x6b8   :  { %v18295_v37 = vpop.f32.mrf.mxu1  ;;  %18538 = vmatmul.mubr.msk.f32.gmra.mxu1 %vm6670_vm3, %v12966_v12 }
 0x6b9   :  { %26818 = vst [vmem:[#allocation29_spill] sm:$0xff] %v24594_v51  ;;  %v24600_v4 = vadd.f32 %v18295_v37, %v24303_v13  ;;  %18540 = vmatprep.mubr.msk.f32.mxu1 %vm6670_vm3, %v12967_v62  ;;  %v12970_v37 = vld [vmem:[#allocation3 + $0x2da] sm:$0xff]  ;;  %v24616_v62 = vpop.f32.mrf.mxu0 }
 0x6ba   :  { %v11907_v36 = vpop.f32.mrf.mxu1 }
 0x6bb   :  { %26819 = vst [vmem:[#allocation60_spill] sm:$0xff] %v24600_v4  ;;  %v24604_v3 = vadd.f32 %v11907_v36, %v24307_v11  ;;  %v12971_v36 = vld [vmem:[#allocation3 + $0x2ea] sm:$0xff] }
 0x6bc   :  { %v18298_v15 = vpop.f32.mrf.mxu1  ;;  %18541 = vmatmul.mubr.msk.f32.gmra.mxu1 %vm6670_vm3, %v12968_v61 }
 0x6bd   :  { %26820 = vst [vmem:[#allocation30_spill] sm:$0xff] %v24604_v3  ;;  %v24610_v51 = vadd.f32 %v18298_v15, %v24315_v24  ;;  %18543 = vmatprep.mubr.msk.f32.mxu1 %vm6670_vm3, %v12969_v34  ;;  %v26823_v3 = vld [vmem:[#allocation90_spill] sm:$0xff]  ;;  %v24626_v34 = vpop.f32.mrf.mxu0 }
 0x6be   :  { %v11917_v13 = vpop.f32.mrf.mxu1  ;;  %v12972_v15 = vld [vmem:[#allocation3 + $0x2f2] sm:$0xff] }
 0x6bf   :  { %26821 = vst [vmem:[#allocation62_spill] sm:$0xff] %v24610_v51  ;;  %v24614_v12 = vadd.f32 %v11917_v13, %v24319_v29  ;;  %v12973_v13 = vld [vmem:[#allocation3 + $0x302] sm:$0xff] }
 0x6c0   :  { %v18301_v11 = vpop.f32.mrf.mxu1  ;;  %18544 = vmatmul.mubr.msk.f32.gmra.mxu1 %vm6670_vm3, %v12970_v37  ;;  %v26827_v37 = vld [vmem:[#allocation22_spill] sm:$0xff] }
 0x6c1   :  { %26822 = vst [vmem:[#allocation32_spill] sm:$0xff] %v24614_v12  ;;  %v24620_v4 = vadd.f32 %v18301_v11, %v26823_v3  ;;  %18546 = vmatprep.mubr.msk.f32.mxu1 %vm6670_vm3, %v12971_v36  ;;  %v12974_v36 = vld [vmem:[#allocation3 + $0x30a] sm:$0xff] }
 0x6c2   :  { %v11927_v24 = vpop.f32.mrf.mxu1 }
 0x6c3   :  { %26824 = vst [vmem:[#allocation64_spill] sm:$0xff] %v24620_v4  ;;  %v24624_v61 = vadd.f32 %v11927_v24, %v24331_v52  ;;  %v24636_v4 = vpop.f32.mrf.mxu0  ;;  %v12975_v24 = vld [vmem:[#allocation3 + $0x31a] sm:$0xff] }
 0x6c4   :  { %v18304_v29 = vpop.f32.mrf.mxu1  ;;  %18547 = vmatmul.mubr.msk.f32.gmra.mxu1 %vm6670_vm3, %v12972_v15  ;;  %v26830_v15 = vld [vmem:[#allocation21_spill] sm:$0xff] }
 0x6c5   :  { %26825 = vst [vmem:[#allocation33_spill] sm:$0xff] %v24624_v61  ;;  %v24630_v12 = vadd.f32 %v18304_v29, %v24339_v35  ;;  %18549 = vmatprep.mubr.msk.f32.mxu1 %vm6670_vm3, %v12973_v13  ;;  %v26829_v61 = vld [vmem:[#allocation89_spill] sm:$0xff]  ;;  %v12976_v13 = vld [vmem:[#allocation3 + $0x322] sm:$0xff] }
 0x6c6   :  { %v11937_v3 = vpop.f32.mrf.mxu1 }
 0x6c7   :  { %26826 = vst [vmem:[#allocation82_spill] sm:$0xff] %v24630_v12  ;;  %v24634_v11 = vadd.f32 %v11937_v3, %v26827_v37  ;;  %v24646_v12 = vpop.f32.mrf.mxu0  ;;  %v12977_v37 = vld [vmem:[#allocation3 + $0x332] sm:$0xff] }
 0x6c8   :  { %v18307_v52 = vpop.f32.mrf.mxu1  ;;  %18550 = vmatmul.mubr.msk.f32.gmra.mxu1 %vm6670_vm3, %v12974_v36  ;;  %v12979_v36 = vld [vmem:[#allocation3 + $0x34a] sm:$0xff] }
 0x6c9   :  { %26828 = vst [vmem:[#allocation68_spill] sm:$0xff] %v24634_v11  ;;  %v24640_v51 = vadd.f32 %v18307_v52, %v26829_v61  ;;  %18552 = vmatprep.mubr.msk.f32.mxu1 %vm6670_vm3, %v12975_v24  ;;  %v12978_v24 = vld [vmem:[#allocation3 + $0x33a] sm:$0xff] }
 0x6ca   :  { %v11947_v35 = vpop.f32.mrf.mxu1 }
 0x6cb   :  { %v24644_v29 = vadd.f32 %v11947_v35, %v26830_v15  ;;  %v24656_v35 = vpop.f32.mrf.mxu0 }
 0x6cc   :  { %v18310_v3 = vpop.f32.mrf.mxu1  ;;  %18553 = vmatmul.mubr.msk.f32.gmra.mxu1 %vm6670_vm3, %v12976_v13 }
 0x6cd   :  { %26831 = vst [vmem:[#allocation71_spill] sm:$0xff] %v24644_v29  ;;  %v24650_v11 = vadd.f32 %v18310_v3, %v24363_v5  ;;  %18555 = vmatprep.mubr.msk.f32.mxu1 %vm6670_vm3, %v12977_v37  ;;  %v12980_v5 = vld [vmem:[#allocation3 + $0x352] sm:$0xff]  ;;  %v24666_v37 = vpop.f32.mrf.mxu0 }
 0x6ce   :  { %v11957_v61 = vpop.f32.mrf.mxu1 }
 0x6cf   :  { %v24654_v52 = vadd.f32 %v11957_v61, %v24367_v63 }
 0x6d0   :  { %v18313_v15 = vpop.f32.mrf.mxu1  ;;  %18556 = vmatmul.mubr.msk.f32.gmra.mxu1 %vm6670_vm3, %v12978_v24 }
 0x6d1   :  { %26832 = vst [vmem:[#allocation37_spill] sm:$0xff] %v24654_v52  ;;  %v24660_v29 = vadd.f32 %v18313_v15, %v24374_v23  ;;  %18558 = vmatprep.mubr.msk.f32.mxu1 %vm6670_vm3, %v12979_v36  ;;  %v24675_v23 = vpop.f32.mrf.mxu0 }
 0x6d2   :  { %v11967_v13 = vpop.f32.mrf.mxu1 }
 0x6d3   :  { %v24664_v3 = vadd.f32 %v11967_v13, %v24378_v40 }
 0x6d4   :  { %v18316_v63 = vpop.f32.mrf.mxu1  ;;  %18559 = vmatmul.mubr.msk.f32.gmra.mxu1 %vm6670_vm3, %v12980_v5 }
 0x6d5   :  { %26833 = vst [vmem:[#allocation7_spill] sm:$0xff] %v24664_v3  ;;  %v24670_v61 = vadd.f32 %v18316_v63, %v24383_v16  ;;  %v24683_v3 = vpop.f32.mrf.mxu0 }
 0x6d6   :  { %v11977_v52 = vpop.f32.mrf.mxu1 }
 0x6d7   :  { %v24673_v24 = vadd.f32 %v11977_v52, %v24387_v48  ;;  %v24691_v52 = vpop.f32.mrf.mxu0 }
 0x6d8   :  { %v18319_v36 = vpop.f32.mrf.mxu1 }
 0x6d9   :  { %26834 = vst [vmem:[#allocation55_spill] sm:$0xff] %v24673_v24  ;;  %v24678_v15 = vadd.f32 %v18319_v36, %v24391_v30 }
 0x6da   :  { %v11987_v40 = vpop.f32.mrf.mxu1 }
 0x6db   :  { %26835 = vst [vmem:[#allocation54_spill] sm:$0xff] %v24678_v15  ;;  %v24681_v13 = vadd.f32 %v11987_v40, %v24395_v20  ;;  %v24699_v40 = vpop.f32.mrf.mxu0  ;;  %v26869_v15 = vld [vmem:[#allocation27_spill] sm:$0xff] }
 0x6dc   :  { %v18322_v5 = vpop.f32.mrf.mxu1 }
 0x6dd   :  { %26836 = vst [vmem:[#allocation56_spill] sm:$0xff] %v24681_v13  ;;  %v24686_v16 = vadd.f32 %v18322_v5, %v24399_v10 }
 0x6de   :  { %v11997_v63 = vpop.f32.mrf.mxu1 }
 0x6df   :  { %26837 = vst [vmem:[#allocation57_spill] sm:$0xff] %v24686_v16  ;;  %v24689_v48 = vadd.f32 %v11997_v63, %v24403_v32  ;;  %v24707_v63 = vpop.f32.mrf.mxu0  ;;  %v26864_v16 = vld [vmem:[#allocation93_spill] sm:$0xff] }
 0x6e0   :  { %v18325_v24 = vpop.f32.mrf.mxu1 }
 0x6e1   :  { %26838 = vst [vmem:[#allocation59_spill] sm:$0xff] %v24689_v48  ;;  %v24694_v30 = vadd.f32 %v18325_v24, %v24407_v21 }
 0x6e2   :  { %v12007_v36 = vpop.f32.mrf.mxu1 }
 0x6e3   :  { %26839 = vst [vmem:[#allocation31_spill] sm:$0xff] %v24694_v30  ;;  %v24697_v20 = vadd.f32 %v12007_v36, %v24411_v44  ;;  %v24715_v36 = vpop.f32.mrf.mxu0  ;;  %v26860_v30 = vld [vmem:[#allocation26_spill] sm:$0xff] }
 0x6e4   :  { %v18328_v13 = vpop.f32.mrf.mxu1 }
 0x6e5   :  { %26840 = vst [vmem:[#allocation81_spill] sm:$0xff] %v24697_v20  ;;  %v24702_v10 = vadd.f32 %v18328_v13, %v24415_v6 }
 0x6e6   :  { %v12017_v5 = vpop.f32.mrf.mxu1 }
 0x6e7   :  { %26841 = vst [vmem:[#allocation61_spill] sm:$0xff] %v24702_v10  ;;  %v24705_v32 = vadd.f32 %v12017_v5, %v24419_v8  ;;  %v24723_v5 = vpop.f32.mrf.mxu0  ;;  %v26856_v10 = vld [vmem:[#allocation91_spill] sm:$0xff] }
 0x6e8   :  { %v18331_v48 = vpop.f32.mrf.mxu1 }
 0x6e9   :  { %26842 = vst [vmem:[#allocation63_spill] sm:$0xff] %v24705_v32  ;;  %v24710_v21 = vadd.f32 %v18331_v48, %v24423_v27 }
 0x6ea   :  { %v12027_v24 = vpop.f32.mrf.mxu1 }
 0x6eb   :  { %26843 = vst [vmem:[#allocation34_spill] sm:$0xff] %v24710_v21  ;;  %v24713_v44 = vadd.f32 %v12027_v24, %v24427_v43  ;;  %v24731_v24 = vpop.f32.mrf.mxu0  ;;  %v26852_v21 = vld [vmem:[#allocation24_spill] sm:$0xff] }
 0x6ec   :  { %v18334_v20 = vpop.f32.mrf.mxu1 }
 0x6ed   :  { %26844 = vst [vmem:[#allocation67_spill] sm:$0xff] %v24713_v44  ;;  %v24718_v6 = vadd.f32 %v18334_v20, %v24431_v53 }
 0x6ee   :  { %v12037_v13 = vpop.f32.mrf.mxu1 }
 0x6ef   :  { %26845 = vst [vmem:[#allocation35_spill] sm:$0xff] %v24718_v6  ;;  %v24721_v8 = vadd.f32 %v12037_v13, %v24435_v39  ;;  %v26850_v6 = vld [vmem:[#allocation92_spill] sm:$0xff]  ;;  %v24739_v13 = vpop.f32.mrf.mxu0 }
 0x6f0   :  { %v18337_v32 = vpop.f32.mrf.mxu1 }
 0x6f1   :  { %26846 = vst [vmem:[#allocation38_spill] sm:$0xff] %v24721_v8  ;;  %v24726_v27 = vadd.f32 %v18337_v32, %v24439_v50 }
 0x6f2   :  { %v12047_v48 = vpop.f32.mrf.mxu1 }
 0x6f3   :  { %26847 = vst [vmem:[#allocation65_spill] sm:$0xff] %v24726_v27  ;;  %v24729_v43 = vadd.f32 %v12047_v48, %v24443_v55  ;;  %v26854_v27 = vld [vmem:[#allocation23_spill] sm:$0xff]  ;;  %v24747_v48 = vpop.f32.mrf.mxu0 }
 0x6f4   :  { %v18340_v44 = vpop.f32.mrf.mxu1 }
 0x6f5   :  { %26848 = vst [vmem:[#allocation66_spill] sm:$0xff] %v24729_v43  ;;  %v24734_v53 = vadd.f32 %v18340_v44, %v24447_v0 }
 0x6f6   :  { %v12057_v20 = vpop.f32.mrf.mxu1 }
 0x6f7   :  { %26849 = vst [vmem:[#allocation39_spill] sm:$0xff] %v24734_v53  ;;  %v24737_v39 = vadd.f32 %v12057_v20, %v26850_v6  ;;  %v26858_v53 = vld [vmem:[#allocation94_spill] sm:$0xff]  ;;  %v24755_v20 = vpop.f32.mrf.mxu0 }
 0x6f8   :  { %v18343_v8 = vpop.f32.mrf.mxu1 }
 0x6f9   :  { %26851 = vst [vmem:[#allocation36_spill] sm:$0xff] %v24737_v39  ;;  %v24742_v50 = vadd.f32 %v18343_v8, %v26852_v21 }
 0x6fa   :  { %v12067_v32 = vpop.f32.mrf.mxu1 }
 0x6fb   :  { %26853 = vst [vmem:[#allocation96_spill] sm:$0xff] %v24742_v50  ;;  %v24745_v55 = vadd.f32 %v12067_v32, %v26854_v27  ;;  %v26862_v50 = vld [vmem:[#allocation25_spill] sm:$0xff]  ;;  %v24763_v32 = vpop.f32.mrf.mxu0 }
 0x6fc   :  { %v18346_v43 = vpop.f32.mrf.mxu1 }
 0x6fd   :  { %26855 = vst [vmem:[#allocation69_spill] sm:$0xff] %v24745_v55  ;;  %v24750_v0 = vadd.f32 %v18346_v43, %v26856_v10 }
 0x6fe   :  { %v12077_v44 = vpop.f32.mrf.mxu1 }
 0x6ff   :  { %26857 = vst [vmem:[#allocation72_spill] sm:$0xff] %v24750_v0  ;;  %v24753_v6 = vadd.f32 %v12077_v44, %v26858_v53  ;;  %v26865_v0 = vld [vmem:[#allocation97_spill] sm:$0xff]  ;;  %v24771_v44 = vpop.f32.mrf.mxu0 }
 0x700   :  { %v18349_v39 = vpop.f32.mrf.mxu1 }
 0x701   :  { %26859 = vst [vmem:[#allocation70_spill] sm:$0xff] %v24753_v6  ;;  %v24758_v21 = vadd.f32 %v18349_v39, %v26860_v30 }
 0x702   :  { %v12087_v8 = vpop.f32.mrf.mxu1 }
 0x703   :  { %26861 = vst [vmem:[#allocation40_spill] sm:$0xff] %v24758_v21  ;;  %v24761_v27 = vadd.f32 %v12087_v8, %v26862_v50  ;;  %v26867_v21 = vld [vmem:[#allocation28_spill] sm:$0xff]  ;;  %v24779_v8 = vpop.f32.mrf.mxu0 }
 0x704   :  { %v18352_v55 = vpop.f32.mrf.mxu1 }
 0x705   :  { %26863 = vst [vmem:[#allocation99_spill] sm:$0xff] %v24761_v27  ;;  %v24766_v10 = vadd.f32 %v18352_v55, %v26864_v16 }
 0x706   :  { %v12097_v43 = vpop.f32.mrf.mxu1 }
 0x707   :  { %v24769_v53 = vadd.f32 %v12097_v43, %v26865_v0  ;;  %v24787_v43 = vpop.f32.mrf.mxu0 }
 0x708   :  { %v18355_v6 = vpop.f32.mrf.mxu1 }
 0x709   :  { %26866 = vst [vmem:[#allocation74_spill] sm:$0xff] %v24769_v53  ;;  %v24774_v30 = vadd.f32 %v18355_v6, %v24487_v59 }
 0x70a   :  { %v12107_v39 = vpop.f32.mrf.mxu1 }
 0x70b   :  { %v24777_v50 = vadd.f32 %v12107_v39, %v26867_v21  ;;  %v24795_v39 = vpop.f32.mrf.mxu0 }
 0x70c   :  { %v18358_v27 = vpop.f32.mrf.mxu1 }
 0x70d   :  { %26868 = vst [vmem:[#allocation73_spill] sm:$0xff] %v24777_v50  ;;  %v24782_v16 = vadd.f32 %v18358_v27, %v26869_v15 }
 0x70e   :  { %v12117_v55 = vpop.f32.mrf.mxu1 }
 0x70f   :  { %v24785_v0 = vadd.f32 %v12117_v55, %v24499_v60  ;;  %v12854_v60 = vadd.f32 %v24520_v47, %v24518_v41 }
 0x710   :  { %v18361_v53 = vpop.f32.mrf.mxu1 }
 0x711   :  { %26870 = vst [vmem:[#allocation8_spill] sm:$0xff] %v24785_v0  ;;  %v24790_v59 = vadd.f32 %v18361_v53, %v24503_v57  ;;  %v24805_v0 = vpop.f32.mrf.mxu0  ;;  %v12853_v53 = vadd.f32 %v24526_v45, %v24524_v14  ;;  %v12858_v45 = vadd.f32 %v24556_v46, %v24540_v18  ;;  %v12860_v18 = vadd.f32 %v24576_v9, %v24550_v31 }
 0x712   :  { %v12127_v6 = vpop.f32.mrf.mxu1 }
 0x713   :  { %26871 = vst [vmem:[#allocation43_spill] sm:$0xff] %v24790_v59  ;;  %v24793_v21 = vadd.f32 %v12127_v6, %v24507_v1  ;;  %v24810_v1 = vld [vmem:[%s25806_s6] ss:$0 sm:$0xff]  ;;  %v12856_v6 = vadd.f32 %v24536_v58, %v24530_v49  ;;  %v24817_v47 = vpop.f32.mrf.mxu0 }
 0x714   :  { %v18364_v50 = vpop.f32.mrf.mxu1 }
 0x715   :  { %26872 = vst [vmem:[#allocation10_spill] sm:$0xff] %v24793_v21  ;;  %v24798_v15 = vadd.f32 %v18364_v50, %v24511_v56 }
 0x716   :  { %v12137_v27 = vpop.f32.mrf.mxu1 }
 0x717   :  { %26873 = vst [vmem:[#allocation9_spill] sm:$0xff] %v24798_v15  ;;  %v24803_v55 = vadd.f32 %v12137_v27, %v24515_v28  ;;  %v12855_v15 = vadd.f32 %v24546_v42, %v24534_v38  ;;  %v12857_v38 = vadd.f32 %v24566_v17, %v24544_v2 }
 0x718   :  { %v18467_v57 = vpop.f32.mrf.mxu1 }
 0x719   :  { %26874 = vst [vmem:[#allocation41_spill] sm:$0xff] %v24803_v55  ;;  %v13561_v56 = vadd.f32 %v18467_v57, %v12854_v60  ;;  %v24829_v57 = vpop.f32.mrf.mxu0 }
 0x71a   :  { %v13241_v50 = vpop.f32.mrf.mxu1 }
 0x71b   :  { %v13632_v41 = vadd.f32 %v24810_v1, %v13561_v56  ;;  %v13560_v28 = vadd.f32 %v13241_v50, %v12853_v53  ;;  %v24845_v17 = vpop.f32.mrf.mxu0 }
 0x71c   :  { %v18470_v27 = vpop.f32.mrf.mxu1 }
 0x71d   :  { %v13631_v55 = vadd.f32 %v24810_v1, %v13560_v28  ;;  %v13563_v21 = vadd.f32 %v18470_v27, %v12856_v6  ;;  %v24822_v59 = vmax.f32 %v13632_v41, 0.0  ;;  %v26875_v27 = vld [vmem:[#allocation95_spill] sm:$0xff] }
 0x71e   :  { %v13251_v14 = vpop.f32.mrf.mxu1 }
 0x71f   :  { %v24826_v60 = vmax.f32 %v13631_v55, 0.0  ;;  %v13634_v49 = vadd.f32 %v24810_v1, %v13563_v21  ;;  %v13562_v58 = vadd.f32 %v13251_v14, %v12855_v15  ;;  %v13760_v46 = vsel %vm6670_vm3, %v24822_v59, 0.0 }
 0x720   :  { %v18473_v53 = vpop.f32.mrf.mxu1  ;;  %v12859_v14 = vadd.f32 %v24586_v25, %v26875_v27 }
 0x721   :  { %v13759_v42 = vsel %vm6670_vm3, %v24826_v60, 0.0  ;;  %v13633_v56 = vadd.f32 %v24810_v1, %v13562_v58  ;;  %v13565_v50 = vadd.f32 %v18473_v53, %v12858_v45  ;;  %v24840_v15 = vmax.f32 %v13634_v49, 0.0 }
 0x722   :  { %v13261_v21 = vpop.f32.mrf.mxu1  ;;  %v13761_v41 = vadd.f32 %v13760_v46, %v13759_v42  ;;  %v12862_v49 = vadd.f32 %v24596_v22, %v24560_v19  ;;  %v24861_v46 = vpop.f32.mrf.mxu0 }
 0x723   :  { %v24842_v55 = vmax.f32 %v13633_v56, 0.0  ;;  %v13636_v6 = vadd.f32 %v24810_v1, %v13565_v50  ;;  %v13564_v2 = vadd.f32 %v13261_v21, %v12857_v38  ;;  %v13764_v42 = vsel %vm6670_vm3, %v24840_v15, 0.0 }
 0x724   :  { %v18476_v28 = vpop.f32.mrf.mxu1 }
 0x725   :  { %v13762_v31 = vsel %vm6670_vm3, %v24842_v55, 0.0  ;;  %v13635_v9 = vadd.f32 %v24810_v1, %v13564_v2  ;;  %v13567_v45 = vadd.f32 %v18476_v28, %v12860_v18  ;;  %v24854_v53 = vmax.f32 %v13636_v6, 0.0  ;;  %v26876_v18 = vld [vmem:[#allocation100_spill] sm:$0xff] }
 0x726   :  { %v13763_v58 = vadd.f32 %v13762_v31, %v13761_v41  ;;  %v13271_v38 = vpop.f32.mrf.mxu1  ;;  %v12861_v28 = vadd.f32 %v24606_v26, %v26876_v18  ;;  %v12864_v41 = vadd.f32 %v24616_v62, %v24570_v54 }
 0x727   :  { %v24858_v56 = vmax.f32 %v13635_v9, 0.0  ;;  %v13638_v25 = vadd.f32 %v24810_v1, %v13567_v45  ;;  %v13566_v50 = vadd.f32 %v13271_v38, %v12859_v14  ;;  %v13768_v27 = vsel %vm6670_vm3, %v24854_v53, 0.0  ;;  %v24877_v38 = vpop.f32.mrf.mxu0 }
 0x728   :  { %v13765_v21 = vadd.f32 %v13764_v42, %v13763_v58  ;;  %v18479_v2 = vpop.f32.mrf.mxu1 }
 0x729   :  { %v13766_v19 = vsel %vm6670_vm3, %v24858_v56, 0.0  ;;  %v13637_v22 = vadd.f32 %v24810_v1, %v13566_v50  ;;  %v13569_v6 = vadd.f32 %v18479_v2, %v12862_v49  ;;  %v24872_v9 = vmax.f32 %v13638_v25, 0.0  ;;  %v26877_v49 = vld [vmem:[#allocation98_spill] sm:$0xff] }
 0x72a   :  { %v13767_v14 = vadd.f32 %v13766_v19, %v13765_v21  ;;  %v13281_v31 = vpop.f32.mrf.mxu1  ;;  %v12863_v2 = vadd.f32 %v24626_v34, %v26877_v49  ;;  %v12866_v25 = vadd.f32 %v24636_v4, %v24580_v33 }
 0x72b   :  { %v24874_v45 = vmax.f32 %v13637_v22, 0.0  ;;  %v13640_v26 = vadd.f32 %v24810_v1, %v13569_v6  ;;  %v13568_v58 = vadd.f32 %v13281_v31, %v12861_v28  ;;  %v13772_v22 = vsel %vm6670_vm3, %v24872_v9, 0.0 }
 0x72c   :  { %v13769_v42 = vadd.f32 %v13768_v27, %v13767_v14  ;;  %v18482_v50 = vpop.f32.mrf.mxu1  ;;  %v24893_v14 = vpop.f32.mrf.mxu0 }
 0x72d   :  { %v13770_v54 = vsel %vm6670_vm3, %v24874_v45, 0.0  ;;  %v13639_v62 = vadd.f32 %v24810_v1, %v13568_v58  ;;  %v13571_v21 = vadd.f32 %v18482_v50, %v12864_v41  ;;  %v24886_v19 = vmax.f32 %v13640_v26, 0.0  ;;  %v26880_v41 = vld [vmem:[#allocation58_spill] sm:$0xff] }
 0x72e   :  { %v13771_v18 = vadd.f32 %v13770_v54, %v13769_v42  ;;  %v13291_v28 = vpop.f32.mrf.mxu1  ;;  %v12865_v50 = vadd.f32 %v24646_v12, %v26880_v41  ;;  %v12868_v42 = vadd.f32 %v24656_v35, %v24590_v7 }
 0x72f   :  { %26878 = vst [vmem:[#allocation46_spill] sm:$0xff] %v24886_v19  ;;  %v24890_v6 = vmax.f32 %v13639_v62, 0.0  ;;  %v13642_v34 = vadd.f32 %v24810_v1, %v13571_v21  ;;  %v13570_v27 = vadd.f32 %v13291_v28, %v12863_v2  ;;  %v13776_v49 = vsel %vm6670_vm3, %v24886_v19, 0.0  ;;  %v24909_v28 = vpop.f32.mrf.mxu0 }
 0x730   :  { %v13773_v31 = vadd.f32 %v13772_v22, %v13771_v18  ;;  %v18485_v58 = vpop.f32.mrf.mxu1 }
 0x731   :  { %26879 = vst [vmem:[#allocation75_spill] sm:$0xff] %v24890_v6  ;;  %v13774_v33 = vsel %vm6670_vm3, %v24890_v6, 0.0  ;;  %v13641_v4 = vadd.f32 %v24810_v1, %v13570_v27  ;;  %v13573_v26 = vadd.f32 %v18485_v58, %v12866_v25  ;;  %v24904_v62 = vmax.f32 %v13642_v34, 0.0  ;;  %v26883_v25 = vld [vmem:[#allocation29_spill] sm:$0xff]  ;;  %v26884_v34 = vld [vmem:[#allocation60_spill] sm:$0xff] }
 0x732   :  { %v13775_v2 = vadd.f32 %v13774_v33, %v13773_v31  ;;  %v13301_v54 = vpop.f32.mrf.mxu1  ;;  %v12867_v58 = vadd.f32 %v24666_v37, %v26883_v25  ;;  %v12870_v41 = vadd.f32 %v24675_v23, %v26884_v34 }
 0x733   :  { %26881 = vst [vmem:[#allocation44_spill] sm:$0xff] %v24904_v62  ;;  %v24906_v21 = vmax.f32 %v13641_v4, 0.0  ;;  %v13644_v12 = vadd.f32 %v24810_v1, %v13573_v26  ;;  %v13572_v18 = vadd.f32 %v13301_v54, %v12865_v50  ;;  %v13780_v26 = vsel %vm6670_vm3, %v24904_v62, 0.0  ;;  %v24925_v54 = vpop.f32.mrf.mxu0 }
 0x734   :  { %v13777_v22 = vadd.f32 %v13776_v49, %v13775_v2  ;;  %v18488_v27 = vpop.f32.mrf.mxu1 }
 0x735   :  { %26882 = vst [vmem:[#allocation47_spill] sm:$0xff] %v24906_v21  ;;  %v13778_v7 = vsel %vm6670_vm3, %v24906_v21, 0.0  ;;  %v13643_v35 = vadd.f32 %v24810_v1, %v13572_v18  ;;  %v13575_v31 = vadd.f32 %v18488_v27, %v12868_v42  ;;  %v24918_v4 = vmax.f32 %v13644_v12, 0.0  ;;  %v26887_v42 = vld [vmem:[#allocation30_spill] sm:$0xff] }
 0x736   :  { %v13779_v33 = vadd.f32 %v13778_v7, %v13777_v22  ;;  %v13311_v50 = vpop.f32.mrf.mxu1  ;;  %v12869_v27 = vadd.f32 %v24683_v3, %v26887_v42  ;;  %v26888_v7 = vld [vmem:[#allocation62_spill] sm:$0xff]  ;;  %v24941_v42 = vpop.f32.mrf.mxu0 }
 0x737   :  { %26885 = vst [vmem:[#allocation12_spill] sm:$0xff] %v24918_v4  ;;  %v24922_v49 = vmax.f32 %v13643_v35, 0.0  ;;  %v13646_v37 = vadd.f32 %v24810_v1, %v13575_v31  ;;  %v13574_v2 = vadd.f32 %v13311_v50, %v12867_v58  ;;  %v12872_v35 = vadd.f32 %v24691_v52, %v26888_v7 }
 0x738   :  { %v13781_v25 = vadd.f32 %v13780_v26, %v13779_v33  ;;  %v18491_v18 = vpop.f32.mrf.mxu1  ;;  %v13784_v31 = vsel %vm6670_vm3, %v24918_v4, 0.0 }
 0x739   :  { %26886 = vst [vmem:[#allocation11_spill] sm:$0xff] %v24922_v49  ;;  %v13782_v23 = vsel %vm6670_vm3, %v24922_v49, 0.0  ;;  %v13645_v12 = vadd.f32 %v24810_v1, %v13574_v2  ;;  %v13577_v22 = vadd.f32 %v18491_v18, %v12870_v41  ;;  %v24936_v50 = vmax.f32 %v13646_v37, 0.0  ;;  %v26891_v41 = vld [vmem:[#allocation32_spill] sm:$0xff] }
 0x73a   :  { %v13783_v58 = vadd.f32 %v13782_v23, %v13781_v25  ;;  %v13321_v34 = vpop.f32.mrf.mxu1  ;;  %v12871_v18 = vadd.f32 %v24699_v40, %v26891_v41  ;;  %v26892_v37 = vld [vmem:[#allocation64_spill] sm:$0xff] }
 0x73b   :  { %26889 = vst [vmem:[#allocation45_spill] sm:$0xff] %v24936_v50  ;;  %v24938_v33 = vmax.f32 %v13645_v12, 0.0  ;;  %v13648_v3 = vadd.f32 %v24810_v1, %v13577_v22  ;;  %v13576_v26 = vadd.f32 %v13321_v34, %v12869_v27  ;;  %v12874_v12 = vadd.f32 %v24707_v63, %v26892_v37  ;;  %v24957_v34 = vpop.f32.mrf.mxu0 }
 0x73c   :  { %v13785_v49 = vadd.f32 %v13784_v31, %v13783_v58  ;;  %v18494_v2 = vpop.f32.mrf.mxu1  ;;  %v13788_v22 = vsel %vm6670_vm3, %v24936_v50, 0.0 }
 0x73d   :  { %26890 = vst [vmem:[#allocation49_spill] sm:$0xff] %v24938_v33  ;;  %v13786_v52 = vsel %vm6670_vm3, %v24938_v33, 0.0  ;;  %v13647_v25 = vadd.f32 %v24810_v1, %v13576_v26  ;;  %v13579_v23 = vadd.f32 %v18494_v2, %v12872_v35  ;;  %v24950_v4 = vmax.f32 %v13648_v3, 0.0  ;;  %v26894_v35 = vld [vmem:[#allocation33_spill] sm:$0xff] }
 0x73e   :  { %v13787_v7 = vadd.f32 %v13786_v52, %v13785_v49  ;;  %v13331_v27 = vpop.f32.mrf.mxu1  ;;  %v12873_v2 = vadd.f32 %v24715_v36, %v26894_v35  ;;  %v26895_v52 = vld [vmem:[#allocation82_spill] sm:$0xff]  ;;  %v24973_v35 = vpop.f32.mrf.mxu0 }
 0x73f   :  { %v24954_v31 = vmax.f32 %v13647_v25, 0.0  ;;  %v13650_v40 = vadd.f32 %v24810_v1, %v13579_v23  ;;  %v13578_v58 = vadd.f32 %v13331_v27, %v12871_v18  ;;  %v12876_v25 = vadd.f32 %v24723_v5, %v26895_v52 }
 0x740   :  { %v13789_v41 = vadd.f32 %v13788_v22, %v13787_v7  ;;  %v18497_v26 = vpop.f32.mrf.mxu1  ;;  %v13792_v23 = vsel %vm6670_vm3, %v24950_v4, 0.0 }
 0x741   :  { %26893 = vst [vmem:[#allocation76_spill] sm:$0xff] %v24954_v31  ;;  %v13790_v63 = vsel %vm6670_vm3, %v24954_v31, 0.0  ;;  %v13649_v49 = vadd.f32 %v24810_v1, %v13578_v58  ;;  %v13581_v3 = vadd.f32 %v18497_v26, %v12874_v12  ;;  %v24968_v27 = vmax.f32 %v13650_v40, 0.0  ;;  %v26896_v12 = vld [vmem:[#allocation68_spill] sm:$0xff] }
 0x742   :  { %v13791_v18 = vadd.f32 %v13790_v63, %v13789_v41  ;;  %v13341_v37 = vpop.f32.mrf.mxu1  ;;  %v12875_v26 = vadd.f32 %v24731_v24, %v26896_v12  ;;  %v12878_v40 = vadd.f32 %v24739_v13, %v24640_v51 }
 0x743   :  { %v24970_v7 = vmax.f32 %v13649_v49, 0.0  ;;  %v13652_v36 = vadd.f32 %v24810_v1, %v13581_v3  ;;  %v13580_v22 = vadd.f32 %v13341_v37, %v12873_v2  ;;  %v13796_v3 = vsel %vm6670_vm3, %v24968_v27, 0.0  ;;  %v24989_v37 = vpop.f32.mrf.mxu0 }
 0x744   :  { %v13793_v31 = vadd.f32 %v13792_v23, %v13791_v18  ;;  %v18500_v58 = vpop.f32.mrf.mxu1 }
 0x745   :  { %v13794_v5 = vsel %vm6670_vm3, %v24970_v7, 0.0  ;;  %v13651_v41 = vadd.f32 %v24810_v1, %v13580_v22  ;;  %v13583_v63 = vadd.f32 %v18500_v58, %v12876_v25  ;;  %v24982_v52 = vmax.f32 %v13652_v36, 0.0  ;;  %v26897_v25 = vld [vmem:[#allocation71_spill] sm:$0xff] }
 0x746   :  { %v13795_v49 = vadd.f32 %v13794_v5, %v13793_v31  ;;  %v13351_v2 = vpop.f32.mrf.mxu1  ;;  %v12877_v58 = vadd.f32 %v24747_v48, %v26897_v25  ;;  %v12880_v36 = vadd.f32 %v24755_v20, %v24650_v11 }
 0x747   :  { %v24986_v23 = vmax.f32 %v13651_v41, 0.0  ;;  %v13654_v24 = vadd.f32 %v24810_v1, %v13583_v63  ;;  %v13582_v18 = vadd.f32 %v13351_v2, %v12875_v26  ;;  %v13800_v5 = vsel %vm6670_vm3, %v24982_v52, 0.0 }
 0x748   :  { %v13797_v12 = vadd.f32 %v13796_v3, %v13795_v49  ;;  %v18503_v22 = vpop.f32.mrf.mxu1  ;;  %v25005_v3 = vpop.f32.mrf.mxu0 }
 0x749   :  { %v13798_v51 = vsel %vm6670_vm3, %v24986_v23, 0.0  ;;  %v13653_v13 = vadd.f32 %v24810_v1, %v13582_v18  ;;  %v13585_v31 = vadd.f32 %v18503_v22, %v12878_v40  ;;  %v25000_v63 = vmax.f32 %v13654_v24, 0.0  ;;  %v26898_v40 = vld [vmem:[#allocation37_spill] sm:$0xff] }
 0x74a   :  { %v13799_v26 = vadd.f32 %v13798_v51, %v13797_v12  ;;  %v13361_v41 = vpop.f32.mrf.mxu1  ;;  %v12879_v22 = vadd.f32 %v24763_v32, %v26898_v40  ;;  %v12882_v24 = vadd.f32 %v24771_v44, %v24660_v29 }
 0x74b   :  { %v25002_v49 = vmax.f32 %v13653_v13, 0.0  ;;  %v13656_v48 = vadd.f32 %v24810_v1, %v13585_v31  ;;  %v13584_v2 = vadd.f32 %v13361_v41, %v12877_v58  ;;  %v13804_v31 = vsel %vm6670_vm3, %v25000_v63, 0.0  ;;  %v25021_v41 = vpop.f32.mrf.mxu0 }
 0x74c   :  { %v13801_v25 = vadd.f32 %v13800_v5, %v13799_v26  ;;  %v18506_v18 = vpop.f32.mrf.mxu1 }
 0x74d   :  { %v13802_v11 = vsel %vm6670_vm3, %v25002_v49, 0.0  ;;  %v13655_v20 = vadd.f32 %v24810_v1, %v13584_v2  ;;  %v13587_v12 = vadd.f32 %v18506_v18, %v12880_v36  ;;  %v25014_v13 = vmax.f32 %v13656_v48, 0.0  ;;  %v26901_v36 = vld [vmem:[#allocation7_spill] sm:$0xff] }
 0x74e   :  { %v13803_v51 = vadd.f32 %v13802_v11, %v13801_v25  ;;  %v13371_v58 = vpop.f32.mrf.mxu1  ;;  %v12881_v18 = vadd.f32 %v24779_v8, %v26901_v36  ;;  %v12884_v25 = vadd.f32 %v24787_v43, %v24670_v61 }
 0x74f   :  { %26899 = vst [vmem:[#allocation77_spill] sm:$0xff] %v25014_v13  ;;  %v25018_v5 = vmax.f32 %v13655_v20, 0.0  ;;  %v13658_v32 = vadd.f32 %v24810_v1, %v13587_v12  ;;  %v13586_v26 = vadd.f32 %v13371_v58, %v12879_v22  ;;  %v13808_v11 = vsel %vm6670_vm3, %v25014_v13, 0.0 }
 0x750   :  { %v13805_v40 = vadd.f32 %v13804_v31, %v13803_v51  ;;  %v18509_v2 = vpop.f32.mrf.mxu1  ;;  %v25037_v31 = vpop.f32.mrf.mxu0 }
 0x751   :  { %26900 = vst [vmem:[#allocation13_spill] sm:$0xff] %v25018_v5  ;;  %v13806_v29 = vsel %vm6670_vm3, %v25018_v5, 0.0  ;;  %v13657_v44 = vadd.f32 %v24810_v1, %v13586_v26  ;;  %v13589_v48 = vadd.f32 %v18509_v2, %v12882_v24  ;;  %v25032_v12 = vmax.f32 %v13658_v32, 0.0  ;;  %v26904_v24 = vld [vmem:[#allocation55_spill] sm:$0xff]  ;;  %v26905_v32 = vld [vmem:[#allocation54_spill] sm:$0xff] }
 0x752   :  { %v13807_v22 = vadd.f32 %v13806_v29, %v13805_v40  ;;  %v13381_v20 = vpop.f32.mrf.mxu1  ;;  %v12883_v2 = vadd.f32 %v24795_v39, %v26904_v24  ;;  %v12886_v29 = vadd.f32 %v24805_v0, %v26905_v32 }
 0x753   :  { %26902 = vst [vmem:[#allocation48_spill] sm:$0xff] %v25032_v12  ;;  %v25034_v51 = vmax.f32 %v13657_v44, 0.0  ;;  %v13660_v8 = vadd.f32 %v24810_v1, %v13589_v48  ;;  %v13588_v58 = vadd.f32 %v13381_v20, %v12881_v18  ;;  %v13812_v48 = vsel %vm6670_vm3, %v25032_v12, 0.0  ;;  %v25053_v20 = vpop.f32.mrf.mxu0 }
 0x754   :  { %v13809_v36 = vadd.f32 %v13808_v11, %v13807_v22  ;;  %v18512_v26 = vpop.f32.mrf.mxu1 }
 0x755   :  { %26903 = vst [vmem:[#allocation51_spill] sm:$0xff] %v25034_v51  ;;  %v13810_v61 = vsel %vm6670_vm3, %v25034_v51, 0.0  ;;  %v13659_v43 = vadd.f32 %v24810_v1, %v13588_v58  ;;  %v13591_v40 = vadd.f32 %v18512_v26, %v12884_v25  ;;  %v25046_v13 = vmax.f32 %v13660_v8, 0.0  ;;  %v26908_v25 = vld [vmem:[#allocation56_spill] sm:$0xff] }
 0x756   :  { %v13811_v44 = vadd.f32 %v13810_v61, %v13809_v36  ;;  %v13391_v18 = vpop.f32.mrf.mxu1  ;;  %v12885_v26 = vadd.f32 %v24817_v47, %v26908_v25  ;;  %v26909_v61 = vld [vmem:[#allocation57_spill] sm:$0xff]  ;;  %v25069_v25 = vpop.f32.mrf.mxu0 }
 0x757   :  { %26906 = vst [vmem:[#allocation79_spill] sm:$0xff] %v25046_v13  ;;  %v25050_v11 = vmax.f32 %v13659_v43, 0.0  ;;  %v13662_v39 = vadd.f32 %v24810_v1, %v13591_v40  ;;  %v13590_v22 = vadd.f32 %v13391_v18, %v12883_v2  ;;  %v12888_v43 = vadd.f32 %v24829_v57, %v26909_v61 }
 0x758   :  { %v13813_v24 = vadd.f32 %v13812_v48, %v13811_v44  ;;  %v18515_v58 = vpop.f32.mrf.mxu1  ;;  %v13816_v40 = vsel %vm6670_vm3, %v25046_v13, 0.0 }
 0x759   :  { %26907 = vst [vmem:[#allocation78_spill] sm:$0xff] %v25050_v11  ;;  %v13814_v0 = vsel %vm6670_vm3, %v25050_v11, 0.0  ;;  %v13661_v8 = vadd.f32 %v24810_v1, %v13590_v22  ;;  %v13593_v36 = vadd.f32 %v18515_v58, %v12886_v29  ;;  %v25064_v18 = vmax.f32 %v13662_v39, 0.0  ;;  %v26912_v29 = vld [vmem:[#allocation59_spill] sm:$0xff] }
 0x75a   :  { %v13815_v2 = vadd.f32 %v13814_v0, %v13813_v24  ;;  %v13401_v32 = vpop.f32.mrf.mxu1  ;;  %v12887_v58 = vadd.f32 %v24845_v17, %v26912_v29  ;;  %v26913_v39 = vld [vmem:[#allocation31_spill] sm:$0xff] }
 0x75b   :  { %26910 = vst [vmem:[#allocation50_spill] sm:$0xff] %v25064_v18  ;;  %v25066_v44 = vmax.f32 %v13661_v8, 0.0  ;;  %v13664_v47 = vadd.f32 %v24810_v1, %v13593_v36  ;;  %v13592_v48 = vadd.f32 %v13401_v32, %v12885_v26  ;;  %v12890_v8 = vadd.f32 %v24861_v46, %v26913_v39  ;;  %v25085_v32 = vpop.f32.mrf.mxu0 }
 0x75c   :  { %v13817_v11 = vadd.f32 %v13816_v40, %v13815_v2  ;;  %v18518_v22 = vpop.f32.mrf.mxu1  ;;  %v13820_v36 = vsel %vm6670_vm3, %v25064_v18, 0.0 }
 0x75d   :  { %26911 = vst [vmem:[#allocation53_spill] sm:$0xff] %v25066_v44  ;;  %v13818_v57 = vsel %vm6670_vm3, %v25066_v44, 0.0  ;;  %v13663_v24 = vadd.f32 %v24810_v1, %v13592_v48  ;;  %v13595_v0 = vadd.f32 %v18518_v22, %v12888_v43  ;;  %v25078_v13 = vmax.f32 %v13664_v47, 0.0  ;;  %v26916_v43 = vld [vmem:[#allocation81_spill] sm:$0xff] }
 0x75e   :  { %v13819_v61 = vadd.f32 %v13818_v57, %v13817_v11  ;;  %v13411_v26 = vpop.f32.mrf.mxu1  ;;  %v12889_v22 = vadd.f32 %v24877_v38, %v26916_v43  ;;  %v26917_v57 = vld [vmem:[#allocation61_spill] sm:$0xff]  ;;  %v25101_v43 = vpop.f32.mrf.mxu0 }
 0x75f   :  { %26914 = vst [vmem:[#allocation14_spill] sm:$0xff] %v25078_v13  ;;  %v25082_v40 = vmax.f32 %v13663_v24, 0.0  ;;  %v13666_v17 = vadd.f32 %v24810_v1, %v13595_v0  ;;  %v13594_v2 = vadd.f32 %v13411_v26, %v12887_v58  ;;  %v12892_v24 = vadd.f32 %v24893_v14, %v26917_v57 }
 0x760   :  { %v13821_v29 = vadd.f32 %v13820_v36, %v13819_v61  ;;  %v18521_v48 = vpop.f32.mrf.mxu1  ;;  %v13824_v0 = vsel %vm6670_vm3, %v25078_v13, 0.0 }
 0x761   :  { %26915 = vst [vmem:[#allocation80_spill] sm:$0xff] %v25082_v40  ;;  %v13822_v46 = vsel %vm6670_vm3, %v25082_v40, 0.0  ;;  %v13665_v11 = vadd.f32 %v24810_v1, %v13594_v2  ;;  %v13597_v47 = vadd.f32 %v18521_v48, %v12890_v8  ;;  %v25096_v26 = vmax.f32 %v13666_v17, 0.0  ;;  %v26918_v8 = vld [vmem:[#allocation63_spill] sm:$0xff]  ;;  %v26919_v17 = vld [vmem:[#allocation34_spill] sm:$0xff] }
 0x762   :  { %v13823_v58 = vadd.f32 %v13822_v46, %v13821_v29  ;;  %v13421_v39 = vpop.f32.mrf.mxu1  ;;  %v12891_v48 = vadd.f32 %v24909_v28, %v26918_v8 }
 0x763   :  { %v25098_v61 = vmax.f32 %v13665_v11, 0.0  ;;  %v13668_v38 = vadd.f32 %v24810_v1, %v13597_v47  ;;  %v13596_v36 = vadd.f32 %v13421_v39, %v12889_v22  ;;  %v12894_v11 = vadd.f32 %v24925_v54, %v26919_v17  ;;  %v25117_v39 = vpop.f32.mrf.mxu0 }
 0x764   :  { %v13825_v40 = vadd.f32 %v13824_v0, %v13823_v58  ;;  %v18524_v2 = vpop.f32.mrf.mxu1  ;;  %v13828_v47 = vsel %vm6670_vm3, %v25096_v26, 0.0 }
 0x765   :  { %v13826_v14 = vsel %vm6670_vm3, %v25098_v61, 0.0  ;;  %v13667_v29 = vadd.f32 %v24810_v1, %v13596_v36  ;;  %v13599_v46 = vadd.f32 %v18524_v2, %v12892_v24  ;;  %v25110_v13 = vmax.f32 %v13668_v38, 0.0  ;;  %v26922_v24 = vld [vmem:[#allocation67_spill] sm:$0xff] }
 0x766   :  { %v13827_v57 = vadd.f32 %v13826_v14, %v13825_v40  ;;  %v13431_v22 = vpop.f32.mrf.mxu1  ;;  %v12893_v2 = vadd.f32 %v24941_v42, %v26922_v24  ;;  %v26923_v14 = vld [vmem:[#allocation35_spill] sm:$0xff]  ;;  %v25133_v24 = vpop.f32.mrf.mxu0 }
 0x767   :  { %26920 = vst [vmem:[#allocation52_spill] sm:$0xff] %v25110_v13  ;;  %v25114_v0 = vmax.f32 %v13667_v29, 0.0  ;;  %v13670_v28 = vadd.f32 %v24810_v1, %v13599_v46  ;;  %v13598_v58 = vadd.f32 %v13431_v22, %v12891_v48  ;;  %v12896_v29 = vadd.f32 %v24957_v34, %v26923_v14 }
 0x768   :  { %v13829_v8 = vadd.f32 %v13828_v47, %v13827_v57  ;;  %v18527_v36 = vpop.f32.mrf.mxu1  ;;  %v13832_v46 = vsel %vm6670_vm3, %v25110_v13, 0.0 }
 0x769   :  { %26921 = vst [vmem:[#allocation84_spill] sm:$0xff] %v25114_v0  ;;  %v13830_v54 = vsel %vm6670_vm3, %v25114_v0, 0.0  ;;  %v13669_v40 = vadd.f32 %v24810_v1, %v13598_v58  ;;  %v13601_v38 = vadd.f32 %v18527_v36, %v12894_v11  ;;  %v25128_v22 = vmax.f32 %v13670_v28, 0.0  ;;  %v26924_v11 = vld [vmem:[#allocation38_spill] sm:$0xff]  ;;  %v26925_v28 = vld [vmem:[#allocation65_spill] sm:$0xff] }
 0x76a   :  { %v13831_v48 = vadd.f32 %v13830_v54, %v13829_v8  ;;  %v13441_v17 = vpop.f32.mrf.mxu1  ;;  %v12895_v36 = vadd.f32 %v24973_v35, %v26924_v11 }
 0x76b   :  { %v25130_v57 = vmax.f32 %v13669_v40, 0.0  ;;  %v13672_v42 = vadd.f32 %v24810_v1, %v13601_v38  ;;  %v13600_v47 = vadd.f32 %v13441_v17, %v12893_v2  ;;  %v12898_v40 = vadd.f32 %v24989_v37, %v26925_v28  ;;  %v25149_v17 = vpop.f32.mrf.mxu0 }
 0x76c   :  { %v13833_v0 = vadd.f32 %v13832_v46, %v13831_v48  ;;  %v18530_v58 = vpop.f32.mrf.mxu1  ;;  %v13836_v38 = vsel %vm6670_vm3, %v25128_v22, 0.0 }
 0x76d   :  { %v13834_v34 = vsel %vm6670_vm3, %v25130_v57, 0.0  ;;  %v13671_v8 = vadd.f32 %v24810_v1, %v13600_v47  ;;  %v13603_v54 = vadd.f32 %v18530_v58, %v12896_v29  ;;  %v25142_v13 = vmax.f32 %v13672_v42, 0.0  ;;  %v26928_v29 = vld [vmem:[#allocation66_spill] sm:$0xff] }
 0x76e   :  { %v13835_v14 = vadd.f32 %v13834_v34, %v13833_v0  ;;  %v13451_v2 = vpop.f32.mrf.mxu1  ;;  %v12897_v58 = vadd.f32 %v25005_v3, %v26928_v29  ;;  %v26929_v34 = vld [vmem:[#allocation39_spill] sm:$0xff]  ;;  %v25165_v29 = vpop.f32.mrf.mxu0 }
 0x76f   :  { %26926 = vst [vmem:[#allocation16_spill] sm:$0xff] %v25142_v13  ;;  %v25146_v46 = vmax.f32 %v13671_v8, 0.0  ;;  %v13674_v35 = vadd.f32 %v24810_v1, %v13603_v54  ;;  %v13602_v48 = vadd.f32 %v13451_v2, %v12895_v36  ;;  %v12900_v8 = vadd.f32 %v25021_v41, %v26929_v34 }
 0x770   :  { %v13837_v11 = vadd.f32 %v13836_v38, %v13835_v14  ;;  %v18533_v47 = vpop.f32.mrf.mxu1  ;;  %v13840_v54 = vsel %vm6670_vm3, %v25142_v13, 0.0 }
 0x771   :  { %26927 = vst [vmem:[#allocation15_spill] sm:$0xff] %v25146_v46  ;;  %v13838_v37 = vsel %vm6670_vm3, %v25146_v46, 0.0  ;;  %v13673_v0 = vadd.f32 %v24810_v1, %v13602_v48  ;;  %v13605_v42 = vadd.f32 %v18533_v47, %v12898_v40  ;;  %v25160_v2 = vmax.f32 %v13674_v35, 0.0  ;;  %v26931_v40 = vld [vmem:[#allocation36_spill] sm:$0xff] }
 0x772   :  { %v13839_v36 = vadd.f32 %v13838_v37, %v13837_v11  ;;  %v13461_v28 = vpop.f32.mrf.mxu1  ;;  %v12899_v47 = vadd.f32 %v25037_v31, %v26931_v40  ;;  %v26932_v35 = vld [vmem:[#allocation96_spill] sm:$0xff] }
 0x773   :  { %v25162_v14 = vmax.f32 %v13673_v0, 0.0  ;;  %v13676_v3 = vadd.f32 %v24810_v1, %v13605_v42  ;;  %v13604_v38 = vadd.f32 %v13461_v28, %v12897_v58  ;;  %v12902_v0 = vadd.f32 %v25053_v20, %v26932_v35  ;;  %v18453_v28 = vpop.f32.mrf.mxu0 }
 0x774   :  { %v13841_v46 = vadd.f32 %v13840_v54, %v13839_v36  ;;  %v18536_v48 = vpop.f32.mrf.mxu1  ;;  %v13844_v42 = vsel %vm6670_vm3, %v25160_v2, 0.0 }
 0x775   :  { %26930 = vst [vmem:[#allocation83_spill] sm:$0xff] %v25162_v14  ;;  %v13842_v41 = vsel %vm6670_vm3, %v25162_v14, 0.0  ;;  %v13675_v11 = vadd.f32 %v24810_v1, %v13604_v38  ;;  %v13607_v37 = vadd.f32 %v18536_v48, %v12900_v8  ;;  %v25174_v13 = vmax.f32 %v13676_v3, 0.0  ;;  %v26935_v38 = vld [vmem:[#allocation69_spill] sm:$0xff]  ;;  %v26936_v48 = vld [vmem:[#allocation72_spill] sm:$0xff] }
 0x776   :  { %v13843_v34 = vadd.f32 %v13842_v41, %v13841_v46  ;;  %v13471_v58 = vpop.f32.mrf.mxu1  ;;  %v12901_v8 = vadd.f32 %v25069_v25, %v26935_v38  ;;  %v12904_v41 = vadd.f32 %v25085_v32, %v26936_v48 }
 0x777   :  { %26933 = vst [vmem:[#allocation86_spill] sm:$0xff] %v25174_v13  ;;  %v25178_v54 = vmax.f32 %v13675_v11, 0.0  ;;  %v13678_v31 = vadd.f32 %v24810_v1, %v13607_v37  ;;  %v13606_v36 = vadd.f32 %v13471_v58, %v12899_v47  ;;  %v13848_v11 = vsel %vm6670_vm3, %v25174_v13, 0.0 }
 0x778   :  { %v13845_v40 = vadd.f32 %v13844_v42, %v13843_v34  ;;  %v18539_v14 = vpop.f32.mrf.mxu1  ;;  %v12814_v42 = vpop.f32.mrf.mxu0 }
 0x779   :  { %26934 = vst [vmem:[#allocation18_spill] sm:$0xff] %v25178_v54  ;;  %v13846_v20 = vsel %vm6670_vm3, %v25178_v54, 0.0  ;;  %v13677_v46 = vadd.f32 %v24810_v1, %v13606_v36  ;;  %v13609_v3 = vadd.f32 %v18539_v14, %v12902_v0  ;;  %v25190_v35 = vmax.f32 %v13678_v31, 0.0  ;;  %v26939_v36 = vld [vmem:[#allocation70_spill] sm:$0xff] }
 0x77a   :  { %v13847_v37 = vadd.f32 %v13846_v20, %v13845_v40  ;;  %v13481_v47 = vpop.f32.mrf.mxu1  ;;  %v12903_v14 = vadd.f32 %v25101_v43, %v26939_v36  ;;  %v26940_v20 = vld [vmem:[#allocation40_spill] sm:$0xff] }
 0x77b   :  { %26937 = vst [vmem:[#allocation17_spill] sm:$0xff] %v25190_v35  ;;  %v25192_v34 = vmax.f32 %v13677_v46, 0.0  ;;  %v13680_v25 = vadd.f32 %v24810_v1, %v13609_v3  ;;  %v13608_v58 = vadd.f32 %v13481_v47, %v12901_v8  ;;  %v12906_v31 = vadd.f32 %v25117_v39, %v26940_v20  ;;  %v18456_v47 = vpop.f32.mrf.mxu0 }
 0x77c   :  { %v13849_v38 = vadd.f32 %v13848_v11, %v13847_v37  ;;  %v18542_v54 = vpop.f32.mrf.mxu1  ;;  %v13852_v8 = vsel %vm6670_vm3, %v25190_v35, 0.0 }
 0x77d   :  { %26938 = vst [vmem:[#allocation85_spill] sm:$0xff] %v25192_v34  ;;  %v13850_v32 = vsel %vm6670_vm3, %v25192_v34, 0.0  ;;  %v13679_v0 = vadd.f32 %v24810_v1, %v13608_v58  ;;  %v13611_v40 = vadd.f32 %v18542_v54, %v12904_v41  ;;  %v25202_v48 = vmax.f32 %v13680_v25, 0.0  ;;  %v26941_v58 = vld [vmem:[#allocation99_spill] sm:$0xff] }
 0x77e   :  { %v13851_v46 = vadd.f32 %v13850_v32, %v13849_v38  ;;  %v13491_v3 = vpop.f32.mrf.mxu1  ;;  %v12905_v54 = vadd.f32 %v25133_v24, %v26941_v58  ;;  %v12908_v38 = vadd.f32 %v25149_v17, %v24766_v10 }
 0x77f   :  { %v25206_v11 = vmax.f32 %v13679_v0, 0.0  ;;  %v13682_v43 = vadd.f32 %v24810_v1, %v13611_v40  ;;  %v13610_v37 = vadd.f32 %v13491_v3, %v12903_v14  ;;  %v13856_v32 = vsel %vm6670_vm3, %v25202_v48, 0.0  ;;  %v12824_v3 = vpop.f32.mrf.mxu0 }
 0x780   :  { %v13853_v36 = vadd.f32 %v13852_v8, %v13851_v46  ;;  %v18545_v34 = vpop.f32.mrf.mxu1 }
 0x781   :  { %v13854_v39 = vsel %vm6670_vm3, %v25206_v11, 0.0  ;;  %v13681_v41 = vadd.f32 %v24810_v1, %v13610_v37  ;;  %v13613_v25 = vadd.f32 %v18545_v34, %v12906_v31  ;;  %v25218_v40 = vmax.f32 %v13682_v43, 0.0  ;;  %v26943_v37 = vld [vmem:[#allocation74_spill] sm:$0xff] }
 0x782   :  { %v13855_v0 = vadd.f32 %v13854_v39, %v13853_v36  ;;  %v13501_v14 = vpop.f32.mrf.mxu1  ;;  %v12907_v34 = vadd.f32 %v25165_v29, %v26943_v37  ;;  %v12910_v43 = vadd.f32 %v18453_v28, %v24774_v30 }
 0x783   :  { %v25220_v20 = vmax.f32 %v13681_v41, 0.0  ;;  %v13684_v24 = vadd.f32 %v24810_v1, %v13613_v25  ;;  %v13612_v46 = vadd.f32 %v13501_v14, %v12905_v54  ;;  %v13860_v54 = vsel %vm6670_vm3, %v25218_v40, 0.0 }
 0x784   :  { %v13857_v8 = vadd.f32 %v13856_v32, %v13855_v0  ;;  %v18548_v58 = vpop.f32.mrf.mxu1  ;;  %v18459_v0 = vpop.f32.mrf.mxu0 }
 0x785   :  { %26942 = vst [vmem:[#allocation88_spill] sm:$0xff] %v25220_v20  ;;  %v13858_v10 = vsel %vm6670_vm3, %v25220_v20, 0.0  ;;  %v13683_v17 = vadd.f32 %v24810_v1, %v13612_v46  ;;  %v13615_v31 = vadd.f32 %v18548_v58, %v12908_v38  ;;  %v25229_v39 = vmax.f32 %v13684_v24, 0.0  ;;  %v26944_v20 = vld [vmem:[#allocation73_spill] sm:$0xff] }
 0x786   :  { %v13859_v36 = vadd.f32 %v13858_v10, %v13857_v8  ;;  %v13511_v41 = vpop.f32.mrf.mxu1  ;;  %v12909_v46 = vadd.f32 %v12814_v42, %v26944_v20  ;;  %v12912_v24 = vadd.f32 %v18456_v47, %v24782_v16  ;;  %v12834_v20 = vpop.f32.mrf.mxu0 }
 0x787   :  { %v25233_v25 = vmax.f32 %v13683_v17, 0.0  ;;  %v13686_v32 = vadd.f32 %v24810_v1, %v13615_v31  ;;  %v13614_v29 = vadd.f32 %v13511_v41, %v12907_v34  ;;  %v13864_v8 = vsel %vm6670_vm3, %v25229_v39, 0.0 }
 0x788   :  { %v13861_v14 = vadd.f32 %v13860_v54, %v13859_v36  ;;  %v18551_v37 = vpop.f32.mrf.mxu1  ;;  %v26947_v54 = vld [vmem:[#allocation8_spill] sm:$0xff] }
 0x789   :  { %v13862_v30 = vsel %vm6670_vm3, %v25233_v25, 0.0  ;;  %v13685_v28 = vadd.f32 %v24810_v1, %v13614_v29  ;;  %v13617_v38 = vadd.f32 %v18551_v37, %v12910_v43  ;;  %v25243_v17 = vmax.f32 %v13686_v32, 0.0 }
 0x78a   :  { %v13863_v58 = vadd.f32 %v13862_v30, %v13861_v14  ;;  %v13521_v10 = vpop.f32.mrf.mxu1  ;;  %v12911_v29 = vadd.f32 %v12824_v3, %v26947_v54  ;;  %v18462_v14 = vpop.f32.mrf.mxu0 }
 0x78b   :  { %26945 = vst [vmem:[#allocation20_spill] sm:$0xff] %v25243_v17  ;;  %v25245_v34 = vmax.f32 %v13685_v28, 0.0  ;;  %v13688_v31 = vadd.f32 %v24810_v1, %v13617_v38  ;;  %v13616_v42 = vadd.f32 %v13521_v10, %v12909_v46  ;;  %v13868_v28 = vsel %vm6670_vm3, %v25243_v17, 0.0  ;;  %v26949_v10 = vld [vmem:[#allocation43_spill] sm:$0xff] }
 0x78c   :  { %v13865_v36 = vadd.f32 %v13864_v8, %v13863_v58  ;;  %v18554_v41 = vpop.f32.mrf.mxu1  ;;  %v12914_v54 = vadd.f32 %v18459_v0, %v26949_v10 }
 0x78d   :  { %26946 = vst [vmem:[#allocation19_spill] sm:$0xff] %v25245_v34  ;;  %v13866_v16 = vsel %vm6670_vm3, %v25245_v34, 0.0  ;;  %v13687_v47 = vadd.f32 %v24810_v1, %v13616_v42  ;;  %v13619_v43 = vadd.f32 %v18554_v41, %v12912_v24  ;;  %v25252_v32 = vmax.f32 %v13688_v31, 0.0  ;;  %v26950_v34 = vld [vmem:[#allocation10_spill] sm:$0xff] }
 0x78e   :  { %v13867_v37 = vadd.f32 %v13866_v16, %v13865_v36  ;;  %v13531_v30 = vpop.f32.mrf.mxu1  ;;  %v12913_v42 = vadd.f32 %v12834_v20, %v26950_v34  ;;  %v12844_v36 = vpop.f32.mrf.mxu0  ;;  %v26951_v34 = vld [vmem:[#allocation41_spill] sm:$0xff] }
 0x78f   :  { %v25256_v46 = vmax.f32 %v13687_v47, 0.0  ;;  %v13690_v38 = vadd.f32 %v24810_v1, %v13619_v43  ;;  %v13618_v8 = vadd.f32 %v13531_v30, %v12911_v29  ;;  %v13872_v41 = vsel %vm6670_vm3, %v25252_v32, 0.0 }
 0x790   :  { %v13869_v3 = vadd.f32 %v13868_v28, %v13867_v37  ;;  %v18557_v58 = vpop.f32.mrf.mxu1  ;;  %v12915_v20 = vadd.f32 %v12844_v36, %v26951_v34 }
 0x791   :  { %26948 = vst [vmem:[#allocation87_spill] sm:$0xff] %v25256_v46  ;;  %v13870_v24 = vsel %vm6670_vm3, %v25256_v46, 0.0  ;;  %v13689_v31 = vadd.f32 %v24810_v1, %v13618_v8  ;;  %v25266_v17 = vmax.f32 %v13690_v38, 0.0  ;;  %v13621_v43 = vadd.f32 %v18557_v58, %v12914_v54 }
 0x792   :  { %v13871_v16 = vadd.f32 %v13870_v24, %v13869_v3  ;;  %v13541_v47 = vpop.f32.mrf.mxu1 }
 0x793   :  { %v25268_v29 = vmax.f32 %v13689_v31, 0.0  ;;  %v13620_v37 = vadd.f32 %v13541_v47, %v12913_v42  ;;  %v13876_v3 = vsel %vm6670_vm3, %v25266_v17, 0.0  ;;  %v13692_v38 = vadd.f32 %v24810_v1, %v13621_v43  ;;  %v26952_v42 = vld [vmem:[#allocation9_spill] sm:$0xff] }
 0x794   :  { %v13873_v0 = vadd.f32 %v13872_v41, %v13871_v16  ;;  %v18560_v30 = vpop.f32.mrf.mxu1  ;;  %v12916_v31 = vadd.f32 %v18462_v14, %v26952_v42 }
 0x795   :  { %v13874_v28 = vsel %vm6670_vm3, %v25268_v29, 0.0  ;;  %v13691_v8 = vadd.f32 %v24810_v1, %v13620_v37  ;;  %v25283_v16 = vmax.f32 %v13692_v38, 0.0 }
 0x796   :  { %v13875_v10 = vadd.f32 %v13874_v28, %v13873_v0  ;;  %v13551_v46 = vpop.f32.mrf.mxu1  ;;  %v13623_v47 = vadd.f32 %v18560_v30, %v12916_v31 }
 0x797   :  { %v25277_v24 = vmax.f32 %v13691_v8, 0.0  ;;  %v13622_v58 = vadd.f32 %v13551_v46, %v12915_v20  ;;  %26953 = vst [vmem:[#allocation90_spill] sm:$0xff] %v25283_v16  ;;  %v13880_v43 = vsel %vm6670_vm3, %v25283_v16, 0.0 }
 0x798   :  { %v13877_v54 = vadd.f32 %v13876_v3, %v13875_v10  ;;  %v13694_v34 = vadd.f32 %v24810_v1, %v13623_v47 }
 0x799   :  { %v13878_v36 = vsel %vm6670_vm3, %v25277_v24, 0.0  ;;  %v13693_v41 = vadd.f32 %v24810_v1, %v13622_v58 }
 0x79a   :  { %v13879_v37 = vadd.f32 %v13878_v36, %v13877_v54  ;;  %v25292_v20 = vmax.f32 %v13694_v34, 0.0 }
 0x79b   :  { %v25285_v0 = vmax.f32 %v13693_v41, 0.0 }
 0x79c   :  { %v13881_v46 = vadd.f32 %v13880_v43, %v13879_v37  ;;  %26955 = vst [vmem:[#allocation89_spill] sm:$0xff] %v25292_v20  ;;  %v13884_v8 = vsel %vm6670_vm3, %v25292_v20, 0.0 }
 0x79d   :  { %26954 = vst [vmem:[#allocation22_spill] sm:$0xff] %v25285_v0  ;;  %v13882_v14 = vsel %vm6670_vm3, %v25285_v0, 0.0 }
 0x79e   :  { %v13883_v28 = vadd.f32 %v13882_v14, %v13881_v46 }
 0x7a0   :  { %v13885_v10 = vadd.f32 %v13884_v8, %v13883_v28 }
 0x7a2   :  { %v13886_v30 = vrot.slane %v13885_v10, 4 }
 0x7a4   :  { %v13887_v3 = vadd.f32 %v13886_v30, %v13885_v10 }
 0x7a6   :  { %v13888_v38 = vrot.slane %v13887_v3, 2 }
 0x7a8   :  { %v13889_v58 = vadd.f32 %v13888_v38, %v13887_v3 }
 0x7aa   :  { %v13890_v54 = vrot.slane %v13889_v58, 1 }
 0x7ac   :  { %v13891_v42 = vadd.f32 %v13890_v54, %v13889_v58 }
 0x7ae   :  { %v25296_v31 = vmul.f32 0.001953125, %v13891_v42 }
 0x7b0   :  { %v13893_v1 = vsub.f32 %v24826_v60, %v25296_v31  ;;  %v13894_v36 = vsub.f32 %v24822_v59, %v25296_v31  ;;  %v13895_v41 = vsub.f32 %v24842_v55, %v25296_v31  ;;  %v13896_v47 = vsub.f32 %v24840_v15, %v25296_v31 }
 0x7b1   :  { %v13897_v34 = vsub.f32 %v24858_v56, %v25296_v31  ;;  %v13898_v14 = vsub.f32 %v24854_v53, %v25296_v31  ;;  %v13899_v3 = vsub.f32 %v24874_v45, %v25296_v31  ;;  %v13900_v42 = vsub.f32 %v24872_v9, %v25296_v31 }
 0x7b2   :  { %v13957_v37 = vmul.f32 %v13893_v1, %v13893_v1  ;;  %v13958_v43 = vmul.f32 %v13894_v36, %v13894_v36  ;;  %v13959_v46 = vmul.f32 %v13895_v41, %v13895_v41  ;;  %v13960_v28 = vmul.f32 %v13896_v47, %v13896_v47 }
 0x7b3   :  { %v13961_v38 = vmul.f32 %v13897_v34, %v13897_v34  ;;  %v13962_v1 = vmul.f32 %v13898_v14, %v13898_v14  ;;  %v13901_v47 = vsub.f32 %v24890_v6, %v25296_v31  ;;  %v13902_v34 = vsub.f32 %v24886_v19, %v25296_v31 }
 0x7b4   :  { %v14021_v8 = vsel %vm6670_vm3, %v13957_v37, 0.0  ;;  %v14022_v10 = vsel %vm6670_vm3, %v13958_v43, 0.0  ;;  %v14024_v58 = vsel %vm6670_vm3, %v13959_v46, 0.0  ;;  %v14026_v36 = vsel %vm6670_vm3, %v13960_v28, 0.0 }
 0x7b5   :  { %v14023_v30 = vadd.f32 %v14022_v10, %v14021_v8  ;;  %v13963_v37 = vmul.f32 %v13899_v3, %v13899_v3  ;;  %v14028_v43 = vsel %vm6670_vm3, %v13961_v38, 0.0  ;;  %v13964_v10 = vmul.f32 %v13900_v42, %v13900_v42 }
 0x7b6   :  { %v14030_v46 = vsel %vm6670_vm3, %v13962_v1, 0.0  ;;  %v13903_v14 = vsub.f32 %v24906_v21, %v25296_v31  ;;  %v13904_v3 = vsub.f32 %v24904_v62, %v25296_v31 }
 0x7b7   :  { %v14025_v54 = vadd.f32 %v14024_v58, %v14023_v30  ;;  %v13965_v58 = vmul.f32 %v13901_v47, %v13901_v47  ;;  %v14032_v28 = vsel %vm6670_vm3, %v13963_v37, 0.0  ;;  %v14034_v38 = vsel %vm6670_vm3, %v13964_v10, 0.0 }
 0x7b8   :  { %v13967_v19 = vmul.f32 %v13903_v14, %v13903_v14  ;;  %v13968_v21 = vmul.f32 %v13904_v3, %v13904_v3  ;;  %v13908_v14 = vsub.f32 %v24936_v50, %v25296_v31 }
 0x7b9   :  { %v14027_v41 = vadd.f32 %v14026_v36, %v14025_v54  ;;  %v13966_v36 = vmul.f32 %v13902_v34, %v13902_v34  ;;  %v14036_v1 = vsel %vm6670_vm3, %v13965_v58, 0.0  ;;  %v13907_v34 = vsub.f32 %v24938_v33, %v25296_v31 }
 0x7ba   :  { %v14040_v10 = vsel %vm6670_vm3, %v13967_v19, 0.0  ;;  %v14042_v58 = vsel %vm6670_vm3, %v13968_v21, 0.0 }
 0x7bb   :  { %v14029_v8 = vadd.f32 %v14028_v43, %v14027_v41  ;;  %v26956_v43 = vld [vmem:[#allocation11_spill] sm:$0xff]  ;;  %v14038_v37 = vsel %vm6670_vm3, %v13966_v36, 0.0 }
 0x7bc   :  { %v13905_v42 = vsub.f32 %v26956_v43, %v25296_v31 }
 0x7bd   :  { %v14031_v30 = vadd.f32 %v14030_v46, %v14029_v8  ;;  %v26957_v46 = vld [vmem:[#allocation12_spill] sm:$0xff] }
 0x7be   :  { %v13906_v47 = vsub.f32 %v26957_v46, %v25296_v31  ;;  %v13971_v46 = vmul.f32 %v13907_v34, %v13907_v34  ;;  %v13912_v34 = vsub.f32 %v24968_v27, %v25296_v31 }
 0x7bf   :  { %v14033_v54 = vadd.f32 %v14032_v28, %v14031_v30  ;;  %v13969_v28 = vmul.f32 %v13905_v42, %v13905_v42  ;;  %v13910_v42 = vsub.f32 %v24950_v4, %v25296_v31 }
 0x7c0   :  { %v14048_v21 = vsel %vm6670_vm3, %v13971_v46, 0.0 }
 0x7c1   :  { %v14035_v41 = vadd.f32 %v14034_v38, %v14033_v54  ;;  %v13970_v38 = vmul.f32 %v13906_v47, %v13906_v47  ;;  %v14044_v36 = vsel %vm6670_vm3, %v13969_v28, 0.0  ;;  %v13911_v47 = vsub.f32 %v24970_v7, %v25296_v31 }
 0x7c3   :  { %v14037_v8 = vadd.f32 %v14036_v1, %v14035_v41  ;;  %v26958_v1 = vld [vmem:[#allocation76_spill] sm:$0xff]  ;;  %v14046_v19 = vsel %vm6670_vm3, %v13970_v38, 0.0 }
 0x7c4   :  { %v13909_v3 = vsub.f32 %v26958_v1, %v25296_v31 }
 0x7c5   :  { %v14039_v30 = vadd.f32 %v14038_v37, %v14037_v8  ;;  %v13972_v37 = vmul.f32 %v13908_v14, %v13908_v14  ;;  %v13913_v14 = vsub.f32 %v24986_v23, %v25296_v31 }
 0x7c7   :  { %v14041_v54 = vadd.f32 %v14040_v10, %v14039_v30  ;;  %v13973_v10 = vmul.f32 %v13909_v3, %v13909_v3  ;;  %v14050_v28 = vsel %vm6670_vm3, %v13972_v37, 0.0  ;;  %v13914_v3 = vsub.f32 %v24982_v52, %v25296_v31 }
 0x7c9   :  { %v14043_v41 = vadd.f32 %v14042_v58, %v14041_v54  ;;  %v13974_v58 = vmul.f32 %v13910_v42, %v13910_v42  ;;  %v14052_v38 = vsel %vm6670_vm3, %v13973_v10, 0.0  ;;  %v13915_v42 = vsub.f32 %v25002_v49, %v25296_v31 }
 0x7cb   :  { %v14045_v8 = vadd.f32 %v14044_v36, %v14043_v41  ;;  %v13975_v36 = vmul.f32 %v13911_v47, %v13911_v47  ;;  %v14054_v46 = vsel %vm6670_vm3, %v13974_v58, 0.0  ;;  %v13916_v47 = vsub.f32 %v25000_v63, %v25296_v31 }
 0x7cd   :  { %v14047_v30 = vadd.f32 %v14046_v19, %v14045_v8  ;;  %v13976_v19 = vmul.f32 %v13912_v34, %v13912_v34  ;;  %v14056_v37 = vsel %vm6670_vm3, %v13975_v36, 0.0  ;;  %v13917_v34 = vsub.f32 %v25018_v5, %v25296_v31 }
 0x7ce   :  { %v13980_v50 = vmul.f32 %v13916_v47, %v13916_v47 }
 0x7cf   :  { %v14049_v54 = vadd.f32 %v14048_v21, %v14047_v30  ;;  %v13977_v21 = vmul.f32 %v13913_v14, %v13913_v14  ;;  %v14058_v10 = vsel %vm6670_vm3, %v13976_v19, 0.0 }
 0x7d1   :  { %v14051_v41 = vadd.f32 %v14050_v28, %v14049_v54  ;;  %v13978_v28 = vmul.f32 %v13914_v3, %v13914_v3  ;;  %v14060_v58 = vsel %vm6670_vm3, %v13977_v21, 0.0  ;;  %v13919_v3 = vsub.f32 %v25034_v51, %v25296_v31 }
 0x7d2   :  { %v14066_v21 = vsel %vm6670_vm3, %v13980_v50, 0.0 }
 0x7d3   :  { %v14053_v8 = vadd.f32 %v14052_v38, %v14051_v41  ;;  %v13979_v38 = vmul.f32 %v13915_v42, %v13915_v42  ;;  %v14062_v36 = vsel %vm6670_vm3, %v13978_v28, 0.0  ;;  %v13920_v42 = vsub.f32 %v25032_v12, %v25296_v31 }
 0x7d4   :  { %v13983_v33 = vmul.f32 %v13919_v3, %v13919_v3  ;;  %v13924_v3 = vsub.f32 %v25064_v18, %v25296_v31 }
 0x7d5   :  { %v14055_v30 = vadd.f32 %v14054_v46, %v14053_v8  ;;  %v26959_v46 = vld [vmem:[#allocation77_spill] sm:$0xff]  ;;  %v14064_v19 = vsel %vm6670_vm3, %v13979_v38, 0.0  ;;  %v13984_v43 = vmul.f32 %v13920_v42, %v13920_v42 }
 0x7d6   :  { %v13918_v14 = vsub.f32 %v26959_v46, %v25296_v31  ;;  %v14072_v50 = vsel %vm6670_vm3, %v13983_v33, 0.0 }
 0x7d7   :  { %v14057_v54 = vadd.f32 %v14056_v37, %v14055_v30  ;;  %v13981_v37 = vmul.f32 %v13917_v34, %v13917_v34 }
 0x7d9   :  { %v14059_v41 = vadd.f32 %v14058_v10, %v14057_v54  ;;  %v13982_v10 = vmul.f32 %v13918_v14, %v13918_v14  ;;  %v14068_v28 = vsel %vm6670_vm3, %v13981_v37, 0.0  ;;  %v13923_v14 = vsub.f32 %v25066_v44, %v25296_v31 }
 0x7da   :  { %v14074_v37 = vsel %vm6670_vm3, %v13984_v43, 0.0  ;;  %v13988_v44 = vmul.f32 %v13924_v3, %v13924_v3 }
 0x7db   :  { %v14061_v8 = vadd.f32 %v14060_v58, %v14059_v41  ;;  %v26960_v58 = vld [vmem:[#allocation78_spill] sm:$0xff]  ;;  %v14070_v38 = vsel %vm6670_vm3, %v13982_v10, 0.0 }
 0x7dc   :  { %v13921_v47 = vsub.f32 %v26960_v58, %v25296_v31 }
 0x7dd   :  { %v14063_v30 = vadd.f32 %v14062_v36, %v14061_v8  ;;  %v26961_v36 = vld [vmem:[#allocation79_spill] sm:$0xff] }
 0x7de   :  { %v13922_v34 = vsub.f32 %v26961_v36, %v25296_v31  ;;  %v13987_v36 = vmul.f32 %v13923_v14, %v13923_v14  ;;  %v13928_v14 = vsub.f32 %v25096_v26, %v25296_v31 }
 0x7df   :  { %v14065_v54 = vadd.f32 %v14064_v19, %v14063_v30  ;;  %v13985_v19 = vmul.f32 %v13921_v47, %v13921_v47 }
 0x7e0   :  { %v14080_v43 = vsel %vm6670_vm3, %v13987_v36, 0.0  ;;  %v13992_v58 = vmul.f32 %v13928_v14, %v13928_v14 }
 0x7e1   :  { %v14067_v41 = vadd.f32 %v14066_v21, %v14065_v54  ;;  %v13986_v21 = vmul.f32 %v13922_v34, %v13922_v34  ;;  %v14076_v10 = vsel %vm6670_vm3, %v13985_v19, 0.0  ;;  %v13927_v34 = vsub.f32 %v25098_v61, %v25296_v31 }
 0x7e2   :  { %v14082_v19 = vsel %vm6670_vm3, %v13988_v44, 0.0 }
 0x7e3   :  { %v14069_v8 = vadd.f32 %v14068_v28, %v14067_v41  ;;  %v26962_v28 = vld [vmem:[#allocation80_spill] sm:$0xff]  ;;  %v14078_v33 = vsel %vm6670_vm3, %v13986_v21, 0.0  ;;  %v13991_v18 = vmul.f32 %v13927_v34, %v13927_v34  ;;  %v13932_v34 = vsub.f32 %v25128_v22, %v25296_v31 }
 0x7e4   :  { %v13925_v42 = vsub.f32 %v26962_v28, %v25296_v31 }
 0x7e5   :  { %v14071_v30 = vadd.f32 %v14070_v38, %v14069_v8  ;;  %v26963_v38 = vld [vmem:[#allocation14_spill] sm:$0xff]  ;;  %v14088_v44 = vsel %vm6670_vm3, %v13991_v18, 0.0  ;;  %v13996_v12 = vmul.f32 %v13932_v34, %v13932_v34 }
 0x7e6   :  { %v13926_v47 = vsub.f32 %v26963_v38, %v25296_v31 }
 0x7e7   :  { %v14073_v54 = vadd.f32 %v14072_v50, %v14071_v30  ;;  %v13989_v50 = vmul.f32 %v13925_v42, %v13925_v42 }
 0x7e9   :  { %v14075_v41 = vadd.f32 %v14074_v37, %v14073_v54  ;;  %v13990_v37 = vmul.f32 %v13926_v47, %v13926_v47  ;;  %v14084_v21 = vsel %vm6670_vm3, %v13989_v50, 0.0  ;;  %v13931_v47 = vsub.f32 %v25130_v57, %v25296_v31 }
 0x7ea   :  { %v14090_v50 = vsel %vm6670_vm3, %v13992_v58, 0.0 }
 0x7eb   :  { %v14077_v8 = vadd.f32 %v14076_v10, %v14075_v41  ;;  %v26964_v10 = vld [vmem:[#allocation84_spill] sm:$0xff]  ;;  %v14086_v36 = vsel %vm6670_vm3, %v13990_v37, 0.0  ;;  %v13995_v62 = vmul.f32 %v13931_v47, %v13931_v47  ;;  %v13936_v47 = vsub.f32 %v25160_v2, %v25296_v31 }
 0x7ec   :  { %v13929_v3 = vsub.f32 %v26964_v10, %v25296_v31 }
 0x7ed   :  { %v14079_v30 = vadd.f32 %v14078_v33, %v14077_v8  ;;  %v26965_v33 = vld [vmem:[#allocation52_spill] sm:$0xff]  ;;  %v14096_v58 = vsel %vm6670_vm3, %v13995_v62, 0.0 }
 0x7ee   :  { %v13930_v42 = vsub.f32 %v26965_v33, %v25296_v31 }
 0x7ef   :  { %v14081_v54 = vadd.f32 %v14080_v43, %v14079_v30  ;;  %v13993_v43 = vmul.f32 %v13929_v3, %v13929_v3 }
 0x7f1   :  { %v14083_v41 = vadd.f32 %v14082_v19, %v14081_v54  ;;  %v13994_v19 = vmul.f32 %v13930_v42, %v13930_v42  ;;  %v14092_v37 = vsel %vm6670_vm3, %v13993_v43, 0.0  ;;  %v14098_v43 = vsel %vm6670_vm3, %v13996_v12, 0.0 }
 0x7f3   :  { %v14085_v8 = vadd.f32 %v14084_v21, %v14083_v41  ;;  %v26966_v21 = vld [vmem:[#allocation15_spill] sm:$0xff]  ;;  %v14094_v18 = vsel %vm6670_vm3, %v13994_v19, 0.0 }
 0x7f4   :  { %v13933_v14 = vsub.f32 %v26966_v21, %v25296_v31 }
 0x7f5   :  { %v14087_v30 = vadd.f32 %v14086_v36, %v14085_v8  ;;  %v26967_v36 = vld [vmem:[#allocation16_spill] sm:$0xff] }
 0x7f6   :  { %v13934_v3 = vsub.f32 %v26967_v36, %v25296_v31  ;;  %v13997_v51 = vmul.f32 %v13933_v14, %v13933_v14  ;;  %v13938_v14 = vsub.f32 %v25174_v13, %v25296_v31 }
 0x7f7   :  { %v14089_v54 = vadd.f32 %v14088_v44, %v14087_v30  ;;  %v26968_v44 = vld [vmem:[#allocation83_spill] sm:$0xff] }
 0x7f8   :  { %v13935_v42 = vsub.f32 %v26968_v44, %v25296_v31  ;;  %v14100_v19 = vsel %vm6670_vm3, %v13997_v51, 0.0 }
 0x7f9   :  { %v14091_v41 = vadd.f32 %v14090_v50, %v14089_v54  ;;  %v13998_v50 = vmul.f32 %v13934_v3, %v13934_v3 }
 0x7fa   :  { %v13999_v46 = vmul.f32 %v13935_v42, %v13935_v42  ;;  %v13940_v42 = vsub.f32 %v25190_v35, %v25296_v31 }
 0x7fb   :  { %v14093_v8 = vadd.f32 %v14092_v37, %v14091_v41  ;;  %v26969_v37 = vld [vmem:[#allocation18_spill] sm:$0xff]  ;;  %v14102_v62 = vsel %vm6670_vm3, %v13998_v50, 0.0 }
 0x7fc   :  { %v13937_v34 = vsub.f32 %v26969_v37, %v25296_v31  ;;  %v14104_v12 = vsel %vm6670_vm3, %v13999_v46, 0.0 }
 0x7fd   :  { %v14095_v30 = vadd.f32 %v14094_v18, %v14093_v8  ;;  %v14000_v18 = vmul.f32 %v13936_v47, %v13936_v47  ;;  %v13941_v47 = vsub.f32 %v25206_v11, %v25296_v31 }
 0x7fe   :  { %v14001_v6 = vmul.f32 %v13937_v34, %v13937_v34  ;;  %v13942_v34 = vsub.f32 %v25202_v48, %v25296_v31 }
 0x7ff   :  { %v14097_v54 = vadd.f32 %v14096_v58, %v14095_v30  ;;  %v26970_v58 = vld [vmem:[#allocation85_spill] sm:$0xff]  ;;  %v14106_v51 = vsel %vm6670_vm3, %v14000_v18, 0.0  ;;  %v14005_v35 = vmul.f32 %v13941_v47, %v13941_v47  ;;  %v13946_v47 = vsub.f32 %v25229_v39, %v25296_v31 }
 0x800   :  { %v13939_v3 = vsub.f32 %v26970_v58, %v25296_v31  ;;  %v14108_v50 = vsel %vm6670_vm3, %v14001_v6, 0.0 }
 0x801   :  { %v14099_v41 = vadd.f32 %v14098_v43, %v14097_v54  ;;  %v14002_v43 = vmul.f32 %v13938_v14, %v13938_v14  ;;  %v14010_v58 = vmul.f32 %v13946_v47, %v13946_v47  ;;  %v13951_v47 = vsub.f32 %v25268_v29, %v25296_v31 }
 0x803   :  { %v14101_v8 = vadd.f32 %v14100_v19, %v14099_v41  ;;  %v14003_v19 = vmul.f32 %v13939_v3, %v13939_v3  ;;  %v14110_v46 = vsel %vm6670_vm3, %v14002_v43, 0.0  ;;  %v13944_v3 = vsub.f32 %v25218_v40, %v25296_v31 }
 0x804   :  { %v14116_v43 = vsel %vm6670_vm3, %v14005_v35, 0.0 }
 0x805   :  { %v14103_v30 = vadd.f32 %v14102_v62, %v14101_v8  ;;  %v14004_v62 = vmul.f32 %v13940_v42, %v13940_v42  ;;  %v14112_v18 = vsel %vm6670_vm3, %v14003_v19, 0.0  ;;  %v13945_v42 = vsub.f32 %v25233_v25, %v25296_v31 }
 0x807   :  { %v14105_v54 = vadd.f32 %v14104_v12, %v14103_v30  ;;  %v26971_v12 = vld [vmem:[#allocation88_spill] sm:$0xff]  ;;  %v14114_v6 = vsel %vm6670_vm3, %v14004_v62, 0.0  ;;  %v14009_v5 = vmul.f32 %v13945_v42, %v13945_v42  ;;  %v13950_v42 = vsub.f32 %v25252_v32, %v25296_v31 }
 0x808   :  { %v13943_v14 = vsub.f32 %v26971_v12, %v25296_v31 }
 0x809   :  { %v14107_v41 = vadd.f32 %v14106_v51, %v14105_v54  ;;  %v14006_v51 = vmul.f32 %v13942_v34, %v13942_v34 }
 0x80b   :  { %v14109_v8 = vadd.f32 %v14108_v50, %v14107_v41  ;;  %v14007_v50 = vmul.f32 %v13943_v14, %v13943_v14  ;;  %v14118_v19 = vsel %vm6670_vm3, %v14006_v51, 0.0  ;;  %v14124_v51 = vsel %vm6670_vm3, %v14009_v5, 0.0 }
 0x80d   :  { %v14111_v30 = vadd.f32 %v14110_v46, %v14109_v8  ;;  %v14008_v46 = vmul.f32 %v13944_v3, %v13944_v3  ;;  %v14120_v62 = vsel %vm6670_vm3, %v14007_v50, 0.0  ;;  %v14126_v50 = vsel %vm6670_vm3, %v14010_v58, 0.0 }
 0x80f   :  { %v14113_v54 = vadd.f32 %v14112_v18, %v14111_v30  ;;  %v26972_v18 = vld [vmem:[#allocation19_spill] sm:$0xff]  ;;  %v14122_v35 = vsel %vm6670_vm3, %v14008_v46, 0.0 }
 0x810   :  { %v13947_v34 = vsub.f32 %v26972_v18, %v25296_v31 }
 0x811   :  { %v14115_v41 = vadd.f32 %v14114_v6, %v14113_v54  ;;  %v26973_v6 = vld [vmem:[#allocation20_spill] sm:$0xff] }
 0x812   :  { %v13948_v14 = vsub.f32 %v26973_v6, %v25296_v31  ;;  %v14011_v13 = vmul.f32 %v13947_v34, %v13947_v34  ;;  %v13952_v34 = vsub.f32 %v25266_v17, %v25296_v31 }
 0x813   :  { %v14117_v8 = vadd.f32 %v14116_v43, %v14115_v41  ;;  %v26974_v43 = vld [vmem:[#allocation87_spill] sm:$0xff] }
 0x814   :  { %v13949_v3 = vsub.f32 %v26974_v43, %v25296_v31  ;;  %v14128_v46 = vsel %vm6670_vm3, %v14011_v13, 0.0 }
 0x815   :  { %v14119_v30 = vadd.f32 %v14118_v19, %v14117_v8  ;;  %v14012_v19 = vmul.f32 %v13948_v14, %v13948_v14  ;;  %v13953_v14 = vsub.f32 %v25277_v24, %v25296_v31 }
 0x817   :  { %v14121_v54 = vadd.f32 %v14120_v62, %v14119_v30  ;;  %v14013_v62 = vmul.f32 %v13949_v3, %v13949_v3  ;;  %v14130_v5 = vsel %vm6670_vm3, %v14012_v19, 0.0  ;;  %v13954_v3 = vsub.f32 %v25283_v16, %v25296_v31 }
 0x819   :  { %v14123_v41 = vadd.f32 %v14122_v35, %v14121_v54  ;;  %v14014_v35 = vmul.f32 %v13950_v42, %v13950_v42  ;;  %v14132_v58 = vsel %vm6670_vm3, %v14013_v62, 0.0  ;;  %v13955_v42 = vsub.f32 %v25285_v0, %v25296_v31 }
 0x81b   :  { %v14125_v8 = vadd.f32 %v14124_v51, %v14123_v41  ;;  %v14015_v51 = vmul.f32 %v13951_v47, %v13951_v47  ;;  %v14134_v13 = vsel %vm6670_vm3, %v14014_v35, 0.0  ;;  %v13956_v47 = vsub.f32 %v25292_v20, %v25296_v31 }
 0x81d   :  { %v14127_v30 = vadd.f32 %v14126_v50, %v14125_v8  ;;  %v14016_v50 = vmul.f32 %v13952_v34, %v13952_v34  ;;  %v14136_v19 = vsel %vm6670_vm3, %v14015_v51, 0.0  ;;  %v14020_v35 = vmul.f32 %v13956_v47, %v13956_v47 }
 0x81f   :  { %v14129_v54 = vadd.f32 %v14128_v46, %v14127_v30  ;;  %v14017_v46 = vmul.f32 %v13953_v14, %v13953_v14  ;;  %v14138_v62 = vsel %vm6670_vm3, %v14016_v50, 0.0  ;;  %v14146_v51 = vsel %vm6670_vm3, %v14020_v35, 0.0 }
 0x821   :  { %v14131_v41 = vadd.f32 %v14130_v5, %v14129_v54  ;;  %v14018_v5 = vmul.f32 %v13954_v3, %v13954_v3  ;;  %v14140_v34 = vsel %vm6670_vm3, %v14017_v46, 0.0  ;;  %v14155_v46 = vld [vmem:[%s25807_s7] sm:$0x1]  ;;  %s18591_s7 = smov [#allocation4]  }
 0x823   :  { %v14133_v8 = vadd.f32 %v14132_v58, %v14131_v41  ;;  %v14019_v58 = vmul.f32 %v13955_v42, %v13955_v42 }
 0x825   :  { %v14135_v30 = vadd.f32 %v14134_v13, %v14133_v8  ;;  %v14142_v8 = vsel %vm6670_vm3, %v14018_v5, 0.0  ;;  %v14144_v14 = vsel %vm6670_vm3, %v14019_v58, 0.0  ;;  %v14159_v5 = vld [vmem:[%s25808_s8] sm:$0x1]  ;;  %s14440_s8 = sshll.u32 %s18591_s7, 4  ;;  %s14441_s8 = int_to_ptr.vmem [resolvable:$true] %s14440_s8 }
 0x826   :  { %s18568_s2 = scalar_lea.vmem %s14441_s8, 512  ;;  %p18573_p1 = scmp.lt.s32.totalorder %s14441_s8, %s14441_s8 }
 0x827   :  { %v14137_v54 = vadd.f32 %v14136_v19, %v14135_v30  ;;  %p18569_p0 = scmp.ne.s32.totalorder %s14441_s8, %s18568_s2  ;;  %p18574_p2 = scmp.lt.s32.totalorder %s18568_s2, %s18568_s2 }
 0x829   :  { %v14139_v41 = vadd.f32 %v14138_v62, %v14137_v54  ;;  %p18575_p3 = por %p18574_p2, %p18573_p1 }
 0x82b   :  { %v14141_v16 = vadd.f32 %v14140_v34, %v14139_v41  ;;  %v26975_v41 = vld [vmem:[#allocation42_spill] sm:$0xff]  ;;  %p18576_p4 = pnand %p18575_p3, %p18569_p0 }
 0x82d   :  { %v14143_v13 = vadd.f32 %v14142_v8, %v14141_v16 }
 0x82f   :  { %v14145_v0 = vadd.f32 %v14144_v14, %v14143_v13 }
 0x831   :  { %v14147_v30 = vadd.f32 %v14146_v51, %v14145_v0 }
 0x833   :  { %v14148_v19 = vrot.slane %v14147_v30, 4 }
 0x835   :  { %v14149_v20 = vadd.f32 %v14148_v19, %v14147_v30 }
 0x837   :  { %v14150_v3 = vrot.slane %v14149_v20, 2 }
 0x839   :  { %v14151_v37 = vadd.f32 %v14150_v3, %v14149_v20 }
 0x83b   :  { %v14152_v50 = vrot.slane %v14151_v37, 1 }
 0x83d   :  { %v14153_v54 = vadd.f32 %v14152_v50, %v14151_v37 }
 0x83f   :  { %v14154_v42 = vmul.f32 0.001953125, %v14153_v54 }
 0x841   :  { %v14156_v62 = vadd.f32 1e-05, %v14154_v42 }
 0x843   :  { %18565 = vrsqrt.f32 %v14156_v62 }
 0x850   :  { %v18566_v16 = vpop.eup %18565 }
 0x851   :  { %v14158_v47 = vmul.f32 %v18566_v16, %v14155_v46 }
 0x853   :  { %v14160_v0 = vmul.f32 %v14158_v47, %v25296_v31  ;;  %v25498_v58 = vrot.slane %v14158_v47, %v26975_v41 }
 0x855   :  { %v14161_v20 = vsub.f32 %v14159_v5, %v14160_v0  ;;  %v14184_v34 = vmul.f32 %v25498_v58, %v26958_v1  ;;  %v14168_v35 = vmul.f32 %v25498_v58, %v24826_v60  ;;  %v14185_v31 = vmul.f32 %v25498_v58, %v24950_v4 }
 0x856   :  { %v14169_v14 = vmul.f32 %v25498_v58, %v24822_v59  ;;  %v14186_v60 = vmul.f32 %v25498_v58, %v24970_v7  ;;  %v14170_v1 = vmul.f32 %v25498_v58, %v24842_v55  ;;  %v14187_v19 = vmul.f32 %v25498_v58, %v24968_v27 }
 0x857   :  { %v25501_v37 = vrot.slane %v14161_v20, %v26975_v41  ;;  %v14171_v4 = vmul.f32 %v25498_v58, %v24840_v15  ;;  %v14188_v50 = vmul.f32 %v25498_v58, %v24986_v23  ;;  %v14172_v54 = vmul.f32 %v25498_v58, %v24858_v56 }
 0x858   :  { %v14189_v7 = vmul.f32 %v25498_v58, %v24982_v52  ;;  %v14173_v55 = vmul.f32 %v25498_v58, %v24854_v53  ;;  %v14190_v27 = vmul.f32 %v25498_v58, %v25002_v49  ;;  %v14174_v15 = vmul.f32 %v25498_v58, %v24874_v45 }
 0x859   :  { %v14254_v8 = vadd.f32 %v25501_v37, %v14184_v34  ;;  %v14238_v13 = vadd.f32 %v25501_v37, %v14168_v35  ;;  %v14255_v51 = vadd.f32 %v25501_v37, %v14185_v31  ;;  %v14239_v30 = vadd.f32 %v25501_v37, %v14169_v14 }
 0x85a   :  { %v14256_v59 = vadd.f32 %v25501_v37, %v14186_v60  ;;  %v14240_v3 = vadd.f32 %v25501_v37, %v14170_v1  ;;  %v14257_v42 = vadd.f32 %v25501_v37, %v14187_v19  ;;  %v14241_v23 = vadd.f32 %v25501_v37, %v14171_v4 }
 0x85b   :  { %14334 = vxpose.xlu1.b32.start [1/16] (narrow) %v14254_v8, 8  ;;  %14302 = vxpose.xlu0.b32.start [1/16] (narrow) %v14238_v13, 8  ;;  %v14258_v56 = vadd.f32 %v25501_v37, %v14188_v50  ;;  %v14242_v62 = vadd.f32 %v25501_v37, %v14172_v54  ;;  %v14259_v52 = vadd.f32 %v25501_v37, %v14189_v7 }
 0x85c   :  { %v14243_v53 = vadd.f32 %v25501_v37, %v14173_v55  ;;  %v14260_v46 = vadd.f32 %v25501_v37, %v14190_v27  ;;  %v14244_v49 = vadd.f32 %v25501_v37, %v14174_v15  ;;  %v14191_v45 = vmul.f32 %v25498_v58, %v25000_v63 }
 0x85d   :  { %v14175_v16 = vmul.f32 %v25498_v58, %v24872_v9  ;;  %v14216_v47 = vmul.f32 %v25498_v58, %v25206_v11  ;;  %v14200_v5 = vmul.f32 %v25498_v58, %v26962_v28  ;;  %v14217_v0 = vmul.f32 %v25498_v58, %v25202_v48 }
 0x85e   :  { %v14201_v41 = vmul.f32 %v25498_v58, %v26963_v38  ;;  %v14218_v20 = vmul.f32 %v25498_v58, %v26971_v12  ;;  %v25560_v63 = vadd.f32 %v25501_v37, %v14191_v45  ;;  %v14202_v34 = vmul.f32 %v25498_v58, %v25098_v61 }
 0x85f   :  { %14335 = vxpose.xlu1.b32.cont [2/16] (narrow) %v14255_v51, 8  ;;  %14303 = vxpose.xlu0.b32.cont [2/16] (narrow) %v14239_v30, 8  ;;  %v25563_v9 = vadd.f32 %v25501_v37, %v14175_v16  ;;  %v25566_v11 = vadd.f32 %v25501_v37, %v14216_v47  ;;  %v25569_v28 = vadd.f32 %v25501_v37, %v14200_v5  ;;  %v26979_v16 = vld [vmem:[#allocation22_spill] sm:$0xff]  ;;  %v26980_v5 = vld [vmem:[#allocation85_spill] sm:$0xff] }
 0x860   :  { %v25572_v48 = vadd.f32 %v25501_v37, %v14217_v0  ;;  %v25575_v38 = vadd.f32 %v25501_v37, %v14201_v41  ;;  %v25578_v12 = vadd.f32 %v25501_v37, %v14218_v20  ;;  %v14219_v35 = vmul.f32 %v25498_v58, %v25218_v40  ;;  %v26981_v41 = vld [vmem:[#allocation89_spill] sm:$0xff] }
 0x861   :  { %v14203_v8 = vmul.f32 %v25498_v58, %v25096_v26  ;;  %v14220_v13 = vmul.f32 %v25498_v58, %v25233_v25  ;;  %v14204_v31 = vmul.f32 %v25498_v58, %v26964_v10  ;;  %v14221_v14 = vmul.f32 %v25498_v58, %v25229_v39 }
 0x862   :  { %v14205_v51 = vmul.f32 %v25498_v58, %v26965_v33  ;;  %v14222_v61 = vmul.f32 %v25498_v58, %v26972_v18  ;;  %v25597_v40 = vadd.f32 %v25501_v37, %v14202_v34  ;;  %v25600_v26 = vadd.f32 %v25501_v37, %v14219_v35  ;;  %v26982_v34 = vld [vmem:[#allocation13_spill] sm:$0xff] }
 0x863   :  { %14336 = vxpose.xlu1.b32.cont [3/16] (narrow) %v14256_v59, 8  ;;  %14304 = vxpose.xlu0.b32.cont [3/16] (narrow) %v14240_v3, 8  ;;  %v25603_v25 = vadd.f32 %v25501_v37, %v14203_v8  ;;  %v25606_v10 = vadd.f32 %v25501_v37, %v14220_v13  ;;  %v25609_v39 = vadd.f32 %v25501_v37, %v14204_v31  ;;  %v26983_v8 = vld [vmem:[#allocation75_spill] sm:$0xff]  ;;  %v26984_v31 = vld [vmem:[#allocation17_spill] sm:$0xff] }
 0x864   :  { %v25612_v33 = vadd.f32 %v25501_v37, %v14221_v14  ;;  %v25615_v18 = vadd.f32 %v25501_v37, %v14205_v51  ;;  %v25618_v30 = vadd.f32 %v25501_v37, %v14222_v61  ;;  %v14206_v60 = vmul.f32 %v25498_v58, %v25130_v57 }
 0x865   :  { %v14223_v1 = vmul.f32 %v25498_v58, %v26973_v6  ;;  %v14207_v19 = vmul.f32 %v25498_v58, %v25128_v22  ;;  %v14224_v4 = vmul.f32 %v25498_v58, %v26974_v43  ;;  %v14208_v59 = vmul.f32 %v25498_v58, %v26966_v21 }
 0x866   :  { %v14225_v3 = vmul.f32 %v25498_v58, %v25252_v32  ;;  %v14209_v50 = vmul.f32 %v25498_v58, %v26967_v36  ;;  %v25635_v57 = vadd.f32 %v25501_v37, %v14206_v60  ;;  %v14226_v54 = vmul.f32 %v25498_v58, %v25268_v29 }
 0x867   :  { %14337 = vxpose.xlu1.b32.cont [4/16] (narrow) %v14257_v42, 8  ;;  %14305 = vxpose.xlu0.b32.cont [4/16] (narrow) %v14241_v23, 8  ;;  %v25638_v6 = vadd.f32 %v25501_v37, %v14223_v1  ;;  %v25641_v22 = vadd.f32 %v25501_v37, %v14207_v19  ;;  %v25644_v43 = vadd.f32 %v25501_v37, %v14224_v4  ;;  %v26976_v42 = vld [vmem:[#allocation18_spill] sm:$0xff] }
 0x868   :  { %v25647_v21 = vadd.f32 %v25501_v37, %v14208_v59  ;;  %v25650_v32 = vadd.f32 %v25501_v37, %v14225_v3  ;;  %v25653_v36 = vadd.f32 %v25501_v37, %v14209_v50  ;;  %v14210_v7 = vmul.f32 %v25498_v58, %v26968_v44  ;;  %v26986_v59 = vld [vmem:[#allocation46_spill] sm:$0xff] }
 0x869   :  { %v14227_v55 = vmul.f32 %v25498_v58, %v25266_v17  ;;  %v14211_v27 = vmul.f32 %v25498_v58, %v25160_v2  ;;  %v14228_v15 = vmul.f32 %v25498_v58, %v25277_v24  ;;  %v14212_v23 = vmul.f32 %v25498_v58, %v26976_v42 }
 0x86a   :  { %v25672_v44 = vadd.f32 %v25501_v37, %v14226_v54  ;;  %v25675_v17 = vadd.f32 %v25501_v37, %v14210_v7  ;;  %v14230_v47 = vmul.f32 %v25498_v58, %v26979_v16  ;;  %v14214_v0 = vmul.f32 %v25498_v58, %v26980_v5  ;;  %v26987_v7 = vld [vmem:[#allocation51_spill] sm:$0xff]  ;;  %v26991_v5 = vld [vmem:[#allocation78_spill] sm:$0xff] }
 0x86b   :  { %14338 = vxpose.xlu1.b32.cont [5/16] (narrow) %v14258_v56, 8  ;;  %14306 = vxpose.xlu0.b32.cont [5/16] (narrow) %v14242_v62, 8  ;;  %v26977_v56 = vld [vmem:[#allocation90_spill] sm:$0xff]  ;;  %v25678_v2 = vadd.f32 %v25501_v37, %v14227_v55  ;;  %v25681_v24 = vadd.f32 %v25501_v37, %v14211_v27  ;;  %v25687_v45 = vadd.f32 %v25501_v37, %v14212_v23  ;;  %v26988_v27 = vld [vmem:[#allocation47_spill] sm:$0xff] }
 0x86c   :  { %v14229_v62 = vmul.f32 %v25498_v58, %v26977_v56  ;;  %v14231_v20 = vmul.f32 %v25498_v58, %v26981_v41  ;;  %v14192_v35 = vmul.f32 %v25498_v58, %v26982_v34  ;;  %v14176_v13 = vmul.f32 %v25498_v58, %v26983_v8  ;;  %v26989_v56 = vld [vmem:[#allocation48_spill] sm:$0xff]  ;;  %v26992_v41 = vld [vmem:[#allocation11_spill] sm:$0xff] }
 0x86d   :  { %v14215_v14 = vmul.f32 %v25498_v58, %v26984_v31  ;;  %v25710_v51 = vadd.f32 %v25501_v37, %v14230_v47  ;;  %v25713_v61 = vadd.f32 %v25501_v37, %v14214_v0  ;;  %v14177_v3 = vmul.f32 %v25498_v58, %v26986_v59  ;;  %v26993_v8 = vld [vmem:[#allocation79_spill] sm:$0xff]  ;;  %v26994_v31 = vld [vmem:[#allocation12_spill] sm:$0xff]  ;;  %v26996_v59 = vld [vmem:[#allocation49_spill] sm:$0xff] }
 0x86e   :  { %v25716_v60 = vadd.f32 %v25501_v37, %v14231_v20  ;;  %v14262_v19 = vadd.f32 %v25501_v37, %v14192_v35  ;;  %v14246_v4 = vadd.f32 %v25501_v37, %v14176_v13  ;;  %v14194_v55 = vmul.f32 %v25498_v58, %v26987_v7  ;;  %v26997_v7 = vld [vmem:[#allocation50_spill] sm:$0xff] }
 0x86f   :  { %14339 = vxpose.xlu1.b32.cont [6/16] (narrow) %v14259_v52, 8  ;;  %14307 = vxpose.xlu0.b32.cont [6/16] (narrow) %v14243_v53, 8  ;;  %v26978_v52 = vld [vmem:[#allocation86_spill] sm:$0xff]  ;;  %v25684_v53 = vadd.f32 %v25501_v37, %v14228_v15  ;;  %v25719_v1 = vadd.f32 %v25501_v37, %v14215_v14  ;;  %v14247_v54 = vadd.f32 %v25501_v37, %v14177_v3 }
 0x870   :  { %v14213_v29 = vmul.f32 %v25498_v58, %v26978_v52  ;;  %v14178_v15 = vmul.f32 %v25498_v58, %v26988_v27  ;;  %v14264_v42 = vadd.f32 %v25501_v37, %v14194_v55  ;;  %v26990_v52 = vld [vmem:[#allocation44_spill] sm:$0xff]  ;;  %v14196_v0 = vmul.f32 %v25498_v58, %v26991_v5  ;;  %v26998_v27 = vld [vmem:[#allocation45_spill] sm:$0xff] }
 0x871   :  { %v14180_v20 = vmul.f32 %v25498_v58, %v26992_v41  ;;  %v14197_v13 = vmul.f32 %v25498_v58, %v26993_v8  ;;  %v14181_v14 = vmul.f32 %v25498_v58, %v26994_v31  ;;  %v14182_v3 = vmul.f32 %v25498_v58, %v26996_v59 }
 0x872   :  { %v14248_v23 = vadd.f32 %v25501_v37, %v14178_v15  ;;  %v14266_v34 = vadd.f32 %v25501_v37, %v14196_v0  ;;  %v14199_v55 = vmul.f32 %v25498_v58, %v26997_v7  ;;  %v14183_v15 = vmul.f32 %v25498_v58, %v26998_v27 }
 0x873   :  { %14340 = vxpose.xlu1.b32.cont [7/16] (narrow) %v14260_v46, 8  ;;  %14308 = vxpose.xlu0.b32.cont [7/16] (narrow) %v14244_v49, 8  ;;  %v25690_v46 = vadd.f32 %v25501_v37, %v14229_v62  ;;  %v25693_v49 = vadd.f32 %v25501_v37, %v14213_v29  ;;  %v14195_v62 = vmul.f32 %v25498_v58, %v26989_v56 }
 0x874   :  { %v14179_v29 = vmul.f32 %v25498_v58, %v26990_v52  ;;  %v14250_v35 = vadd.f32 %v25501_v37, %v14180_v20 }
 0x875   :  { %v14265_v16 = vadd.f32 %v25501_v37, %v14195_v62 }
 0x876   :  { %v14249_v47 = vadd.f32 %v25501_v37, %v14179_v29 }
 0x877   :  { %14341 = vxpose.xlu1.b32.cont [8/16] (narrow) %v25560_v63, 8  ;;  %14309 = vxpose.xlu0.b32.cont [8/16] (narrow) %v25563_v9, 8  ;;  %v26985_v63 = vld [vmem:[#allocation77_spill] sm:$0xff] }
 0x878   :  { %v14193_v9 = vmul.f32 %v25498_v58, %v26985_v63  ;;  %v26995_v63 = vld [vmem:[#allocation53_spill] sm:$0xff] }
 0x87a   :  { %v14263_v50 = vadd.f32 %v25501_v37, %v14193_v9  ;;  %v14198_v9 = vmul.f32 %v25498_v58, %v26995_v63 }
 0x87b   :  { %14342 = vxpose.xlu1.b32.cont [9/16] (narrow) %v14262_v19, 8  ;;  %14310 = vxpose.xlu0.b32.cont [9/16] (narrow) %v14246_v4, 8  ;;  %v14267_v19 = vadd.f32 %v25501_v37, %v14197_v13  ;;  %v14251_v4 = vadd.f32 %v25501_v37, %v14181_v14 }
 0x87f   :  { %14343 = vxpose.xlu1.b32.cont [10/16] (narrow) %v14263_v50, 8  ;;  %14311 = vxpose.xlu0.b32.cont [10/16] (narrow) %v14247_v54, 8  ;;  %v14268_v50 = vadd.f32 %v25501_v37, %v14198_v9  ;;  %v14252_v54 = vadd.f32 %v25501_v37, %v14182_v3 }
 0x883   :  { %14344 = vxpose.xlu1.b32.cont [11/16] (narrow) %v14264_v42, 8  ;;  %14312 = vxpose.xlu0.b32.cont [11/16] (narrow) %v14248_v23, 8  ;;  %v14269_v42 = vadd.f32 %v25501_v37, %v14199_v55  ;;  %v14253_v23 = vadd.f32 %v25501_v37, %v14183_v15 }
 0x887   :  { %14345 = vxpose.xlu1.b32.cont [12/16] (narrow) %v14265_v16, 8  ;;  %14313 = vxpose.xlu0.b32.cont [12/16] (narrow) %v14249_v47, 8 }
 0x88b   :  { %14346 = vxpose.xlu1.b32.cont [13/16] (narrow) %v14266_v34, 8  ;;  %14314 = vxpose.xlu0.b32.cont [13/16] (narrow) %v14250_v35, 8 }
 0x88f   :  { %14347 = vxpose.xlu1.b32.cont [14/16] (narrow) %v14267_v19, 8  ;;  %14315 = vxpose.xlu0.b32.cont [14/16] (narrow) %v14251_v4, 8 }
 0x893   :  { %14348 = vxpose.xlu1.b32.cont [15/16] (narrow) %v14268_v50, 8  ;;  %14316 = vxpose.xlu0.b32.cont [15/16] (narrow) %v14252_v54, 8 }
 0x897   :  { %14349 = vxpose.xlu1.b32.end [16/16] (narrow) %v14269_v42, 8  ;;  %14317 = vxpose.xlu0.b32.end [16/16] (narrow) %v14253_v23, 8 }
 0x89b   :  { %14398 = vxpose.xlu1.b32.start [1/16] (narrow) %v25566_v11, 8  ;;  %14366 = vxpose.xlu0.b32.start [1/16] (narrow) %v25569_v28, 8 }
 0x89f   :  { %14399 = vxpose.xlu1.b32.cont [2/16] (narrow) %v25572_v48, 8  ;;  %14367 = vxpose.xlu0.b32.cont [2/16] (narrow) %v25575_v38, 8 }
 0x8a3   :  { %14400 = vxpose.xlu1.b32.cont [3/16] (narrow) %v25578_v12, 8  ;;  %14368 = vxpose.xlu0.b32.cont [3/16] (narrow) %v25597_v40, 8 }
 0x8a7   :  { %14401 = vxpose.xlu1.b32.cont [4/16] (narrow) %v25600_v26, 8  ;;  %14369 = vxpose.xlu0.b32.cont [4/16] (narrow) %v25603_v25, 8 }
 0x8ab   :  { %14402 = vxpose.xlu1.b32.cont [5/16] (narrow) %v25606_v10, 8  ;;  %14370 = vxpose.xlu0.b32.cont [5/16] (narrow) %v25609_v39, 8 }
 0x8af   :  { %14403 = vxpose.xlu1.b32.cont [6/16] (narrow) %v25612_v33, 8  ;;  %14371 = vxpose.xlu0.b32.cont [6/16] (narrow) %v25615_v18, 8 }
 0x8b3   :  { %14404 = vxpose.xlu1.b32.cont [7/16] (narrow) %v25618_v30, 8  ;;  %14372 = vxpose.xlu0.b32.cont [7/16] (narrow) %v25635_v57, 8 }
 0x8b7   :  { %14405 = vxpose.xlu1.b32.cont [8/16] (narrow) %v25638_v6, 8  ;;  %14373 = vxpose.xlu0.b32.cont [8/16] (narrow) %v25641_v22, 8 }
 0x8bb   :  { %14406 = vxpose.xlu1.b32.cont [9/16] (narrow) %v25644_v43, 8  ;;  %14374 = vxpose.xlu0.b32.cont [9/16] (narrow) %v25647_v21, 8 }
 0x8bf   :  { %14407 = vxpose.xlu1.b32.cont [10/16] (narrow) %v25650_v32, 8  ;;  %14375 = vxpose.xlu0.b32.cont [10/16] (narrow) %v25653_v36, 8 }
 0x8c3   :  { %14408 = vxpose.xlu1.b32.cont [11/16] (narrow) %v25672_v44, 8  ;;  %14376 = vxpose.xlu0.b32.cont [11/16] (narrow) %v25675_v17, 8 }
 0x8c7   :  { %14409 = vxpose.xlu1.b32.cont [12/16] (narrow) %v25678_v2, 8  ;;  %14377 = vxpose.xlu0.b32.cont [12/16] (narrow) %v25681_v24, 8 }
 0x8cb   :  { %14410 = vxpose.xlu1.b32.cont [13/16] (narrow) %v25684_v53, 8  ;;  %14378 = vxpose.xlu0.b32.cont [13/16] (narrow) %v25687_v45, 8 }
 0x8cf   :  { %14411 = vxpose.xlu1.b32.cont [14/16] (narrow) %v25690_v46, 8  ;;  %14379 = vxpose.xlu0.b32.cont [14/16] (narrow) %v25693_v49, 8 }
 0x8d3   :  { %14412 = vxpose.xlu1.b32.cont [15/16] (narrow) %v25710_v51, 8  ;;  %14380 = vxpose.xlu0.b32.cont [15/16] (narrow) %v25713_v61, 8 }
 0x8d7   :  { %14413 = vxpose.xlu1.b32.end [16/16] (narrow) %v25716_v60, 8  ;;  %14381 = vxpose.xlu0.b32.end [16/16] (narrow) %v25719_v1, 8  ;;  %v14350_v58 = vpop.trf.xlu1  ;;  %v14318_v37 = vpop.trf.xlu0 }
 0x8d8   :  { %14431 = vst [vmem:[#allocation4 + $0x8] sm:$0xff] %v14350_v58  ;;  %14430 = vst [vmem:[#allocation4] sm:$0xff] %v14318_v37 }
 0x917   :  { %v14414_v11 = vpop.trf.xlu1  ;;  %v14382_v28 = vpop.trf.xlu0 }
 0x918   :  { %14433 = vst [vmem:[#allocation4 + $0x18] sm:$0xff] %v14414_v11  ;;  %14432 = vst [vmem:[#allocation4 + $0x10] sm:$0xff] %v14382_v28 }
 0x919   :  { %18579 = shalt.err (!%p18576_p4)
}
 0x91a   :  { %14443 = dma.vmem_to_hbm [thread:$0]  %s14441_s8, 512, %s25809_s9, [#allocation5]  }
 0x91b   :  { %18588 = dma.done.wait [#allocation5], 512  }
 0x91c   :  { %18589 = vsyncadd [#allocation5], 4294966784 }
 0x91d   :  { %14447 = vsyncpa [#allocation5], 1 }

</bundles_post_ra>
